<compile_context>
chip_gen: v7x
topology: tpu7x:2x2x1
jax: 0.10.0
libtpu: 0.0.40
codegen_flags: <defaults>
</compile_context>

<pallas_src>
import functools
import math

import jax
import jax.numpy as jnp
from jax.experimental import pallas as pl
from jax.experimental.pallas import tpu as pltpu


# --------------------------------------------------------------------------
# Fused kernel: one batch element per grid step
# --------------------------------------------------------------------------
def _fused_attn_kernel(x_ref, wqkv_ref, bqkv_ref, wproj_ref, bproj_ref,
                       o_ref, y_ref, *, n_head):
    """Refs:
      x_ref    : (1, T, C)  bf16 activations for this batch element
      wqkv_ref : (C, 3C)    bf16 c_attn weight (q columns pre-scaled by 1/sqrt(D))
      bqkv_ref : (1, 3C)    f32  c_attn bias   (q part pre-scaled)
      wproj_ref: (C, C)     bf16 c_proj weight
      bproj_ref: (1, C)     f32  c_proj bias
      o_ref    : (1, T, C)  f32  output
      y_ref    : (T, C)     bf16 VMEM scratch: merged head outputs
    """
    T = x_ref.shape[1]
    C = x_ref.shape[2]
    D = C // n_head

    # ---- c_attn: (T, C) @ (C, 3C) + bias, f32 accumulation on the MXU ------
    qkv = jnp.dot(x_ref[0], wqkv_ref[...],
                  preferred_element_type=jnp.float32) + bqkv_ref[...]
    qkv = qkv.astype(jnp.bfloat16)                          # (T, 3C) MXU operand

    # Causal mask, hoisted out of the head loop.
    row = jax.lax.broadcasted_iota(jnp.int32, (T, T), 0)
    col = jax.lax.broadcasted_iota(jnp.int32, (T, T), 1)
    causal = col <= row

    # ---- per-head attention; each head's result stored immediately ---------
    for h in range(n_head):                                 # small static unroll
        q_h = qkv[:, h * D:(h + 1) * D]                     # (T, D), pre-scaled
        k_h = qkv[:, C + h * D:C + (h + 1) * D]             # (T, D)
        v_h = qkv[:, 2 * C + h * D:2 * C + (h + 1) * D]     # (T, D)

        # QK^T: contract over D directly (no explicit transpose).
        s = jax.lax.dot_general(
            q_h, k_h, (((1,), (1,)), ((), ())),
            preferred_element_type=jnp.float32)             # (T, T) f32
        s = jnp.where(causal, s, -jnp.inf)

        # Stable softmax; the causal diagonal is never masked, so every row
        # has at least one finite entry (l > 0).
        m = jnp.max(s, axis=-1, keepdims=True)
        p = jnp.exp(s - m)
        l = jnp.sum(p, axis=-1, keepdims=True)

        y_h = jnp.dot(p.astype(jnp.bfloat16), v_h,
                      preferred_element_type=jnp.float32)   # (T, D) f32
        y_h = y_h * pl.reciprocal(l, approx=True)           # EUP divide

        # Per-head store: bounds live ranges, no concat, no vreg spills.
        y_ref[:, h * D:(h + 1) * D] = y_h.astype(jnp.bfloat16)

    # ---- c_proj: (T, C) @ (C, C) + bias ------------------------------------
    o_ref[0] = (jnp.dot(y_ref[...], wproj_ref[...],
                        preferred_element_type=jnp.float32)
                + bproj_ref[...]).astype(o_ref.dtype)


def causal_self_attention(x, dev_params, n_head):
    """Forward pass of CausalSelfAttention (eval mode)."""
    B, T, C = x.shape
    assert C % n_head == 0
    # Full-extent blocks below require (8, 128)-friendly trailing dims.
    assert T % 8 == 0 and C % 128 == 0

    w_qkv = dev_params["w_attn"]     # (C, 3C) bf16, q columns pre-scaled
    b_qkv = dev_params["b_attn"]     # (1, 3C) f32
    w_proj = dev_params["w_proj"]    # (C, C)  bf16
    b_proj = dev_params["b_proj"]    # (1, C)  f32

    kernel = functools.partial(_fused_attn_kernel, n_head=n_head)
    return pl.pallas_call(
        kernel,
        out_shape=jax.ShapeDtypeStruct((B, T, C), jnp.float32),
        grid=(B,),
        in_specs=[
            pl.BlockSpec((1, T, C), lambda b: (b, 0, 0)),     # x (per batch)
            pl.BlockSpec((C, 3 * C), lambda b: (0, 0)),       # w_attn resident
            pl.BlockSpec((1, 3 * C), lambda b: (0, 0)),       # b_attn resident
            pl.BlockSpec((C, C), lambda b: (0, 0)),           # w_proj resident
            pl.BlockSpec((1, C), lambda b: (0, 0)),           # b_proj resident
        ],
        out_specs=pl.BlockSpec((1, T, C), lambda b: (b, 0, 0)),
        scratch_shapes=[pltpu.VMEM((T, C), jnp.bfloat16)],
        compiler_params=pltpu.CompilerParams(
            dimension_semantics=("parallel",)),   # B=2 splits both v7x cores
    )(x.astype(jnp.bfloat16), w_qkv, b_qkv, w_proj, b_proj)


# --------------------------------------------------------------------------
# Parameters
# --------------------------------------------------------------------------
def init_params(key, n_embd):
    k1, k2, k3, k4 = jax.random.split(key, 4)
    bound = 1.0 / math.sqrt(n_embd)
    # weights stored as (in_features, out_features) == PyTorch W.T
    return {
        "w_attn": jax.random.uniform(k1, (n_embd, 3 * n_embd), jnp.float32,
                                     -bound, bound),
        "b_attn": jax.random.uniform(k2, (3 * n_embd,), jnp.float32,
                                     -bound, bound),
        "w_proj": jax.random.uniform(k3, (n_embd, n_embd), jnp.float32,
                                     -bound, bound),
        "b_proj": jax.random.uniform(k4, (n_embd,), jnp.float32,
                                     -bound, bound),
    }


def prepare_device_params(params, n_head):
    """f32 training params -> kernel layout:
       * weights bf16 (halves HBM traffic, bf16-native MXU),
       * 1/sqrt(D) folded into the q columns of c_attn (exact: power of two),
       * biases f32, reshaped to (1, N) row vectors."""
    C = params["w_proj"].shape[0]
    D = C // n_head
    scale = 1.0 / math.sqrt(D)
    col_scale = jnp.concatenate(
        [jnp.full((C,), scale, jnp.float32), jnp.ones((2 * C,), jnp.float32)])
    return {
        "w_attn": (params["w_attn"] * col_scale[None, :]).astype(jnp.bfloat16),
        "b_attn": (params["b_attn"] * col_scale).astype(jnp.float32)
                  .reshape(1, 3 * C),
        "w_proj": params["w_proj"].astype(jnp.bfloat16),
        "b_proj": params["b_proj"].astype(jnp.float32).reshape(1, C),
    }


# --------------------------------------------------------------------------
# Pure-JAX reference (mirrors the PyTorch forward, eval mode)
# --------------------------------------------------------------------------
def reference_forward(x, params, n_head):
    B, T, C = x.shape
    D = C // n_head
    qkv = x.reshape(B * T, C) @ params["w_attn"] + params["b_attn"]
    q, k, v = jnp.split(qkv.reshape(B, T, 3 * C), 3, axis=2)
    q = q.reshape(B, T, n_head, D).transpose(0, 2, 1, 3)
    k = k.reshape(B, T, n_head, D).transpose(0, 2, 1, 3)
    v = v.reshape(B, T, n_head, D).transpose(0, 2, 1, 3)
    s = jnp.einsum("bhqd,bhkd->bhqk", q, k) / math.sqrt(D)
    mask = jnp.tril(jnp.ones((T, T), bool))
    s = jnp.where(mask[None, None], s, -jnp.inf)
    p = jax.nn.softmax(s, axis=-1)
    y = jnp.einsum("bhqk,bhkd->bhqd", p, v)
    y = y.transpose(0, 2, 1, 3).reshape(B * T, C)
    out = y @ params["w_proj"] + params["b_proj"]
    return out.reshape(B, T, C)


if __name__ == "__main__":
    # Shapes consistent with the module: block_size=128, n_embd=384, n_head=6.
    B, T, n_embd, n_head = 2, 128, 384, 6

    key = jax.random.PRNGKey(0)
    kx, kp = jax.random.split(key)
    x = jax.random.normal(kx, (B, T, n_embd), jnp.float32)
    params = init_params(kp, n_embd)
    dev_params = prepare_device_params(params, n_head)

    fwd = jax.jit(functools.partial(causal_self_attention, n_head=n_head))
    out = jax.block_until_ready(fwd(x, dev_params))

    ref = reference_forward(x, params, n_head)
    assert out.shape == (B, T, n_embd)
    # bf16 MXU operands with f32 accumulation -> ~1e-3..1e-2 absolute error.
    err = float(jnp.max(jnp.abs(out - ref)))
    assert err < 5e-2, f"max abs error {err}"

    print("KERNEL_OK")
</pallas_src>

<mosaic_0001>
module attributes {stable_mosaic.version = 11 : i64} {
  func.func @_fused_attn_kernel(%arg0: i32, %arg1: memref<1x128x384xbf16, #tpu.memory_space<vmem>>, %arg2: memref<384x1152xbf16, #tpu.memory_space<vmem>>, %arg3: memref<1x1152xf32, #tpu.memory_space<vmem>>, %arg4: memref<384x384xbf16, #tpu.memory_space<vmem>>, %arg5: memref<1x384xf32, #tpu.memory_space<vmem>>, %arg6: memref<1x128x384xf32, #tpu.memory_space<vmem>>, %arg7: memref<128x384xbf16, #tpu.memory_space<vmem>>) attributes {dimension_semantics = [#tpu.dimension_semantics<parallel>], iteration_bounds = array<i64: 2>, scalar_prefetch = 0 : i64, scratch_operands = 1 : i64, tpu.core_type = #tpu.core_type<tc>, window_params = [{transform_indices = @transform_0, window_bounds = array<i64: 1, 128, 384>}, {pipeline_mode = #tpu.pipeline_mode<synchronous>, transform_indices = @transform_1, window_bounds = array<i64: 384, 1152>}, {pipeline_mode = #tpu.pipeline_mode<synchronous>, transform_indices = @transform_2, window_bounds = array<i64: 1, 1152>}, {pipeline_mode = #tpu.pipeline_mode<synchronous>, transform_indices = @transform_3, window_bounds = array<i64: 384, 384>}, {pipeline_mode = #tpu.pipeline_mode<synchronous>, transform_indices = @transform_4, window_bounds = array<i64: 1, 384>}, {transform_indices = @transform_5, window_bounds = array<i64: 1, 128, 384>}]} {
    %c0 = arith.constant 0 : index
    %c0_0 = arith.constant 0 : index
    %c0_1 = arith.constant 0 : index
    %0 = vector.load %arg1[%c0, %c0_0, %c0_1] : memref<1x128x384xbf16, #tpu.memory_space<vmem>>, vector<1x128x384xbf16>
    %1 = vector.shape_cast %0 : vector<1x128x384xbf16> to vector<128x384xbf16>
    %c0_2 = arith.constant 0 : index
    %c0_3 = arith.constant 0 : index
    %2 = vector.load %arg2[%c0_2, %c0_3] : memref<384x1152xbf16, #tpu.memory_space<vmem>>, vector<384x1152xbf16>
    %cst = arith.constant dense<0.000000e+00> : vector<128x1152xf32>
    %3 = tpu.matmul %1, %2, %cst {dimension_numbers = #tpu.dot_dimension_numbers<[1], [0], [0], [1], [0, 0, 1, 1], [], []>} : vector<128x384xbf16>, vector<384x1152xbf16>, vector<128x1152xf32> -> vector<128x1152xf32>
    %c0_4 = arith.constant 0 : index
    %c0_5 = arith.constant 0 : index
    %4 = vector.load %arg3[%c0_4, %c0_5] : memref<1x1152xf32, #tpu.memory_space<vmem>>, vector<1x1152xf32>
    %5 = vector.broadcast %4 : vector<1x1152xf32> to vector<128x1152xf32>
    %6 = arith.addf %3, %5 : vector<128x1152xf32>
    %7 = arith.truncf %6 : vector<128x1152xf32> to vector<128x1152xbf16>
    %8 = tpu.iota {dimensions = array<i32: 0>} : vector<128x128xi32>
    %9 = tpu.iota {dimensions = array<i32: 1>} : vector<128x128xi32>
    %10 = arith.cmpi sle, %9, %8 : vector<128x128xi32>
    %11 = vector.extract_strided_slice %7 {offsets = [0, 0], sizes = [128, 64], strides = [1, 1]} : vector<128x1152xbf16> to vector<128x64xbf16>
    %12 = vector.extract_strided_slice %7 {offsets = [0, 384], sizes = [128, 64], strides = [1, 1]} : vector<128x1152xbf16> to vector<128x64xbf16>
    %13 = vector.extract_strided_slice %7 {offsets = [0, 768], sizes = [128, 64], strides = [1, 1]} : vector<128x1152xbf16> to vector<128x64xbf16>
    %cst_6 = arith.constant dense<0.000000e+00> : vector<128x128xf32>
    %14 = tpu.matmul %11, %12, %cst_6 {dimension_numbers = #tpu.dot_dimension_numbers<[1], [1], [0], [0], [0, 0, 1, 0], [], []>} : vector<128x64xbf16>, vector<128x64xbf16>, vector<128x128xf32> -> vector<128x128xf32>
    %cst_7 = arith.constant 0xFF800000 : f32
    %15 = vector.broadcast %cst_7 : f32 to vector<128x128xf32>
    %16 = arith.select %10, %14, %15 : vector<128x128xi1>, vector<128x128xf32>
    %cst_8 = arith.constant dense<0xFF800000> : vector<128xf32>
    %17 = vector.multi_reduction <maximumf>, %16, %cst_8 [1] : vector<128x128xf32> to vector<128xf32>
    %18 = vector.shape_cast %17 : vector<128xf32> to vector<128x1xf32>
    %19 = vector.broadcast %18 : vector<128x1xf32> to vector<128x128xf32>
    %20 = arith.subf %16, %19 : vector<128x128xf32>
    %21 = math.exp %20 : vector<128x128xf32>
    %cst_9 = arith.constant dense<0.000000e+00> : vector<128xf32>
    %22 = vector.multi_reduction <add>, %21, %cst_9 [1] : vector<128x128xf32> to vector<128xf32>
    %23 = vector.shape_cast %22 : vector<128xf32> to vector<128x1xf32>
    %24 = arith.truncf %21 : vector<128x128xf32> to vector<128x128xbf16>
    %cst_10 = arith.constant dense<0.000000e+00> : vector<128x64xf32>
    %25 = tpu.matmul %24, %13, %cst_10 {dimension_numbers = #tpu.dot_dimension_numbers<[1], [0], [0], [1], [0, 0, 1, 1], [], []>} : vector<128x128xbf16>, vector<128x64xbf16>, vector<128x64xf32> -> vector<128x64xf32>
    %26 = tpu.reciprocal %23 {approx = true} : vector<128x1xf32> -> vector<128x1xf32>
    %27 = vector.broadcast %26 : vector<128x1xf32> to vector<128x64xf32>
    %28 = arith.mulf %25, %27 : vector<128x64xf32>
    %29 = arith.truncf %28 : vector<128x64xf32> to vector<128x64xbf16>
    %c0_11 = arith.constant 0 : index
    %c0_12 = arith.constant 0 : index
    %30 = vector.load %arg7[%c0_11, %c0_12] : memref<128x384xbf16, #tpu.memory_space<vmem>>, vector<128x64xbf16>
    tpu.vector_store %arg7[%c0_11, %c0_12], %29 {strides = array<i32>} : memref<128x384xbf16, #tpu.memory_space<vmem>>, vector<128x64xbf16>,
    %31 = vector.extract_strided_slice %7 {offsets = [0, 64], sizes = [128, 64], strides = [1, 1]} : vector<128x1152xbf16> to vector<128x64xbf16>
    %32 = vector.extract_strided_slice %7 {offsets = [0, 448], sizes = [128, 64], strides = [1, 1]} : vector<128x1152xbf16> to vector<128x64xbf16>
    %33 = vector.extract_strided_slice %7 {offsets = [0, 832], sizes = [128, 64], strides = [1, 1]} : vector<128x1152xbf16> to vector<128x64xbf16>
    %cst_13 = arith.constant dense<0.000000e+00> : vector<128x128xf32>
    %34 = tpu.matmul %31, %32, %cst_13 {dimension_numbers = #tpu.dot_dimension_numbers<[1], [1], [0], [0], [0, 0, 1, 0], [], []>} : vector<128x64xbf16>, vector<128x64xbf16>, vector<128x128xf32> -> vector<128x128xf32>
    %cst_14 = arith.constant 0xFF800000 : f32
    %35 = vector.broadcast %cst_14 : f32 to vector<128x128xf32>
    %36 = arith.select %10, %34, %35 : vector<128x128xi1>, vector<128x128xf32>
    %cst_15 = arith.constant dense<0xFF800000> : vector<128xf32>
    %37 = vector.multi_reduction <maximumf>, %36, %cst_15 [1] : vector<128x128xf32> to vector<128xf32>
    %38 = vector.shape_cast %37 : vector<128xf32> to vector<128x1xf32>
    %39 = vector.broadcast %38 : vector<128x1xf32> to vector<128x128xf32>
    %40 = arith.subf %36, %39 : vector<128x128xf32>
    %41 = math.exp %40 : vector<128x128xf32>
    %cst_16 = arith.constant dense<0.000000e+00> : vector<128xf32>
    %42 = vector.multi_reduction <add>, %41, %cst_16 [1] : vector<128x128xf32> to vector<128xf32>
    %43 = vector.shape_cast %42 : vector<128xf32> to vector<128x1xf32>
    %44 = arith.truncf %41 : vector<128x128xf32> to vector<128x128xbf16>
    %cst_17 = arith.constant dense<0.000000e+00> : vector<128x64xf32>
    %45 = tpu.matmul %44, %33, %cst_17 {dimension_numbers = #tpu.dot_dimension_numbers<[1], [0], [0], [1], [0, 0, 1, 1], [], []>} : vector<128x128xbf16>, vector<128x64xbf16>, vector<128x64xf32> -> vector<128x64xf32>
    %46 = tpu.reciprocal %43 {approx = true} : vector<128x1xf32> -> vector<128x1xf32>
    %47 = vector.broadcast %46 : vector<128x1xf32> to vector<128x64xf32>
    %48 = arith.mulf %45, %47 : vector<128x64xf32>
    %49 = arith.truncf %48 : vector<128x64xf32> to vector<128x64xbf16>
    %c0_18 = arith.constant 0 : index
    %c64 = arith.constant 64 : index
    %50 = vector.load %arg7[%c0_18, %c64] : memref<128x384xbf16, #tpu.memory_space<vmem>>, vector<128x64xbf16>
    tpu.vector_store %arg7[%c0_18, %c64], %49 {strides = array<i32>} : memref<128x384xbf16, #tpu.memory_space<vmem>>, vector<128x64xbf16>,
    %51 = vector.extract_strided_slice %7 {offsets = [0, 128], sizes = [128, 64], strides = [1, 1]} : vector<128x1152xbf16> to vector<128x64xbf16>
    %52 = vector.extract_strided_slice %7 {offsets = [0, 512], sizes = [128, 64], strides = [1, 1]} : vector<128x1152xbf16> to vector<128x64xbf16>
    %53 = vector.extract_strided_slice %7 {offsets = [0, 896], sizes = [128, 64], strides = [1, 1]} : vector<128x1152xbf16> to vector<128x64xbf16>
    %cst_19 = arith.constant dense<0.000000e+00> : vector<128x128xf32>
    %54 = tpu.matmul %51, %52, %cst_19 {dimension_numbers = #tpu.dot_dimension_numbers<[1], [1], [0], [0], [0, 0, 1, 0], [], []>} : vector<128x64xbf16>, vector<128x64xbf16>, vector<128x128xf32> -> vector<128x128xf32>
    %cst_20 = arith.constant 0xFF800000 : f32
    %55 = vector.broadcast %cst_20 : f32 to vector<128x128xf32>
    %56 = arith.select %10, %54, %55 : vector<128x128xi1>, vector<128x128xf32>
    %cst_21 = arith.constant dense<0xFF800000> : vector<128xf32>
    %57 = vector.multi_reduction <maximumf>, %56, %cst_21 [1] : vector<128x128xf32> to vector<128xf32>
    %58 = vector.shape_cast %57 : vector<128xf32> to vector<128x1xf32>
    %59 = vector.broadcast %58 : vector<128x1xf32> to vector<128x128xf32>
    %60 = arith.subf %56, %59 : vector<128x128xf32>
    %61 = math.exp %60 : vector<128x128xf32>
    %cst_22 = arith.constant dense<0.000000e+00> : vector<128xf32>
    %62 = vector.multi_reduction <add>, %61, %cst_22 [1] : vector<128x128xf32> to vector<128xf32>
    %63 = vector.shape_cast %62 : vector<128xf32> to vector<128x1xf32>
    %64 = arith.truncf %61 : vector<128x128xf32> to vector<128x128xbf16>
    %cst_23 = arith.constant dense<0.000000e+00> : vector<128x64xf32>
    %65 = tpu.matmul %64, %53, %cst_23 {dimension_numbers = #tpu.dot_dimension_numbers<[1], [0], [0], [1], [0, 0, 1, 1], [], []>} : vector<128x128xbf16>, vector<128x64xbf16>, vector<128x64xf32> -> vector<128x64xf32>
    %66 = tpu.reciprocal %63 {approx = true} : vector<128x1xf32> -> vector<128x1xf32>
    %67 = vector.broadcast %66 : vector<128x1xf32> to vector<128x64xf32>
    %68 = arith.mulf %65, %67 : vector<128x64xf32>
    %69 = arith.truncf %68 : vector<128x64xf32> to vector<128x64xbf16>
    %c0_24 = arith.constant 0 : index
    %c128 = arith.constant 128 : index
    %70 = vector.load %arg7[%c0_24, %c128] : memref<128x384xbf16, #tpu.memory_space<vmem>>, vector<128x64xbf16>
    tpu.vector_store %arg7[%c0_24, %c128], %69 {strides = array<i32>} : memref<128x384xbf16, #tpu.memory_space<vmem>>, vector<128x64xbf16>,
    %71 = vector.extract_strided_slice %7 {offsets = [0, 192], sizes = [128, 64], strides = [1, 1]} : vector<128x1152xbf16> to vector<128x64xbf16>
    %72 = vector.extract_strided_slice %7 {offsets = [0, 576], sizes = [128, 64], strides = [1, 1]} : vector<128x1152xbf16> to vector<128x64xbf16>
    %73 = vector.extract_strided_slice %7 {offsets = [0, 960], sizes = [128, 64], strides = [1, 1]} : vector<128x1152xbf16> to vector<128x64xbf16>
    %cst_25 = arith.constant dense<0.000000e+00> : vector<128x128xf32>
    %74 = tpu.matmul %71, %72, %cst_25 {dimension_numbers = #tpu.dot_dimension_numbers<[1], [1], [0], [0], [0, 0, 1, 0], [], []>} : vector<128x64xbf16>, vector<128x64xbf16>, vector<128x128xf32> -> vector<128x128xf32>
    %cst_26 = arith.constant 0xFF800000 : f32
    %75 = vector.broadcast %cst_26 : f32 to vector<128x128xf32>
    %76 = arith.select %10, %74, %75 : vector<128x128xi1>, vector<128x128xf32>
    %cst_27 = arith.constant dense<0xFF800000> : vector<128xf32>
    %77 = vector.multi_reduction <maximumf>, %76, %cst_27 [1] : vector<128x128xf32> to vector<128xf32>
    %78 = vector.shape_cast %77 : vector<128xf32> to vector<128x1xf32>
    %79 = vector.broadcast %78 : vector<128x1xf32> to vector<128x128xf32>
    %80 = arith.subf %76, %79 : vector<128x128xf32>
    %81 = math.exp %80 : vector<128x128xf32>
    %cst_28 = arith.constant dense<0.000000e+00> : vector<128xf32>
    %82 = vector.multi_reduction <add>, %81, %cst_28 [1] : vector<128x128xf32> to vector<128xf32>
    %83 = vector.shape_cast %82 : vector<128xf32> to vector<128x1xf32>
    %84 = arith.truncf %81 : vector<128x128xf32> to vector<128x128xbf16>
    %cst_29 = arith.constant dense<0.000000e+00> : vector<128x64xf32>
    %85 = tpu.matmul %84, %73, %cst_29 {dimension_numbers = #tpu.dot_dimension_numbers<[1], [0], [0], [1], [0, 0, 1, 1], [], []>} : vector<128x128xbf16>, vector<128x64xbf16>, vector<128x64xf32> -> vector<128x64xf32>
    %86 = tpu.reciprocal %83 {approx = true} : vector<128x1xf32> -> vector<128x1xf32>
    %87 = vector.broadcast %86 : vector<128x1xf32> to vector<128x64xf32>
    %88 = arith.mulf %85, %87 : vector<128x64xf32>
    %89 = arith.truncf %88 : vector<128x64xf32> to vector<128x64xbf16>
    %c0_30 = arith.constant 0 : index
    %c192 = arith.constant 192 : index
    %90 = vector.load %arg7[%c0_30, %c192] : memref<128x384xbf16, #tpu.memory_space<vmem>>, vector<128x64xbf16>
    tpu.vector_store %arg7[%c0_30, %c192], %89 {strides = array<i32>} : memref<128x384xbf16, #tpu.memory_space<vmem>>, vector<128x64xbf16>,
    %91 = vector.extract_strided_slice %7 {offsets = [0, 256], sizes = [128, 64], strides = [1, 1]} : vector<128x1152xbf16> to vector<128x64xbf16>
    %92 = vector.extract_strided_slice %7 {offsets = [0, 640], sizes = [128, 64], strides = [1, 1]} : vector<128x1152xbf16> to vector<128x64xbf16>
    %93 = vector.extract_strided_slice %7 {offsets = [0, 1024], sizes = [128, 64], strides = [1, 1]} : vector<128x1152xbf16> to vector<128x64xbf16>
    %cst_31 = arith.constant dense<0.000000e+00> : vector<128x128xf32>
    %94 = tpu.matmul %91, %92, %cst_31 {dimension_numbers = #tpu.dot_dimension_numbers<[1], [1], [0], [0], [0, 0, 1, 0], [], []>} : vector<128x64xbf16>, vector<128x64xbf16>, vector<128x128xf32> -> vector<128x128xf32>
    %cst_32 = arith.constant 0xFF800000 : f32
    %95 = vector.broadcast %cst_32 : f32 to vector<128x128xf32>
    %96 = arith.select %10, %94, %95 : vector<128x128xi1>, vector<128x128xf32>
    %cst_33 = arith.constant dense<0xFF800000> : vector<128xf32>
    %97 = vector.multi_reduction <maximumf>, %96, %cst_33 [1] : vector<128x128xf32> to vector<128xf32>
    %98 = vector.shape_cast %97 : vector<128xf32> to vector<128x1xf32>
    %99 = vector.broadcast %98 : vector<128x1xf32> to vector<128x128xf32>
    %100 = arith.subf %96, %99 : vector<128x128xf32>
    %101 = math.exp %100 : vector<128x128xf32>
    %cst_34 = arith.constant dense<0.000000e+00> : vector<128xf32>
    %102 = vector.multi_reduction <add>, %101, %cst_34 [1] : vector<128x128xf32> to vector<128xf32>
    %103 = vector.shape_cast %102 : vector<128xf32> to vector<128x1xf32>
    %104 = arith.truncf %101 : vector<128x128xf32> to vector<128x128xbf16>
    %cst_35 = arith.constant dense<0.000000e+00> : vector<128x64xf32>
    %105 = tpu.matmul %104, %93, %cst_35 {dimension_numbers = #tpu.dot_dimension_numbers<[1], [0], [0], [1], [0, 0, 1, 1], [], []>} : vector<128x128xbf16>, vector<128x64xbf16>, vector<128x64xf32> -> vector<128x64xf32>
    %106 = tpu.reciprocal %103 {approx = true} : vector<128x1xf32> -> vector<128x1xf32>
    %107 = vector.broadcast %106 : vector<128x1xf32> to vector<128x64xf32>
    %108 = arith.mulf %105, %107 : vector<128x64xf32>
    %109 = arith.truncf %108 : vector<128x64xf32> to vector<128x64xbf16>
    %c0_36 = arith.constant 0 : index
    %c256 = arith.constant 256 : index
    %110 = vector.load %arg7[%c0_36, %c256] : memref<128x384xbf16, #tpu.memory_space<vmem>>, vector<128x64xbf16>
    tpu.vector_store %arg7[%c0_36, %c256], %109 {strides = array<i32>} : memref<128x384xbf16, #tpu.memory_space<vmem>>, vector<128x64xbf16>,
    %111 = vector.extract_strided_slice %7 {offsets = [0, 320], sizes = [128, 64], strides = [1, 1]} : vector<128x1152xbf16> to vector<128x64xbf16>
    %112 = vector.extract_strided_slice %7 {offsets = [0, 704], sizes = [128, 64], strides = [1, 1]} : vector<128x1152xbf16> to vector<128x64xbf16>
    %113 = vector.extract_strided_slice %7 {offsets = [0, 1088], sizes = [128, 64], strides = [1, 1]} : vector<128x1152xbf16> to vector<128x64xbf16>
    %cst_37 = arith.constant dense<0.000000e+00> : vector<128x128xf32>
    %114 = tpu.matmul %111, %112, %cst_37 {dimension_numbers = #tpu.dot_dimension_numbers<[1], [1], [0], [0], [0, 0, 1, 0], [], []>} : vector<128x64xbf16>, vector<128x64xbf16>, vector<128x128xf32> -> vector<128x128xf32>
    %cst_38 = arith.constant 0xFF800000 : f32
    %115 = vector.broadcast %cst_38 : f32 to vector<128x128xf32>
    %116 = arith.select %10, %114, %115 : vector<128x128xi1>, vector<128x128xf32>
    %cst_39 = arith.constant dense<0xFF800000> : vector<128xf32>
    %117 = vector.multi_reduction <maximumf>, %116, %cst_39 [1] : vector<128x128xf32> to vector<128xf32>
    %118 = vector.shape_cast %117 : vector<128xf32> to vector<128x1xf32>
    %119 = vector.broadcast %118 : vector<128x1xf32> to vector<128x128xf32>
    %120 = arith.subf %116, %119 : vector<128x128xf32>
    %121 = math.exp %120 : vector<128x128xf32>
    %cst_40 = arith.constant dense<0.000000e+00> : vector<128xf32>
    %122 = vector.multi_reduction <add>, %121, %cst_40 [1] : vector<128x128xf32> to vector<128xf32>
    %123 = vector.shape_cast %122 : vector<128xf32> to vector<128x1xf32>
    %124 = arith.truncf %121 : vector<128x128xf32> to vector<128x128xbf16>
    %cst_41 = arith.constant dense<0.000000e+00> : vector<128x64xf32>
    %125 = tpu.matmul %124, %113, %cst_41 {dimension_numbers = #tpu.dot_dimension_numbers<[1], [0], [0], [1], [0, 0, 1, 1], [], []>} : vector<128x128xbf16>, vector<128x64xbf16>, vector<128x64xf32> -> vector<128x64xf32>
    %126 = tpu.reciprocal %123 {approx = true} : vector<128x1xf32> -> vector<128x1xf32>
    %127 = vector.broadcast %126 : vector<128x1xf32> to vector<128x64xf32>
    %128 = arith.mulf %125, %127 : vector<128x64xf32>
    %129 = arith.truncf %128 : vector<128x64xf32> to vector<128x64xbf16>
    %c0_42 = arith.constant 0 : index
    %c320 = arith.constant 320 : index
    %130 = vector.load %arg7[%c0_42, %c320] : memref<128x384xbf16, #tpu.memory_space<vmem>>, vector<128x64xbf16>
    tpu.vector_store %arg7[%c0_42, %c320], %129 {strides = array<i32>} : memref<128x384xbf16, #tpu.memory_space<vmem>>, vector<128x64xbf16>,
    %c0_43 = arith.constant 0 : index
    %c0_44 = arith.constant 0 : index
    %131 = vector.load %arg7[%c0_43, %c0_44] : memref<128x384xbf16, #tpu.memory_space<vmem>>, vector<128x384xbf16>
    %c0_45 = arith.constant 0 : index
    %c0_46 = arith.constant 0 : index
    %132 = vector.load %arg4[%c0_45, %c0_46] : memref<384x384xbf16, #tpu.memory_space<vmem>>, vector<384x384xbf16>
    %cst_47 = arith.constant dense<0.000000e+00> : vector<128x384xf32>
    %133 = tpu.matmul %131, %132, %cst_47 {dimension_numbers = #tpu.dot_dimension_numbers<[1], [0], [0], [1], [0, 0, 1, 1], [], []>} : vector<128x384xbf16>, vector<384x384xbf16>, vector<128x384xf32> -> vector<128x384xf32>
    %c0_48 = arith.constant 0 : index
    %c0_49 = arith.constant 0 : index
    %134 = vector.load %arg5[%c0_48, %c0_49] : memref<1x384xf32, #tpu.memory_space<vmem>>, vector<1x384xf32>
    %135 = vector.broadcast %134 : vector<1x384xf32> to vector<128x384xf32>
    %136 = arith.addf %133, %135 : vector<128x384xf32>
    %c0_50 = arith.constant 0 : index
    %c0_51 = arith.constant 0 : index
    %c0_52 = arith.constant 0 : index
    %137 = vector.load %arg6[%c0_50, %c0_51, %c0_52] : memref<1x128x384xf32, #tpu.memory_space<vmem>>, vector<1x128x384xf32>
    %138 = vector.shape_cast %137 : vector<1x128x384xf32> to vector<128x384xf32>
    %139 = vector.shape_cast %136 : vector<128x384xf32> to vector<1x128x384xf32>
    tpu.vector_store %arg6[%c0_50, %c0_51, %c0_52], %139 {strides = array<i32>} : memref<1x128x384xf32, #tpu.memory_space<vmem>>, vector<1x128x384xf32>,
    return
  }
  func.func @transform_0(%arg0: i32) -> (i32, i32, i32) {
    %c0_i32 = arith.constant 0 : i32
    %c0_i32_0 = arith.constant 0 : i32
    %c0_i32_1 = arith.constant 0 : i32
    return %arg0, %c0_i32, %c0_i32_0 : i32, i32, i32
  }
  func.func @transform_1(%arg0: i32) -> (i32, i32) {
    %c0_i32 = arith.constant 0 : i32
    %c0_i32_0 = arith.constant 0 : i32
    %c0_i32_1 = arith.constant 0 : i32
    return %c0_i32, %c0_i32_0 : i32, i32
  }
  func.func @transform_2(%arg0: i32) -> (i32, i32) {
    %c0_i32 = arith.constant 0 : i32
    %c0_i32_0 = arith.constant 0 : i32
    %c0_i32_1 = arith.constant 0 : i32
    return %c0_i32, %c0_i32_0 : i32, i32
  }
  func.func @transform_3(%arg0: i32) -> (i32, i32) {
    %c0_i32 = arith.constant 0 : i32
    %c0_i32_0 = arith.constant 0 : i32
    %c0_i32_1 = arith.constant 0 : i32
    return %c0_i32, %c0_i32_0 : i32, i32
  }
  func.func @transform_4(%arg0: i32) -> (i32, i32) {
    %c0_i32 = arith.constant 0 : i32
    %c0_i32_0 = arith.constant 0 : i32
    %c0_i32_1 = arith.constant 0 : i32
    return %c0_i32, %c0_i32_0 : i32, i32
  }
  func.func @transform_5(%arg0: i32) -> (i32, i32, i32) {
    %c0_i32 = arith.constant 0 : i32
    %c0_i32_0 = arith.constant 0 : i32
    %c0_i32_1 = arith.constant 0 : i32
    return %arg0, %c0_i32, %c0_i32_0 : i32, i32, i32
  }
}

</mosaic_0001>

<bundles_post_ra>
// kernel: causal_self_attention.1
= control target key start
LH: loop header
LB: loop body
LE: loop exit
PB: predicated region body
PF: predicated region fallthrough
CT: control target
= control target key end

     0   :  { %10 = vsyncpa [#allocation4], 0  ;;  %s12927_s0 = inlined_call_operand.vmem [shape: bf16[2,128,384], index: 0, kind: input, shape index: {}]   ;;  %s12928_s1 = inlined_call_operand.hbm [shape: bf16[384,1152], index: 1, kind: input, shape index: {}]   ;;  %s12929_s2 = inlined_call_operand.vmem [shape: f32[1,1152], index: 2, kind: input, shape index: {}]   ;;  %s12930_s3 = inlined_call_operand.vmem [shape: bf16[384,384], index: 3, kind: input, shape index: {}]   ;;  %s12931_s4 = inlined_call_operand.vmem [shape: f32[1,384], index: 4, kind: input, shape index: {}]   ;;  %s12932_s5 = inlined_call_operand.hbm [shape: f32[2,128,384], index: 5, kind: output, shape index: {}]  }
   0x1   :  { %11 = vsyncpa [#allocation5], 0 }
   0x2   :  { %13 = vsyncpa [#allocation5 + $0x1], 0  ;;  %s9580_s18 = smov 0   ;;  %s9582_s19 = smov 0  }
   0x3   :  { %s9584_s20 = smov 0   ;;  %s9586_s21 = smov 0  }
   0x4 LB: > { %s9601_s22 = sadd.s32 4294967295, %s9540_s21   ;;  %s6968_s23 = sadd.s32 4294967294, %s9540_s21   ;;  %s9540_s21 = sphi %s9586_s21, %s13652_s21   ;;  %s9536_s20 = sphi %s9584_s20, %s13651_s20   ;;  %s9532_s19 = sphi %s9582_s19, %s13650_s19   ;;  %s9528_s18 = sphi %s9580_s18, %s13649_s18  }
   0x5   : > { %s9605_s24 = sadd.s32 1, %s9540_s21   ;;  %s136_s25 = sadd.s32 1, %s9536_s20 }
   0x6   : > { %s133_s26 = ssub.s32 %s9540_s21, %s9605_s24  ;;  %p146_p0 = scmp.ne.s32.totalorder %s9536_s20, %s9532_s19 }
   0x7   : > { %p134_p1 = scmp.eq.s32.totalorder %s133_s26, 0  ;;  %p147_p2 = scmp.eq.s32.totalorder %s9601_s22, 1 }
   0x8   : > { %p152_p3 = scmp.ne.s32.totalorder %s9532_s19, %s9528_s18  ;;  %p153_p4 = scmp.eq.s32.totalorder %s6968_s23, 1 }
   0x9   : > { %s9616_s27 = scalar_select %p134_p1, %s9536_s20, %s136_s25  }
   0xa   : > { %p9618_p5 = por %p147_p2, %p146_p0  ;;  %p9622_p6 = por %p153_p4, %p152_p3 }
   0xb   : > { %p6969_p7 = scmp.ge.s32.totalorder %s9540_s21, 1  ;;  %p160_p8 = scmp.lt.s32.totalorder %s9540_s21, 3 }
   0xc   : > { %s13083_s28 = scalar_select %p9618_p5, 1, 0 }
   0xd   : > { %s13084_s29 = scalar_select %p9622_p6, 1, 0 }
   0xe   : > { %p12933_p9 = scmp.eq.s32.totalorder %s9601_s22, 0  ;;  %p9629_p10 = pnand %p6969_p7, %p160_p8 }
   0xf   : > { %s9542_s6 = smov [#allocation3]   ;;  %s9446_s11 = scalar_lea.hbm %s12928_s1, 27648 }
  0x10   : > { %s13085_s30 = scalar_select %p9629_p10, 1, 0 }
  0x11   : > { %s172_s7 = sshll.u32 %s9542_s6, 4  ;;  %p8532_p11 = pneg %p9629_p10  ;;  %s173_s7 = int_to_ptr.vmem [resolvable:$true] %s172_s7 }
  0x12   : > { %p9447_p13 = scmp.ne.s32.totalorder %s12928_s1, %s9446_s11  ;;  %p9453_p3 = scmp.lt.u32.totalorder %s9446_s11, %s12928_s1 }
  0x13   : > { %p9637_p12 = pnand %p12933_p9, %p8532_p11 }
  0x15   : > { %p9448_p0 = pneg %p9637_p12 }
  0x17   : > { %p9449_p1 = pnand %p9448_p0, %p9447_p13 }
  0x19   : > { %p9450_p2 = pneg %p9449_p1 }
  0x1b   : > { %p9455_p4 = pnand %p9453_p3, %p9450_p2 }
  0x1d   : > { %9458 = shalt.err (!%p9455_p4)
}
  0x1e   : > { %s9459_s16 = scalar_lea.vmem %s173_s7, 27648  ;;  %p9467_p9 = scmp.lt.s32.totalorder %s173_s7, %s173_s7 }
  0x1f   : > { %p9460_p7 = scmp.ne.s32.totalorder %s173_s7, %s9459_s16  ;;  %p9468_p6 = scmp.lt.s32.totalorder %s9459_s16, %s9459_s16 }
  0x21   : > { %p9462_p8 = pnand %p9460_p7, %p9448_p0  ;;  %p9469_p5 = por %p9468_p6, %p9467_p9 }
  0x23   : > { %p9463_p11 = pneg %p9462_p8 }
  0x25   : > { %p9470_p10 = pnand %p9469_p5, %p9463_p11 }
  0x27   : > { %9473 = shalt.err (!%p9470_p10)
}
  0x28   : > { %s9543_s17 = smov 576   ;;  %s9544_s23 = smov 36  }
  0x29   : > { %8535 = dma.hbm_to_vmem [thread:$0]  (!%p9637_p12), %s12928_s1, 27648, %s173_s7, [#allocation4], %s9543_s17, %s9543_s17, %s9544_s23  }
  0x2a   : > { %p13087_p13 = scmp.ne.s32.totalorder %s13085_s30, 0 }
  0x2c   : > { %205 = sbr.rel (%p13087_p13) target bundleno = 3958 (0xf76), region = 40 }
  0x33   : > { %p13088_p1 = scmp.eq.s32.totalorder %s9601_s22, 0 }
  0x35   : > { %9519 = dma.done.wait (%p13088_p1), [#allocation4], 27648   ;;  %p13089_p0 = pmov %p13088_p1 }
  0x36   : > { %v12939_v0 = vmov 0   ;;  %v8582_v1 = vld [vmem:[#allocation3 + $0x4] ss:$36 sps:$4 sm:$0xff]   ;;  %v8588_v5 = vld [vmem:[#allocation3 + $0x4c] ss:$36 sps:$4 sm:$0xff]   ;;  %p233_p5 = scmp.lt.s32.totalorder %s9601_s22, 1 }
  0x37   : > { %9521 = vsyncadd (%p13089_p0), [#allocation4], 4294939648  ;;  %1937 = vmatprep.mubr.bf16.mxu1 %v12939_v0  ;;  %v8584_v2 = vld [vmem:[#allocation3 + $0x484] ss:$36 sps:$4 sm:$0xff]   ;;  %1792 = vmatprep.subr.bf16.mxu0 %v8582_v1  ;;  %v8590_v6 = vld [vmem:[#allocation3 + $0x4cc] ss:$36 sps:$4 sm:$0xff]  }
  0x38   : > { %v8586_v3 = vld [vmem:[#allocation3] ss:$36 sps:$4 sm:$0xff]   ;;  %1905 = vmatprep.subr.bf16.mxu1 %v8584_v2  ;;  %v8592_v7 = vld [vmem:[#allocation3 + $0x48] ss:$36 sps:$4 sm:$0xff]   ;;  %v8594_v9 = vld [vmem:[#allocation3 + $0x94] ss:$36 sps:$4 sm:$0xff]  }
  0x39   : > { %v8587_v4 = vld [vmem:[#allocation3 + $0x480] ss:$36 sps:$4 sm:$0xff]   ;;  %1793 = vmatpush1.bf16.msra.mxu0 %v8586_v3  ;;  %v8593_v8 = vld [vmem:[#allocation3 + $0x4c8] ss:$36 sps:$4 sm:$0xff]   ;;  %v8596_v10 = vld [vmem:[#allocation3 + $0x514] ss:$36 sps:$4 sm:$0xff]  }
  0x3a   : > { %1906 = vmatpush1.bf16.msra.mxu1 %v8587_v4  ;;  %1794 = vmatprep.subr.bf16.mxu0 %v8588_v5  ;;  %v8598_v11 = vld [vmem:[#allocation3 + $0x90] ss:$36 sps:$4 sm:$0xff]   ;;  %v8600_v13 = vld [vmem:[#allocation3 + $0xdc] ss:$36 sps:$4 sm:$0xff]   ;;  %v8606_v17 = vld [vmem:[#allocation3 + $0x124] ss:$36 sps:$4 sm:$0xff]  }
  0x3b   : > { %1907 = vmatprep.subr.bf16.mxu1 %v8590_v6  ;;  %v8599_v12 = vld [vmem:[#allocation3 + $0x510] ss:$36 sps:$4 sm:$0xff]   ;;  %v8602_v14 = vld [vmem:[#allocation3 + $0x55c] ss:$36 sps:$4 sm:$0xff]   ;;  %v8608_v18 = vld [vmem:[#allocation3 + $0x5a4] ss:$36 sps:$4 sm:$0xff]  }
  0x3c   : > { %v8604_v15 = vld [vmem:[#allocation3 + $0xd8] ss:$36 sps:$4 sm:$0xff]   ;;  %s234_s30 = scalar_select %p233_p5, %s9601_s22, 1  ;;  %v8610_v19 = vld [vmem:[#allocation3 + $0x120] ss:$36 sps:$4 sm:$0xff]   ;;  %vm12984_vm0 = vcmask 523264  }
  0x3d   : > { %1795 = vmatpush1.bf16.msra.mxu0 %v8592_v7  ;;  %v8605_v16 = vld [vmem:[#allocation3 + $0x558] ss:$36 sps:$4 sm:$0xff]   ;;  %v8611_v20 = vld [vmem:[#allocation3 + $0x5a0] ss:$36 sps:$4 sm:$0xff]   ;;  %v8612_v21 = vld [vmem:[#allocation3 + $0x16c] ss:$36 sps:$4 sm:$0xff]  }
  0x3e   : > { %1908 = vmatpush1.bf16.msra.mxu1 %v8593_v8  ;;  %1796 = vmatprep.subr.bf16.mxu0 %v8594_v9  ;;  %v8614_v22 = vld [vmem:[#allocation3 + $0x5ec] ss:$36 sps:$4 sm:$0xff]   ;;  %s8524_s6 = smul.u32 192, %s234_s30  ;;  %v8618_v25 = vld [vmem:[#allocation3 + $0x1b4] ss:$36 sps:$4 sm:$0xff]   ;;  %s9546_s12 = smov 64  }
  0x3f   : > { %1909 = vmatprep.subr.bf16.mxu1 %v8596_v10  ;;  %v8616_v23 = vld [vmem:[#allocation3 + $0x168] ss:$36 sps:$4 sm:$0xff]   ;;  %v8620_v26 = vld [vmem:[#allocation3 + $0x634] ss:$36 sps:$4 sm:$0xff]   ;;  %v8624_v29 = vld [vmem:[#allocation3 + $0x1fc] ss:$36 sps:$4 sm:$0xff]  }
  0x40   : > { %v8617_v24 = vld [vmem:[#allocation3 + $0x5e8] ss:$36 sps:$4 sm:$0xff]   ;;  %s9669_s9 = scalar_lea.vmem %s12927_s0, %s8524_s6  ;;  %v8622_v27 = vld [vmem:[#allocation3 + $0x1b0] ss:$36 sps:$4 sm:$0xff]   ;;  %v8626_v30 = vld [vmem:[#allocation3 + $0x67c] ss:$36 sps:$4 sm:$0xff]  }
  0x41   : > { %1797 = vmatpush1.bf16.msra.mxu0 %v8598_v11  ;;  %v8623_v28 = vld [vmem:[#allocation3 + $0x630] ss:$36 sps:$4 sm:$0xff]   ;;  %v8628_v31 = vld [vmem:[#allocation3 + $0x1f8] ss:$36 sps:$4 sm:$0xff]   ;;  %v8630_v33 = vld [vmem:[#allocation3 + $0x244] ss:$36 sps:$4 sm:$0xff]  }
  0x42   : > { %1910 = vmatpush1.bf16.msra.mxu1 %v8599_v12  ;;  %1798 = vmatprep.subr.bf16.mxu0 %v8600_v13  ;;  %v8629_v32 = vld [vmem:[#allocation3 + $0x678] ss:$36 sps:$4 sm:$0xff]   ;;  %v8635_v34 = vld [vmem:[#allocation3 + $0xc] ss:$36 sps:$4 sm:$0xff]   ;;  %v8632_v35 = vld [vmem:[%s9669_s9 + $0x8] ss:$12 sps:$4 sm:$0xff]  }
  0x43   : > { %1911 = vmatprep.subr.bf16.mxu1 %v8602_v14  ;;  %v8633_v36 = vld [vmem:[#allocation3 + $0x8] ss:$36 sps:$4 sm:$0xff]   ;;  %v8636_v37 = vld [vmem:[#allocation3 + $0x240] ss:$36 sps:$4 sm:$0xff]   ;;  %v8641_v39 = vld [vmem:[#allocation3 + $0x54] ss:$36 sps:$4 sm:$0xff]  }
  0x44   : > { %v8637_v38 = vld [vmem:[#allocation3 + $0x28c] ss:$36 sps:$4 sm:$0xff]   ;;  %v8643_v42 = vld [vmem:[#allocation3 + $0x2d4] ss:$36 sps:$4 sm:$0xff]   ;;  %v8648_v43 = vld [vmem:[#allocation3 + $0x9c] ss:$36 sps:$4 sm:$0xff]  }
  0x45   : > { %1799 = vmatpush1.bf16.msra.mxu0 %v8604_v15  ;;  %v8639_v40 = vld [vmem:[#allocation3 + $0x50] ss:$36 sps:$4 sm:$0xff]   ;;  %v8642_v41 = vld [vmem:[#allocation3 + $0x288] ss:$36 sps:$4 sm:$0xff]   ;;  %v8646_v45 = vld [vmem:[#allocation3 + $0x98] ss:$36 sps:$4 sm:$0xff]  }
  0x46   : > { %1912 = vmatpush1.bf16.msra.mxu1 %v8605_v16  ;;  %1800 = vmatprep.subr.bf16.mxu0 %v8606_v17  ;;  %v8645_v44 = vld [vmem:[%s9669_s9 + $0x20] ss:$12 sps:$4 sm:$0xff]   ;;  %v8649_v46 = vld [vmem:[#allocation3 + $0x2d0] ss:$36 sps:$4 sm:$0xff]   ;;  %v8654_v48 = vld [vmem:[#allocation3 + $0xe4] ss:$36 sps:$4 sm:$0xff]  }
  0x47   : > { %1913 = vmatprep.subr.bf16.mxu1 %v8608_v18  ;;  %v8650_v47 = vld [vmem:[#allocation3 + $0x31c] ss:$36 sps:$4 sm:$0xff]   ;;  %v8656_v51 = vld [vmem:[#allocation3 + $0x364] ss:$36 sps:$4 sm:$0xff]   ;;  %v8661_v52 = vld [vmem:[#allocation3 + $0x12c] ss:$36 sps:$4 sm:$0xff]  }
  0x48   : > { %v8652_v49 = vld [vmem:[#allocation3 + $0xe0] ss:$36 sps:$4 sm:$0xff]   ;;  %v8655_v50 = vld [vmem:[#allocation3 + $0x318] ss:$36 sps:$4 sm:$0xff]   ;;  %v8659_v54 = vld [vmem:[#allocation3 + $0x128] ss:$36 sps:$4 sm:$0xff]  }
  0x49   : > { %1801 = vmatpush1.bf16.msra.mxu0 %v8610_v19  ;;  %v8658_v53 = vld [vmem:[%s9669_s9 + $0x38] ss:$12 sps:$4 sm:$0xff]   ;;  %v8663_v57 = vld [vmem:[#allocation3 + $0x3ac] ss:$36 sps:$4 sm:$0xff]   ;;  %v8674_v62 = vld [vmem:[#allocation3 + $0x1bc] ss:$36 sps:$4 sm:$0xff]  }
  0x4a   : > { %1914 = vmatpush1.bf16.msra.mxu1 %v8611_v20  ;;  %1802 = vmatprep.subr.bf16.mxu0 %v8612_v21  ;;  %v8662_v55 = vld [vmem:[#allocation3 + $0x360] ss:$36 sps:$4 sm:$0xff]   ;;  %v8667_v58 = vld [vmem:[#allocation3 + $0x174] ss:$36 sps:$4 sm:$0xff]   ;;  %v8668_v60 = vld [vmem:[#allocation3 + $0x3a8] ss:$36 sps:$4 sm:$0xff]  }
  0x4b   : > { %1915 = vmatprep.subr.bf16.mxu1 %v8614_v22  ;;  %v9677_v56 = vld [vmem:[%s9669_s9 + $0x4] ss:$12 sps:$4 sm:$0xff]   ;;  %v8669_v61 = vld [vmem:[#allocation3 + $0x3f4] ss:$36 sps:$4 sm:$0xff]   ;;  %v8676_v3 = vld [vmem:[#allocation3 + $0x43c] ss:$36 sps:$4 sm:$0xff]  }
  0x4c   : > { %1824 = vmatprep.mubr.bf16.mxu0 %v9677_v56  ;;  %v8665_v59 = vld [vmem:[#allocation3 + $0x170] ss:$36 sps:$4 sm:$0xff]   ;;  %v8672_v1 = vld [vmem:[#allocation3 + $0x1b8] ss:$36 sps:$4 sm:$0xff]   ;;  %v8680_v4 = vld [vmem:[#allocation3 + $0x204] ss:$36 sps:$4 sm:$0xff]  }
  0x4d   : > { %1803 = vmatpush1.bf16.msra.mxu0 %v8616_v23  ;;  %v8671_v63 = vld [vmem:[%s9669_s9 + $0x50] ss:$12 sps:$4 sm:$0xff]   ;;  %v8678_v5 = vld [vmem:[#allocation3 + $0x200] ss:$36 sps:$4 sm:$0xff]   ;;  %v8691_v9 = vld [vmem:[#allocation3 + $0x14] ss:$36 sps:$4 sm:$0xff]  }
  0x4e   : > { %1916 = vmatpush1.bf16.msra.mxu1 %v8617_v24  ;;  %1804 = vmatprep.subr.bf16.mxu0 %v8618_v25  ;;  %v8675_v2 = vld [vmem:[#allocation3 + $0x3f0] ss:$36 sps:$4 sm:$0xff]   ;;  %v8681_v6 = vld [vmem:[#allocation3 + $0x438] ss:$36 sps:$4 sm:$0xff]   ;;  %v9683_v7 = vld [vmem:[%s9669_s9] ss:$12 sps:$4 sm:$0xff]  }
  0x4f   : > { %1917 = vmatprep.subr.bf16.mxu1 %v8620_v26  ;;  %v8688_v8 = vld [vmem:[#allocation3 + $0x24c] ss:$36 sps:$4 sm:$0xff]   ;;  %v8685_v10 = vld [vmem:[%s9669_s9 + $0x68] ss:$12 sps:$4 sm:$0xff]   ;;  %v8697_v14 = vld [vmem:[#allocation3 + $0x5c] ss:$36 sps:$4 sm:$0xff]  }
  0x50   : > { %v8686_v11 = vld [vmem:[#allocation3 + $0x248] ss:$36 sps:$4 sm:$0xff]   ;;  %v8689_v12 = vld [vmem:[#allocation3 + $0x10] ss:$36 sps:$4 sm:$0xff]   ;;  %v8695_v17 = vld [vmem:[#allocation3 + $0x58] ss:$36 sps:$4 sm:$0xff]  }
  0x51   : > { %1805 = vmatpush1.bf16.msra.mxu0 %v8622_v27  ;;  %v8694_v13 = vld [vmem:[#allocation3 + $0x294] ss:$36 sps:$4 sm:$0xff]   ;;  %v9688_v15 = vld [vmem:[%s9669_s9 + $0x1c] ss:$12 sps:$4 sm:$0xff]   ;;  %v8701_v21 = vld [vmem:[%s9669_s9 + $0x80] ss:$12 sps:$4 sm:$0xff]  }
  0x52   : > { %1918 = vmatpush1.bf16.msra.mxu1 %v8623_v28  ;;  %1806 = vmatprep.subr.bf16.mxu0 %v8624_v29  ;;  %v8692_v16 = vld [vmem:[#allocation3 + $0x290] ss:$36 sps:$4 sm:$0xff]   ;;  %v9692_v18 = vld [vmem:[%s9669_s9 + $0x18] ss:$12 sps:$4 sm:$0xff]   ;;  %v8704_v19 = vld [vmem:[#allocation3 + $0x2dc] ss:$36 sps:$4 sm:$0xff]  }
  0x53   : > { %1919 = vmatprep.subr.bf16.mxu1 %v8626_v30  ;;  %v8707_v20 = vld [vmem:[#allocation3 + $0xa4] ss:$36 sps:$4 sm:$0xff]   ;;  %v8702_v22 = vld [vmem:[#allocation3 + $0x2d8] ss:$36 sps:$4 sm:$0xff]   ;;  %v8713_v25 = vld [vmem:[#allocation3 + $0xec] ss:$36 sps:$4 sm:$0xff]  }
  0x54   : > { %v8705_v23 = vld [vmem:[#allocation3 + $0xa0] ss:$36 sps:$4 sm:$0xff]   ;;  %v8711_v28 = vld [vmem:[#allocation3 + $0xe8] ss:$36 sps:$4 sm:$0xff]   ;;  %v8723_v30 = vld [vmem:[#allocation3 + $0x134] ss:$36 sps:$4 sm:$0xff]  }
  0x55   : > { %1807 = vmatpush1.bf16.msra.mxu0 %v8628_v31  ;;  %v8710_v24 = vld [vmem:[#allocation3 + $0x324] ss:$36 sps:$4 sm:$0xff]   ;;  %v9698_v26 = vld [vmem:[%s9669_s9 + $0x34] ss:$12 sps:$4 sm:$0xff]   ;;  %v8720_v29 = vld [vmem:[#allocation3 + $0x36c] ss:$36 sps:$4 sm:$0xff]  }
  0x56   : > { %1920 = vmatpush1.bf16.msra.mxu1 %v8629_v32  ;;  %1808 = vmatprep.subr.bf16.mxu0 %v8630_v33  ;;  %v8708_v27 = vld [vmem:[#allocation3 + $0x320] ss:$36 sps:$4 sm:$0xff]   ;;  %v9704_v31 = vld [vmem:[%s9669_s9 + $0x30] ss:$12 sps:$4 sm:$0xff]   ;;  %v8718_v33 = vld [vmem:[#allocation3 + $0x368] ss:$36 sps:$4 sm:$0xff]  }
  0x57   : > { %2018 = vmatprep.subr.bf16.mxu1 %v8635_v34  ;;  %v8717_v32 = vld [vmem:[%s9669_s9 + $0x98] ss:$12 sps:$4 sm:$0xff]   ;;  %v8721_v34 = vld [vmem:[#allocation3 + $0x130] ss:$36 sps:$4 sm:$0xff]   ;;  %s230_s8 = sand.u32 1, %s9532_s19   ;;  %s8525_s13 = smul.u32 6144, %s9601_s22 }
  0x58   : > { %s12886_s22 = scalar_lea.sflag [#allocation5], %s230_s8  ;;  %p13647_p9 = scmp.ne.s32.totalorder %s13083_s28, 0 }
  0x59   : > { %1938 = vmatmul.mubr.bf16.vlgmr.msra.gmra.mrb[0].mxu1 %v8632_v35  ;;  %1809 = vmatpush1.bf16.msra.mxu0 %v8636_v37  ;;  %v8726_v35 = vld [vmem:[#allocation3 + $0x3b4] ss:$36 sps:$4 sm:$0xff]   ;;  %s12877_s17 = scalar_lea.hbm %s12932_s5, %s8525_s13  ;;  %s9547_s25 = smov [#allocation6]  }
  0x5a   : > { %2019 = vmatpush1.bf16.msra.mxu1 %v8633_v36  ;;  %1810 = vmatprep.subr.bf16.mxu0 %v8637_v38  ;;  %v8729_v36 = vld [vmem:[#allocation3 + $0x17c] ss:$36 sps:$4 sm:$0xff]   ;;  %v9708_v37 = vld [vmem:[%s9669_s9 + $0x4c] ss:$12 sps:$4 sm:$0xff]   ;;  %v8724_v38 = vld [vmem:[#allocation3 + $0x3b0] ss:$36 sps:$4 sm:$0xff]  }
  0x5b   : > { %2020 = vmatprep.subr.bf16.mxu1 %v8641_v39  ;;  %1947 = vmatprep.mubr.bf16.mxu1 %v12939_v0  ;;  %v8727_v39 = vld [vmem:[#allocation3 + $0x178] ss:$36 sps:$4 sm:$0xff]   ;;  %s9478_s26 = sshll.u32 %s9547_s25, 4  ;;  %s9479_s26 = int_to_ptr.vmem [resolvable:$false] %s9478_s26 }
  0x5c   : > { %s9480_s30 = scalar_lea.vmem %s9479_s26, 12288 }
  0x5d   : > { %1811 = vmatpush1.bf16.msra.mxu0 %v8642_v41  ;;  %v8739_v41 = vld [vmem:[#allocation3 + $0x1c4] ss:$36 sps:$4 sm:$0xff]  }
  0x5e   : > { %2021 = vmatpush1.bf16.msra.mxu1 %v8639_v40  ;;  %1812 = vmatprep.subr.bf16.mxu0 %v8643_v42  ;;  %v8736_v40 = vld [vmem:[#allocation3 + $0x3fc] ss:$36 sps:$4 sm:$0xff]   ;;  %v9714_v42 = vld [vmem:[%s9669_s9 + $0x48] ss:$12 sps:$4 sm:$0xff]  }
  0x5f   : > { %2022 = vmatprep.subr.bf16.mxu1 %v8648_v43  ;;  %v9717_v43 = vld [vmem:[%s9669_s9 + $0xb0] ss:$12 sps:$4 sm:$0xff]  }
  0x61   : > { %1948 = vmatmul.mubr.bf16.gmra.mrb[4].mxu1 %v8645_v44  ;;  %1813 = vmatpush1.bf16.msra.mxu0 %v8649_v46  ;;  %v8734_v44 = vld [vmem:[#allocation3 + $0x3f8] ss:$36 sps:$4 sm:$0xff]   ;;  %v8742_v46 = vld [vmem:[#allocation3 + $0x444] ss:$36 sps:$4 sm:$0xff]  }
  0x62   : > { %2023 = vmatpush1.bf16.msra.mxu1 %v8646_v45  ;;  %1814 = vmatprep.subr.bf16.mxu0 %v8650_v47  ;;  %v8737_v45 = vld [vmem:[#allocation3 + $0x1c0] ss:$36 sps:$4 sm:$0xff]   ;;  %v8745_v47 = vld [vmem:[#allocation3 + $0x20c] ss:$36 sps:$4 sm:$0xff]  }
  0x63   : > { %2024 = vmatprep.subr.bf16.mxu1 %v8654_v48  ;;  %1957 = vmatprep.mubr.bf16.mxu1 %v12939_v0  ;;  %v9720_v48 = vld [vmem:[%s9669_s9 + $0x64] ss:$12 sps:$4 sm:$0xff]  }
  0x65   : > { %1815 = vmatpush1.bf16.msra.mxu0 %v8655_v50  ;;  %v8743_v50 = vld [vmem:[#allocation3 + $0x208] ss:$36 sps:$4 sm:$0xff]  }
  0x66   : > { %2025 = vmatpush1.bf16.msra.mxu1 %v8652_v49  ;;  %1816 = vmatprep.subr.bf16.mxu0 %v8656_v51  ;;  %v8740_v49 = vld [vmem:[#allocation3 + $0x440] ss:$36 sps:$4 sm:$0xff]   ;;  %v8751_v51 = vld [vmem:[#allocation3 + $0x48c] ss:$36 sps:$4 sm:$0xff]  }
  0x67   : > { %2026 = vmatprep.subr.bf16.mxu1 %v8661_v52  ;;  %v8754_v52 = vld [vmem:[#allocation3 + $0x254] ss:$36 sps:$4 sm:$0xff]  }
  0x69   : > { %1958 = vmatmul.mubr.bf16.gmra.mrb[8].mxu1 %v8658_v53  ;;  %1817 = vmatpush1.bf16.msra.mxu0 %v8662_v55  ;;  %v9727_v53 = vld [vmem:[%s9669_s9 + $0x60] ss:$12 sps:$4 sm:$0xff]   ;;  %v8752_v55 = vld [vmem:[#allocation3 + $0x250] ss:$36 sps:$4 sm:$0xff]  }
  0x6a   : > { %2027 = vmatpush1.bf16.msra.mxu1 %v8659_v54  ;;  %1818 = vmatprep.subr.bf16.mxu0 %v8663_v57  ;;  %v8749_v54 = vld [vmem:[#allocation3 + $0x488] ss:$36 sps:$4 sm:$0xff]   ;;  %v8757_v57 = vld [vmem:[#allocation3 + $0x29c] ss:$36 sps:$4 sm:$0xff]  }
  0x6b   : > { %2028 = vmatprep.subr.bf16.mxu1 %v8667_v58  ;;  %1967 = vmatprep.mubr.bf16.mxu1 %v12939_v0  ;;  %v9730_v58 = vld [vmem:[%s9669_s9 + $0x7c] ss:$12 sps:$4 sm:$0xff]  }
  0x6d   : > { %1819 = vmatpush1.bf16.msra.mxu0 %v8668_v60  ;;  %v8755_v60 = vld [vmem:[#allocation3 + $0x298] ss:$36 sps:$4 sm:$0xff]  }
  0x6e   : > { %2029 = vmatpush1.bf16.msra.mxu1 %v8665_v59  ;;  %1820 = vmatprep.subr.bf16.mxu0 %v8669_v61  ;;  %v8763_v59 = vld [vmem:[#allocation3 + $0x4d4] ss:$36 sps:$4 sm:$0xff]  }
  0x6f   : > { %2030 = vmatprep.subr.bf16.mxu1 %v8674_v62  ;;  %v8761_v61 = vld [vmem:[#allocation3 + $0x4d0] ss:$36 sps:$4 sm:$0xff]   ;;  %v8766_v62 = vld [vmem:[#allocation3 + $0x2e4] ss:$36 sps:$4 sm:$0xff]  }
  0x71   : > { %1968 = vmatmul.mubr.bf16.gmra.mrb[12].mxu1 %v8671_v63  ;;  %1821 = vmatpush1.bf16.msra.mxu0 %v8675_v2  ;;  %v8775_v63 = vld [vmem:[#allocation3 + $0x51c] ss:$36 sps:$4 sm:$0xff]  }
  0x72   : > { %2031 = vmatpush1.bf16.msra.mxu1 %v8672_v1  ;;  %1822 = vmatprep.subr.bf16.mxu0 %v8676_v3  ;;  %v9737_v1 = vld [vmem:[%s9669_s9 + $0x78] ss:$12 sps:$4 sm:$0xff]   ;;  %v9740_v3 = vld [vmem:[%s9669_s9 + $0x94] ss:$12 sps:$4 sm:$0xff]  }
  0x73   : > { %2032 = vmatprep.subr.bf16.mxu1 %v8680_v4  ;;  %1977 = vmatprep.mubr.bf16.mxu1 %v12939_v0  ;;  %v8764_v2 = vld [vmem:[#allocation3 + $0x2e0] ss:$36 sps:$4 sm:$0xff]   ;;  %v8769_v4 = vld [vmem:[#allocation3 + $0x32c] ss:$36 sps:$4 sm:$0xff]  }
  0x75   : > { %1823 = vmatpush1.bf16.msra.mxu0 %v8681_v6  ;;  %v8787_v6 = vld [vmem:[#allocation3 + $0x564] ss:$36 sps:$4 sm:$0xff]  }
  0x76   : > { %2033 = vmatpush1.bf16.msra.mxu1 %v8678_v5  ;;  %2244 = vmatprep.subr.bf16.mxu0 %v8691_v9  ;;  %v8773_v5 = vld [vmem:[#allocation3 + $0x518] ss:$36 sps:$4 sm:$0xff]  }
  0x77   : > { %2034 = vmatprep.subr.bf16.mxu1 %v8688_v8  ;;  %v8767_v8 = vld [vmem:[#allocation3 + $0x328] ss:$36 sps:$4 sm:$0xff]   ;;  %v8778_v9 = vld [vmem:[#allocation3 + $0x374] ss:$36 sps:$4 sm:$0xff]  }
  0x78   : > { %1825 = vmatmul.mubr.bf16.vlgmr.msra.gmra.mrb[0].mxu0 %v9683_v7 }
  0x79   : > { %1978 = vmatmul.mubr.bf16.gmra.mrb[16].mxu1 %v8685_v10  ;;  %2245 = vmatpush1.bf16.msra.mxu0 %v8689_v12  ;;  %v8785_v10 = vld [vmem:[#allocation3 + $0x560] ss:$36 sps:$4 sm:$0xff]   ;;  %v8776_v12 = vld [vmem:[#allocation3 + $0x370] ss:$36 sps:$4 sm:$0xff]  }
  0x7a   : > { %2035 = vmatpush1.bf16.msra.mxu1 %v8686_v11  ;;  %2246 = vmatprep.subr.bf16.mxu0 %v8697_v14  ;;  %v9747_v11 = vld [vmem:[%s9669_s9 + $0x90] ss:$12 sps:$4 sm:$0xff]  }
  0x7b   : > { %2036 = vmatprep.subr.bf16.mxu1 %v8694_v13  ;;  %1834 = vmatprep.mubr.bf16.mxu0 %v9688_v15  ;;  %v9750_v13 = vld [vmem:[%s9669_s9 + $0xac] ss:$12 sps:$4 sm:$0xff]   ;;  %v8781_v14 = vld [vmem:[#allocation3 + $0x3bc] ss:$36 sps:$4 sm:$0xff]  }
  0x7c   : > { %1987 = vmatprep.mubr.bf16.mxu1 %v12939_v0 }
  0x7d   : > { %2247 = vmatpush1.bf16.msra.mxu0 %v8695_v17  ;;  %v8779_v17 = vld [vmem:[#allocation3 + $0x3b8] ss:$36 sps:$4 sm:$0xff]  }
  0x7e   : > { %2037 = vmatpush1.bf16.msra.mxu1 %v8692_v16  ;;  %2248 = vmatprep.subr.bf16.mxu0 %v8707_v20  ;;  %v8796_v16 = vld [vmem:[#allocation3 + $0x5ac] ss:$36 sps:$4 sm:$0xff]   ;;  %v8799_v20 = vld [vmem:[#allocation3 + $0x5f4] ss:$36 sps:$4 sm:$0xff]  }
  0x7f   : > { %2038 = vmatprep.subr.bf16.mxu1 %v8704_v19  ;;  %v8794_v19 = vld [vmem:[#allocation3 + $0x5a8] ss:$36 sps:$4 sm:$0xff]  }
  0x80   : > { %1835 = vmatmul.mubr.bf16.gmra.mrb[4].mxu0 %v9692_v18 }
  0x81   : > { %1988 = vmatmul.mubr.bf16.gmra.mrb[20].mxu1 %v8701_v21  ;;  %2249 = vmatpush1.bf16.msra.mxu0 %v8705_v23  ;;  %v8790_v21 = vld [vmem:[#allocation3 + $0x404] ss:$36 sps:$4 sm:$0xff]  }
  0x82   : > { %2039 = vmatpush1.bf16.msra.mxu1 %v8702_v22  ;;  %2250 = vmatprep.subr.bf16.mxu0 %v8713_v25  ;;  %v9757_v22 = vld [vmem:[%s9669_s9 + $0xa8] ss:$12 sps:$4 sm:$0xff]   ;;  %v8788_v23 = vld [vmem:[#allocation3 + $0x400] ss:$36 sps:$4 sm:$0xff]  }
  0x83   : > { %2040 = vmatprep.subr.bf16.mxu1 %v8710_v24  ;;  %1844 = vmatprep.mubr.bf16.mxu0 %v9698_v26  ;;  %v8793_v24 = vld [vmem:[#allocation3 + $0x44c] ss:$36 sps:$4 sm:$0xff]  }
  0x84   : > { %1997 = vmatprep.mubr.bf16.mxu1 %v12939_v0  ;;  %v8797_v25 = vld [vmem:[#allocation3 + $0x5f0] ss:$36 sps:$4 sm:$0xff]  }
  0x85   : > { %2251 = vmatpush1.bf16.msra.mxu0 %v8711_v28  ;;  %v8791_v28 = vld [vmem:[#allocation3 + $0x448] ss:$36 sps:$4 sm:$0xff]  }
  0x86   : > { %2041 = vmatpush1.bf16.msra.mxu1 %v8708_v27  ;;  %2252 = vmatprep.subr.bf16.mxu0 %v8723_v30  ;;  %v8802_v27 = vld [vmem:[#allocation3 + $0x63c] ss:$36 sps:$4 sm:$0xff]  }
  0x87   : > { %2042 = vmatprep.subr.bf16.mxu1 %v8720_v29  ;;  %v8808_v29 = vld [vmem:[#allocation3 + $0x494] ss:$36 sps:$4 sm:$0xff]  }
  0x88   : > { %1845 = vmatmul.mubr.bf16.gmra.mrb[8].mxu0 %v9704_v31  ;;  %v8800_v30 = vld [vmem:[#allocation3 + $0x638] ss:$36 sps:$4 sm:$0xff]  }
  0x89   : > { %1998 = vmatmul.mubr.bf16.gmra.mrb[24].mxu1 %v8717_v32  ;;  %2253 = vmatpush1.bf16.msra.mxu0 %v8721_v34  ;;  %v8805_v32 = vld [vmem:[#allocation3 + $0x684] ss:$36 sps:$4 sm:$0xff]  }
  0x8a   : > { %2043 = vmatpush1.bf16.msra.mxu1 %v8718_v33  ;;  %2254 = vmatprep.subr.bf16.mxu0 %v8729_v36  ;;  %v8806_v33 = vld [vmem:[#allocation3 + $0x490] ss:$36 sps:$4 sm:$0xff]   ;;  %v8803_v34 = vld [vmem:[#allocation3 + $0x680] ss:$36 sps:$4 sm:$0xff]  }
  0x8b   : > { %2044 = vmatprep.subr.bf16.mxu1 %v8726_v35  ;;  %1854 = vmatprep.mubr.bf16.mxu0 %v9708_v37  ;;  %v8814_v35 = vld [vmem:[#allocation3 + $0x4dc] ss:$36 sps:$4 sm:$0xff]  }
  0x8c   : > { %2007 = vmatprep.mubr.bf16.mxu1 %v12939_v0  ;;  %v8811_v36 = vld [vmem:[#allocation3 + $0x1c] ss:$36 sps:$4 sm:$0xff]  }
  0x8d   : > { %2255 = vmatpush1.bf16.msra.mxu0 %v8727_v39  ;;  %v8818_v39 = vld [vmem:[#allocation3 + $0x520] ss:$36 sps:$4 sm:$0xff]  }
  0x8e   : > { %2045 = vmatpush1.bf16.msra.mxu1 %v8724_v38  ;;  %2256 = vmatprep.subr.bf16.mxu0 %v8739_v41  ;;  %v8820_v38 = vld [vmem:[#allocation3 + $0x524] ss:$36 sps:$4 sm:$0xff]   ;;  %v8830_v41 = vld [vmem:[#allocation3 + $0x5b0] ss:$36 sps:$4 sm:$0xff]  }
  0x8f   : > { %2046 = vmatprep.subr.bf16.mxu1 %v8736_v40  ;;  %v8826_v40 = vld [vmem:[#allocation3 + $0x56c] ss:$36 sps:$4 sm:$0xff]  }
  0x90   : > { %1855 = vmatmul.mubr.bf16.gmra.mrb[12].mxu0 %v9714_v42 }
  0x91   : > { %2008 = vmatmul.mubr.bf16.gmra.mrb[28].mxu1 %v9717_v43  ;;  %2257 = vmatpush1.bf16.msra.mxu0 %v8737_v45  ;;  %v8842_v45 = vld [vmem:[#allocation3 + $0x640] ss:$36 sps:$4 sm:$0xff]  }
  0x92   : > { %2047 = vmatpush1.bf16.msra.mxu1 %v8734_v44  ;;  %2258 = vmatprep.subr.bf16.mxu0 %v8745_v47  ;;  %v8838_v44 = vld [vmem:[#allocation3 + $0x5fc] ss:$36 sps:$4 sm:$0xff]  }
  0x93   : > { %2048 = vmatprep.subr.bf16.mxu1 %v8742_v46  ;;  %1864 = vmatprep.mubr.bf16.mxu0 %v9720_v48  ;;  %v8850_v46 = vld [vmem:[#allocation3 + $0x68c] ss:$36 sps:$4 sm:$0xff]   ;;  %v8809_v47 = vld [vmem:[#allocation3 + $0x18] ss:$36 sps:$4 sm:$0xff]  }
  0x94   : > { %2050 = vmatprep.mubr.bf16.mxu1 %v9677_v56 }
  0x95   : > { %2259 = vmatpush1.bf16.msra.mxu0 %v8743_v50  ;;  %v8815_v50 = vld [vmem:[#allocation3 + $0x60] ss:$36 sps:$4 sm:$0xff]  }
  0x96   : > { %2049 = vmatpush1.bf16.msra.mxu1 %v8740_v49  ;;  %2260 = vmatprep.subr.bf16.mxu0 %v8754_v52  ;;  %v8817_v49 = vld [vmem:[#allocation3 + $0x64] ss:$36 sps:$4 sm:$0xff]   ;;  %v8829_v52 = vld [vmem:[#allocation3 + $0xf4] ss:$36 sps:$4 sm:$0xff]  }
  0x97   : > { %2131 = vmatprep.subr.bf16.mxu1 %v8751_v51  ;;  %v9780_v51 = vld [vmem:[%s9669_s9 + $0x8] ss:$12 sps:$4 sm:$0xff]  }
  0x98   : > { %1865 = vmatmul.mubr.bf16.gmra.mrb[16].mxu0 %v9727_v53 }
  0x99   : > { %2051 = vmatmul.mubr.bf16.vlgmr.msra.gmra.mrb[32].mxu1 %v9683_v7  ;;  %2261 = vmatpush1.bf16.msra.mxu0 %v8752_v55  ;;  %v9787_v55 = vld [vmem:[%s9669_s9 + $0x20] ss:$12 sps:$4 sm:$0xff]  }
  0x9a   : > { %2132 = vmatpush1.bf16.msra.mxu1 %v8749_v54  ;;  %2262 = vmatprep.subr.bf16.mxu0 %v8757_v57  ;;  %v8827_v54 = vld [vmem:[#allocation3 + $0xf0] ss:$36 sps:$4 sm:$0xff]   ;;  %v8833_v57 = vld [vmem:[#allocation3 + $0x138] ss:$36 sps:$4 sm:$0xff]  }
  0x9b   : > { %1874 = vmatprep.mubr.bf16.mxu0 %v9730_v58  ;;  %2060 = vmatprep.mubr.bf16.mxu1 %v9688_v15 }
  0x9c   : > { %2133 = vmatprep.subr.bf16.mxu1 %v8763_v59  ;;  %v8839_v59 = vld [vmem:[#allocation3 + $0x180] ss:$36 sps:$4 sm:$0xff]  }
  0x9d   : > { %2263 = vmatpush1.bf16.msra.mxu0 %v8755_v60  ;;  %v9794_v60 = vld [vmem:[%s9669_s9 + $0x38] ss:$12 sps:$4 sm:$0xff]  }
  0x9e   : > { %2134 = vmatpush1.bf16.msra.mxu1 %v8761_v61  ;;  %2264 = vmatprep.subr.bf16.mxu0 %v8766_v62  ;;  %v8847_v61 = vld [vmem:[#allocation3 + $0x1cc] ss:$36 sps:$4 sm:$0xff]  }
  0x9f   : > { %2135 = vmatprep.subr.bf16.mxu1 %v8775_v63  ;;  %v8845_v62 = vld [vmem:[#allocation3 + $0x1c8] ss:$36 sps:$4 sm:$0xff]   ;;  %v8853_v63 = vld [vmem:[#allocation3 + $0x214] ss:$36 sps:$4 sm:$0xff]  }
  0xa0   : > { %1875 = vmatmul.mubr.bf16.gmra.mrb[20].mxu0 %v9737_v1 }
  0xa1   : > { %2061 = vmatmul.mubr.bf16.gmra.mrb[36].mxu1 %v9692_v18  ;;  %2265 = vmatpush1.bf16.msra.mxu0 %v8764_v2  ;;  %v9801_v2 = vld [vmem:[%s9669_s9 + $0x50] ss:$12 sps:$4 sm:$0xff]  }
  0xa2   : > { %1884 = vmatprep.mubr.bf16.mxu0 %v9740_v3  ;;  %2266 = vmatprep.subr.bf16.mxu0 %v8769_v4  ;;  %v8854_v4 = vld [vmem:[#allocation3 + $0x258] ss:$36 sps:$4 sm:$0xff]  }
  0xa3   : > { %2070 = vmatprep.mubr.bf16.mxu1 %v9698_v26  ;;  %2136 = vmatpush1.bf16.msra.mxu1 %v8773_v5  ;;  %v8859_v5 = vld [vmem:[#allocation3 + $0x2a4] ss:$36 sps:$4 sm:$0xff]  }
  0xa4   : > { %2137 = vmatprep.subr.bf16.mxu1 %v8787_v6  ;;  %v8879_v6 = vld [vmem:[#allocation3 + $0x20] ss:$36 sps:$4 sm:$0xff]  }
  0xa5   : > { %2267 = vmatpush1.bf16.msra.mxu0 %v8767_v8  ;;  %v8880_v8 = vld [vmem:[#allocation3 + $0x2a8] ss:$36 sps:$4 sm:$0xff]  }
  0xa6   : > { %2268 = vmatprep.subr.bf16.mxu0 %v8778_v9  ;;  %v8857_v9 = vld [vmem:[#allocation3 + $0x2a0] ss:$36 sps:$4 sm:$0xff]  }
  0xa7   : > { %2138 = vmatpush1.bf16.msra.mxu1 %v8785_v10  ;;  %v9808_v10 = vld [vmem:[%s9669_s9 + $0x68] ss:$12 sps:$4 sm:$0xff]  }
  0xa8   : > { %1885 = vmatmul.mubr.bf16.gmra.mrb[24].mxu0 %v9747_v11  ;;  %2139 = vmatprep.subr.bf16.mxu1 %v8796_v16  ;;  %v8860_v16 = vld [vmem:[#allocation3 + $0x2e8] ss:$36 sps:$4 sm:$0xff]  }
  0xa9   : > { %2071 = vmatmul.mubr.bf16.gmra.mrb[40].mxu1 %v9704_v31  ;;  %2269 = vmatpush1.bf16.msra.mxu0 %v8776_v12  ;;  %v8862_v12 = vld [vmem:[#allocation3 + $0x2ec] ss:$36 sps:$4 sm:$0xff]  }
  0xaa   : > { %1894 = vmatprep.mubr.bf16.mxu0 %v9750_v13  ;;  %2270 = vmatprep.subr.bf16.mxu0 %v8781_v14  ;;  %v8881_v14 = vld [vmem:[#allocation3 + $0x68] ss:$36 sps:$4 sm:$0xff]  }
  0xab   : > { %2080 = vmatprep.mubr.bf16.mxu1 %v9708_v37  ;;  %2140 = vmatpush1.bf16.msra.mxu1 %v8794_v19  ;;  %v8882_v19 = vld [vmem:[#allocation3 + $0x2f0] ss:$36 sps:$4 sm:$0xff]  }
  0xac   : > { %2141 = vmatprep.subr.bf16.mxu1 %v8799_v20  ;;  %v9815_v20 = vld [vmem:[%s9669_s9 + $0x80] ss:$12 sps:$4 sm:$0xff]  }
  0xad   : > { %2271 = vmatpush1.bf16.msra.mxu0 %v8779_v17  ;;  %v8865_v17 = vld [vmem:[#allocation3 + $0x334] ss:$36 sps:$4 sm:$0xff]  }
  0xae   : > { %2272 = vmatprep.subr.bf16.mxu0 %v8790_v21  ;;  %v8883_v21 = vld [vmem:[#allocation3 + $0xb0] ss:$36 sps:$4 sm:$0xff]  }
  0xaf   : > { %2142 = vmatpush1.bf16.msra.mxu1 %v8797_v25  ;;  %v8868_v25 = vld [vmem:[#allocation3 + $0x37c] ss:$36 sps:$4 sm:$0xff]  }
  0xb0   : > { %1895 = vmatmul.mubr.bf16.gmra.mrb[28].mxu0 %v9757_v22  ;;  %2143 = vmatprep.subr.bf16.mxu1 %v8802_v27  ;;  %v8866_v27 = vld [vmem:[#allocation3 + $0x378] ss:$36 sps:$4 sm:$0xff]  }
  0xb1   : > { %2081 = vmatmul.mubr.bf16.gmra.mrb[44].mxu1 %v9714_v42  ;;  %2273 = vmatpush1.bf16.msra.mxu0 %v8788_v23  ;;  %v8863_v23 = vld [vmem:[#allocation3 + $0x330] ss:$36 sps:$4 sm:$0xff]  }
  0xb2   : > { %2090 = vmatprep.mubr.bf16.mxu1 %v9720_v48  ;;  %2274 = vmatprep.subr.bf16.mxu0 %v8793_v24  ;;  %v8884_v24 = vld [vmem:[#allocation3 + $0x338] ss:$36 sps:$4 sm:$0xff]  }
  0xb3   : > { %2276 = vmatprep.mubr.bf16.mxu0 %v9677_v56  ;;  %2144 = vmatpush1.bf16.msra.mxu1 %v8800_v30  ;;  %v8812_v56 = vld [vmem:[#allocation3 + $0x4d8] ss:$36 sps:$4 sm:$0xff]  }
  0xb4   : > { %2145 = vmatprep.subr.bf16.mxu1 %v8805_v32  ;;  %v9822_v30 = vld [vmem:[%s9669_s9 + $0x98] ss:$12 sps:$4 sm:$0xff]  }
  0xb5   : > { %2275 = vmatpush1.bf16.msra.mxu0 %v8791_v28  ;;  %v8871_v28 = vld [vmem:[#allocation3 + $0x3c4] ss:$36 sps:$4 sm:$0xff]  }
  0xb6   : > { %2357 = vmatprep.subr.bf16.mxu0 %v8808_v29  ;;  %v8885_v29 = vld [vmem:[#allocation3 + $0xf8] ss:$36 sps:$4 sm:$0xff]   ;;  %v8886_v32 = vld [vmem:[#allocation3 + $0x380] ss:$36 sps:$4 sm:$0xff]  }
  0xb7   : > { %2146 = vmatpush1.bf16.msra.mxu1 %v8803_v34  ;;  %v8874_v34 = vld [vmem:[#allocation3 + $0x40c] ss:$36 sps:$4 sm:$0xff]  }
  0xb8   : > { %2277 = vmatmul.mubr.bf16.vlgmr.msra.gmra.mrb[32].mxu0 %v9683_v7  ;;  %2470 = vmatprep.subr.bf16.mxu1 %v8811_v36  ;;  %v8824_v7 = vld [vmem:[#allocation3 + $0x568] ss:$36 sps:$4 sm:$0xff]  }
  0xb9   : > { %2091 = vmatmul.mubr.bf16.gmra.mrb[48].mxu1 %v9727_v53  ;;  %2286 = vmatprep.mubr.bf16.mxu0 %v9688_v15  ;;  %v8832_v15 = vld [vmem:[#allocation3 + $0x5b4] ss:$36 sps:$4 sm:$0xff]   ;;  %v8872_v36 = vld [vmem:[#allocation3 + $0x408] ss:$36 sps:$4 sm:$0xff]  }
  0xba   : > { %2100 = vmatprep.mubr.bf16.mxu1 %v9730_v58  ;;  %2358 = vmatpush1.bf16.msra.mxu0 %v8806_v33  ;;  %v8869_v33 = vld [vmem:[#allocation3 + $0x3c0] ss:$36 sps:$4 sm:$0xff]  }
  0xbb   : > { %2359 = vmatprep.subr.bf16.mxu0 %v8814_v35  ;;  %v8887_v35 = vld [vmem:[#allocation3 + $0x140] ss:$36 sps:$4 sm:$0xff]  }
  0xbe   : > { %2360 = vmatpush1.bf16.msra.mxu0 %v8812_v56  ;;  %v8877_v56 = vld [vmem:[#allocation3 + $0x454] ss:$36 sps:$4 sm:$0xff]  }
  0xbf   : > { %2361 = vmatprep.subr.bf16.mxu0 %v8820_v38  ;;  %v8888_v38 = vld [vmem:[#allocation3 + $0x3c8] ss:$36 sps:$4 sm:$0xff]  }
  0xc0   : > { %2287 = vmatmul.mubr.bf16.gmra.mrb[36].mxu0 %v9692_v18  ;;  %v8836_v18 = vld [vmem:[#allocation3 + $0x5f8] ss:$36 sps:$4 sm:$0xff]  }
  0xc1   : > { %2101 = vmatmul.mubr.bf16.gmra.mrb[52].mxu1 %v9737_v1  ;;  %2296 = vmatprep.mubr.bf16.mxu0 %v9698_v26  ;;  %v8844_v26 = vld [vmem:[#allocation3 + $0x644] ss:$36 sps:$4 sm:$0xff]  }
  0xc2   : > { %2110 = vmatprep.mubr.bf16.mxu1 %v9740_v3  ;;  %2362 = vmatpush1.bf16.msra.mxu0 %v8818_v39  ;;  %v8889_v39 = vld [vmem:[#allocation3 + $0x188] ss:$36 sps:$4 sm:$0xff]  }
  0xc3   : > { %2363 = vmatprep.subr.bf16.mxu0 %v8826_v40  ;;  %v8875_v40 = vld [vmem:[#allocation3 + $0x450] ss:$36 sps:$4 sm:$0xff]  }
  0xc6   : > { %2364 = vmatpush1.bf16.msra.mxu0 %v8824_v7  ;;  %v8890_v7 = vld [vmem:[#allocation3 + $0x410] ss:$36 sps:$4 sm:$0xff]  }
  0xc7   : > { %2365 = vmatprep.subr.bf16.mxu0 %v8832_v15  ;;  %v9832_v15 = vld [vmem:[%s9669_s9 + $0x4] ss:$12 sps:$4 sm:$0xff]  }
  0xc8   : > { %2297 = vmatmul.mubr.bf16.gmra.mrb[40].mxu0 %v9704_v31  ;;  %v8848_v31 = vld [vmem:[#allocation3 + $0x688] ss:$36 sps:$4 sm:$0xff]  }
  0xc9   : > { %2111 = vmatmul.mubr.bf16.gmra.mrb[56].mxu1 %v9747_v11  ;;  %2306 = vmatprep.mubr.bf16.mxu0 %v9708_v37  ;;  %v8878_v37 = vld [vmem:[#allocation3 + $0x260] ss:$36 sps:$4 sm:$0xff]  }
  0xca   : > { %2120 = vmatprep.mubr.bf16.mxu1 %v9750_v13  ;;  %2366 = vmatpush1.bf16.msra.mxu0 %v8830_v41  ;;  %v8896_v41 = vld [vmem:[#allocation3 + $0x49c] ss:$36 sps:$4 sm:$0xff]  }
  0xcb   : > { %2367 = vmatprep.subr.bf16.mxu0 %v8838_v44  ;;  %v8894_v44 = vld [vmem:[#allocation3 + $0x498] ss:$36 sps:$4 sm:$0xff]  }
  0xce   : > { %2368 = vmatpush1.bf16.msra.mxu0 %v8836_v18  ;;  %v8892_v18 = vld [vmem:[#allocation3 + $0x458] ss:$36 sps:$4 sm:$0xff]  }
  0xcf   : > { %2369 = vmatprep.subr.bf16.mxu0 %v8844_v26  ;;  %v8899_v26 = vld [vmem:[#allocation3 + $0x4e4] ss:$36 sps:$4 sm:$0xff]  }
  0xd0   : > { %2307 = vmatmul.mubr.bf16.gmra.mrb[44].mxu0 %v9714_v42  ;;  %v8823_v42 = vld [vmem:[#allocation3 + $0xac] ss:$36 sps:$4 sm:$0xff]  }
  0xd1   : > { %2121 = vmatmul.mubr.bf16.gmra.mrb[60].mxu1 %v9757_v22  ;;  %2316 = vmatprep.mubr.bf16.mxu0 %v9720_v48  ;;  %v8821_v48 = vld [vmem:[#allocation3 + $0xa8] ss:$36 sps:$4 sm:$0xff]  }
  0xd2   : > { %2163 = vmatprep.mubr.bf16.mxu1 %v12939_v0  ;;  %2370 = vmatpush1.bf16.msra.mxu0 %v8842_v45  ;;  %v9837_v45 = vld [vmem:[%s9669_s9] ss:$12 sps:$4 sm:$0xff]  }
  0xd3   : > { %2371 = vmatprep.subr.bf16.mxu0 %v8850_v46  ;;  %v9842_v46 = vld [vmem:[%s9669_s9 + $0x1c] ss:$12 sps:$4 sm:$0xff]  }
  0xd6   : > { %2372 = vmatpush1.bf16.msra.mxu0 %v8848_v31  ;;  %v8893_v31 = vld [vmem:[#allocation3 + $0x218] ss:$36 sps:$4 sm:$0xff]  }
  0xd7   : > { %7339 = vmatprep.subr.bf16.mxu0 %v8878_v37  ;;  %v8897_v37 = vld [vmem:[#allocation3 + $0x4e0] ss:$36 sps:$4 sm:$0xff]  }
  0xd8   : > { %2317 = vmatmul.mubr.bf16.gmra.mrb[48].mxu0 %v9727_v53  ;;  %v8835_v53 = vld [vmem:[#allocation3 + $0x13c] ss:$36 sps:$4 sm:$0xff]  }
  0xd9   : > { %2164 = vmatmul.mubr.bf16.vlgmr.msra.gmra.mrb[32].mxu1 %v9780_v51  ;;  %2326 = vmatprep.mubr.bf16.mxu0 %v9730_v58  ;;  %v8841_v58 = vld [vmem:[#allocation3 + $0x184] ss:$36 sps:$4 sm:$0xff]  }
  0xda   : > { %2471 = vmatpush1.bf16.msra.mxu1 %v8809_v47  ;;  %2173 = vmatprep.mubr.bf16.mxu1 %v12939_v0  ;;  %v8902_v47 = vld [vmem:[#allocation3 + $0x52c] ss:$36 sps:$4 sm:$0xff]  }
  0xdb   : > { %2472 = vmatprep.subr.bf16.mxu1 %v8817_v49  ;;  %v8900_v49 = vld [vmem:[#allocation3 + $0x528] ss:$36 sps:$4 sm:$0xff]  }
  0xde   : > { %2473 = vmatpush1.bf16.msra.mxu1 %v8815_v50  ;;  %v8905_v50 = vld [vmem:[#allocation3 + $0x574] ss:$36 sps:$4 sm:$0xff]  }
  0xdf   : > { %2474 = vmatprep.subr.bf16.mxu1 %v8823_v42  ;;  %v9416_v42 = vld [vmem:[%s9669_s9 + $0x18] ss:$12 sps:$4 sm:$0xff]  }
  0xe0   : > { %2327 = vmatmul.mubr.bf16.gmra.mrb[52].mxu0 %v9737_v1  ;;  %v8851_v1 = vld [vmem:[#allocation3 + $0x210] ss:$36 sps:$4 sm:$0xff]  }
  0xe1   : > { %2174 = vmatmul.mubr.bf16.gmra.mrb[36].mxu1 %v9787_v55  ;;  %2336 = vmatprep.mubr.bf16.mxu0 %v9740_v3  ;;  %v8856_v3 = vld [vmem:[#allocation3 + $0x25c] ss:$36 sps:$4 sm:$0xff]  }
  0xe2   : > { %2475 = vmatpush1.bf16.msra.mxu1 %v8821_v48  ;;  %2183 = vmatprep.mubr.bf16.mxu1 %v12939_v0  ;;  %v9417_v48 = vld [vmem:[%s9669_s9 + $0x34] ss:$12 sps:$4 sm:$0xff]  }
  0xe3   : > { %2476 = vmatprep.subr.bf16.mxu1 %v8829_v52  ;;  %v8903_v52 = vld [vmem:[#allocation3 + $0x570] ss:$36 sps:$4 sm:$0xff]  }
  0xe6   : > { %2477 = vmatpush1.bf16.msra.mxu1 %v8827_v54  ;;  %v8908_v54 = vld [vmem:[#allocation3 + $0x5bc] ss:$36 sps:$4 sm:$0xff]  }
  0xe7   : > { %2478 = vmatprep.subr.bf16.mxu1 %v8835_v53  ;;  %v8906_v53 = vld [vmem:[#allocation3 + $0x5b8] ss:$36 sps:$4 sm:$0xff]  }
  0xe8   : > { %2337 = vmatmul.mubr.bf16.gmra.mrb[56].mxu0 %v9747_v11 }
  0xe9   : > { %2184 = vmatmul.mubr.bf16.gmra.mrb[40].mxu1 %v9794_v60  ;;  %2346 = vmatprep.mubr.bf16.mxu0 %v9750_v13 }
  0xea   : > { %2479 = vmatpush1.bf16.msra.mxu1 %v8833_v57  ;;  %2193 = vmatprep.mubr.bf16.mxu1 %v12939_v0  ;;  %v8911_v57 = vld [vmem:[#allocation3 + $0x604] ss:$36 sps:$4 sm:$0xff]  }
  0xeb   : > { %2480 = vmatprep.subr.bf16.mxu1 %v8841_v58  ;;  %v9418_v58 = vld [vmem:[%s9669_s9 + $0x30] ss:$12 sps:$4 sm:$0xff]  }
  0xee   : > { %2481 = vmatpush1.bf16.msra.mxu1 %v8839_v59  ;;  %v9419_v59 = vld [vmem:[%s9669_s9 + $0x4c] ss:$12 sps:$4 sm:$0xff]  }
  0xef   : > { %2482 = vmatprep.subr.bf16.mxu1 %v8847_v61  ;;  %v8909_v61 = vld [vmem:[#allocation3 + $0x600] ss:$36 sps:$4 sm:$0xff]  }
  0xf0   : > { %2347 = vmatmul.mubr.bf16.gmra.mrb[60].mxu0 %v9757_v22 }
  0xf1   : > { %2194 = vmatmul.mubr.bf16.gmra.mrb[44].mxu1 %v9801_v2  ;;  %2389 = vmatprep.mubr.bf16.mxu0 %v12939_v0 }
  0xf2   : > { %2483 = vmatpush1.bf16.msra.mxu1 %v8845_v62  ;;  %2203 = vmatprep.mubr.bf16.mxu1 %v12939_v0 }
  0xf3   : > { %2484 = vmatprep.subr.bf16.mxu1 %v8853_v63  ;;  %v8914_v63 = vld [vmem:[#allocation3 + $0x64c] ss:$36 sps:$4 sm:$0xff]  }
  0xf6   : > { %2485 = vmatpush1.bf16.msra.mxu1 %v8851_v1 }
  0xf7   : > { %2486 = vmatprep.subr.bf16.mxu1 %v8856_v3 }
  0xf8   : > { %2390 = vmatmul.mubr.bf16.vlgmr.msra.gmra.mrb[32].mxu0 %v9780_v51 }
  0xf9   : > { %2204 = vmatmul.mubr.bf16.gmra.mrb[48].mxu1 %v9808_v10  ;;  %2399 = vmatprep.mubr.bf16.mxu0 %v12939_v0 }
  0xfa   : > { %2487 = vmatpush1.bf16.msra.mxu1 %v8854_v4  ;;  %2213 = vmatprep.mubr.bf16.mxu1 %v12939_v0 }
  0xfb   : > { %2488 = vmatprep.subr.bf16.mxu1 %v8859_v5  ;;  %7340 = vmatpush3.bf16.msra.mxu0 %v8879_v6  ;;  %v8912_v5 = vld [vmem:[#allocation3 + $0x648] ss:$36 sps:$4 sm:$0xff]   ;;  %v8917_v6 = vld [vmem:[#allocation3 + $0x694] ss:$36 sps:$4 sm:$0xff]  }
  0xfc   : > { %7341 = vmatprep.subr.bf16.mxu0 %v8880_v8  ;;  %v9862_v8 = vld [vmem:[%s9669_s9 + $0xb0] ss:$12 sps:$4 sm:$0xff]  }
  0xfe   : > { %2489 = vmatpush1.bf16.msra.mxu1 %v8857_v9  ;;  %v9421_v9 = vld [vmem:[%s9669_s9 + $0x48] ss:$12 sps:$4 sm:$0xff]  }
  0xff   : > { %2490 = vmatprep.subr.bf16.mxu1 %v8862_v12  ;;  %7342 = vmatpush3.bf16.msra.mxu0 %v8881_v14  ;;  %v9422_v12 = vld [vmem:[%s9669_s9 + $0x64] ss:$12 sps:$4 sm:$0xff]  }
 0x100   : > { %2400 = vmatmul.mubr.bf16.gmra.mrb[36].mxu0 %v9787_v55  ;;  %7343 = vmatprep.subr.bf16.mxu0 %v8882_v19  ;;  %v8915_v14 = vld [vmem:[#allocation3 + $0x690] ss:$36 sps:$4 sm:$0xff]  }
 0x101   : > { %2214 = vmatmul.mubr.bf16.gmra.mrb[52].mxu1 %v9815_v20  ;;  %2409 = vmatprep.mubr.bf16.mxu0 %v12939_v0 }
 0x102   : > { %2491 = vmatpush1.bf16.msra.mxu1 %v8860_v16  ;;  %2223 = vmatprep.mubr.bf16.mxu1 %v12939_v0 }
 0x103   : > { %2492 = vmatprep.subr.bf16.mxu1 %v8865_v17  ;;  %7344 = vmatpush3.bf16.msra.mxu0 %v8883_v21  ;;  %v9870_v17 = vld [vmem:[#allocation3 + $0x4a0] ss:$36 sps:$4 sm:$0xff]  }
 0x104   : > { %7345 = vmatprep.subr.bf16.mxu0 %v8884_v24  ;;  %v9880_v24 = vld [vmem:[%s9669_s9 + $0x60] ss:$12 sps:$4 sm:$0xff]  }
 0x106   : > { %2493 = vmatpush1.bf16.msra.mxu1 %v8863_v23 }
 0x107   : > { %2494 = vmatprep.subr.bf16.mxu1 %v8868_v25  ;;  %7346 = vmatpush3.bf16.msra.mxu0 %v8885_v29  ;;  %v9885_v25 = vld [vmem:[%s9669_s9 + $0x7c] ss:$12 sps:$4 sm:$0xff]   ;;  %v12941_v29 = vlaneseq }
 0x108   : > { %2410 = vmatmul.mubr.bf16.gmra.mrb[40].mxu0 %v9794_v60  ;;  %7347 = vmatprep.subr.bf16.mxu0 %v8886_v32 }
 0x109   : > { %2224 = vmatmul.mubr.bf16.gmra.mrb[56].mxu1 %v9822_v30  ;;  %2419 = vmatprep.mubr.bf16.mxu0 %v12939_v0 }
 0x10a   : > { %2495 = vmatpush1.bf16.msra.mxu1 %v8866_v27  ;;  %2233 = vmatprep.mubr.bf16.mxu1 %v12939_v0 }
 0x10b   : > { %2496 = vmatprep.subr.bf16.mxu1 %v8871_v28  ;;  %7348 = vmatpush3.bf16.msra.mxu0 %v8887_v35  ;;  %v9902_v35 = vshrl.u32 %v12941_v29, 7 }
 0x10c   : > { %7349 = vmatprep.subr.bf16.mxu0 %v8888_v38 }
 0x10d   : > { %13090 = vst [vmem:[#allocation9_spill] sm:$0xff] %v9902_v35 }
 0x10e   : > { %2497 = vmatpush1.bf16.msra.mxu1 %v8869_v33 }
 0x10f   : > { %2498 = vmatprep.subr.bf16.mxu1 %v8874_v34  ;;  %7350 = vmatpush3.bf16.msra.mxu0 %v8889_v39  ;;  %v9898_v34 = vld [vmem:[%s9669_s9 + $0x78] ss:$12 sps:$4 sm:$0xff]   ;;  %v12938_v39 = vsub.s32 0, %v9902_v35 }
 0x110   : > { %2420 = vmatmul.mubr.bf16.gmra.mrb[44].mxu0 %v9801_v2  ;;  %7351 = vmatprep.subr.bf16.mxu0 %v8890_v7  ;;  %v9918_v7 = vld [vmem:[%s12929_s2] sm:$0xff] }
 0x111   : > { %2234 = vmatmul.mubr.bf16.gmra.mrb[60].mxu1 %v9717_v43  ;;  %2429 = vmatprep.mubr.bf16.mxu0 %v12939_v0  ;;  %v8891_v43 = vld [vmem:[#allocation3 + $0x1d0] ss:$36 sps:$4 sm:$0xff]  }
 0x112   : > { %2499 = vmatpush1.bf16.msra.mxu1 %v8872_v36  ;;  %2502 = vmatprep.mubr.bf16.mxu1 %v9832_v15  ;;  %v9905_v36 = vld [vmem:[%s9669_s9 + $0x94] ss:$12 sps:$4 sm:$0xff]  }
 0x113   : > { %2500 = vmatprep.subr.bf16.mxu1 %v8877_v56  ;;  %7352 = vmatpush3.bf16.msra.mxu0 %v8891_v43  ;;  %v9927_v43 = vrot.slane %v9918_v7, %v12938_v39 }
 0x114   : > { %7353 = vmatprep.subr.bf16.mxu0 %v8892_v18 }
 0x116   : > { %2501 = vmatpush1.bf16.msra.mxu1 %v8875_v40 }
 0x117   : > { %2583 = vmatprep.subr.bf16.mxu1 %v8896_v41  ;;  %7354 = vmatpush3.bf16.msra.mxu0 %v8893_v31 }
 0x118   : > { %2430 = vmatmul.mubr.bf16.gmra.mrb[48].mxu0 %v9808_v10 }
 0x119   : > { %2503 = vmatmul.mubr.bf16.vlgmr.msra.gmra.mrb[64].mxu1 %v9837_v45  ;;  %2439 = vmatprep.mubr.bf16.mxu0 %v12939_v0 }
 0x11a   : > { %2512 = vmatprep.mubr.bf16.mxu1 %v9842_v46  ;;  %2584 = vmatpush1.bf16.msra.mxu1 %v8894_v44 }
 0x11b   : > { %2585 = vmatprep.subr.bf16.mxu1 %v8899_v26 }
 0x11e   : > { %2586 = vmatpush1.bf16.msra.mxu1 %v8897_v37 }
 0x11f   : > { %2587 = vmatprep.subr.bf16.mxu1 %v8902_v47 }
 0x120   : > { %2440 = vmatmul.mubr.bf16.gmra.mrb[52].mxu0 %v9815_v20 }
 0x121   : > { %2513 = vmatmul.mubr.bf16.gmra.mrb[68].mxu1 %v9416_v42  ;;  %2449 = vmatprep.mubr.bf16.mxu0 %v12939_v0 }
 0x122   : > { %2522 = vmatprep.mubr.bf16.mxu1 %v9417_v48  ;;  %2588 = vmatpush1.bf16.msra.mxu1 %v8900_v49 }
 0x123   : > { %2589 = vmatprep.subr.bf16.mxu1 %v8905_v50 }
 0x126   : > { %2590 = vmatpush1.bf16.msra.mxu1 %v8903_v52 }
 0x127   : > { %2591 = vmatprep.subr.bf16.mxu1 %v8908_v54 }
 0x128   : > { %2450 = vmatmul.mubr.bf16.gmra.mrb[56].mxu0 %v9822_v30 }
 0x129   : > { %2523 = vmatmul.mubr.bf16.gmra.mrb[72].mxu1 %v9418_v58  ;;  %2459 = vmatprep.mubr.bf16.mxu0 %v12939_v0 }
 0x12a   : > { %2532 = vmatprep.mubr.bf16.mxu1 %v9419_v59  ;;  %2592 = vmatpush1.bf16.msra.mxu1 %v8906_v53 }
 0x12b   : > { %2593 = vmatprep.subr.bf16.mxu1 %v8911_v57 }
 0x12c   : > { %v9853_v62 = vpop.f32.mrb[0].mxu1 }
 0x12d   : > { %v9855_v1 = vpop.f32.mrb[1].mxu1 }
 0x12e   : > { %v9857_v3 = vpop.f32.mrb[2].mxu1  ;;  %2594 = vmatpush1.bf16.msra.mxu1 %v8909_v61 }
 0x12f   : > { %v9859_v4 = vpop.f32.mrb[3].mxu1  ;;  %2595 = vmatprep.subr.bf16.mxu1 %v8914_v63 }
 0x130   : > { %2460 = vmatmul.mubr.bf16.gmra.mrb[60].mxu0 %v9862_v8 }
 0x131   : > { %2533 = vmatmul.mubr.bf16.gmra.mrb[76].mxu1 %v9421_v9  ;;  %2728 = vmatprep.mubr.bf16.mxu0 %v9832_v15  ;;  %v12937_v15 = vsub.s32 1, %v9902_v35 }
 0x132   : > { %2542 = vmatprep.mubr.bf16.mxu1 %v9422_v12  ;;  %2596 = vmatpush1.bf16.msra.mxu1 %v8912_v5 }
 0x133   : > { %2597 = vmatprep.subr.bf16.mxu1 %v8917_v6  ;;  %v9932_v44 = vrot.slane %v9918_v7, %v12937_v15 }
 0x134   : > { %v9868_v16 = vpop.f32.mrb[4].mxu1 }
 0x135   : > { %v9872_v19 = vpop.f32.mrb[5].mxu1 }
 0x136   : > { %v9874_v21 = vpop.f32.mrb[6].mxu1  ;;  %2598 = vmatpush1.bf16.msra.mxu1 %v8915_v14 }
 0x137   : > { %v9876_v23 = vpop.f32.mrb[7].mxu1  ;;  %7691 = vmatprep.subr.bf16.mxu1 %v9870_v17 }
 0x138   : > { %2729 = vmatmul.mubr.bf16.vlgmr.msra.gmra.mrb[64].mxu0 %v9837_v45 }
 0x139   : > { %2543 = vmatmul.mubr.bf16.gmra.mrb[80].mxu1 %v9880_v24  ;;  %2736 = vmatprep.mubr.bf16.mxu0 %v9842_v46 }
 0x13a   : > { %2552 = vmatprep.mubr.bf16.mxu1 %v9885_v25 }
 0x13c   : > { %v9889_v27 = vpop.f32.mrb[8].mxu1 }
 0x13d   : > { %v9891_v28 = vpop.f32.mrb[9].mxu1 }
 0x13e   : > { %v9893_v32 = vpop.f32.mrb[10].mxu1 }
 0x13f   : > { %v9895_v33 = vpop.f32.mrb[11].mxu1 }
 0x140   : > { %2737 = vmatmul.mubr.bf16.gmra.mrb[68].mxu0 %v9416_v42 }
 0x141   : > { %2553 = vmatmul.mubr.bf16.gmra.mrb[84].mxu1 %v9898_v34  ;;  %2744 = vmatprep.mubr.bf16.mxu0 %v9417_v48 }
 0x142   : > { %2562 = vmatprep.mubr.bf16.mxu1 %v9905_v36 }
 0x144   : > { %v9908_v56 = vpop.f32.mrb[12].mxu1 }
 0x145   : > { %v9910_v38 = vpop.f32.mrb[13].mxu1 }
 0x146   : > { %v9913_v40 = vpop.f32.mrb[14].mxu1 }
 0x147   : > { %v9921_v41 = vpop.f32.mrb[15].mxu1 }
 0x148   : > { %2745 = vmatmul.mubr.bf16.gmra.mrb[72].mxu0 %v9418_v58 }
 0x149   : > { %2563 = vmatmul.mubr.bf16.gmra.mrb[88].mxu1 %v9747_v11  ;;  %2752 = vmatprep.mubr.bf16.mxu0 %v9419_v59 }
 0x14a   : > { %2572 = vmatprep.mubr.bf16.mxu1 %v9750_v13 }
 0x14b   : > { %v1826_v18 = vpop.f32.mrb[0].mxu0 }
 0x14c   : > { %v9935_v26 = vpop.f32.mrb[16].mxu1  ;;  %v1827_v45 = vadd.f32 %v1826_v18, %v9927_v43  ;;  %v1828_v11 = vpop.f32.mrb[1].mxu0 }
 0x14d   : > { %v9938_v46 = vpop.f32.mrb[17].mxu1  ;;  %v1829_v31 = vadd.f32 %v1828_v11, %v9932_v44  ;;  %v1830_v37 = vpop.f32.mrb[2].mxu0 }
 0x14e   : > { %v9941_v47 = vpop.f32.mrb[18].mxu1  ;;  %v1940_v49 = vadd.f32 %v9853_v62, %v1827_v45  ;;  %v1831_v50 = vadd.f32 %v1830_v37, %v9927_v43  ;;  %v1832_v42 = vpop.f32.mrb[3].mxu0  ;;  %v8919_v45 = vld [vmem:[#allocation3 + $0x4e8] ss:$36 sps:$4 sm:$0xff]  }
 0x14f   : > { %v9945_v13 = vpop.f32.mrb[19].mxu1  ;;  %v1942_v48 = vadd.f32 %v9855_v1, %v1829_v31  ;;  %v1833_v52 = vadd.f32 %v1832_v42, %v9932_v44 }
 0x150   : > { %v1944_v54 = vadd.f32 %v9857_v3, %v1831_v50  ;;  %2753 = vmatmul.mubr.bf16.gmra.mrb[76].mxu0 %v9421_v9 }
 0x151   : > { %2573 = vmatmul.mubr.bf16.gmra.mrb[92].mxu1 %v9757_v22  ;;  %v1946_v53 = vadd.f32 %v9859_v4, %v1833_v52  ;;  %2760 = vmatprep.mubr.bf16.mxu0 %v9422_v12 }
 0x152   : > { %2615 = vmatprep.mubr.bf16.mxu1 %v12939_v0  ;;  %v9953_v57 = vpack.c.bf16 %v1944_v54, %v1940_v49 }
 0x153   : > { %v9955_v58 = vpack.c.bf16 %v1946_v53, %v1942_v48  ;;  %v1836_v59 = vpop.f32.mrb[4].mxu0 }
 0x154   : > { %v9957_v61 = vpop.f32.mrb[20].mxu1  ;;  %v1837_v62 = vadd.f32 %v1836_v59, %v9927_v43  ;;  %v1838_v63 = vpop.f32.mrb[5].mxu0 }
 0x155   : > { %13091 = vst [vmem:[#allocation10_spill] sm:$0xff] %v9955_v58  ;;  %v9960_v1 = vpop.f32.mrb[21].mxu1  ;;  %v1839_v22 = vadd.f32 %v1838_v63, %v9932_v44  ;;  %v1840_v3 = vpop.f32.mrb[6].mxu0  ;;  %v8921_v63 = vld [vmem:[#allocation3 + $0x578] ss:$36 sps:$4 sm:$0xff]  }
 0x156   : > { %v9963_v5 = vpop.f32.mrb[22].mxu1  ;;  %v1950_v4 = vadd.f32 %v9868_v16, %v1837_v62  ;;  %v1841_v6 = vadd.f32 %v1840_v3, %v9927_v43  ;;  %v1842_v9 = vpop.f32.mrb[7].mxu0 }
 0x157   : > { %v9967_v12 = vpop.f32.mrb[23].mxu1  ;;  %v1952_v14 = vadd.f32 %v9872_v19, %v1839_v22  ;;  %v1843_v18 = vadd.f32 %v1842_v9, %v9932_v44 }
 0x158   : > { %v1954_v11 = vadd.f32 %v9874_v21, %v1841_v6  ;;  %2761 = vmatmul.mubr.bf16.gmra.mrb[80].mxu0 %v9880_v24  ;;  %v8920_v21 = vld [vmem:[#allocation3 + $0x530] ss:$36 sps:$4 sm:$0xff]  }
 0x159   : > { %2616 = vmatmul.mubr.bf16.vlgmr.msra.gmra.mrb[64].mxu1 %v9780_v51  ;;  %v1956_v31 = vadd.f32 %v9876_v23, %v1843_v18  ;;  %2768 = vmatprep.mubr.bf16.mxu0 %v9885_v25 }
 0x15a   : > { %2625 = vmatprep.mubr.bf16.mxu1 %v12939_v0  ;;  %v9977_v16 = vpack.c.bf16 %v1954_v11, %v1950_v4  ;;  %7692 = vmatpush3.bf16.msra.mxu1 %v9870_v17 }
 0x15b   : > { %v9980_v19 = vpack.c.bf16 %v1956_v31, %v1952_v14  ;;  %v1846_v37 = vpop.f32.mrb[8].mxu0  ;;  %7693 = vmatprep.subr.bf16.mxu1 %v8919_v45 }
 0x15c   : > { %v9982_v49 = vpop.f32.mrb[24].mxu1  ;;  %v1847_v50 = vadd.f32 %v1846_v37, %v9927_v43  ;;  %v1848_v24 = vpop.f32.mrb[9].mxu0 }
 0x15d   : > { %13092 = vst [vmem:[#allocation11_spill] sm:$0xff] %v9980_v19  ;;  %v9985_v42 = vpop.f32.mrb[25].mxu1  ;;  %v1849_v23 = vadd.f32 %v1848_v24, %v9932_v44  ;;  %v1850_v48 = vpop.f32.mrb[10].mxu0  ;;  %v8923_v24 = vld [vmem:[#allocation3 + $0x608] ss:$36 sps:$4 sm:$0xff]  }
 0x15e   : > { %v9988_v25 = vpop.f32.mrb[26].mxu1  ;;  %v1960_v52 = vadd.f32 %v9889_v27, %v1847_v50  ;;  %v1851_v17 = vadd.f32 %v1850_v48, %v9927_v43  ;;  %v1852_v54 = vpop.f32.mrb[11].mxu0  ;;  %7694 = vmatpush3.bf16.msra.mxu1 %v8919_v45  ;;  %v9427_v48 = vld [vmem:[%s9669_s9 + $0x90] ss:$12 sps:$4 sm:$0xff]  }
 0x15f   : > { %v9992_v53 = vpop.f32.mrb[27].mxu1  ;;  %v1962_v59 = vadd.f32 %v9891_v28, %v1849_v23  ;;  %v1853_v62 = vadd.f32 %v1852_v54, %v9932_v44  ;;  %7695 = vmatprep.subr.bf16.mxu1 %v8920_v21 }
 0x160   : > { %v1964_v22 = vadd.f32 %v9893_v32, %v1851_v17  ;;  %2769 = vmatmul.mubr.bf16.gmra.mrb[84].mxu0 %v9898_v34  ;;  %v8922_v32 = vld [vmem:[#allocation3 + $0x5c0] ss:$36 sps:$4 sm:$0xff]  }
 0x161   : > { %2626 = vmatmul.mubr.bf16.gmra.mrb[68].mxu1 %v9787_v55  ;;  %v1966_v27 = vadd.f32 %v9895_v33, %v1853_v62  ;;  %2776 = vmatprep.mubr.bf16.mxu0 %v9905_v36 }
 0x162   : > { %2635 = vmatprep.mubr.bf16.mxu1 %v12939_v0  ;;  %v10002_v3 = vpack.c.bf16 %v1964_v22, %v1960_v52  ;;  %7696 = vmatpush3.bf16.msra.mxu1 %v8920_v21  ;;  %v9428_v52 = vld [vmem:[%s9669_s9 + $0xac] ss:$12 sps:$4 sm:$0xff]  }
 0x163   : > { %v10004_v28 = vpack.c.bf16 %v1966_v27, %v1962_v59  ;;  %v1856_v4 = vpop.f32.mrb[12].mxu0  ;;  %7697 = vmatprep.subr.bf16.mxu1 %v8921_v63  ;;  %v8924_v59 = vld [vmem:[#allocation3 + $0x650] ss:$36 sps:$4 sm:$0xff]  }
 0x164   : > { %v10006_v6 = vpop.f32.mrb[28].mxu1  ;;  %v1857_v9 = vadd.f32 %v1856_v4, %v9927_v43  ;;  %v1858_v14 = vpop.f32.mrb[13].mxu0 }
 0x165   : > { %13093 = vst [vmem:[#allocation12_spill] sm:$0xff] %v10004_v28  ;;  %v10009_v34 = vpop.f32.mrb[29].mxu1  ;;  %v1859_v33 = vadd.f32 %v1858_v14, %v9932_v44  ;;  %v1860_v18 = vpop.f32.mrb[14].mxu0  ;;  %v8925_v14 = vld [vmem:[#allocation3 + $0x698] ss:$36 sps:$4 sm:$0xff]  }
 0x166   : > { %v10012_v36 = vpop.f32.mrb[30].mxu1  ;;  %v1970_v45 = vadd.f32 %v9908_v56, %v1857_v9  ;;  %v1861_v11 = vadd.f32 %v1860_v18, %v9927_v43  ;;  %v1862_v31 = vpop.f32.mrb[15].mxu0  ;;  %7698 = vmatpush3.bf16.msra.mxu1 %v8921_v63  ;;  %v9429_v18 = vld [vmem:[%s9669_s9 + $0xa8] ss:$12 sps:$4 sm:$0xff]   ;;  %s8523_s9 = smul.u32 384, %s230_s8 }
 0x167   : > { %v10016_v37 = vpop.f32.mrb[31].mxu1  ;;  %v1972_v21 = vadd.f32 %v9910_v38, %v1859_v33  ;;  %v1863_v50 = vadd.f32 %v1862_v31, %v9932_v44  ;;  %7699 = vmatprep.subr.bf16.mxu1 %v8922_v32 }
 0x168   : > { %v1974_v23 = vadd.f32 %v9913_v40, %v1861_v11  ;;  %2777 = vmatmul.mubr.bf16.gmra.mrb[88].mxu0 %v9427_v48  ;;  %s12755_s11 = scalar_lea.vmem [#allocation6], %s8523_s9 }
 0x169   : > { %2636 = vmatmul.mubr.bf16.gmra.mrb[72].mxu1 %v9794_v60  ;;  %v1976_v56 = vadd.f32 %v9921_v41, %v1863_v50  ;;  %2784 = vmatprep.mubr.bf16.mxu0 %v9428_v52  ;;  %s6894_s14 = sshll.u32 %s12755_s11, 4  ;;  %s12879_s14 = int_to_ptr.vmem [resolvable:$true] %s6894_s14 }
 0x16a   : > { %2645 = vmatprep.mubr.bf16.mxu1 %v12939_v0  ;;  %v10026_v17 = vpack.c.bf16 %v1974_v23, %v1970_v45  ;;  %7700 = vmatpush3.bf16.msra.mxu1 %v8922_v32  ;;  %s9474_s23 = scalar_lea.vmem %s12879_s14, 6144  ;;  %p9481_p2 = scmp.lt.s32.totalorder %s12879_s14, %s9479_s26 }
 0x16b   : > { %v10028_v38 = vpack.c.bf16 %v1976_v56, %v1972_v21  ;;  %v1866_v54 = vpop.f32.mrb[16].mxu0  ;;  %7701 = vmatprep.subr.bf16.mxu1 %v8923_v24  ;;  %p9475_p6 = scmp.ne.s32.totalorder %s12879_s14, %s9474_s23  ;;  %p9482_p3 = scmp.lt.s32.totalorder %s9480_s30, %s9474_s23 }
 0x16c   : > { %v1867_v40 = vadd.f32 %v1866_v54, %v9927_v43  ;;  %v1868_v62 = vpop.f32.mrb[17].mxu0 }
 0x16d   : > { %13094 = vst [vmem:[#allocation13_spill] sm:$0xff] %v10028_v38  ;;  %v1869_v63 = vadd.f32 %v1868_v62, %v9932_v44  ;;  %v1870_v22 = vpop.f32.mrb[18].mxu0  ;;  %p9476_p10 = pnand %p9475_p6, %p13647_p9  ;;  %p9483_p4 = por %p9482_p3, %p9481_p2 }
 0x16e   : > { %v1980_v41 = vadd.f32 %v9935_v26, %v1867_v40  ;;  %v1871_v27 = vadd.f32 %v1870_v22, %v9927_v43  ;;  %v1872_v4 = vpop.f32.mrb[19].mxu0  ;;  %7702 = vmatpush3.bf16.msra.mxu1 %v8923_v24 }
 0x16f   : > { %v1982_v32 = vadd.f32 %v9938_v46, %v1869_v63  ;;  %v1873_v9 = vadd.f32 %v1872_v4, %v9932_v44  ;;  %7703 = vmatprep.subr.bf16.mxu1 %v8924_v59  ;;  %p9477_p12 = pneg %p9476_p10 }
 0x170   : > { %v1984_v33 = vadd.f32 %v9941_v47, %v1871_v27  ;;  %2785 = vmatmul.mubr.bf16.gmra.mrb[92].mxu0 %v9429_v18 }
 0x171   : > { %2646 = vmatmul.mubr.bf16.gmra.mrb[76].mxu1 %v9801_v2  ;;  %v1986_v45 = vadd.f32 %v9945_v13, %v1873_v9  ;;  %7739 = vmatprep.mubr.msk.bf16.mxu0 %vm12984_vm0, %v9953_v57  ;;  %p9484_p7 = pnand %p9483_p4, %p9477_p12 }
 0x172   : > { %2655 = vmatprep.mubr.bf16.mxu1 %v12939_v0  ;;  %v10043_v26 = vpack.c.bf16 %v1984_v33, %v1980_v41  ;;  %7704 = vmatpush3.bf16.msra.mxu1 %v8924_v59 }
 0x173   : > { %v10045_v46 = vpack.c.bf16 %v1986_v45, %v1982_v32  ;;  %v1876_v11 = vpop.f32.mrb[20].mxu0  ;;  %7705 = vmatprep.subr.bf16.mxu1 %v8925_v14 }
 0x174   : > { %v1877_v47 = vadd.f32 %v1876_v11, %v9927_v43  ;;  %v1878_v31 = vpop.f32.mrb[21].mxu0 }
 0x175   : > { %13095 = vst [vmem:[#allocation14_spill] sm:$0xff] %v10045_v46  ;;  %v1879_v21 = vadd.f32 %v1878_v31, %v9932_v44  ;;  %v1880_v50 = vpop.f32.mrb[22].mxu0 }
 0x176   : > { %v1990_v13 = vadd.f32 %v9957_v61, %v1877_v47  ;;  %v1881_v24 = vadd.f32 %v1880_v50, %v9927_v43  ;;  %v1882_v23 = vpop.f32.mrb[23].mxu0  ;;  %7706 = vmatpush3.bf16.msra.mxu1 %v8925_v14 }
 0x177   : > { %v1992_v48 = vadd.f32 %v9960_v1, %v1879_v21  ;;  %v1883_v56 = vadd.f32 %v1882_v23, %v9932_v44 }
 0x178   : > { %v1994_v52 = vadd.f32 %v9963_v5, %v1881_v24 }
 0x179   : > { %2656 = vmatmul.mubr.bf16.gmra.mrb[80].mxu1 %v9808_v10  ;;  %v1996_v54 = vadd.f32 %v9967_v12, %v1883_v56 }
 0x17a   : > { %2665 = vmatprep.mubr.bf16.mxu1 %v12939_v0  ;;  %v10057_v59 = vpack.c.bf16 %v1994_v52, %v1990_v13 }
 0x17b   : > { %v10059_v40 = vpack.c.bf16 %v1996_v54, %v1992_v48  ;;  %v1886_v61 = vpop.f32.mrb[24].mxu0 }
 0x17c   : > { %v1887_v62 = vadd.f32 %v1886_v61, %v9927_v43  ;;  %v1888_v63 = vpop.f32.mrb[25].mxu0 }
 0x17d   : > { %13096 = vst [vmem:[#allocation15_spill] sm:$0xff] %v10059_v40  ;;  %v1889_v1 = vadd.f32 %v1888_v63, %v9932_v44  ;;  %v1890_v22 = vpop.f32.mrb[26].mxu0 }
 0x17e   : > { %v2000_v41 = vadd.f32 %v9982_v49, %v1887_v62  ;;  %v1891_v5 = vadd.f32 %v1890_v22, %v9927_v43  ;;  %v1892_v27 = vpop.f32.mrb[27].mxu0 }
 0x17f   : > { %v2002_v12 = vadd.f32 %v9985_v42, %v1889_v1  ;;  %v1893_v4 = vadd.f32 %v1892_v27, %v9932_v44 }
 0x180   : > { %v2004_v32 = vadd.f32 %v9988_v25, %v1891_v5 }
 0x181   : > { %2666 = vmatmul.mubr.bf16.gmra.mrb[84].mxu1 %v9815_v20  ;;  %v2006_v9 = vadd.f32 %v9992_v53, %v1893_v4 }
 0x182   : > { %2675 = vmatprep.mubr.bf16.mxu1 %v12939_v0  ;;  %v10071_v14 = vpack.c.bf16 %v2004_v32, %v2000_v41 }
 0x183   : > { %v10073_v33 = vpack.c.bf16 %v2006_v9, %v2002_v12  ;;  %v1896_v49 = vpop.f32.mrb[28].mxu0 }
 0x184   : > { %v1897_v18 = vadd.f32 %v1896_v49, %v9927_v43  ;;  %v1898_v45 = vpop.f32.mrb[29].mxu0 }
 0x185   : > { %13097 = vst [vmem:[#allocation16_spill] sm:$0xff] %v10073_v33  ;;  %v1899_v42 = vadd.f32 %v1898_v45, %v9932_v44  ;;  %v1900_v11 = vpop.f32.mrb[30].mxu0 }
 0x186   : > { %v2010_v47 = vadd.f32 %v10006_v6, %v1897_v18  ;;  %v1901_v25 = vadd.f32 %v1900_v11, %v9927_v43  ;;  %v1902_v31 = vpop.f32.mrb[31].mxu0  ;;  %v12936_v43 = vsub.s32 2, %v9902_v35 }
 0x187   : > { %v2012_v53 = vadd.f32 %v10009_v34, %v1899_v42  ;;  %v1903_v21 = vadd.f32 %v1902_v31, %v9932_v44  ;;  %v529_v44 = vsub.s32 3, %v9902_v35 }
 0x188   : > { %v2014_v50 = vadd.f32 %v10012_v36, %v1901_v25 }
 0x189   : > { %2676 = vmatmul.mubr.bf16.gmra.mrb[88].mxu1 %v9822_v30  ;;  %v2016_v13 = vadd.f32 %v10016_v37, %v1903_v21  ;;  %v533_v21 = vsub.s32 4, %v9902_v35 }
 0x18a   : > { %2685 = vmatprep.mubr.bf16.mxu1 %v12939_v0  ;;  %v10085_v24 = vpack.c.bf16 %v2014_v50, %v2010_v47 }
 0x18b   : > { %v10087_v23 = vpack.c.bf16 %v2016_v13, %v2012_v53  ;;  %v537_v13 = vsub.s32 5, %v9902_v35 }
 0x18d   : > { %13098 = vst [vmem:[#allocation17_spill] sm:$0xff] %v10087_v23 }
 0x191   : > { %2686 = vmatmul.mubr.bf16.gmra.mrb[92].mxu1 %v9862_v8 }
 0x192   : > { %7707 = vmatprep.mubr.bf16.mxu1 %v9780_v51  ;;  %v10102_v51 = vrot.slane %v9918_v7, %v12936_v43 }
 0x199   : > { %7708 = vmatmul.mubr.bf16.vlgmr.msra.gmra.mrb[96].mxu1 %v9787_v55 }
 0x19a   : > { %7711 = vmatprep.mubr.bf16.mxu1 %v9794_v60  ;;  %v10105_v60 = vrot.slane %v9918_v7, %v529_v44 }
 0x1a1   : > { %7712 = vmatmul.mubr.bf16.gmra.mrb[100].mxu1 %v9801_v2 }
 0x1a2   : > { %7715 = vmatprep.mubr.bf16.mxu1 %v9808_v10 }
 0x1a9   : > { %7716 = vmatmul.mubr.bf16.gmra.mrb[104].mxu1 %v9815_v20 }
 0x1aa   : > { %7719 = vmatprep.mubr.bf16.mxu1 %v9822_v30 }
 0x1ac   : > { %v2165_v55 = vpop.f32.mrb[32].mxu1 }
 0x1ad   : > { %v2167_v2 = vpop.f32.mrb[33].mxu1  ;;  %v8219_v10 = vadd.f32 %v2165_v55, %v10102_v51 }
 0x1ae   : > { %v2169_v6 = vpop.f32.mrb[34].mxu1  ;;  %v8220_v20 = vadd.f32 %v2167_v2, %v10105_v60 }
 0x1af   : > { %v8221_v34 = vadd.f32 %v2169_v6, %v10102_v51  ;;  %v2171_v36 = vpop.f32.mrb[35].mxu1 }
 0x1b0   : > { %v8222_v30 = vadd.f32 %v2171_v36, %v10105_v60  ;;  %v10144_v36 = vrot.slane %v9918_v7, %v533_v21 }
 0x1b1   : > { %v10111_v37 = vpack.c.bf16 %v8221_v34, %v8219_v10  ;;  %7720 = vmatmul.mubr.bf16.gmra.mrb[108].mxu1 %v9862_v8 }
 0x1b2   : > { %v2893_v48 = vpack.c.bf16 %v8222_v30, %v8220_v20  ;;  %v10149_v30 = vrot.slane %v9918_v7, %v537_v13 }
 0x1b3   : > { %13099 = vst [vmem:[#allocation18_spill] sm:$0xff] %v10111_v37 }
 0x1b4   : > { %v2175_v56 = vpop.f32.mrb[36].mxu1  ;;  %3456 = vrot.lane.b32.xlu0 %v2893_v48, %s9546_s12  ;;  %8475 = vmatprep.subr.msk.bf16.mxu0 %vm12984_vm0, %v2893_v48  ;;  %v3023_v52 = vsel %vm12984_vm0, %v2893_v48, 0 }
 0x1b5   : > { %v2177_v54 = vpop.f32.mrb[37].mxu1  ;;  %7724 = vmatpush3.bf16.xpose.msra.mxu0 %v3023_v52  ;;  %v8223_v62 = vadd.f32 %v2175_v56, %v10102_v51 }
 0x1b6   : > { %v2179_v61 = vpop.f32.mrb[38].mxu1  ;;  %v8224_v22 = vadd.f32 %v2177_v54, %v10105_v60 }
 0x1b7   : > { %v8225_v63 = vadd.f32 %v2179_v61, %v10102_v51  ;;  %v2181_v1 = vpop.f32.mrb[39].mxu1 }
 0x1b8   : > { %v8226_v8 = vadd.f32 %v2181_v1, %v10105_v60 }
 0x1b9   : > { %v10121_v41 = vpack.c.bf16 %v8225_v63, %v8223_v62 }
 0x1ba   : > { %v2902_v5 = vpack.c.bf16 %v8226_v8, %v8224_v22 }
 0x1bb   : > { %13100 = vst [vmem:[#allocation19_spill] sm:$0xff] %v10121_v41 }
 0x1bc   : > { %v2185_v27 = vpop.f32.mrb[40].mxu1  ;;  %3458 = vrot.lane.b32.xlu1 %v2902_v5, %s9546_s12  ;;  %8476 = vmatprep.subr.msk.bf16.mxu0 %vm12984_vm0, %v2902_v5  ;;  %v3026_v12 = vsel %vm12984_vm0, %v2902_v5, 0 }
 0x1bd   : > { %v2187_v4 = vpop.f32.mrb[41].mxu1  ;;  %7726 = vmatpush3.bf16.xpose.msra.mxu0 %v3026_v12  ;;  %v8227_v9 = vadd.f32 %v2185_v27, %v10102_v51 }
 0x1be   : > { %v2189_v32 = vpop.f32.mrb[42].mxu1  ;;  %v8228_v45 = vadd.f32 %v2187_v4, %v10105_v60 }
 0x1bf   : > { %v8229_v49 = vadd.f32 %v2189_v32, %v10102_v51  ;;  %v2191_v18 = vpop.f32.mrb[43].mxu1 }
 0x1c0   : > { %v8230_v42 = vadd.f32 %v2191_v18, %v10105_v60 }
 0x1c1   : > { %v10130_v11 = vpack.c.bf16 %v8229_v49, %v8227_v9 }
 0x1c2   : > { %v2911_v47 = vpack.c.bf16 %v8230_v42, %v8228_v45 }
 0x1c3   : > { %13101 = vst [vmem:[#allocation20_spill] sm:$0xff] %v10130_v11 }
 0x1c4   : > { %v2195_v25 = vpop.f32.mrb[44].mxu1  ;;  %3460 = vrot.lane.b32.xlu0 %v2911_v47, %s9546_s12  ;;  %8477 = vmatprep.subr.msk.bf16.mxu0 %vm12984_vm0, %v2911_v47  ;;  %v3029_v31 = vsel %vm12984_vm0, %v2911_v47, 0 }
 0x1c5   : > { %v2197_v53 = vpop.f32.mrb[45].mxu1  ;;  %7728 = vmatpush3.bf16.xpose.msra.mxu0 %v3029_v31  ;;  %v8231_v44 = vadd.f32 %v2195_v25, %v10102_v51 }
 0x1c6   : > { %v2199_v50 = vpop.f32.mrb[46].mxu1  ;;  %v8232_v6 = vadd.f32 %v2197_v53, %v10105_v60 }
 0x1c7   : > { %v8233_v55 = vadd.f32 %v2199_v50, %v10102_v51  ;;  %v2201_v2 = vpop.f32.mrb[47].mxu1 }
 0x1c8   : > { %v8234_v10 = vadd.f32 %v2201_v2, %v10105_v60 }
 0x1c9   : > { %v10141_v34 = vpack.c.bf16 %v8233_v55, %v8231_v44 }
 0x1ca   : > { %v10146_v20 = vpack.c.bf16 %v8234_v10, %v8232_v6 }
 0x1cb   : > { %13102 = vst [vmem:[#allocation21_spill] sm:$0xff] %v10141_v34  ;;  %v2391_v52 = vpop.f32.mrb[32].mxu0 }
 0x1cc   : > { %v2205_v48 = vpop.f32.mrb[48].mxu1  ;;  %8478 = vmatprep.subr.msk.bf16.mxu0 %vm12984_vm0, %v10146_v20  ;;  %v3032_v56 = vsel %vm12984_vm0, %v10146_v20, 0  ;;  %v8251_v61 = vadd.f32 %v2391_v52, %v10144_v36  ;;  %v2393_v62 = vpop.f32.mrb[33].mxu0 }
 0x1cd   : > { %v2207_v54 = vpop.f32.mrb[49].mxu1  ;;  %7730 = vmatpush3.bf16.xpose.msra.mxu0 %v3032_v56  ;;  %v8252_v1 = vadd.f32 %v2393_v62, %v10149_v30  ;;  %v2395_v22 = vpop.f32.mrb[34].mxu0  ;;  %v8235_v8 = vadd.f32 %v2205_v48, %v10102_v51 }
 0x1ce   : > { %v2209_v63 = vpop.f32.mrb[50].mxu1  ;;  %v8253_v12 = vadd.f32 %v2395_v22, %v10144_v36  ;;  %v2397_v4 = vpop.f32.mrb[35].mxu0  ;;  %v8236_v32 = vadd.f32 %v2207_v54, %v10105_v60 }
 0x1cf   : > { %v8237_v5 = vadd.f32 %v2209_v63, %v10102_v51  ;;  %v2211_v27 = vpop.f32.mrb[51].mxu1  ;;  %v8254_v49 = vadd.f32 %v2397_v4, %v10149_v30 }
 0x1d0   : > { %v8238_v9 = vadd.f32 %v2211_v27, %v10105_v60  ;;  %v10165_v45 = vpack.c.bf16 %v8253_v12, %v8251_v61 }
 0x1d1   : > { %v10163_v18 = vpack.c.bf16 %v8237_v5, %v8235_v8  ;;  %v10169_v47 = vpack.c.bf16 %v8254_v49, %v8252_v1 }
 0x1d2   : > { %13104 = vst [vmem:[#allocation23_spill] sm:$0xff] %v10165_v45  ;;  %v10167_v42 = vpack.c.bf16 %v8238_v9, %v8236_v32 }
 0x1d3   : > { %13103 = vst [vmem:[#allocation22_spill] sm:$0xff] %v10163_v18  ;;  %13105 = vst [vmem:[#allocation24_spill] sm:$0xff] %v10169_v47  ;;  %v2401_v53 = vpop.f32.mrb[36].mxu0 }
 0x1d4   : > { %v2215_v25 = vpop.f32.mrb[52].mxu1  ;;  %8479 = vmatprep.subr.msk.bf16.mxu0 %vm12984_vm0, %v10167_v42  ;;  %v3035_v31 = vsel %vm12984_vm0, %v10167_v42, 0  ;;  %v8255_v50 = vadd.f32 %v2401_v53, %v10144_v36  ;;  %v2403_v13 = vpop.f32.mrb[37].mxu0 }
 0x1d5   : > { %v2217_v21 = vpop.f32.mrb[53].mxu1  ;;  %7732 = vmatpush3.bf16.xpose.msra.mxu0 %v3035_v31  ;;  %v8256_v55 = vadd.f32 %v2403_v13, %v10149_v30  ;;  %v2405_v2 = vpop.f32.mrb[38].mxu0  ;;  %v8239_v6 = vadd.f32 %v2215_v25, %v10102_v51 }
 0x1d6   : > { %v2219_v44 = vpop.f32.mrb[54].mxu1  ;;  %v8257_v56 = vadd.f32 %v2405_v2, %v10144_v36  ;;  %v2407_v52 = vpop.f32.mrb[39].mxu0  ;;  %v8240_v54 = vadd.f32 %v2217_v21, %v10105_v60 }
 0x1d7   : > { %v8241_v10 = vadd.f32 %v2219_v44, %v10102_v51  ;;  %v2221_v48 = vpop.f32.mrb[55].mxu1  ;;  %v8258_v62 = vadd.f32 %v2407_v52, %v10149_v30 }
 0x1d8   : > { %v8242_v61 = vadd.f32 %v2221_v48, %v10105_v60  ;;  %v10185_v1 = vpack.c.bf16 %v8257_v56, %v8255_v50 }
 0x1d9   : > { %v10183_v63 = vpack.c.bf16 %v8241_v10, %v8239_v6  ;;  %v10189_v8 = vpack.c.bf16 %v8258_v62, %v8256_v55 }
 0x1da   : > { %13107 = vst [vmem:[#allocation26_spill] sm:$0xff] %v10185_v1  ;;  %v10187_v22 = vpack.c.bf16 %v8242_v61, %v8240_v54 }
 0x1db   : > { %13106 = vst [vmem:[#allocation25_spill] sm:$0xff] %v10183_v63  ;;  %13108 = vst [vmem:[#allocation27_spill] sm:$0xff] %v10189_v8  ;;  %v2411_v12 = vpop.f32.mrb[40].mxu0 }
 0x1dc   : > { %v2225_v5 = vpop.f32.mrb[56].mxu1  ;;  %8480 = vmatprep.subr.msk.bf16.mxu0 %vm12984_vm0, %v10187_v22  ;;  %v3038_v27 = vsel %vm12984_vm0, %v10187_v22, 0  ;;  %v8259_v32 = vadd.f32 %v2411_v12, %v10144_v36  ;;  %v2413_v9 = vpop.f32.mrb[41].mxu0 }
 0x1dd   : > { %v2227_v4 = vpop.f32.mrb[57].mxu1  ;;  %7734 = vmatpush3.bf16.xpose.msra.mxu0 %v3038_v27  ;;  %v8260_v25 = vadd.f32 %v2413_v9, %v10149_v30  ;;  %v2415_v31 = vpop.f32.mrb[42].mxu0  ;;  %v8243_v53 = vadd.f32 %v2225_v5, %v10102_v51 }
 0x1de   : > { %v2229_v49 = vpop.f32.mrb[58].mxu1  ;;  %v8261_v13 = vadd.f32 %v2415_v31, %v10144_v36  ;;  %v2417_v44 = vpop.f32.mrb[43].mxu0  ;;  %v8244_v55 = vadd.f32 %v2227_v4, %v10105_v60 }
 0x1df   : > { %v8245_v21 = vadd.f32 %v2229_v49, %v10102_v51  ;;  %v2231_v50 = vpop.f32.mrb[59].mxu1  ;;  %v8262_v6 = vadd.f32 %v2417_v44, %v10149_v30 }
 0x1e0   : > { %v8246_v2 = vadd.f32 %v2231_v50, %v10105_v60  ;;  %v10205_v48 = vpack.c.bf16 %v8261_v13, %v8259_v32 }
 0x1e1   : > { %v10203_v10 = vpack.c.bf16 %v8245_v21, %v8243_v53  ;;  %v10209_v52 = vpack.c.bf16 %v8262_v6, %v8260_v25 }
 0x1e2   : > { %13110 = vst [vmem:[#allocation29_spill] sm:$0xff] %v10205_v48  ;;  %v10207_v56 = vpack.c.bf16 %v8246_v2, %v8244_v55 }
 0x1e3   : > { %13109 = vst [vmem:[#allocation28_spill] sm:$0xff] %v10203_v10  ;;  %13111 = vst [vmem:[#allocation30_spill] sm:$0xff] %v10209_v52  ;;  %v2421_v62 = vpop.f32.mrb[44].mxu0  ;;  %v545_v10 = vsub.s32 7, %v9902_v35 }
 0x1e4   : > { %v2235_v54 = vpop.f32.mrb[60].mxu1  ;;  %8481 = vmatprep.subr.msk.bf16.mxu0 %vm12984_vm0, %v10207_v56  ;;  %v3041_v61 = vsel %vm12984_vm0, %v10207_v56, 0  ;;  %v8263_v27 = vadd.f32 %v2421_v62, %v10144_v36  ;;  %v2423_v12 = vpop.f32.mrb[45].mxu0 }
 0x1e5   : > { %v2237_v5 = vpop.f32.mrb[61].mxu1  ;;  %7736 = vmatpush3.bf16.xpose.msra.mxu0 %v3041_v61  ;;  %v8264_v32 = vadd.f32 %v2423_v12, %v10149_v30  ;;  %v2425_v9 = vpop.f32.mrb[46].mxu0  ;;  %v8247_v49 = vadd.f32 %v2235_v54, %v10102_v51 }
 0x1e6   : > { %v2239_v4 = vpop.f32.mrb[62].mxu1  ;;  %v8265_v53 = vadd.f32 %v2425_v9, %v10144_v36  ;;  %v2427_v21 = vpop.f32.mrb[47].mxu0  ;;  %v8248_v50 = vadd.f32 %v2237_v5, %v10105_v60 }
 0x1e7   : > { %v8249_v25 = vadd.f32 %v2239_v4, %v10102_v51  ;;  %v2241_v31 = vpop.f32.mrb[63].mxu1  ;;  %v8266_v44 = vadd.f32 %v2427_v21, %v10149_v30 }
 0x1e8   : > { %v8250_v13 = vadd.f32 %v2241_v31, %v10105_v60  ;;  %v10225_v2 = vpack.c.bf16 %v8265_v53, %v8263_v27 }
 0x1e9   : > { %v10223_v55 = vpack.c.bf16 %v8249_v25, %v8247_v49  ;;  %v10229_v61 = vpack.c.bf16 %v8266_v44, %v8264_v32 }
 0x1ea   : > { %13113 = vst [vmem:[#allocation32_spill] sm:$0xff] %v10225_v2  ;;  %v10227_v6 = vpack.c.bf16 %v8250_v13, %v8248_v50 }
 0x1eb   : > { %13112 = vst [vmem:[#allocation31_spill] sm:$0xff] %v10223_v55  ;;  %13114 = vst [vmem:[#allocation33_spill] sm:$0xff] %v10229_v61  ;;  %v2431_v54 = vpop.f32.mrb[48].mxu0 }
 0x1ec   : > { %8482 = vmatprep.subr.msk.bf16.mxu0 %vm12984_vm0, %v10227_v6  ;;  %v3044_v51 = vsel %vm12984_vm0, %v10227_v6, 0  ;;  %v8267_v60 = vadd.f32 %v2431_v54, %v10144_v36  ;;  %v2433_v62 = vpop.f32.mrb[49].mxu0 }
 0x1ed   : > { %7738 = vmatpush3.bf16.xpose.msra.mxu0 %v3044_v51  ;;  %v8268_v5 = vadd.f32 %v2433_v62, %v10149_v30  ;;  %v2435_v12 = vpop.f32.mrb[50].mxu0 }
 0x1ee   : > { %v8269_v27 = vadd.f32 %v2435_v12, %v10144_v36  ;;  %v2437_v4 = vpop.f32.mrb[51].mxu0 }
 0x1ef   : > { %v8270_v32 = vadd.f32 %v2437_v4, %v10149_v30 }
 0x1f0   : > { %v10239_v9 = vpack.c.bf16 %v8269_v27, %v8267_v60 }
 0x1f1   : > { %v10241_v49 = vpack.c.bf16 %v8270_v32, %v8268_v5 }
 0x1f2   : > { %13115 = vst [vmem:[#allocation34_spill] sm:$0xff] %v10239_v9 }
 0x1f3   : > { %13116 = vst [vmem:[#allocation35_spill] sm:$0xff] %v10241_v49  ;;  %v2441_v25 = vpop.f32.mrb[52].mxu0 }
 0x1f4   : > { %7740 = vmatmul.mubr.msk.bf16.vlgmr.msra.gmra.mrb[96].mxu0 %vm12984_vm0, %v9977_v16  ;;  %v8271_v31 = vadd.f32 %v2441_v25, %v10144_v36  ;;  %v2443_v53 = vpop.f32.mrb[53].mxu0 }
 0x1f5   : > { %7743 = vmatprep.mubr.msk.bf16.mxu0 %vm12984_vm0, %v10002_v3  ;;  %v8272_v21 = vadd.f32 %v2443_v53, %v10149_v30  ;;  %v2445_v50 = vpop.f32.mrb[54].mxu0 }
 0x1f6   : > { %v8273_v13 = vadd.f32 %v2445_v50, %v10144_v36  ;;  %v2447_v44 = vpop.f32.mrb[55].mxu0 }
 0x1f7   : > { %v8274_v51 = vadd.f32 %v2447_v44, %v10149_v30 }
 0x1f8   : > { %v10251_v54 = vpack.c.bf16 %v8273_v13, %v8271_v31 }
 0x1f9   : > { %v10253_v60 = vpack.c.bf16 %v8274_v51, %v8272_v21 }
 0x1fa   : > { %13117 = vst [vmem:[#allocation36_spill] sm:$0xff] %v10251_v54 }
 0x1fb   : > { %13118 = vst [vmem:[#allocation37_spill] sm:$0xff] %v10253_v60  ;;  %v2451_v62 = vpop.f32.mrb[56].mxu0 }
 0x1fc   : > { %7744 = vmatmul.mubr.msk.bf16.gmra.mrb[100].mxu0 %vm12984_vm0, %v10026_v17  ;;  %v8275_v5 = vadd.f32 %v2451_v62, %v10144_v36  ;;  %v2453_v12 = vpop.f32.mrb[57].mxu0 }
 0x1fd   : > { %7747 = vmatprep.mubr.msk.bf16.mxu0 %vm12984_vm0, %v10043_v26  ;;  %v8276_v27 = vadd.f32 %v2453_v12, %v10149_v30  ;;  %v2455_v4 = vpop.f32.mrb[58].mxu0 }
 0x1fe   : > { %v8277_v32 = vadd.f32 %v2455_v4, %v10144_v36  ;;  %v2457_v25 = vpop.f32.mrb[59].mxu0 }
 0x1ff   : > { %v8278_v31 = vadd.f32 %v2457_v25, %v10149_v30 }
 0x200   : > { %v10263_v53 = vpack.c.bf16 %v8277_v32, %v8275_v5 }
 0x201   : > { %v10265_v21 = vpack.c.bf16 %v8278_v31, %v8276_v27 }
 0x202   : > { %13119 = vst [vmem:[#allocation38_spill] sm:$0xff] %v10263_v53 }
 0x203   : > { %13120 = vst [vmem:[#allocation39_spill] sm:$0xff] %v10265_v21  ;;  %v2461_v50 = vpop.f32.mrb[60].mxu0 }
 0x204   : > { %7748 = vmatmul.mubr.msk.bf16.gmra.mrb[104].mxu0 %vm12984_vm0, %v10057_v59  ;;  %v8279_v13 = vadd.f32 %v2461_v50, %v10144_v36  ;;  %v2463_v44 = vpop.f32.mrb[61].mxu0 }
 0x205   : > { %7751 = vmatprep.mubr.msk.bf16.mxu0 %vm12984_vm0, %v10071_v14  ;;  %v8280_v51 = vadd.f32 %v2463_v44, %v10149_v30  ;;  %v2465_v62 = vpop.f32.mrb[62].mxu0 }
 0x206   : > { %v8281_v12 = vadd.f32 %v2465_v62, %v10144_v36  ;;  %v2467_v4 = vpop.f32.mrb[63].mxu0 }
 0x207   : > { %v8282_v5 = vadd.f32 %v2467_v4, %v10149_v30 }
 0x208   : > { %v10275_v27 = vpack.c.bf16 %v8281_v12, %v8279_v13 }
 0x209   : > { %v10277_v32 = vpack.c.bf16 %v8282_v5, %v8280_v51 }
 0x20a   : > { %13121 = vst [vmem:[#allocation40_spill] sm:$0xff] %v10275_v27 }
 0x20b   : > { %13122 = vst [vmem:[#allocation41_spill] sm:$0xff] %v10277_v32  ;;  %v7355_v25 = vpop.f32.mrb[64].mxu0 }
 0x20c   : > { %7752 = vmatmul.mubr.msk.bf16.gmra.mrb[108].mxu0 %vm12984_vm0, %v10085_v24  ;;  %v7356_v31 = vpop.f32.mrb[65].mxu0 }
 0x20d   : > { %v10281_v43 = vadd.f32 %v7356_v31, %v7355_v25  ;;  %v7358_v50 = vpop.f32.mrb[66].mxu0 }
 0x20e   : > { %v7359_v15 = vpop.f32.mrb[67].mxu0 }
 0x20f   : > { %v10283_v44 = vadd.f32 %v7359_v15, %v7358_v50  ;;  %v541_v15 = vsub.s32 6, %v9902_v35 }
 0x213   : > { %v7361_v39 = vpop.f32.mrb[68].mxu0 }
 0x214   : > { %v7362_v36 = vpop.f32.mrb[69].mxu0 }
 0x215   : > { %v10285_v62 = vadd.f32 %v7362_v36, %v7361_v39  ;;  %v7364_v30 = vpop.f32.mrb[70].mxu0 }
 0x216   : > { %v7365_v13 = vpop.f32.mrb[71].mxu0 }
 0x217   : > { %v10287_v12 = vadd.f32 %v7365_v13, %v7364_v30  ;;  %v10300_v13 = vrot.slane %v9918_v7, %v541_v15 }
 0x21b   : > { %v7367_v51 = vpop.f32.mrb[72].mxu0 }
 0x21c   : > { %v7368_v4 = vpop.f32.mrb[73].mxu0 }
 0x21d   : > { %v10289_v5 = vadd.f32 %v7368_v4, %v7367_v51  ;;  %v7370_v0 = vpop.f32.mrb[74].mxu0  ;;  %v10303_v51 = vrot.slane %v9918_v7, %v545_v10 }
 0x21e   : > { %v7371_v29 = vpop.f32.mrb[75].mxu0 }
 0x21f   : > { %v10291_v25 = vadd.f32 %v7371_v29, %v7370_v0 }
 0x223   : > { %v7373_v31 = vpop.f32.mrb[76].mxu0 }
 0x224   : > { %v7374_v50 = vpop.f32.mrb[77].mxu0 }
 0x225   : > { %v10295_v39 = vadd.f32 %v7374_v50, %v7373_v31  ;;  %v7376_v36 = vpop.f32.mrb[78].mxu0 }
 0x226   : > { %v7377_v18 = vpop.f32.mrb[79].mxu0 }
 0x227   : > { %v10297_v30 = vadd.f32 %v7377_v18, %v7376_v36 }
 0x22b   : > { %v7379_v29 = vpop.f32.mrb[80].mxu0 }
 0x22c   : > { %v2617_v0 = vpop.f32.mrb[64].mxu1  ;;  %v7380_v37 = vpop.f32.mrb[81].mxu0 }
 0x22d   : > { %v8283_v4 = vadd.f32 %v2617_v0, %v10300_v13  ;;  %v2619_v11 = vpop.f32.mrb[65].mxu1  ;;  %v10307_v50 = vadd.f32 %v7380_v37, %v7379_v29  ;;  %v7382_v21 = vpop.f32.mrb[82].mxu0 }
 0x22e   : > { %v8284_v32 = vadd.f32 %v2619_v11, %v10303_v51  ;;  %v2621_v31 = vpop.f32.mrb[66].mxu1  ;;  %v7383_v49 = vpop.f32.mrb[83].mxu0 }
 0x22f   : > { %v8285_v18 = vadd.f32 %v2621_v31, %v10300_v13  ;;  %v2623_v36 = vpop.f32.mrb[67].mxu1  ;;  %v10313_v10 = vadd.f32 %v7383_v49, %v7382_v21 }
 0x230   : > { %v8286_v15 = vadd.f32 %v2623_v36, %v10303_v51 }
 0x231   : > { %v10311_v7 = vpack.c.bf16 %v8285_v18, %v8283_v4 }
 0x232   : > { %v10315_v55 = vpack.c.bf16 %v8286_v15, %v8284_v32 }
 0x233   : > { %7755 = vmatprep.subr.bf16.mxu1 %v10311_v7  ;;  %v7385_v37 = vpop.f32.mrb[84].mxu0 }
 0x234   : > { %v2627_v0 = vpop.f32.mrb[68].mxu1  ;;  %7756 = vmatpush3.bf16.msra.mxu1 %v10311_v7  ;;  %v7386_v31 = vpop.f32.mrb[85].mxu0 }
 0x235   : > { %v8287_v11 = vadd.f32 %v2627_v0, %v10300_v13  ;;  %v2629_v29 = vpop.f32.mrb[69].mxu1  ;;  %v10321_v63 = vadd.f32 %v7386_v31, %v7385_v37  ;;  %v7388_v32 = vpop.f32.mrb[86].mxu0 }
 0x236   : > { %v8288_v52 = vadd.f32 %v2629_v29, %v10303_v51  ;;  %v2631_v36 = vpop.f32.mrb[70].mxu1  ;;  %v7389_v18 = vpop.f32.mrb[87].mxu0 }
 0x237   : > { %v8289_v49 = vadd.f32 %v2631_v36, %v10300_v13  ;;  %v2633_v21 = vpop.f32.mrb[71].mxu1  ;;  %v10327_v47 = vadd.f32 %v7389_v18, %v7388_v32 }
 0x238   : > { %v8290_v4 = vadd.f32 %v2633_v21, %v10303_v51 }
 0x239   : > { %v10325_v15 = vpack.c.bf16 %v8289_v49, %v8287_v11 }
 0x23a   : > { %v10329_v34 = vpack.c.bf16 %v8290_v4, %v8288_v52 }
 0x23b   : > { %7757 = vmatprep.subr.bf16.mxu1 %v10325_v15  ;;  %v7391_v37 = vpop.f32.mrb[88].mxu0 }
 0x23c   : > { %v2637_v0 = vpop.f32.mrb[72].mxu1  ;;  %7758 = vmatpush3.bf16.msra.mxu1 %v10325_v15  ;;  %v7392_v36 = vpop.f32.mrb[89].mxu0 }
 0x23d   : > { %v8291_v29 = vadd.f32 %v2637_v0, %v10300_v13  ;;  %v2639_v31 = vpop.f32.mrb[73].mxu1  ;;  %v10335_v60 = vadd.f32 %v7392_v36, %v7391_v37  ;;  %v7394_v11 = vpop.f32.mrb[90].mxu0 }
 0x23e   : > { %v8292_v41 = vadd.f32 %v2639_v31, %v10303_v51  ;;  %v2641_v21 = vpop.f32.mrb[74].mxu1  ;;  %v7395_v32 = vpop.f32.mrb[91].mxu0 }
 0x23f   : > { %v8293_v49 = vadd.f32 %v2641_v21, %v10300_v13  ;;  %v2643_v52 = vpop.f32.mrb[75].mxu1  ;;  %v10339_v18 = vadd.f32 %v7395_v32, %v7394_v11 }
 0x240   : > { %v8294_v4 = vadd.f32 %v2643_v52, %v10303_v51 }
 0x241   : > { %v10341_v61 = vpack.c.bf16 %v8293_v49, %v8291_v29 }
 0x242   : > { %v10343_v8 = vpack.c.bf16 %v8294_v4, %v8292_v41 }
 0x243   : > { %7759 = vmatprep.subr.bf16.mxu1 %v10341_v61  ;;  %v7397_v37 = vpop.f32.mrb[92].mxu0 }
 0x244   : > { %v2647_v0 = vpop.f32.mrb[76].mxu1  ;;  %7760 = vmatpush3.bf16.msra.mxu1 %v10341_v61  ;;  %v7398_v21 = vpop.f32.mrb[93].mxu0 }
 0x245   : > { %v8295_v31 = vadd.f32 %v2647_v0, %v10300_v13  ;;  %v2649_v36 = vpop.f32.mrb[77].mxu1  ;;  %v10349_v52 = vadd.f32 %v7398_v21, %v7397_v37  ;;  %v7400_v11 = vpop.f32.mrb[94].mxu0 }
 0x246   : > { %v8296_v23 = vadd.f32 %v2649_v36, %v10303_v51  ;;  %v2651_v33 = vpop.f32.mrb[78].mxu1  ;;  %v7401_v49 = vpop.f32.mrb[95].mxu0 }
 0x247   : > { %v8297_v29 = vadd.f32 %v2651_v33, %v10300_v13  ;;  %v2653_v41 = vpop.f32.mrb[79].mxu1  ;;  %v10353_v4 = vadd.f32 %v7401_v49, %v7400_v11 }
 0x248   : > { %v8298_v32 = vadd.f32 %v2653_v41, %v10303_v51 }
 0x249   : > { %v10355_v40 = vpack.c.bf16 %v8297_v29, %v8295_v31 }
 0x24a   : > { %v10357_v46 = vpack.c.bf16 %v8298_v32, %v8296_v23 }
 0x24b   : > { %7761 = vmatprep.subr.bf16.mxu1 %v10355_v40 }
 0x24c   : > { %v2657_v0 = vpop.f32.mrb[80].mxu1  ;;  %7762 = vmatpush3.bf16.msra.mxu1 %v10355_v40 }
 0x24d   : > { %v8299_v37 = vadd.f32 %v2657_v0, %v10300_v13  ;;  %v2659_v36 = vpop.f32.mrb[81].mxu1 }
 0x24e   : > { %v8300_v33 = vadd.f32 %v2659_v36, %v10303_v51  ;;  %v2661_v21 = vpop.f32.mrb[82].mxu1 }
 0x24f   : > { %v8301_v38 = vadd.f32 %v2661_v21, %v10300_v13  ;;  %v2663_v41 = vpop.f32.mrb[83].mxu1 }
 0x250   : > { %v8302_v11 = vadd.f32 %v2663_v41, %v10303_v51 }
 0x251   : > { %v10365_v31 = vpack.c.bf16 %v8301_v38, %v8299_v37 }
 0x252   : > { %v10367_v23 = vpack.c.bf16 %v8302_v11, %v8300_v33 }
 0x253   : > { %7763 = vmatprep.subr.bf16.mxu1 %v10365_v31 }
 0x254   : > { %v2667_v29 = vpop.f32.mrb[84].mxu1  ;;  %7764 = vmatpush3.bf16.msra.mxu1 %v10365_v31 }
 0x255   : > { %v8303_v49 = vadd.f32 %v2667_v29, %v10300_v13  ;;  %v2669_v32 = vpop.f32.mrb[85].mxu1 }
 0x256   : > { %v8304_v0 = vadd.f32 %v2669_v32, %v10303_v51  ;;  %v2671_v36 = vpop.f32.mrb[86].mxu1 }
 0x257   : > { %v8305_v21 = vadd.f32 %v2671_v36, %v10300_v13  ;;  %v2673_v28 = vpop.f32.mrb[87].mxu1 }
 0x258   : > { %v8306_v41 = vadd.f32 %v2673_v28, %v10303_v51 }
 0x259   : > { %v10375_v38 = vpack.c.bf16 %v8305_v21, %v8303_v49 }
 0x25a   : > { %v10377_v37 = vpack.c.bf16 %v8306_v41, %v8304_v0 }
 0x25b   : > { %7765 = vmatprep.subr.bf16.mxu1 %v10375_v38 }
 0x25c   : > { %v2677_v33 = vpop.f32.mrb[88].mxu1  ;;  %7766 = vmatpush3.bf16.msra.mxu1 %v10375_v38 }
 0x25d   : > { %v8307_v11 = vadd.f32 %v2677_v33, %v10300_v13  ;;  %v2679_v29 = vpop.f32.mrb[89].mxu1 }
 0x25e   : > { %v8308_v32 = vadd.f32 %v2679_v29, %v10303_v51  ;;  %v2681_v19 = vpop.f32.mrb[90].mxu1 }
 0x25f   : > { %v8309_v36 = vadd.f32 %v2681_v19, %v10300_v13  ;;  %v2683_v58 = vpop.f32.mrb[91].mxu1 }
 0x260   : > { %v8310_v28 = vadd.f32 %v2683_v58, %v10303_v51  ;;  %v6975_v58 = vld [vmem:[%s12929_s2 + $0x8] ss:$0 sm:$0xff] }
 0x261   : > { %v10385_v49 = vpack.c.bf16 %v8309_v36, %v8307_v11  ;;  %v2739_v36 = vadd.f32 %v10285_v62, %v6975_v58  ;;  %v2734_v54 = vadd.f32 %v10283_v44, %v6975_v58  ;;  %v2747_v2 = vadd.f32 %v10289_v5, %v6975_v58 }
 0x262   : > { %v10387_v0 = vpack.c.bf16 %v8310_v28, %v8308_v32  ;;  %v2758_v44 = vadd.f32 %v10297_v30, %v6975_v58  ;;  %v2750_v45 = vadd.f32 %v10291_v25, %v6975_v58  ;;  %v2763_v5 = vadd.f32 %v10307_v50, %v6975_v58 }
 0x263   : > { %7767 = vmatprep.subr.bf16.mxu1 %v10385_v49  ;;  %v2774_v30 = vadd.f32 %v10327_v47, %v6975_v58  ;;  %v2766_v25 = vadd.f32 %v10313_v10, %v6975_v58  ;;  %v2779_v50 = vadd.f32 %v10335_v60, %v6975_v58  ;;  %v2790_v47 = vadd.f32 %v10353_v4, %v6975_v58 }
 0x264   : > { %v2687_v21 = vpop.f32.mrb[92].mxu1  ;;  %7768 = vmatpush3.bf16.msra.mxu1 %v10385_v49  ;;  %v2782_v10 = vadd.f32 %v10339_v18, %v6975_v58  ;;  %v13132_v4 = vmov 0  ;;  %v2966_v18 = vadd.s32 24, %v9902_v35 }
 0x265   : > { %v8311_v41 = vadd.f32 %v2687_v21, %v10300_v13  ;;  %v2689_v33 = vpop.f32.mrb[93].mxu1  ;;  %v2731_v21 = vadd.f32 %v10281_v43, %v6975_v58 }
 0x266   : > { %v8312_v29 = vadd.f32 %v2689_v33, %v10303_v51  ;;  %v2691_v27 = vpop.f32.mrb[94].mxu1  ;;  %v2742_v33 = vadd.f32 %v10287_v12, %v6975_v58 }
 0x267   : > { %v8313_v19 = vadd.f32 %v2691_v27, %v10300_v13  ;;  %v2693_v53 = vpop.f32.mrb[95].mxu1  ;;  %v10406_v27 = vpop.permute.xlu0 %3456 }
 0x268   : > { %v8314_v11 = vadd.f32 %v2693_v53, %v10303_v51 }
 0x269   : > { %v10398_v32 = vpack.c.bf16 %v8313_v19, %v8311_v41 }
 0x26a   : > { %v10401_v28 = vpack.c.bf16 %v8314_v11, %v8312_v29  ;;  %v2755_v11 = vadd.f32 %v10295_v39, %v6975_v58  ;;  %v2771_v39 = vadd.f32 %v10321_v63, %v6975_v58  ;;  %v2787_v63 = vadd.f32 %v10349_v52, %v6975_v58 }
 0x26b   : > { %7769 = vmatprep.subr.bf16.mxu1 %v10398_v32  ;;  %v13135_v58 = vmov 0 }
 0x26c   : > { %7770 = vmatpush3.bf16.msra.mxu1 %v10398_v32  ;;  %v7709_v13 = vpop.f32.mrb[96].mxu1 }
 0x26d   : > { %8483 = vmatprep.subr.msk.bf16.mxu1 %vm12984_vm0, %v10406_v27  ;;  %v2827_v53 = vpop.f32.mrb[97].mxu1  ;;  %v2836_v62 = vadd.f32 %v7709_v13, %v2739_v36 }
 0x26e   : > { %v2828_v51 = vadd.f32 %v2827_v53, %v2731_v21  ;;  %v7710_v41 = vpop.f32.mrb[98].mxu1 }
 0x26f   : > { %v2830_v29 = vpop.f32.mrb[99].mxu1  ;;  %v2839_v43 = vadd.f32 %v7710_v41, %v2742_v33 }
 0x270   : > { %v2831_v19 = vadd.f32 %v2830_v29, %v2734_v54 }
 0x271   : > { %v10413_v12 = vpack.c.bf16 %v2839_v43, %v2836_v62 }
 0x272   : > { %v10415_v9 = vpack.c.bf16 %v2831_v19, %v2828_v51 }
 0x273   : > { %13123 = vst [vmem:[#allocation42_spill] sm:$0xff] %v10413_v12  ;;  %v13165_v12 = vmov 0 }
 0x274   : > { %13124 = vst [vmem:[#allocation43_spill] sm:$0xff] %v10415_v9  ;;  %v7713_v48 = vpop.f32.mrb[100].mxu1 }
 0x275   : > { %v2843_v1 = vpop.f32.mrb[101].mxu1  ;;  %v2852_v36 = vadd.f32 %v7713_v48, %v2755_v11 }
 0x276   : > { %v2844_v21 = vadd.f32 %v2843_v1, %v2747_v2  ;;  %v7714_v13 = vpop.f32.mrb[102].mxu1 }
 0x277   : > { %v2846_v53 = vpop.f32.mrb[103].mxu1  ;;  %v2855_v33 = vadd.f32 %v7714_v13, %v2758_v44 }
 0x278   : > { %v2847_v54 = vadd.f32 %v2846_v53, %v2750_v45 }
 0x279   : > { %v10421_v62 = vpack.c.bf16 %v2855_v33, %v2852_v36 }
 0x27a   : > { %v10423_v51 = vpack.c.bf16 %v2847_v54, %v2844_v21 }
 0x27b   : > { %13125 = vst [vmem:[#allocation44_spill] sm:$0xff] %v10421_v62  ;;  %v13159_v62 = vmov 0 }
 0x27c   : > { %13126 = vst [vmem:[#allocation45_spill] sm:$0xff] %v10423_v51  ;;  %v7717_v41 = vpop.f32.mrb[104].mxu1  ;;  %v13162_v51 = vmov 0 }
 0x27d   : > { %v2859_v29 = vpop.f32.mrb[105].mxu1  ;;  %v2868_v48 = vadd.f32 %v7717_v41, %v2771_v39  ;;  %v2965_v41 = vadd.s32 16, %v9902_v35 }
 0x27e   : > { %v2860_v1 = vadd.f32 %v2859_v29, %v2763_v5  ;;  %v7718_v2 = vpop.f32.mrb[106].mxu1  ;;  %v2964_v29 = vadd.s32 8, %v9902_v35 }
 0x27f   : > { %v2862_v43 = vpop.f32.mrb[107].mxu1  ;;  %v2871_v19 = vadd.f32 %v7718_v2, %v2774_v30 }
 0x280   : > { %v2863_v45 = vadd.f32 %v2862_v43, %v2766_v25  ;;  %v13131_v25 = vlaneseq }
 0x281   : > { %v10429_v11 = vpack.c.bf16 %v2871_v19, %v2868_v48 }
 0x282   : > { %v10431_v44 = vpack.c.bf16 %v2863_v45, %v2860_v1  ;;  %v10442_v60 = vand.u32 127, %v13131_v25  ;;  %v13138_v45 = vmov 0 }
 0x283   : > { %13127 = vst [vmem:[#allocation46_spill] sm:$0xff] %v10429_v11  ;;  %v13153_v11 = vmov 0 }
 0x284   : > { %13128 = vst [vmem:[#allocation47_spill] sm:$0xff] %v10431_v44  ;;  %v7721_v36 = vpop.f32.mrb[108].mxu1  ;;  %vm10445_vm1 = vcmp.le.s32.totalorder %v10442_v60, %v2965_v41  ;;  %vm10452_vm2 = vcmp.le.s32.totalorder %v10442_v60, %v9902_v35  ;;  %vm10467_vm3 = vcmp.le.s32.totalorder %v10442_v60, %v2966_v18  ;;  %vm10473_vm4 = vcmp.le.s32.totalorder %v10442_v60, %v2964_v29 }
 0x285   : > { %v2875_v21 = vpop.f32.mrb[109].mxu1  ;;  %v2884_v13 = vadd.f32 %v7721_v36, %v2787_v63  ;;  %v13133_v4 = vsel %vm10445_vm1, 4294967295, %v13132_v4  ;;  %v13136_v58 = vsel %vm10452_vm2, 4294967295, %v13135_v58  ;;  %v13139_v45 = vsel %vm10467_vm3, 4294967295, %v13138_v45 }
 0x286   : > { %v2876_v53 = vadd.f32 %v2875_v21, %v2779_v50  ;;  %v7722_v33 = vpop.f32.mrb[110].mxu1  ;;  %13134 = vst [vmem:[#allocation50_spill] sm:$0xff] %v13133_v4  ;;  %13137 = vst [vmem:[#allocation51_spill] sm:$0xff] %v13136_v58  ;;  %v13141_v50 = vmov 0  ;;  %v13156_v44 = vmov 0 }
 0x287   : > { %v2878_v54 = vpop.f32.mrb[111].mxu1  ;;  %v2887_v39 = vadd.f32 %v7722_v33, %v2790_v47  ;;  %13140 = vst [vmem:[#allocation52_spill] sm:$0xff] %v13139_v45  ;;  %v13142_v50 = vsel %vm10473_vm4, 4294967295, %v13141_v50 }
 0x288   : > { %v2879_v5 = vadd.f32 %v2878_v54, %v2782_v10  ;;  %13143 = vst [vmem:[#allocation53_spill] sm:$0xff] %v13142_v50 }
 0x289   : > { %v10436_v30 = vpack.c.bf16 %v2887_v39, %v2884_v13 }
 0x28a   : > { %v10438_v52 = vpack.c.bf16 %v2879_v5, %v2876_v53 }
 0x28b   : > { %13129 = vst [vmem:[#allocation48_spill] sm:$0xff] %v10436_v30  ;;  %v2971_v30 = vadd.s32 64, %v9902_v35 }
 0x28c   : > { %13130 = vst [vmem:[#allocation49_spill] sm:$0xff] %v10438_v52  ;;  %v13150_v52 = vmov 0 }
 0x28d   : > { %vm10522_vm8 = vcmp.le.s32.totalorder %v10442_v60, %v2971_v30  ;;  %v2973_v30 = vadd.s32 80, %v9902_v35 }
 0x28e   : > { %v13154_v11 = vsel %vm10522_vm8, 4294967295, %v13153_v11 }
 0x28f   : > { %13155 = vst [vmem:[#allocation57_spill] sm:$0xff] %v13154_v11  ;;  %vm10559_vm11 = vcmp.le.s32.totalorder %v10442_v60, %v2973_v30  ;;  %v13168_v30 = vmov 0 }
 0x290   : > { %v13163_v51 = vsel %vm10559_vm11, 4294967295, %v13162_v51 }
 0x291   : > { %13164 = vst [vmem:[#allocation60_spill] sm:$0xff] %v13163_v51 }
 0x2c7   : > { %v7741_v48 = vpop.f32.mrb[96].mxu0 }
 0x2c8   : > { %v3080_v1 = vpop.f32.mrb[97].mxu0  ;;  %v10459_v2 = vsel %vm10445_vm1, %v7741_v48, -inf  ;;  %v2967_v48 = vadd.s32 32, %v9902_v35 }
 0x2c9   : > { %3163 = vmax.xlane.f32.xlu1 %v10459_v2  ;;  %v7742_v43 = vpop.f32.mrb[98].mxu0  ;;  %v10464_v19 = vsel %vm10452_vm2, %v3080_v1, -inf  ;;  %v2969_v1 = vadd.s32 48, %v9902_v35 }
 0x2ca   : > { %3159 = vmax.xlane.f32.xlu0 %v10464_v19  ;;  %v3083_v63 = vpop.f32.mrb[99].mxu0  ;;  %v10479_v47 = vsel %vm10467_vm3, %v7742_v43, -inf  ;;  %vm10494_vm5 = vcmp.le.s32.totalorder %v10442_v60, %v2967_v48  ;;  %v13144_v43 = vmov 0 }
 0x2cb   : > { %v10484_v36 = vsel %vm10473_vm4, %v3083_v63, -inf  ;;  %v13145_v43 = vsel %vm10494_vm5, 4294967295, %v13144_v43  ;;  %v2970_v63 = vadd.s32 56, %v9902_v35  ;;  %vm10500_vm6 = vcmp.le.s32.totalorder %v10442_v60, %v2969_v1 }
 0x2cc   : > { %13146 = vst [vmem:[#allocation54_spill] sm:$0xff] %v13145_v43  ;;  %v2968_v1 = vadd.s32 40, %v9902_v35 }
 0x2cd   : > { %3165 = vmax.xlane.f32.xlu1 %v10479_v47  ;;  %vm10515_vm7 = vcmp.le.s32.totalorder %v10442_v60, %v2970_v63 }
 0x2ce   : > { %3161 = vmax.xlane.f32.xlu0 %v10484_v36  ;;  %v13151_v52 = vsel %vm10515_vm7, 4294967295, %v13150_v52  ;;  %vm10537_vm9 = vcmp.le.s32.totalorder %v10442_v60, %v2968_v1 }
 0x2cf   : > { %v7745_v10 = vpop.f32.mrb[100].mxu0  ;;  %13152 = vst [vmem:[#allocation56_spill] sm:$0xff] %v13151_v52  ;;  %v13157_v44 = vsel %vm10537_vm9, 4294967295, %v13156_v44 }
 0x2d0   : > { %v3096_v21 = vpop.f32.mrb[101].mxu0  ;;  %v10512_v48 = vsel %vm10500_vm6, %v7745_v10, -inf  ;;  %13158 = vst [vmem:[#allocation58_spill] sm:$0xff] %v13157_v44 }
 0x2d1   : > { %v7746_v13 = vpop.f32.mrb[102].mxu0 }
 0x2d2   : > { %v3099_v53 = vpop.f32.mrb[103].mxu0  ;;  %v10529_v10 = vsel %vm10515_vm7, %v7746_v13, -inf  ;;  %v2977_v13 = vadd.s32 112, %v9902_v35 }
 0x2d4   : > { %vm10566_vm12 = vcmp.le.s32.totalorder %v10442_v60, %v2977_v13  ;;  %v2975_v13 = vadd.s32 96, %v9902_v35 }
 0x2d5   : > { %v13166_v12 = vsel %vm10566_vm12, 4294967295, %v13165_v12 }
 0x2d6   : > { %13167 = vst [vmem:[#allocation61_spill] sm:$0xff] %v13166_v12  ;;  %vm10592_vm14 = vcmp.le.s32.totalorder %v10442_v60, %v2975_v13  ;;  %v13174_v12 = vmov 0 }
 0x2d7   : > { %v7749_v33 = vpop.f32.mrb[104].mxu0 }
 0x2d8   : > { %v3112_v54 = vpop.f32.mrb[105].mxu0 }
 0x2d9   : > { %v7750_v39 = vpop.f32.mrb[106].mxu0  ;;  %v10534_v63 = vsel %vm10522_vm8, %v3112_v54, -inf  ;;  %v10551_v54 = vsel %vm10537_vm9, %v3099_v53, -inf  ;;  %v10572_v53 = vsel %vm10559_vm11, %v7749_v33, -inf  ;;  %v13171_v33 = vmov 0 }
 0x2da   : > { %v3115_v5 = vpop.f32.mrb[107].mxu0  ;;  %v13172_v33 = vsel %vm10592_vm14, 4294967295, %v13171_v33 }
 0x2db   : > { %13173 = vst [vmem:[#allocation63_spill] sm:$0xff] %v13172_v33  ;;  %v13177_v33 = vmov 0 }
 0x2de   : > { %3462 = vrot.lane.b32.xlu1 %v10146_v20, %s9546_s12  ;;  %v13147_v20 = vmov 0 }
 0x2df   : > { %v7753_v41 = vpop.f32.mrb[108].mxu0  ;;  %v13148_v20 = vsel %vm10500_vm6, 4294967295, %v13147_v20 }
 0x2e0   : > { %v3128_v25 = vpop.f32.mrb[109].mxu0  ;;  %13149 = vst [vmem:[#allocation55_spill] sm:$0xff] %v13148_v20 }
 0x2e1   : > { %v7754_v18 = vpop.f32.mrb[110].mxu0 }
 0x2e2   : > { %v3131_v29 = vpop.f32.mrb[111].mxu0 }
 0x2e4   : > { %3464 = vrot.lane.b32.xlu0 %v10167_v42, %s9546_s12  ;;  %v10507_v42 = vsel %vm10494_vm5, %v3096_v21, -inf  ;;  %v2972_v21 = vadd.s32 72, %v9902_v35 }
 0x2e6   : > { %vm10544_vm10 = vcmp.le.s32.totalorder %v10442_v60, %v2972_v21  ;;  %v2974_v21 = vadd.s32 88, %v9902_v35 }
 0x2e7   : > { %v13160_v62 = vsel %vm10544_vm10, 4294967295, %v13159_v62  ;;  %v10556_v1 = vsel %vm10544_vm10, %v3115_v5, -inf  ;;  %v10577_v5 = vsel %vm10566_vm12, %v7753_v41, -inf  ;;  %v2978_v41 = vadd.s32 120, %v9902_v35 }
 0x2e8   : > { %13161 = vst [vmem:[#allocation59_spill] sm:$0xff] %v13160_v62  ;;  %vm10580_vm13 = vcmp.le.s32.totalorder %v10442_v60, %v2974_v21  ;;  %v10599_v21 = vsel %vm10592_vm14, %v3128_v25, -inf  ;;  %vm13184_vm12 = vcmask 523264  }
 0x2e9   : > { %v13169_v30 = vsel %vm10580_vm13, 4294967295, %v13168_v30  ;;  %v10588_v9 = vsel %vm10580_vm13, %v7750_v39, -inf  ;;  %vm10603_vm15 = vcmp.le.s32.totalorder %v10442_v60, %v2978_v41  ;;  %v2976_v39 = vadd.s32 104, %v9902_v35  ;;  %vm13185_vm14 = vmmov %vm13184_vm12 }
 0x2ea   : > { %13170 = vst [vmem:[#allocation62_spill] sm:$0xff] %v13169_v30  ;;  %v13175_v12 = vsel %vm10603_vm15, 4294967295, %v13174_v12  ;;  %v10610_v13 = vsel %vm10603_vm15, %v7754_v18, -inf  ;;  %vm13186_vm11 = vmmov %vm13184_vm12 }
 0x2eb   : > { %13176 = vst [vmem:[#allocation64_spill] sm:$0xff] %v13175_v12  ;;  %vm10614_vm0 = vcmp.le.s32.totalorder %v10442_v60, %v2976_v39  ;;  %vm13187_vm8 = vmmov %vm13186_vm11 }
 0x2ec   : > { %v13178_v33 = vsel %vm10614_vm0, 4294967295, %v13177_v33  ;;  %v10620_v25 = vsel %vm10614_vm0, %v3131_v29, -inf  ;;  %vm13188_vm15 = vmmov %vm13187_vm8 }
 0x2ed   : > { %13179 = vst [vmem:[#allocation65_spill] sm:$0xff] %v13178_v33  ;;  %vm13189_vm7 = vmmov %vm13187_vm8 }
 0x2ee   : > { %vm13190_vm0 = vmmov %vm13189_vm7 }
 0x2ef   : > { %vm13191_vm6 = vmmov %vm13190_vm0 }
 0x302   : > { %3167 = vmax.xlane.f32.xlu1 %v10507_v42 }
 0x303   : > { %3171 = vmax.xlane.f32.xlu0 %v10512_v48 }
 0x306   : > { %3173 = vmax.xlane.f32.xlu1 %v10529_v10 }
 0x307   : > { %3175 = vmax.xlane.f32.xlu0 %v10534_v63 }
 0x30a   : > { %3169 = vmax.xlane.f32.xlu1 %v10551_v54 }
 0x30b   : > { %3177 = vmax.xlane.f32.xlu0 %v10556_v1 }
 0x30e   : > { %3179 = vmax.xlane.f32.xlu1 %v10572_v53 }
 0x30f   : > { %3187 = vmax.xlane.f32.xlu0 %v10577_v5 }
 0x312   : > { %3181 = vmax.xlane.f32.xlu1 %v10588_v9 }
 0x316   : > { %3183 = vmax.xlane.f32.xlu1 %v10599_v21 }
 0x31a   : > { %3189 = vmax.xlane.f32.xlu1 %v10610_v13 }
 0x31e   : > { %3185 = vmax.xlane.f32.xlu1 %v10620_v25 }
 0x325   : > { %3468 = vrot.lane.b32.xlu0 %v10207_v56, %s9546_s12 }
 0x329   : > { %3470 = vrot.lane.b32.xlu0 %v10227_v6, %s9546_s12 }
 0x32d   : > { %3432 = vrot.lane.b32.xlu0 %v9953_v57, %s9546_s12  ;;  %v3459_v57 = vpop.permute.xlu1 %3458 }
 0x32f   : > { %3466 = vrot.lane.b32.xlu1 %v10187_v22, %s9546_s12 }
 0x331   : > { %3436 = vrot.lane.b32.xlu0 %v10002_v3, %s9546_s12 }
 0x333   : > { %3434 = vrot.lane.b32.xlu1 %v9977_v16, %s9546_s12  ;;  %v3461_v16 = vpop.permute.xlu0 %3460 }
 0x334   : > { %v3503_v18 = vsel %vm13188_vm15, %v3461_v16, 0  ;;  %vm13210_vm15 = vmmov %vm13190_vm0 }
 0x335   : > { %3440 = vrot.lane.b32.xlu0 %v10043_v26, %s9546_s12 }
 0x337   : > { %3438 = vrot.lane.b32.xlu1 %v10026_v17, %s9546_s12 }
 0x339   : > { %3444 = vrot.lane.b32.xlu0 %v10071_v14, %s9546_s12 }
 0x33b   : > { %3442 = vrot.lane.b32.xlu1 %v10057_v59, %s9546_s12 }
 0x33d   : > { %3761 = vrot.lane.b32.xlu0 %v10311_v7, %s9546_s12 }
 0x33f   : > { %3446 = vrot.lane.b32.xlu1 %v10085_v24, %s9546_s12 }
 0x341   : > { %3765 = vrot.lane.b32.xlu0 %v10341_v61, %s9546_s12 }
 0x343   : > { %3763 = vrot.lane.b32.xlu1 %v10325_v15, %s9546_s12 }
 0x347   : > { %3767 = vrot.lane.b32.xlu1 %v10355_v40, %s9546_s12 }
 0x34b   : > { %3769 = vrot.lane.b32.xlu1 %v10365_v31, %s9546_s12 }
 0x34f   : > { %3771 = vrot.lane.b32.xlu1 %v10375_v38, %s9546_s12 }
 0x356   : > { %v3164_v3 = vpop.xlane.xlu1 %3163 }
 0x357   : > { %v3160_v17 = vpop.xlane.xlu0 %3159  ;;  %v3193_v59 = vsub.f32 %v10459_v2, %v3164_v3 }
 0x358   : > { %v3191_v26 = vsub.f32 %v10464_v19, %v3160_v17 }
 0x359   : > { %v3211_v6 = vmul.f32 1.442695, %v3193_v59 }
 0x35a   : > { %v3207_v14 = vmul.f32 1.442695, %v3191_v26  ;;  %v3166_v24 = vpop.xlane.xlu1 %3165 }
 0x35b   : > { %v3194_v22 = vsub.f32 %v10479_v47, %v3166_v24  ;;  %v3162_v56 = vpop.xlane.xlu0 %3161  ;;  %v3497_v47 = vsel %vm13184_vm12, %v10406_v27, 0  ;;  %vm13192_vm12 = vmmov %vm13190_vm0 }
 0x35c   : > { %v3192_v40 = vsub.f32 %v10484_v36, %v3162_v56  ;;  %9022 = vpow2.f32 %v3207_v14  ;;  %v3500_v36 = vsel %vm13186_vm11, %v3459_v57, 0  ;;  %vm13207_vm11 = vmmov %vm13190_vm0 }
 0x35d   : > { %v3213_v61 = vmul.f32 1.442695, %v3194_v22 }
 0x35e   : > { %v3209_v7 = vmul.f32 1.442695, %v3192_v40  ;;  %v3463_v29 = vpop.permute.xlu1 %3462 }
 0x35f   : > { %9024 = vpow2.f32 %v3213_v61  ;;  %v3506_v41 = vsel %vm13190_vm0, %v3463_v29, 0  ;;  %v3465_v39 = vpop.permute.xlu0 %3464 }
 0x360   : > { %9026 = vpow2.f32 %v3209_v7  ;;  %v3509_v27 = vsel %vm13192_vm12, %v3465_v39, 0  ;;  %vm13211_vm12 = vmmov %vm13190_vm0 }
 0x361   : > { %9028 = vpow2.f32 %v3211_v6 }
 0x366   : > { %v10661_v15 = vpop.eup %9022 }
 0x367   : > { %13180 = vst [vmem:[#allocation66_spill] sm:$0xff] %v10661_v15 }
 0x369   : > { %v10663_v31 = vpop.eup %9024 }
 0x36a   : > { %13181 = vst [vmem:[#allocation67_spill] sm:$0xff] %v10663_v31  ;;  %v10665_v38 = vpop.eup %9026 }
 0x36b   : > { %13182 = vst [vmem:[#allocation68_spill] sm:$0xff] %v10665_v38  ;;  %v10667_v60 = vpop.eup %9028  ;;  %v3271_v2 = vpack.c.bf16 %v10665_v38, %v10661_v15 }
 0x36c   : > { %13183 = vst [vmem:[#allocation69_spill] sm:$0xff] %v10667_v60  ;;  %v3272_v19 = vpack.c.bf16 %v10663_v31, %v10667_v60 }
 0x36d   : > { %7771 = vmatprep.mubr.bf16.mxu1 %v3271_v2 }
 0x36e   : > { %7772 = vmatmul.mubr.bf16.vlgmr.msra.gmra.mrb[112].mxu1 %v3272_v19 }
 0x36f   : > { %7788 = vmatpush3.bf16.xpose.msra.mxu1 %v3497_v47 }
 0x370   : > { %8484 = vmatprep.subr.msk.bf16.mxu1 %vm13185_vm14, %v3459_v57  ;;  %vm13209_vm14 = vmmov %vm13190_vm0 }
 0x377   : > { %7790 = vmatpush3.bf16.xpose.msra.mxu1 %v3500_v36 }
 0x378   : > { %8485 = vmatprep.subr.msk.bf16.mxu1 %vm13187_vm8, %v3461_v16  ;;  %vm13204_vm8 = vmmov %vm13190_vm0 }
 0x37f   : > { %7792 = vmatpush3.bf16.xpose.msra.mxu1 %v3503_v18 }
 0x380   : > { %8486 = vmatprep.subr.msk.bf16.mxu1 %vm13189_vm7, %v3463_v29  ;;  %vm13202_vm7 = vmmov %vm13190_vm0 }
 0x387   : > { %7794 = vmatpush3.bf16.xpose.msra.mxu1 %v3506_v41 }
 0x388   : > { %8487 = vmatprep.subr.msk.bf16.mxu1 %vm13191_vm6, %v3465_v39  ;;  %vm13201_vm6 = vmmov %vm13190_vm0 }
 0x38f   : > { %7796 = vmatpush3.bf16.xpose.msra.mxu1 %v3509_v27  ;;  %v3168_v3 = vpop.xlane.xlu1 %3167 }
 0x390   : > { %v3195_v57 = vsub.f32 %v10507_v42, %v3168_v3  ;;  %v3172_v17 = vpop.xlane.xlu0 %3171 }
 0x391   : > { %v3197_v26 = vsub.f32 %v10512_v48, %v3172_v17 }
 0x392   : > { %v3215_v59 = vmul.f32 1.442695, %v3195_v57 }
 0x393   : > { %v3174_v16 = vpop.xlane.xlu1 %3173  ;;  %v3219_v22 = vmul.f32 1.442695, %v3197_v26 }
 0x394   : > { %v3198_v14 = vsub.f32 %v10529_v10, %v3174_v16  ;;  %v3176_v24 = vpop.xlane.xlu0 %3175  ;;  %9030 = vpow2.f32 %v3215_v59 }
 0x395   : > { %v3199_v56 = vsub.f32 %v10534_v63, %v3176_v24  ;;  %9032 = vpow2.f32 %v3219_v22 }
 0x396   : > { %v3221_v40 = vmul.f32 1.442695, %v3198_v14 }
 0x397   : > { %v3223_v6 = vmul.f32 1.442695, %v3199_v56  ;;  %v3170_v61 = vpop.xlane.xlu1 %3169 }
 0x398   : > { %v3196_v7 = vsub.f32 %v10551_v54, %v3170_v61  ;;  %v3178_v2 = vpop.xlane.xlu0 %3177  ;;  %9034 = vpow2.f32 %v3221_v40 }
 0x399   : > { %v3200_v42 = vsub.f32 %v10556_v1, %v3178_v2  ;;  %9036 = vpow2.f32 %v3223_v6 }
 0x39a   : > { %v3217_v48 = vmul.f32 1.442695, %v3196_v7 }
 0x39b   : > { %v3225_v19 = vmul.f32 1.442695, %v3200_v42  ;;  %v3180_v47 = vpop.xlane.xlu1 %3179 }
 0x39c   : > { %9038 = vpow2.f32 %v3217_v48  ;;  %v3201_v10 = vsub.f32 %v10572_v53, %v3180_v47  ;;  %v3188_v36 = vpop.xlane.xlu0 %3187 }
 0x39d   : > { %9040 = vpow2.f32 %v3225_v19  ;;  %v3205_v40 = vsub.f32 %v10577_v5, %v3188_v36 }
 0x39e   : > { %v3227_v63 = vmul.f32 1.442695, %v3201_v10  ;;  %v10691_v54 = vpop.eup %9030 }
 0x39f   : > { %v3182_v18 = vpop.xlane.xlu1 %3181  ;;  %13193 = vst [vmem:[#allocation70_spill] sm:$0xff] %v10691_v54  ;;  %v10693_v27 = vpop.eup %9032 }
 0x3a0   : > { %v3202_v29 = vsub.f32 %v10588_v9, %v3182_v18  ;;  %v3469_v41 = vpop.permute.xlu0 %3468  ;;  %13194 = vst [vmem:[#allocation71_spill] sm:$0xff] %v10693_v27  ;;  %9042 = vpow2.f32 %v3227_v63 }
 0x3a2   : > { %v3229_v39 = vmul.f32 1.442695, %v3202_v29  ;;  %v10695_v3 = vpop.eup %9034 }
 0x3a3   : > { %v3184_v1 = vpop.xlane.xlu1 %3183  ;;  %13195 = vst [vmem:[#allocation72_spill] sm:$0xff] %v10695_v3  ;;  %v10697_v17 = vpop.eup %9036  ;;  %v3274_v22 = vpack.c.bf16 %v10695_v3, %v10693_v27 }
 0x3a4   : > { %9044 = vpow2.f32 %v3229_v39  ;;  %v3471_v57 = vpop.permute.xlu0 %3470  ;;  %13196 = vst [vmem:[#allocation73_spill] sm:$0xff] %v10697_v17  ;;  %v3203_v26 = vsub.f32 %v10599_v21, %v3184_v1  ;;  %v3515_v1 = vsel %vm13204_vm8, %v3469_v41, 0  ;;  %vm13214_vm8 = vmmov %vm13190_vm0 }
 0x3a6   : > { %v10699_v53 = vpop.eup %9038  ;;  %v3231_v6 = vmul.f32 1.442695, %v3203_v26 }
 0x3a7   : > { %13197 = vst [vmem:[#allocation74_spill] sm:$0xff] %v10699_v53  ;;  %v10702_v16 = vpop.eup %9040  ;;  %v3190_v9 = vpop.xlane.xlu1 %3189  ;;  %v3273_v59 = vpack.c.bf16 %v10699_v53, %v10691_v54 }
 0x3a8   : > { %13198 = vst [vmem:[#allocation75_spill] sm:$0xff] %v10702_v16  ;;  %v3206_v14 = vsub.f32 %v10610_v13, %v3190_v9  ;;  %v3433_v24 = vpop.permute.xlu0 %3432  ;;  %v3275_v56 = vpack.c.bf16 %v10702_v16, %v10697_v17  ;;  %v3235_v13 = vmul.f32 1.442695, %v3205_v40  ;;  %9046 = vpow2.f32 %v3231_v6 }
 0x3a9   : > { %7775 = vmatprep.mubr.bf16.mxu1 %v3273_v59  ;;  %v3518_v40 = vsel %vm13210_vm15, %v3471_v57, 0  ;;  %vm13233_vm15 = vnez %v13148_v20 }
 0x3aa   : > { %7776 = vmatmul.mubr.bf16.gmra.mrb[116].mxu1 %v3274_v22  ;;  %v3237_v21 = vmul.f32 1.442695, %v3206_v14  ;;  %v10713_v42 = vpop.eup %9042 }
 0x3ab   : > { %7779 = vmatprep.mubr.bf16.mxu1 %v3275_v56  ;;  %v3186_v61 = vpop.xlane.xlu1 %3185  ;;  %13199 = vst [vmem:[#allocation76_spill] sm:$0xff] %v10713_v42 }
 0x3ac   : > { %v3204_v7 = vsub.f32 %v10620_v25, %v3186_v61  ;;  %v3437_v2 = vpop.permute.xlu0 %3436  ;;  %9048 = vpow2.f32 %v3237_v21 }
 0x3ae   : > { %v10715_v48 = vpop.eup %9044  ;;  %v3233_v19 = vmul.f32 1.442695, %v3204_v7 }
 0x3af   : > { %13200 = vst [vmem:[#allocation77_spill] sm:$0xff] %v10715_v48  ;;  %v3467_v47 = vpop.permute.xlu1 %3466  ;;  %v3276_v5 = vpack.c.bf16 %v10715_v48, %v10713_v42 }
 0x3b0   : > { %9050 = vpow2.f32 %v3233_v19  ;;  %v3441_v10 = vpop.permute.xlu0 %3440  ;;  %8488 = vmatprep.subr.msk.bf16.mxu1 %vm13190_vm0, %v3467_v47  ;;  %v3512_v36 = vsel %vm13201_vm6, %v3467_v47, 0  ;;  %vm13212_vm6 = vmmov %vm13190_vm0 }
 0x3b1   : > { %9052 = vpow2.f32 %v3235_v13  ;;  %7798 = vmatpush3.bf16.xpose.msra.mxu1 %v3512_v36 }
 0x3b2   : > { %7780 = vmatmul.mubr.bf16.gmra.mrb[120].mxu1 %v3276_v5  ;;  %8489 = vmatprep.subr.msk.bf16.mxu1 %vm13202_vm7, %v3469_v41  ;;  %v10722_v29 = vpop.eup %9046  ;;  %vm13213_vm7 = vmmov %vm13190_vm0 }
 0x3b3   : > { %v3435_v25 = vpop.permute.xlu1 %3434  ;;  %13203 = vst [vmem:[#allocation78_spill] sm:$0xff] %v10722_v29 }
 0x3b4   : > { %v3445_v63 = vpop.permute.xlu0 %3444 }
 0x3b6   : > { %v10725_v26 = vpop.eup %9048 }
 0x3b7   : > { %v3439_v18 = vpop.permute.xlu1 %3438  ;;  %13205 = vst [vmem:[#allocation79_spill] sm:$0xff] %v10725_v26 }
 0x3b8   : > { %v3762_v39 = vpop.permute.xlu0 %3761 }
 0x3b9   : > { %7800 = vmatpush3.bf16.xpose.msra.mxu1 %v3515_v1  ;;  %7819 = vmatprep.subr.bf16.mxu0 %v3762_v39 }
 0x3ba   : > { %v10727_v9 = vpop.eup %9050  ;;  %8490 = vmatprep.subr.msk.bf16.mxu1 %vm13207_vm11, %v3471_v57  ;;  %7820 = vmatpush3.bf16.msra.mxu0 %v3762_v39  ;;  %vm13215_vm11 = vmmov %vm13190_vm0 }
 0x3bb   : > { %13206 = vst [vmem:[#allocation80_spill] sm:$0xff] %v10727_v9  ;;  %v10730_v59 = vpop.eup %9052  ;;  %v3443_v14 = vpop.permute.xlu1 %3442  ;;  %v3277_v22 = vpack.c.bf16 %v10727_v9, %v10722_v29 }
 0x3bc   : > { %13208 = vst [vmem:[#allocation81_spill] sm:$0xff] %v10730_v59  ;;  %v3278_v56 = vpack.c.bf16 %v10725_v26, %v10730_v59  ;;  %v3766_v21 = vpop.permute.xlu0 %3765 }
 0x3bd   : > { %7783 = vmatprep.mubr.bf16.mxu1 %v3277_v22 }
 0x3be   : > { %7784 = vmatmul.mubr.bf16.gmra.mrb[124].mxu1 %v3278_v56 }
 0x3bf   : > { %7803 = vmatprep.mubr.msk.bf16.mxu1 %vm13209_vm14, %v3433_v24  ;;  %v3447_v41 = vpop.permute.xlu1 %3446  ;;  %vm13216_vm14 = vmmov %vm13190_vm0 }
 0x3c1   : > { %7802 = vmatpush3.bf16.xpose.msra.mxu1 %v3518_v40 }
 0x3c2   : > { %7883 = vmatprep.subr.bf16.mxu1 %v10315_v55 }
 0x3c3   : > { %v3764_v6 = vpop.permute.xlu1 %3763 }
 0x3c4   : > { %7821 = vmatprep.subr.bf16.mxu0 %v3764_v6 }
 0x3c5   : > { %7822 = vmatpush3.bf16.msra.mxu0 %v3764_v6 }
 0x3c6   : > { %7823 = vmatprep.subr.bf16.mxu0 %v3766_v21 }
 0x3c7   : > { %v3768_v61 = vpop.permute.xlu1 %3767 }
 0x3c8   : > { %7804 = vmatmul.mubr.msk.bf16.vlgmr.msra.gmra.mrb[128].mxu1 %vm13211_vm12, %v3435_v25  ;;  %vm13234_vm12 = vnez %v13178_v33 }
 0x3c9   : > { %7807 = vmatprep.mubr.msk.bf16.mxu1 %vm13190_vm0, %v3437_v2  ;;  %7824 = vmatpush3.bf16.msra.mxu0 %v3766_v21  ;;  %vm13235_vm0 = vnez %v13151_v52 }
 0x3ca   : > { %7884 = vmatpush3.bf16.msra.mxu1 %v10315_v55  ;;  %7825 = vmatprep.subr.bf16.mxu0 %v3768_v61 }
 0x3cb   : > { %7885 = vmatprep.subr.bf16.mxu1 %v10329_v34  ;;  %v3770_v57 = vpop.permute.xlu1 %3769 }
 0x3cd   : > { %7826 = vmatpush3.bf16.msra.mxu0 %v3768_v61 }
 0x3ce   : > { %7886 = vmatpush3.bf16.msra.mxu1 %v10329_v34  ;;  %7827 = vmatprep.subr.bf16.mxu0 %v3770_v57 }
 0x3cf   : > { %7887 = vmatprep.subr.bf16.mxu1 %v10343_v8  ;;  %v3772_v24 = vpop.permute.xlu1 %3771 }
 0x3d0   : > { %7808 = vmatmul.mubr.msk.bf16.gmra.mrb[132].mxu1 %vm13212_vm6, %v3439_v18  ;;  %vm13236_vm6 = vnez %v13175_v12 }
 0x3d1   : > { %7811 = vmatprep.mubr.msk.bf16.mxu1 %vm13213_vm7, %v3441_v10  ;;  %7828 = vmatpush3.bf16.msra.mxu0 %v3770_v57  ;;  %vm13237_vm7 = vnez %v13154_v11 }
 0x3d2   : > { %7888 = vmatpush3.bf16.msra.mxu1 %v10343_v8  ;;  %7829 = vmatprep.subr.bf16.mxu0 %v3772_v24 }
 0x3d3   : > { %7889 = vmatprep.subr.bf16.mxu1 %v10357_v46 }
 0x3d5   : > { %7830 = vmatpush3.bf16.msra.mxu0 %v3772_v24 }
 0x3d6   : > { %7890 = vmatpush3.bf16.msra.mxu1 %v10357_v46 }
 0x3d7   : > { %7891 = vmatprep.subr.bf16.mxu1 %v10367_v23 }
 0x3d8   : > { %7812 = vmatmul.mubr.msk.bf16.gmra.mrb[136].mxu1 %vm13214_vm8, %v3443_v14  ;;  %vm13238_vm8 = vnez %v13163_v51 }
 0x3d9   : > { %7815 = vmatprep.mubr.msk.bf16.mxu1 %vm13215_vm11, %v3445_v63 }
 0x3da   : > { %7892 = vmatpush3.bf16.msra.mxu1 %v10367_v23 }
 0x3db   : > { %7893 = vmatprep.subr.bf16.mxu1 %v10377_v37 }
 0x3de   : > { %7894 = vmatpush3.bf16.msra.mxu1 %v10377_v37 }
 0x3df   : > { %7895 = vmatprep.subr.bf16.mxu1 %v10387_v0 }
 0x3e0   : > { %7816 = vmatmul.mubr.msk.bf16.gmra.mrb[140].mxu1 %vm13216_vm14, %v3447_v41 }
 0x3e2   : > { %7896 = vmatpush3.bf16.msra.mxu1 %v10387_v0 }
 0x3e3   : > { %7897 = vmatprep.subr.bf16.mxu1 %v10401_v28 }
 0x3e6   : > { %7898 = vmatpush3.bf16.msra.mxu1 %v10401_v28 }
 0x441   : > { %v10761_v7 = vpop.f32.mrb[112].mxu1 }
 0x442   : > { %13217 = vst [vmem:[#allocation82_spill] sm:$0xff] %v10761_v7  ;;  %v10763_v2 = vpop.f32.mrb[113].mxu1 }
 0x443   : > { %13218 = vst [vmem:[#allocation83_spill] sm:$0xff] %v10763_v2  ;;  %v10765_v13 = vpop.f32.mrb[114].mxu1 }
 0x444   : > { %13219 = vst [vmem:[#allocation84_spill] sm:$0xff] %v10765_v13  ;;  %v10767_v19 = vpop.f32.mrb[115].mxu1 }
 0x445   : > { %13220 = vst [vmem:[#allocation85_spill] sm:$0xff] %v10767_v19 }
 0x47d   : > { %v10769_v47 = vpop.f32.mrb[116].mxu1 }
 0x47e   : > { %13221 = vst [vmem:[#allocation86_spill] sm:$0xff] %v10769_v47  ;;  %v10771_v5 = vpop.f32.mrb[117].mxu1  ;;  %v13245_v47 = vld [vmem:[#allocation29_spill] sm:$0xff] }
 0x47f   : > { %13222 = vst [vmem:[#allocation87_spill] sm:$0xff] %v10771_v5  ;;  %v10773_v10 = vpop.f32.mrb[118].mxu1 }
 0x480   : > { %13223 = vst [vmem:[#allocation88_spill] sm:$0xff] %v10773_v10  ;;  %v10775_v36 = vpop.f32.mrb[119].mxu1 }
 0x481   : > { %13224 = vst [vmem:[#allocation89_spill] sm:$0xff] %v10775_v36 }
 0x485   : > { %v10777_v25 = vpop.f32.mrb[120].mxu1 }
 0x486   : > { %13225 = vst [vmem:[#allocation90_spill] sm:$0xff] %v10777_v25  ;;  %v10779_v63 = vpop.f32.mrb[121].mxu1 }
 0x487   : > { %13226 = vst [vmem:[#allocation91_spill] sm:$0xff] %v10779_v63  ;;  %v10781_v18 = vpop.f32.mrb[122].mxu1 }
 0x488   : > { %13227 = vst [vmem:[#allocation92_spill] sm:$0xff] %v10781_v18  ;;  %v10783_v39 = vpop.f32.mrb[123].mxu1 }
 0x489   : > { %13228 = vst [vmem:[#allocation93_spill] sm:$0xff] %v10783_v39 }
 0x491   : > { %v10785_v1 = vpop.f32.mrb[124].mxu1 }
 0x492   : > { %13229 = vst [vmem:[#allocation94_spill] sm:$0xff] %v10785_v1  ;;  %v10787_v14 = vpop.f32.mrb[125].mxu1 }
 0x493   : > { %13230 = vst [vmem:[#allocation95_spill] sm:$0xff] %v10787_v14  ;;  %v10789_v22 = vpop.f32.mrb[126].mxu1 }
 0x494   : > { %13231 = vst [vmem:[#allocation96_spill] sm:$0xff] %v10789_v22  ;;  %v10791_v56 = vpop.f32.mrb[127].mxu1 }
 0x495   : > { %13232 = vst [vmem:[#allocation97_spill] sm:$0xff] %v10791_v56 }
 0x49b   : > { %v7805_v41 = vpop.f32.mrb[128].mxu1 }
 0x49c   : > { %v3554_v40 = vpop.f32.mrb[129].mxu1  ;;  %v3619_v6 = vsel %vm10445_vm1, %v7805_v41, -inf }
 0x49d   : > { %3637 = vmax.xlane.f32.xlu0 %v3619_v6  ;;  %v7806_v21 = vpop.f32.mrb[130].mxu1  ;;  %v3617_v24 = vsel %vm10452_vm2, %v3554_v40, -inf }
 0x49e   : > { %v3557_v61 = vpop.f32.mrb[131].mxu1  ;;  %v3620_v1 = vsel %vm10467_vm3, %v7806_v21, -inf }
 0x49f   : > { %v3618_v57 = vsel %vm10473_vm4, %v3557_v61, -inf }
 0x4a0   : > { %3635 = vmax.xlane.f32.xlu1 %v3618_v57 }
 0x4a1   : > { %3633 = vmax.xlane.f32.xlu0 %v3617_v24 }
 0x4a3   : > { %v7809_v35 = vpop.f32.mrb[132].mxu1 }
 0x4a4   : > { %v3570_v22 = vpop.f32.mrb[133].mxu1 }
 0x4a5   : > { %3639 = vmax.xlane.f32.xlu0 %v3620_v1  ;;  %v7810_v56 = vpop.f32.mrb[134].mxu1 }
 0x4a6   : > { %v3573_v14 = vpop.f32.mrb[135].mxu1 }
 0x4a7   : > { %v10807_v21 = vsel %vm10537_vm9, %v3573_v14, -inf  ;;  %v10827_v14 = vsel %vm13233_vm15, %v7809_v35, -inf }
 0x4ab   : > { %v7813_v41 = vpop.f32.mrb[136].mxu1 }
 0x4ac   : > { %v3586_v18 = vpop.f32.mrb[137].mxu1 }
 0x4ad   : > { %v7814_v25 = vpop.f32.mrb[138].mxu1  ;;  %v10847_v35 = vsel %vm13237_vm7, %v3586_v18, -inf  ;;  %v13243_v18 = vld [vmem:[#allocation26_spill] sm:$0xff] }
 0x4ae   : > { %v3589_v26 = vpop.f32.mrb[139].mxu1 }
 0x4af   : > { %v10812_v63 = vsel %vm10544_vm10, %v3589_v26, -inf }
 0x4b1   : > { %3775 = vrot.lane.b32.xlu1 %v10398_v32, %s9546_s12  ;;  %v10817_v32 = vsel %vm10494_vm5, %v3570_v22, -inf  ;;  %v10837_v22 = vsel %vm13235_vm0, %v7810_v56, -inf  ;;  %v13239_v56 = vld [vmem:[#allocation63_spill] sm:$0xff] }
 0x4b2   : > { %vm13240_vm11 = vnez %v13239_v56 }
 0x4b3   : > { %v7817_v61 = vpop.f32.mrb[140].mxu1 }
 0x4b4   : > { %v3602_v59 = vpop.f32.mrb[141].mxu1 }
 0x4b5   : > { %v7818_v39 = vpop.f32.mrb[142].mxu1  ;;  %v10857_v9 = vsel %vm13240_vm11, %v3602_v59, -inf }
 0x4b6   : > { %v3605_v40 = vpop.f32.mrb[143].mxu1 }
 0x4b7   : > { %v10832_v26 = vsel %vm13234_vm12, %v3605_v40, -inf  ;;  %v10852_v40 = vsel %vm13238_vm8, %v7813_v41, -inf  ;;  %v13244_v41 = vld [vmem:[#allocation23_spill] sm:$0xff]  ;;  %vm13247_vm12 = vcmask 523264  }
 0x4bb   : > { %3773 = vrot.lane.b32.xlu0 %v10385_v49, %s9546_s12  ;;  %v10822_v49 = vsel %vm10580_vm13, %v7814_v25, -inf  ;;  %v10842_v25 = vsel %vm13236_vm6, %v7818_v39, -inf  ;;  %v13241_v39 = vld [vmem:[#allocation61_spill] sm:$0xff]  ;;  %vm13249_vm6 = vmmov %vm13247_vm12 }
 0x4bc   : > { %vm13242_vm14 = vnez %v13241_v39  ;;  %vm13250_vm11 = vmmov %vm13249_vm6 }
 0x4bd   : > { %v10862_v29 = vsel %vm13242_vm14, %v7817_v61, -inf  ;;  %vm13252_vm13 = vmmov %vm13249_vm6 }
 0x4be   : > { %vm13253_vm8 = vmmov %vm13249_vm6 }
 0x4bf   : > { %vm13255_vm14 = vmmov %vm13249_vm6 }
 0x4c0   : > { %vm13288_vm9 = vmmov %vm13249_vm6 }
 0x4d5   : > { %3643 = vmax.xlane.f32.xlu1 %v10807_v21 }
 0x4d9   : > { %3651 = vmax.xlane.f32.xlu1 %v10812_v63 }
 0x4da   : > { %3641 = vmax.xlane.f32.xlu0 %v10817_v32 }
 0x4dd   : > { %3655 = vmax.xlane.f32.xlu1 %v10822_v49 }
 0x4de   : > { %3645 = vmax.xlane.f32.xlu0 %v10827_v14 }
 0x4e1   : > { %3659 = vmax.xlane.f32.xlu1 %v10832_v26 }
 0x4e2   : > { %3647 = vmax.xlane.f32.xlu0 %v10837_v22 }
 0x4e5   : > { %3663 = vmax.xlane.f32.xlu1 %v10842_v25 }
 0x4e6   : > { %3649 = vmax.xlane.f32.xlu0 %v10847_v35 }
 0x4ea   : > { %3653 = vmax.xlane.f32.xlu0 %v10852_v40 }
 0x4ee   : > { %3657 = vmax.xlane.f32.xlu0 %v10857_v9 }
 0x4f2   : > { %3661 = vmax.xlane.f32.xlu0 %v10862_v29 }
 0x4f6   : > { %4423 = vrot.lane.b32.xlu1 %v13243_v18, %s9546_s12 }
 0x508   : > { %4421 = vrot.lane.b32.xlu0 %v13244_v41, %s9546_s12 }
 0x50c   : > { %4425 = vrot.lane.b32.xlu0 %v13245_v47, %s9546_s12 }
 0x52a   : > { %v3638_v10 = vpop.xlane.xlu0 %3637 }
 0x52b   : > { %v3667_v48 = vsub.f32 %v3619_v6, %v3638_v10 }
 0x52d   : > { %v3636_v59 = vpop.xlane.xlu1 %3635  ;;  %v3685_v13 = vmul.f32 1.442695, %v3667_v48 }
 0x52e   : > { %v3666_v5 = vsub.f32 %v3618_v57, %v3636_v59  ;;  %v3634_v36 = vpop.xlane.xlu0 %3633  ;;  %v13259_v57 = vld [vmem:[#allocation36_spill] sm:$0xff] }
 0x52f   : > { %v3665_v42 = vsub.f32 %v3617_v24, %v3634_v36 }
 0x530   : > { %v3683_v7 = vmul.f32 1.442695, %v3666_v5  ;;  %v13256_v5 = vld [vmem:[#allocation34_spill] sm:$0xff] }
 0x531   : > { %v3681_v61 = vmul.f32 1.442695, %v3665_v42  ;;  %v3776_v27 = vpop.permute.xlu1 %3775 }
 0x532   : > { %9054 = vpow2.f32 %v3683_v7  ;;  %v3640_v2 = vpop.xlane.xlu0 %3639 }
 0x533   : > { %9056 = vpow2.f32 %v3681_v61  ;;  %v3668_v19 = vsub.f32 %v3620_v1, %v3640_v2  ;;  %v3994_v2 = vsel %vm13253_vm8, %v13245_v47, 0  ;;  %vm13261_vm8 = vmmov %vm13249_vm6 }
 0x534   : > { %9058 = vpow2.f32 %v3685_v13  ;;  %v13254_v13 = vld [vmem:[#allocation32_spill] sm:$0xff] }
 0x535   : > { %v3687_v16 = vmul.f32 1.442695, %v3668_v19  ;;  %v3997_v19 = vsel %vm13249_vm6, %v13254_v13, 0 }
 0x536   : > { %v3774_v17 = vpop.permute.xlu0 %3773 }
 0x537   : > { %9060 = vpow2.f32 %v3687_v16  ;;  %7831 = vmatprep.subr.bf16.mxu0 %v3774_v17 }
 0x538   : > { %7832 = vmatpush3.bf16.msra.mxu0 %v3774_v17 }
 0x539   : > { %7833 = vmatprep.subr.bf16.mxu0 %v3776_v27 }
 0x53c   : > { %v10871_v54 = vpop.eup %9054  ;;  %7834 = vmatpush3.bf16.msra.mxu0 %v3776_v27  ;;  %v3988_v27 = vsel %vm13249_vm6, %v13244_v41, 0 }
 0x53d   : > { %v10873_v10 = vpop.eup %9056  ;;  %8491 = vmatprep.subr.msk.bf16.mxu0 %vm13247_vm12, %v13244_v41  ;;  %vm13251_vm12 = vmmov %vm13249_vm6 }
 0x53e   : > { %13246 = vst [vmem:[#allocation26_spill] sm:$0xff] %v10873_v10  ;;  %v3745_v42 = vpack.c.bf16 %v10871_v54, %v10873_v10  ;;  %v10879_v48 = vpop.eup %9058  ;;  %v3991_v16 = vsel %vm13251_vm12, %v13243_v18, 0  ;;  %vm13258_vm12 = vmmov %vm13249_vm6 }
 0x53f   : > { %13248 = vst [vmem:[#allocation23_spill] sm:$0xff] %v10879_v48  ;;  %v4000_v6 = vsel %vm13258_vm12, %v13256_v5, 0  ;;  %vm13267_vm12 = vmmov %vm13249_vm6 }
 0x540   : > { %7835 = vmatprep.mubr.bf16.mxu0 %v3745_v42 }
 0x541   : > { %v10881_v7 = vpop.eup %9060 }
 0x542   : > { %v3746_v17 = vpack.c.bf16 %v10881_v7, %v10879_v48 }
 0x544   : > { %7836 = vmatmul.mubr.bf16.vlgmr.msra.gmra.mrb[112].mxu0 %v3746_v17 }
 0x545   : > { %7852 = vmatpush3.bf16.xpose.msra.mxu0 %v3988_v27  ;;  %v13262_v27 = vld [vmem:[#allocation38_spill] sm:$0xff] }
 0x546   : > { %8492 = vmatprep.subr.msk.bf16.mxu0 %vm13250_vm11, %v13243_v18  ;;  %vm13257_vm11 = vmmov %vm13249_vm6 }
 0x54d   : > { %7854 = vmatpush3.bf16.xpose.msra.mxu0 %v3991_v16 }
 0x54e   : > { %8493 = vmatprep.subr.msk.bf16.mxu0 %vm13252_vm13, %v13245_v47  ;;  %vm13260_vm13 = vmmov %vm13249_vm6 }
 0x555   : > { %7856 = vmatpush3.bf16.xpose.msra.mxu0 %v3994_v2 }
 0x556   : > { %8494 = vmatprep.subr.msk.bf16.mxu0 %vm13255_vm14, %v13254_v13  ;;  %vm13263_vm14 = vmmov %vm13249_vm6 }
 0x55d   : > { %7858 = vmatpush3.bf16.xpose.msra.mxu0 %v3997_v19 }
 0x55e   : > { %8495 = vmatprep.subr.msk.bf16.mxu0 %vm13257_vm11, %v13256_v5  ;;  %vm13266_vm11 = vmmov %vm13249_vm6 }
 0x562   : > { %v3644_v36 = vpop.xlane.xlu1 %3643 }
 0x563   : > { %v3670_v1 = vsub.f32 %v10807_v21, %v3644_v36  ;;  %v4003_v21 = vsel %vm13261_vm8, %v13259_v57, 0  ;;  %vm13277_vm8 = vmmov %vm13249_vm6 }
 0x565   : > { %7860 = vmatpush3.bf16.xpose.msra.mxu0 %v4000_v6  ;;  %v3691_v24 = vmul.f32 1.442695, %v3670_v1 }
 0x566   : > { %8496 = vmatprep.subr.msk.bf16.mxu0 %vm13260_vm13, %v13259_v57  ;;  %v3652_v47 = vpop.xlane.xlu1 %3651  ;;  %vm13270_vm13 = vmmov %vm13249_vm6 }
 0x567   : > { %v3642_v18 = vpop.xlane.xlu0 %3641  ;;  %9062 = vpow2.f32 %v3691_v24  ;;  %v3674_v16 = vsub.f32 %v10812_v63, %v3652_v47 }
 0x568   : > { %v3669_v41 = vsub.f32 %v10817_v32, %v3642_v18 }
 0x569   : > { %v3699_v6 = vmul.f32 1.442695, %v3674_v16 }
 0x56a   : > { %v3689_v59 = vmul.f32 1.442695, %v3669_v41  ;;  %v3656_v42 = vpop.xlane.xlu1 %3655  ;;  %v4006_v41 = vsel %vm13249_vm6, %v13262_v27, 0 }
 0x56b   : > { %v3646_v61 = vpop.xlane.xlu0 %3645  ;;  %v3676_v24 = vsub.f32 %v10822_v49, %v3656_v42 }
 0x56c   : > { %9064 = vpow2.f32 %v3689_v59  ;;  %v3671_v17 = vsub.f32 %v10827_v14, %v3646_v61 }
 0x56d   : > { %7862 = vmatpush3.bf16.xpose.msra.mxu0 %v4003_v21  ;;  %v3703_v61 = vmul.f32 1.442695, %v3676_v24 }
 0x56e   : > { %8497 = vmatprep.subr.msk.bf16.mxu0 %vm13263_vm14, %v13262_v27  ;;  %v3693_v2 = vmul.f32 1.442695, %v3671_v17  ;;  %v3660_v36 = vpop.xlane.xlu1 %3659  ;;  %vm13279_vm14 = vmmov %vm13249_vm6 }
 0x56f   : > { %v3648_v19 = vpop.xlane.xlu0 %3647  ;;  %v3678_v49 = vsub.f32 %v10832_v26, %v3660_v36 }
 0x570   : > { %v3672_v32 = vsub.f32 %v10837_v22, %v3648_v19  ;;  %9066 = vpow2.f32 %v3693_v2  ;;  %v13265_v22 = vld [vmem:[#allocation40_spill] sm:$0xff] }
 0x571   : > { %v10918_v59 = vpop.eup %9062  ;;  %v3707_v2 = vmul.f32 1.442695, %v3678_v49  ;;  %v4009_v26 = vsel %vm13267_vm12, %v13265_v22, 0  ;;  %vm13284_vm12 = vmmov %vm13249_vm6 }
 0x572   : > { %v3695_v1 = vmul.f32 1.442695, %v3672_v32  ;;  %v3664_v17 = vpop.xlane.xlu1 %3663 }
 0x573   : > { %v3650_v14 = vpop.xlane.xlu0 %3649  ;;  %v3680_v19 = vsub.f32 %v10842_v25, %v3664_v17 }
 0x574   : > { %9068 = vpow2.f32 %v3695_v1  ;;  %v3673_v18 = vsub.f32 %v10847_v35, %v3650_v14 }
 0x575   : > { %7864 = vmatpush3.bf16.xpose.msra.mxu0 %v4006_v41  ;;  %9070 = vpow2.f32 %v3699_v6 }
 0x576   : > { %v10920_v63 = vpop.eup %9064  ;;  %v3697_v47 = vmul.f32 1.442695, %v3673_v18  ;;  %8498 = vmatprep.subr.msk.bf16.mxu0 %vm13266_vm11, %v13265_v22  ;;  %vm13282_vm11 = vmmov %vm13249_vm6 }
 0x577   : > { %13264 = vst [vmem:[#allocation29_spill] sm:$0xff] %v10920_v63  ;;  %v3654_v42 = vpop.xlane.xlu0 %3653  ;;  %v3747_v35 = vpack.c.bf16 %v10918_v59, %v10920_v63 }
 0x578   : > { %9072 = vpow2.f32 %v3697_v47  ;;  %v3675_v21 = vsub.f32 %v10852_v40, %v3654_v42  ;;  %v3711_v40 = vmul.f32 1.442695, %v3680_v19 }
 0x579   : > { %7839 = vmatprep.mubr.bf16.mxu0 %v3747_v35  ;;  %9074 = vpow2.f32 %v3703_v61 }
 0x57a   : > { %v3701_v16 = vmul.f32 1.442695, %v3675_v21  ;;  %v10932_v36 = vpop.eup %9066 }
 0x57b   : > { %v3658_v32 = vpop.xlane.xlu0 %3657  ;;  %13268 = vst [vmem:[#allocation32_spill] sm:$0xff] %v10932_v36 }
 0x57c   : > { %9076 = vpow2.f32 %v3701_v16  ;;  %v3677_v1 = vsub.f32 %v10857_v9, %v3658_v32 }
 0x57d   : > { %7866 = vmatpush3.bf16.xpose.msra.mxu0 %v4009_v26  ;;  %9078 = vpow2.f32 %v3707_v2  ;;  %v13278_v26 = vld [vmem:[#allocation11_spill] sm:$0xff] }
 0x57e   : > { %v10934_v6 = vpop.eup %9068  ;;  %v3705_v24 = vmul.f32 1.442695, %v3677_v1  ;;  %v13276_v1 = vld [vmem:[#allocation10_spill] sm:$0xff] }
 0x57f   : > { %v3662_v14 = vpop.xlane.xlu0 %3661  ;;  %v3748_v18 = vpack.c.bf16 %v10934_v6, %v10932_v36  ;;  %v10939_v41 = vpop.eup %9070 }
 0x580   : > { %9080 = vpow2.f32 %v3705_v24  ;;  %v3679_v25 = vsub.f32 %v10862_v29, %v3662_v14  ;;  %v13280_v24 = vld [vmem:[#allocation12_spill] sm:$0xff]  ;;  %v13283_v14 = vld [vmem:[#allocation14_spill] sm:$0xff] }
 0x581   : > { %7840 = vmatmul.mubr.bf16.gmra.mrb[116].mxu0 %v3748_v18  ;;  %9082 = vpow2.f32 %v3711_v40  ;;  %v13281_v40 = vld [vmem:[#allocation13_spill] sm:$0xff]  ;;  %v13285_v18 = vld [vmem:[#allocation15_spill] sm:$0xff] }
 0x582   : > { %v10941_v9 = vpop.eup %9072  ;;  %v3709_v47 = vmul.f32 1.442695, %v3679_v25  ;;  %v13287_v25 = vld [vmem:[#allocation16_spill] sm:$0xff] }
 0x583   : > { %13269 = vst [vmem:[#allocation34_spill] sm:$0xff] %v10941_v9  ;;  %v10943_v61 = vpop.permute.xlu0 %4421  ;;  %v3749_v49 = vpack.c.bf16 %v10939_v41, %v10941_v9  ;;  %v10949_v42 = vpop.eup %9074 }
 0x584   : > { %9084 = vpow2.f32 %v3709_v47  ;;  %8499 = vmatprep.subr.msk.bf16.mxu1 %vm13270_vm13, %v10943_v61  ;;  %vm13286_vm13 = vmmov %vm13249_vm6  ;;  %v13289_v47 = vld [vmem:[#allocation17_spill] sm:$0xff] }
 0x585   : > { %7843 = vmatprep.mubr.bf16.mxu0 %v3749_v49 }
 0x586   : > { %v10951_v29 = vpop.eup %9076 }
 0x587   : > { %13271 = vst [vmem:[#allocation36_spill] sm:$0xff] %v10951_v29  ;;  %v3750_v35 = vpack.c.bf16 %v10949_v42, %v10951_v29  ;;  %v10955_v17 = vpop.eup %9078 }
 0x588   : > { %13272 = vst [vmem:[#allocation38_spill] sm:$0xff] %v10955_v17 }
 0x589   : > { %7844 = vmatmul.mubr.bf16.gmra.mrb[120].mxu0 %v3750_v35 }
 0x58a   : > { %v10957_v21 = vpop.eup %9080 }
 0x58b   : > { %13273 = vst [vmem:[#allocation40_spill] sm:$0xff] %v10957_v21  ;;  %v3751_v16 = vpack.c.bf16 %v10955_v17, %v10957_v21  ;;  %v10961_v2 = vpop.eup %9082 }
 0x58c   : > { %13274 = vst [vmem:[#allocation98_spill] sm:$0xff] %v10961_v2 }
 0x58d   : > { %7847 = vmatprep.mubr.bf16.mxu0 %v3751_v16 }
 0x58e   : > { %v10963_v19 = vpop.eup %9084 }
 0x58f   : > { %13275 = vst [vmem:[#allocation99_spill] sm:$0xff] %v10963_v19  ;;  %v3752_v32 = vpack.c.bf16 %v10961_v2, %v10963_v19 }
 0x591   : > { %7848 = vmatmul.mubr.bf16.gmra.mrb[124].mxu0 %v3752_v32 }
 0x592   : > { %7867 = vmatprep.mubr.msk.bf16.mxu0 %vm13277_vm8, %v13276_v1  ;;  %vm13290_vm8 = vmmov %vm13249_vm6 }
 0x599   : > { %7868 = vmatmul.mubr.msk.bf16.vlgmr.msra.gmra.mrb[128].mxu0 %vm13279_vm14, %v13278_v26  ;;  %vm13308_vm14 = vnez %v13241_v39 }
 0x59a   : > { %7871 = vmatprep.mubr.msk.bf16.mxu0 %vm13249_vm6, %v13280_v24  ;;  %vm13309_vm6 = vnez %v13163_v51 }
 0x5a1   : > { %7872 = vmatmul.mubr.msk.bf16.gmra.mrb[132].mxu0 %vm13282_vm11, %v13281_v40  ;;  %vm13310_vm11 = vnez %v13169_v30 }
 0x5a2   : > { %7875 = vmatprep.mubr.msk.bf16.mxu0 %vm13284_vm12, %v13283_v14  ;;  %vm13311_vm12 = vnez %v13239_v56 }
 0x5a9   : > { %7876 = vmatmul.mubr.msk.bf16.gmra.mrb[136].mxu0 %vm13286_vm13, %v13285_v18  ;;  %vm13312_vm13 = vnez %v13175_v12 }
 0x5aa   : > { %7879 = vmatprep.mubr.msk.bf16.mxu0 %vm13288_vm9, %v13287_v25  ;;  %vm13307_vm9 = vnez %v13157_v44 }
 0x5b1   : > { %7880 = vmatmul.mubr.msk.bf16.gmra.mrb[140].mxu0 %vm13290_vm8, %v13289_v47  ;;  %vm13313_vm8 = vnez %v13178_v33 }
 0x617   : > { %v10983_v49 = vpop.f32.mrb[112].mxu0 }
 0x618   : > { %13291 = vst [vmem:[#allocation10_spill] sm:$0xff] %v10983_v49  ;;  %v10985_v35 = vpop.f32.mrb[113].mxu0 }
 0x619   : > { %13292 = vst [vmem:[#allocation11_spill] sm:$0xff] %v10985_v35  ;;  %v10987_v16 = vpop.f32.mrb[114].mxu0 }
 0x61a   : > { %13293 = vst [vmem:[#allocation12_spill] sm:$0xff] %v10987_v16  ;;  %v10989_v32 = vpop.f32.mrb[115].mxu0 }
 0x61b   : > { %13294 = vst [vmem:[#allocation13_spill] sm:$0xff] %v10989_v32 }
 0x654   : > { %v10991_v60 = vpop.f32.mrb[116].mxu0 }
 0x655   : > { %13295 = vst [vmem:[#allocation14_spill] sm:$0xff] %v10991_v60  ;;  %v10993_v15 = vpop.f32.mrb[117].mxu0 }
 0x656   : > { %13296 = vst [vmem:[#allocation15_spill] sm:$0xff] %v10993_v15  ;;  %v10995_v19 = vpop.f32.mrb[118].mxu0 }
 0x657   : > { %13297 = vst [vmem:[#allocation16_spill] sm:$0xff] %v10995_v19  ;;  %v10997_v21 = vpop.f32.mrb[119].mxu0 }
 0x658   : > { %13298 = vst [vmem:[#allocation17_spill] sm:$0xff] %v10997_v21 }
 0x65c   : > { %v10999_v29 = vpop.f32.mrb[120].mxu0 }
 0x65d   : > { %13299 = vst [vmem:[#allocation100_spill] sm:$0xff] %v10999_v29  ;;  %v11001_v9 = vpop.f32.mrb[121].mxu0 }
 0x65e   : > { %13300 = vst [vmem:[#allocation101_spill] sm:$0xff] %v11001_v9  ;;  %v11003_v3 = vpop.f32.mrb[122].mxu0 }
 0x65f   : > { %13301 = vst [vmem:[#allocation102_spill] sm:$0xff] %v11003_v3  ;;  %v11005_v49 = vpop.f32.mrb[123].mxu0 }
 0x660   : > { %13302 = vst [vmem:[#allocation103_spill] sm:$0xff] %v11005_v49 }
 0x664   : > { %v11007_v35 = vpop.f32.mrb[124].mxu0 }
 0x665   : > { %13303 = vst [vmem:[#allocation104_spill] sm:$0xff] %v11007_v35  ;;  %v11009_v16 = vpop.f32.mrb[125].mxu0 }
 0x666   : > { %13304 = vst [vmem:[#allocation105_spill] sm:$0xff] %v11009_v16  ;;  %v11011_v32 = vpop.f32.mrb[126].mxu0 }
 0x667   : > { %13305 = vst [vmem:[#allocation106_spill] sm:$0xff] %v11011_v32  ;;  %v11013_v60 = vpop.f32.mrb[127].mxu0 }
 0x668   : > { %13306 = vst [vmem:[#allocation107_spill] sm:$0xff] %v11013_v60 }
 0x66c   : > { %v7869_v15 = vpop.f32.mrb[128].mxu0 }
 0x66d   : > { %v4045_v19 = vpop.f32.mrb[129].mxu0  ;;  %v11017_v21 = vsel %vm10445_vm1, %v7869_v15, -inf }
 0x66e   : > { %4128 = vmax.xlane.f32.xlu0 %v11017_v21  ;;  %v7870_v29 = vpop.f32.mrb[130].mxu0  ;;  %v11027_v32 = vsel %vm10452_vm2, %v4045_v19, -inf }
 0x66f   : > { %v4048_v3 = vpop.f32.mrb[131].mxu0  ;;  %v11022_v49 = vsel %vm10467_vm3, %v7870_v29, -inf }
 0x670   : > { %4130 = vmax.xlane.f32.xlu1 %v11022_v49  ;;  %v11032_v15 = vsel %vm10473_vm4, %v4048_v3, -inf }
 0x672   : > { %4124 = vmax.xlane.f32.xlu0 %v11027_v32 }
 0x674   : > { %4126 = vmax.xlane.f32.xlu1 %v11032_v15  ;;  %v7873_v35 = vpop.f32.mrb[132].mxu0 }
 0x675   : > { %v4061_v60 = vpop.f32.mrb[133].mxu0  ;;  %v11041_v3 = vsel %vm13233_vm15, %v7873_v35, -inf }
 0x676   : > { %v7874_v16 = vpop.f32.mrb[134].mxu0  ;;  %v11046_v48 = vsel %vm10494_vm5, %v4061_v60, -inf }
 0x677   : > { %v4064_v9 = vpop.f32.mrb[135].mxu0 }
 0x678   : > { %v11066_v60 = vsel %vm13307_vm9, %v4064_v9, -inf }
 0x67c   : > { %v7877_v29 = vpop.f32.mrb[136].mxu0 }
 0x67d   : > { %v4077_v53 = vpop.f32.mrb[137].mxu0 }
 0x67e   : > { %v7878_v36 = vpop.f32.mrb[138].mxu0 }
 0x67f   : > { %v4080_v31 = vpop.f32.mrb[139].mxu0 }
 0x680   : > { %v11061_v35 = vsel %vm10544_vm10, %v4080_v31, -inf  ;;  %v11081_v31 = vsel %vm13310_vm11, %v7878_v36, -inf }
 0x684   : > { %v7881_v38 = vpop.f32.mrb[140].mxu0 }
 0x685   : > { %4427 = vrot.lane.b32.xlu1 %v13254_v13, %s9546_s12  ;;  %v4093_v19 = vpop.f32.mrb[141].mxu0  ;;  %v11051_v13 = vsel %vm13237_vm7, %v4077_v53, -inf  ;;  %v11071_v53 = vsel %vm13308_vm14, %v7881_v38, -inf  ;;  %vm13318_vm14 = vcmask 523264  }
 0x686   : > { %v7882_v63 = vpop.f32.mrb[142].mxu0  ;;  %v11086_v9 = vsel %vm13311_vm12, %v4093_v19, -inf  ;;  %vm13319_vm12 = vmmov %vm13318_vm14 }
 0x687   : > { %v4096_v2 = vpop.f32.mrb[143].mxu0  ;;  %v11091_v38 = vsel %vm13312_vm13, %v7882_v63, -inf }
 0x688   : > { %4429 = vrot.lane.b32.xlu0 %v13256_v5, %s9546_s12  ;;  %v11056_v5 = vsel %vm13235_vm0, %v7874_v16, -inf  ;;  %v11076_v16 = vsel %vm13309_vm6, %v7877_v29, -inf  ;;  %v11096_v29 = vsel %vm13313_vm8, %v4096_v2, -inf  ;;  %vm13320_vm6 = vmmov %vm13319_vm12 }
 0x689   : > { %vm13321_vm7 = vmmov %vm13320_vm6 }
 0x68a   : > { %vm13322_vm13 = vmmov %vm13320_vm6 }
 0x68b   : > { %vm13323_vm0 = vmmov %vm13320_vm6 }
 0x68c   : > { %vm13324_vm8 = vmmov %vm13323_vm0 }
 0x68d   : > { %vm13325_vm15 = vmmov %vm13323_vm0 }
 0x6a7   : > { %4136 = vmax.xlane.f32.xlu0 %v11041_v3 }
 0x6a9   : > { %4132 = vmax.xlane.f32.xlu1 %v11046_v48 }
 0x6ab   : > { %4140 = vmax.xlane.f32.xlu0 %v11051_v13 }
 0x6ad   : > { %4138 = vmax.xlane.f32.xlu1 %v11056_v5 }
 0x6af   : > { %4142 = vmax.xlane.f32.xlu0 %v11061_v35 }
 0x6b1   : > { %4134 = vmax.xlane.f32.xlu1 %v11066_v60 }
 0x6b3   : > { %4152 = vmax.xlane.f32.xlu0 %v11071_v53 }
 0x6b5   : > { %4144 = vmax.xlane.f32.xlu1 %v11076_v16 }
 0x6b9   : > { %4146 = vmax.xlane.f32.xlu1 %v11081_v31 }
 0x6bd   : > { %4148 = vmax.xlane.f32.xlu1 %v11086_v9 }
 0x6c1   : > { %4154 = vmax.xlane.f32.xlu1 %v11091_v38 }
 0x6c5   : > { %4150 = vmax.xlane.f32.xlu1 %v11096_v29 }
 0x6c9   : > { %4433 = vrot.lane.b32.xlu0 %v13262_v27, %s9546_s12 }
 0x6cd   : > { %4435 = vrot.lane.b32.xlu0 %v13265_v22, %s9546_s12 }
 0x6d1   : > { %4397 = vrot.lane.b32.xlu0 %v13276_v1, %s9546_s12 }
 0x6d5   : > { %4401 = vrot.lane.b32.xlu0 %v13280_v24, %s9546_s12 }
 0x6d6   : > { %4431 = vrot.lane.b32.xlu1 %v13259_v57, %s9546_s12  ;;  %v4424_v57 = vpop.permute.xlu1 %4423 }
 0x6d9   : > { %4405 = vrot.lane.b32.xlu0 %v13283_v14, %s9546_s12 }
 0x6da   : > { %4399 = vrot.lane.b32.xlu1 %v13278_v26, %s9546_s12 }
 0x6dd   : > { %4409 = vrot.lane.b32.xlu0 %v13287_v25, %s9546_s12 }
 0x6de   : > { %4403 = vrot.lane.b32.xlu1 %v13281_v40, %s9546_s12 }
 0x6e1   : > { %4726 = vrot.lane.b32.xlu0 %v10315_v55, %s9546_s12  ;;  %v4426_v55 = vpop.permute.xlu0 %4425 }
 0x6e2   : > { %4407 = vrot.lane.b32.xlu1 %v13285_v18, %s9546_s12 }
 0x6e5   : > { %4730 = vrot.lane.b32.xlu0 %v10343_v8, %s9546_s12 }
 0x6e6   : > { %4411 = vrot.lane.b32.xlu1 %v13289_v47, %s9546_s12  ;;  %v4462_v47 = vsel %vm13318_vm14, %v10943_v61, 0  ;;  %vm13326_vm14 = vmmov %vm13323_vm0 }
 0x6ea   : > { %4728 = vrot.lane.b32.xlu1 %v10329_v34, %s9546_s12 }
 0x6ee   : > { %4732 = vrot.lane.b32.xlu1 %v10357_v46, %s9546_s12 }
 0x6f2   : > { %4734 = vrot.lane.b32.xlu1 %v10367_v23, %s9546_s12 }
 0x6f6   : > { %4736 = vrot.lane.b32.xlu1 %v10377_v37, %s9546_s12 }
 0x6fb   : > { %v4129_v27 = vpop.xlane.xlu0 %4128 }
 0x6fc   : > { %v4158_v22 = vsub.f32 %v11017_v21, %v4129_v27 }
 0x6fd   : > { %v4131_v63 = vpop.xlane.xlu1 %4130 }
 0x6fe   : > { %v4159_v8 = vsub.f32 %v11022_v49, %v4131_v63  ;;  %v4176_v23 = vmul.f32 1.442695, %v4158_v22  ;;  %v4465_v49 = vsel %vm13320_vm6, %v4424_v57, 0  ;;  %vm13338_vm6 = vmmov %vm13323_vm0 }
 0x6ff   : > { %v4125_v36 = vpop.xlane.xlu0 %4124 }
 0x700   : > { %v4178_v2 = vmul.f32 1.442695, %v4159_v8  ;;  %v4156_v34 = vsub.f32 %v11027_v32, %v4125_v36  ;;  %v4468_v32 = vsel %vm13322_vm13, %v4426_v55, 0  ;;  %vm13343_vm13 = vmmov %vm13323_vm0 }
 0x701   : > { %v4127_v1 = vpop.xlane.xlu1 %4126 }
 0x702   : > { %v4172_v46 = vmul.f32 1.442695, %v4156_v34  ;;  %v4157_v26 = vsub.f32 %v11032_v15, %v4127_v1  ;;  %9086 = vpow2.f32 %v4178_v2 }
 0x703   : > { %v4430_v27 = vpop.permute.xlu0 %4429 }
 0x704   : > { %v4174_v24 = vmul.f32 1.442695, %v4157_v26  ;;  %9088 = vpow2.f32 %v4172_v46  ;;  %v4474_v63 = vsel %vm13326_vm14, %v4430_v27, 0  ;;  %vm13346_vm14 = vmmov %vm13323_vm0 }
 0x705   : > { %v4428_v15 = vpop.permute.xlu1 %4427 }
 0x706   : > { %9090 = vpow2.f32 %v4174_v24  ;;  %v4471_v19 = vsel %vm13324_vm8, %v4428_v15, 0  ;;  %vm13344_vm8 = vmmov %vm13323_vm0 }
 0x707   : > { %9092 = vpow2.f32 %v4176_v23 }
 0x70c   : > { %v11137_v37 = vpop.eup %9086 }
 0x70d   : > { %13314 = vst [vmem:[#allocation108_spill] sm:$0xff] %v11137_v37 }
 0x70e   : > { %v11139_v40 = vpop.eup %9088 }
 0x70f   : > { %13315 = vst [vmem:[#allocation109_spill] sm:$0xff] %v11139_v40 }
 0x710   : > { %v11141_v14 = vpop.eup %9090 }
 0x711   : > { %13316 = vst [vmem:[#allocation110_spill] sm:$0xff] %v11141_v14  ;;  %v11143_v21 = vpop.eup %9092  ;;  %v4236_v18 = vpack.c.bf16 %v11141_v14, %v11139_v40  ;;  %v13394_v40 = vld [vmem:[#allocation41_spill] sm:$0xff] }
 0x712   : > { %13317 = vst [vmem:[#allocation111_spill] sm:$0xff] %v11143_v21  ;;  %v4237_v25 = vpack.c.bf16 %v11137_v37, %v11143_v21  ;;  %v13393_v21 = vld [vmem:[#allocation39_spill] sm:$0xff] }
 0x713   : > { %7899 = vmatprep.mubr.bf16.mxu1 %v4236_v18 }
 0x714   : > { %7900 = vmatmul.mubr.bf16.vlgmr.msra.gmra.mrb[144].mxu1 %v4237_v25 }
 0x715   : > { %7916 = vmatpush3.bf16.xpose.msra.mxu1 %v4462_v47 }
 0x716   : > { %8500 = vmatprep.subr.msk.bf16.mxu1 %vm13319_vm12, %v4424_v57  ;;  %vm13341_vm12 = vmmov %vm13323_vm0 }
 0x71d   : > { %7918 = vmatpush3.bf16.xpose.msra.mxu1 %v4465_v49 }
 0x71e   : > { %8501 = vmatprep.subr.msk.bf16.mxu1 %vm13321_vm7, %v4426_v55  ;;  %vm13336_vm7 = vmmov %vm13323_vm0 }
 0x725   : > { %7920 = vmatpush3.bf16.xpose.msra.mxu1 %v4468_v32 }
 0x726   : > { %8502 = vmatprep.subr.msk.bf16.mxu1 %vm13323_vm0, %v4428_v15 }
 0x72d   : > { %7922 = vmatpush3.bf16.xpose.msra.mxu1 %v4471_v19 }
 0x72e   : > { %8503 = vmatprep.subr.msk.bf16.mxu1 %vm13325_vm15, %v4430_v27  ;;  %vm13335_vm15 = vmmov %vm13323_vm0 }
 0x734   : > { %v4137_v61 = vpop.xlane.xlu0 %4136 }
 0x735   : > { %7924 = vmatpush3.bf16.xpose.msra.mxu1 %v4474_v63  ;;  %v4162_v2 = vsub.f32 %v11041_v3, %v4137_v61 }
 0x736   : > { %v4133_v57 = vpop.xlane.xlu1 %4132 }
 0x737   : > { %v4160_v8 = vsub.f32 %v11046_v48, %v4133_v57  ;;  %v4184_v47 = vmul.f32 1.442695, %v4162_v2 }
 0x738   : > { %v4141_v22 = vpop.xlane.xlu0 %4140 }
 0x739   : > { %v4180_v34 = vmul.f32 1.442695, %v4160_v8  ;;  %v4164_v46 = vsub.f32 %v11051_v13, %v4141_v22 }
 0x73a   : > { %v4139_v36 = vpop.xlane.xlu1 %4138 }
 0x73b   : > { %v4163_v55 = vsub.f32 %v11056_v5, %v4139_v36  ;;  %9094 = vpow2.f32 %v4180_v34  ;;  %v4188_v49 = vmul.f32 1.442695, %v4164_v46 }
 0x73c   : > { %v4143_v1 = vpop.xlane.xlu0 %4142 }
 0x73d   : > { %v4186_v26 = vmul.f32 1.442695, %v4163_v55  ;;  %v4165_v23 = vsub.f32 %v11061_v35, %v4143_v1 }
 0x73e   : > { %v4135_v24 = vpop.xlane.xlu1 %4134 }
 0x73f   : > { %v4190_v18 = vmul.f32 1.442695, %v4165_v23  ;;  %v4161_v25 = vsub.f32 %v11066_v60, %v4135_v24  ;;  %9096 = vpow2.f32 %v4186_v26 }
 0x740   : > { %v4153_v48 = vpop.xlane.xlu0 %4152 }
 0x741   : > { %v4182_v32 = vmul.f32 1.442695, %v4161_v25  ;;  %9098 = vpow2.f32 %v4190_v18  ;;  %v4170_v26 = vsub.f32 %v11071_v53, %v4153_v48 }
 0x742   : > { %v4145_v5 = vpop.xlane.xlu1 %4144 }
 0x743   : > { %9100 = vpow2.f32 %v4182_v32  ;;  %v4166_v3 = vsub.f32 %v11076_v16, %v4145_v5 }
 0x744   : > { %9102 = vpow2.f32 %v4184_v47  ;;  %v4434_v13 = vpop.permute.xlu0 %4433 }
 0x745   : > { %9104 = vpow2.f32 %v4188_v49  ;;  %v4192_v15 = vmul.f32 1.442695, %v4166_v3  ;;  %v11169_v61 = vpop.eup %9094 }
 0x746   : > { %v4147_v35 = vpop.xlane.xlu1 %4146  ;;  %13327 = vst [vmem:[#allocation112_spill] sm:$0xff] %v11169_v61 }
 0x747   : > { %v4167_v19 = vsub.f32 %v11081_v31, %v4147_v35  ;;  %9106 = vpow2.f32 %v4192_v15 }
 0x748   : > { %v11167_v27 = vpop.permute.xlu0 %4435 }
 0x749   : > { %v4194_v60 = vmul.f32 1.442695, %v4167_v19  ;;  %v11171_v57 = vpop.eup %9096 }
 0x74a   : > { %v4149_v63 = vpop.xlane.xlu1 %4148  ;;  %13328 = vst [vmem:[#allocation113_spill] sm:$0xff] %v11171_v57 }
 0x74b   : > { %9108 = vpow2.f32 %v4194_v60  ;;  %v11173_v8 = vpop.eup %9098  ;;  %v4168_v36 = vsub.f32 %v11086_v9, %v4149_v63 }
 0x74c   : > { %13329 = vst [vmem:[#allocation114_spill] sm:$0xff] %v11173_v8  ;;  %v4398_v16 = vpop.permute.xlu0 %4397 }
 0x74d   : > { %v11175_v22 = vpop.eup %9100  ;;  %v4196_v24 = vmul.f32 1.442695, %v4168_v36  ;;  %v4480_v36 = vsel %vm13338_vm6, %v4434_v13, 0  ;;  %vm13353_vm6 = vmmov %vm13323_vm0 }
 0x74e   : > { %13330 = vst [vmem:[#allocation115_spill] sm:$0xff] %v11175_v22  ;;  %v11178_v55 = vpop.eup %9102  ;;  %v4155_v31 = vpop.xlane.xlu1 %4154  ;;  %v4238_v2 = vpack.c.bf16 %v11175_v22, %v11169_v61  ;;  %v13392_v61 = vld [vmem:[#allocation35_spill] sm:$0xff]  ;;  %v13397_v22 = vld [vmem:[#allocation22_spill] sm:$0xff] }
 0x74f   : > { %13331 = vst [vmem:[#allocation116_spill] sm:$0xff] %v11178_v55  ;;  %v11182_v34 = vpop.eup %9104  ;;  %v4171_v1 = vsub.f32 %v11091_v38, %v4155_v31  ;;  %v4239_v46 = vpack.c.bf16 %v11171_v57, %v11178_v55  ;;  %v4200_v38 = vmul.f32 1.442695, %v4170_v26  ;;  %9110 = vpow2.f32 %v4196_v24  ;;  %v13391_v55 = vld [vmem:[#allocation31_spill] sm:$0xff]  ;;  %v13395_v57 = vld [vmem:[#allocation18_spill] sm:$0xff] }
 0x750   : > { %13332 = vst [vmem:[#allocation117_spill] sm:$0xff] %v11182_v34  ;;  %v4402_v23 = vpop.permute.xlu0 %4401  ;;  %7903 = vmatprep.mubr.bf16.mxu1 %v4238_v2  ;;  %v4240_v9 = vpack.c.bf16 %v11173_v8, %v11182_v34  ;;  %v4483_v24 = vsel %vm13344_vm8, %v11167_v27, 0  ;;  %vm13375_vm8 = vnez %v13148_v20  ;;  %v13389_v34 = vld [vmem:[#allocation25_spill] sm:$0xff]  ;;  %v13390_v8 = vld [vmem:[#allocation30_spill] sm:$0xff] }
 0x751   : > { %7904 = vmatmul.mubr.bf16.gmra.mrb[148].mxu1 %v4239_v46  ;;  %v4202_v18 = vmul.f32 1.442695, %v4171_v1  ;;  %v11191_v49 = vpop.eup %9106 }
 0x752   : > { %7907 = vmatprep.mubr.bf16.mxu1 %v4240_v9  ;;  %v4151_v25 = vpop.xlane.xlu1 %4150  ;;  %13333 = vst [vmem:[#allocation118_spill] sm:$0xff] %v11191_v49 }
 0x753   : > { %v4169_v47 = vsub.f32 %v11096_v29, %v4151_v25  ;;  %9112 = vpow2.f32 %v4202_v18  ;;  %v13345_v18 = vld [vmem:[#allocation43_spill] sm:$0xff] }
 0x754   : > { %v4406_v32 = vpop.permute.xlu0 %4405 }
 0x755   : > { %v11193_v5 = vpop.eup %9108  ;;  %v4198_v53 = vmul.f32 1.442695, %v4169_v47 }
 0x756   : > { %13334 = vst [vmem:[#allocation119_spill] sm:$0xff] %v11193_v5  ;;  %v4432_v48 = vpop.permute.xlu1 %4431  ;;  %v4241_v3 = vpack.c.bf16 %v11193_v5, %v11191_v49 }
 0x757   : > { %9114 = vpow2.f32 %v4198_v53  ;;  %8504 = vmatprep.subr.msk.bf16.mxu1 %vm13335_vm15, %v4432_v48  ;;  %v4477_v15 = vsel %vm13323_vm0, %v4432_v48, 0  ;;  %vm13347_vm15 = vmmov %vm13323_vm0  ;;  %v13349_v53 = vld [vmem:[#allocation45_spill] sm:$0xff] }
 0x758   : > { %9116 = vpow2.f32 %v4200_v38  ;;  %v4410_v29 = vpop.permute.xlu0 %4409  ;;  %7926 = vmatpush3.bf16.xpose.msra.mxu1 %v4477_v15  ;;  %v13355_v15 = vld [vmem:[#allocation46_spill] sm:$0xff] }
 0x759   : > { %7908 = vmatmul.mubr.bf16.gmra.mrb[152].mxu1 %v4241_v3  ;;  %8505 = vmatprep.subr.msk.bf16.mxu1 %vm13336_vm7, %v4434_v13  ;;  %v11200_v63 = vpop.eup %9110  ;;  %vm13350_vm7 = vmmov %vm13323_vm0  ;;  %v13352_v3 = vld [vmem:[#allocation47_spill] sm:$0xff] }
 0x75a   : > { %v4400_v35 = vpop.permute.xlu1 %4399  ;;  %13337 = vst [vmem:[#allocation120_spill] sm:$0xff] %v11200_v63 }
 0x75c   : > { %v4727_v19 = vpop.permute.xlu0 %4726 }
 0x75d   : > { %7947 = vmatprep.subr.bf16.mxu0 %v4727_v19  ;;  %v11203_v31 = vpop.eup %9112 }
 0x75e   : > { %7948 = vmatpush3.bf16.msra.mxu0 %v4727_v19  ;;  %v4404_v60 = vpop.permute.xlu1 %4403  ;;  %13339 = vst [vmem:[#allocation121_spill] sm:$0xff] %v11203_v31 }
 0x760   : > { %7928 = vmatpush3.bf16.xpose.msra.mxu1 %v4480_v36  ;;  %v4731_v47 = vpop.permute.xlu0 %4730 }
 0x761   : > { %v11205_v2 = vpop.eup %9114  ;;  %8506 = vmatprep.subr.msk.bf16.mxu1 %vm13341_vm12, %v11167_v27  ;;  %vm13354_vm12 = vmmov %vm13323_vm0 }
 0x762   : > { %13340 = vst [vmem:[#allocation122_spill] sm:$0xff] %v11205_v2  ;;  %v11209_v1 = vpop.eup %9116  ;;  %v4408_v46 = vpop.permute.xlu1 %4407  ;;  %v4242_v26 = vpack.c.bf16 %v11205_v2, %v11200_v63 }
 0x763   : > { %13342 = vst [vmem:[#allocation123_spill] sm:$0xff] %v11209_v1  ;;  %v4243_v9 = vpack.c.bf16 %v11203_v31, %v11209_v1 }
 0x764   : > { %7911 = vmatprep.mubr.bf16.mxu1 %v4242_v26 }
 0x765   : > { %7912 = vmatmul.mubr.bf16.gmra.mrb[156].mxu1 %v4243_v9 }
 0x766   : > { %7931 = vmatprep.mubr.msk.bf16.mxu1 %vm13343_vm13, %v4398_v16  ;;  %v4412_v13 = vpop.permute.xlu1 %4411  ;;  %v13348_v16 = vld [vmem:[#allocation42_spill] sm:$0xff]  ;;  %vm13357_vm13 = vmmov %vm13323_vm0 }
 0x768   : > { %7930 = vmatpush3.bf16.xpose.msra.mxu1 %v4483_v24 }
 0x769   : > { %8011 = vmatprep.subr.bf16.mxu1 %v13345_v18 }
 0x76a   : > { %v4729_v25 = vpop.permute.xlu1 %4728 }
 0x76b   : > { %7949 = vmatprep.subr.bf16.mxu0 %v4729_v25 }
 0x76c   : > { %7950 = vmatpush3.bf16.msra.mxu0 %v4729_v25 }
 0x76d   : > { %7951 = vmatprep.subr.bf16.mxu0 %v4731_v47 }
 0x76e   : > { %v4733_v38 = vpop.permute.xlu1 %4732 }
 0x76f   : > { %7932 = vmatmul.mubr.msk.bf16.vlgmr.msra.gmra.mrb[160].mxu1 %vm13346_vm14, %v4400_v35  ;;  %v13358_v35 = vld [vmem:[#allocation48_spill] sm:$0xff]  ;;  %vm13376_vm14 = vnez %v13178_v33 }
 0x770   : > { %7935 = vmatprep.mubr.msk.bf16.mxu1 %vm13347_vm15, %v4402_v23  ;;  %7952 = vmatpush3.bf16.msra.mxu0 %v4731_v47  ;;  %v13351_v23 = vld [vmem:[#allocation44_spill] sm:$0xff]  ;;  %vm13377_vm15 = vnez %v13151_v52 }
 0x771   : > { %8012 = vmatpush3.bf16.msra.mxu1 %v13345_v18  ;;  %7953 = vmatprep.subr.bf16.mxu0 %v4733_v38 }
 0x772   : > { %8013 = vmatprep.subr.bf16.mxu1 %v13348_v16  ;;  %v4735_v27 = vpop.permute.xlu1 %4734 }
 0x774   : > { %7954 = vmatpush3.bf16.msra.mxu0 %v4733_v38 }
 0x775   : > { %8014 = vmatpush3.bf16.msra.mxu1 %v13348_v16  ;;  %7955 = vmatprep.subr.bf16.mxu0 %v4735_v27 }
 0x776   : > { %8015 = vmatprep.subr.bf16.mxu1 %v13349_v53  ;;  %v4737_v48 = vpop.permute.xlu1 %4736 }
 0x777   : > { %7936 = vmatmul.mubr.msk.bf16.gmra.mrb[164].mxu1 %vm13323_vm0, %v4404_v60  ;;  %vm13378_vm0 = vnez %v13175_v12 }
 0x778   : > { %7939 = vmatprep.mubr.msk.bf16.mxu1 %vm13350_vm7, %v4406_v32  ;;  %7956 = vmatpush3.bf16.msra.mxu0 %v4735_v27  ;;  %v13356_v32 = vld [vmem:[#allocation49_spill] sm:$0xff]  ;;  %vm13379_vm7 = vnez %v13154_v11 }
 0x779   : > { %8016 = vmatpush3.bf16.msra.mxu1 %v13349_v53  ;;  %7957 = vmatprep.subr.bf16.mxu0 %v4737_v48 }
 0x77a   : > { %8017 = vmatprep.subr.bf16.mxu1 %v13351_v23 }
 0x77c   : > { %7958 = vmatpush3.bf16.msra.mxu0 %v4737_v48 }
 0x77d   : > { %8018 = vmatpush3.bf16.msra.mxu1 %v13351_v23 }
 0x77e   : > { %8019 = vmatprep.subr.bf16.mxu1 %v13352_v3 }
 0x77f   : > { %7940 = vmatmul.mubr.msk.bf16.gmra.mrb[168].mxu1 %vm13353_vm6, %v4408_v46  ;;  %vm13380_vm6 = vnez %v13163_v51 }
 0x780   : > { %7943 = vmatprep.mubr.msk.bf16.mxu1 %vm13354_vm12, %v4410_v29  ;;  %vm13381_vm12 = vnez %v13239_v56 }
 0x781   : > { %8020 = vmatpush3.bf16.msra.mxu1 %v13352_v3 }
 0x782   : > { %8021 = vmatprep.subr.bf16.mxu1 %v13355_v15 }
 0x785   : > { %8022 = vmatpush3.bf16.msra.mxu1 %v13355_v15 }
 0x786   : > { %8023 = vmatprep.subr.bf16.mxu1 %v13356_v32 }
 0x787   : > { %7944 = vmatmul.mubr.msk.bf16.gmra.mrb[172].mxu1 %vm13357_vm13, %v4412_v13  ;;  %vm13382_vm13 = vnez %v13241_v39  ;;  %v13396_v39 = vld [vmem:[#allocation20_spill] sm:$0xff] }
 0x789   : > { %8024 = vmatpush3.bf16.msra.mxu1 %v13356_v32 }
 0x78a   : > { %8025 = vmatprep.subr.bf16.mxu1 %v13358_v35 }
 0x78d   : > { %8026 = vmatpush3.bf16.msra.mxu1 %v13358_v35 }
 0x7e7   : > { %v11241_v19 = vpop.f32.mrb[144].mxu1 }
 0x7e8   : > { %13359 = vst [vmem:[#allocation43_spill] sm:$0xff] %v11241_v19  ;;  %v11243_v60 = vpop.f32.mrb[145].mxu1 }
 0x7e9   : > { %13360 = vst [vmem:[#allocation42_spill] sm:$0xff] %v11243_v60  ;;  %v11245_v29 = vpop.f32.mrb[146].mxu1  ;;  %v13385_v60 = vld [vmem:[#allocation37_spill] sm:$0xff] }
 0x7ea   : > { %13361 = vst [vmem:[#allocation45_spill] sm:$0xff] %v11245_v29  ;;  %v11247_v36 = vpop.f32.mrb[147].mxu1 }
 0x7eb   : > { %13362 = vst [vmem:[#allocation44_spill] sm:$0xff] %v11247_v36  ;;  %v13387_v36 = vld [vmem:[#allocation21_spill] sm:$0xff] }
 0x824   : > { %v11249_v46 = vpop.f32.mrb[148].mxu1 }
 0x825   : > { %13363 = vst [vmem:[#allocation47_spill] sm:$0xff] %v11249_v46  ;;  %v11251_v26 = vpop.f32.mrb[149].mxu1 }
 0x826   : > { %13364 = vst [vmem:[#allocation46_spill] sm:$0xff] %v11251_v26  ;;  %v11253_v9 = vpop.f32.mrb[150].mxu1 }
 0x827   : > { %13365 = vst [vmem:[#allocation49_spill] sm:$0xff] %v11253_v9  ;;  %v11255_v13 = vpop.f32.mrb[151].mxu1 }
 0x828   : > { %13366 = vst [vmem:[#allocation48_spill] sm:$0xff] %v11255_v13 }
 0x82c   : > { %v11257_v24 = vpop.f32.mrb[152].mxu1 }
 0x82d   : > { %13367 = vst [vmem:[#allocation124_spill] sm:$0xff] %v11257_v24  ;;  %v11259_v25 = vpop.f32.mrb[153].mxu1 }
 0x82e   : > { %13368 = vst [vmem:[#allocation125_spill] sm:$0xff] %v11259_v25  ;;  %v11261_v47 = vpop.f32.mrb[154].mxu1 }
 0x82f   : > { %13369 = vst [vmem:[#allocation126_spill] sm:$0xff] %v11261_v47  ;;  %v11263_v38 = vpop.f32.mrb[155].mxu1 }
 0x830   : > { %13370 = vst [vmem:[#allocation127_spill] sm:$0xff] %v11263_v38 }
 0x838   : > { %v11265_v27 = vpop.f32.mrb[156].mxu1 }
 0x839   : > { %13371 = vst [vmem:[#allocation128_spill] sm:$0xff] %v11265_v27  ;;  %v11267_v48 = vpop.f32.mrb[157].mxu1 }
 0x83a   : > { %13372 = vst [vmem:[#allocation129_spill] sm:$0xff] %v11267_v48  ;;  %v11269_v1 = vpop.f32.mrb[158].mxu1 }
 0x83b   : > { %13373 = vst [vmem:[#allocation130_spill] sm:$0xff] %v11269_v1  ;;  %v11271_v31 = vpop.f32.mrb[159].mxu1 }
 0x83c   : > { %13374 = vst [vmem:[#allocation131_spill] sm:$0xff] %v11271_v31 }
 0x842   : > { %v7933_v63 = vpop.f32.mrb[160].mxu1 }
 0x843   : > { %v4519_v2 = vpop.f32.mrb[161].mxu1  ;;  %v11275_v46 = vsel %vm10445_vm1, %v7933_v63, -inf }
 0x844   : > { %4602 = vmax.xlane.f32.xlu0 %v11275_v46  ;;  %v7934_v24 = vpop.f32.mrb[162].mxu1  ;;  %v11285_v27 = vsel %vm10452_vm2, %v4519_v2, -inf }
 0x845   : > { %v4522_v47 = vpop.f32.mrb[163].mxu1  ;;  %v11290_v63 = vsel %vm10467_vm3, %v7934_v24, -inf }
 0x846   : > { %v11280_v25 = vsel %vm10473_vm4, %v4522_v47, -inf }
 0x847   : > { %4600 = vmax.xlane.f32.xlu1 %v11280_v25 }
 0x848   : > { %4598 = vmax.xlane.f32.xlu0 %v11285_v27 }
 0x84a   : > { %v7937_v1 = vpop.f32.mrb[164].mxu1 }
 0x84b   : > { %v4535_v48 = vpop.f32.mrb[165].mxu1 }
 0x84c   : > { %4604 = vmax.xlane.f32.xlu0 %v11290_v63  ;;  %v7938_v31 = vpop.f32.mrb[166].mxu1 }
 0x84d   : > { %v4538_v38 = vpop.f32.mrb[167].mxu1 }
 0x84e   : > { %v11299_v24 = vsel %vm13307_vm9, %v4538_v38, -inf  ;;  %v11318_v38 = vsel %vm13375_vm8, %v7937_v1, -inf }
 0x852   : > { %v7941_v47 = vpop.f32.mrb[168].mxu1 }
 0x853   : > { %v4551_v9 = vpop.f32.mrb[169].mxu1 }
 0x854   : > { %v7942_v49 = vpop.f32.mrb[170].mxu1  ;;  %v11338_v1 = vsel %vm13379_vm7, %v4551_v9, -inf  ;;  %v13383_v9 = vld [vmem:[#allocation27_spill] sm:$0xff] }
 0x855   : > { %v4554_v26 = vpop.f32.mrb[171].mxu1 }
 0x856   : > { %v11304_v29 = vsel %vm10544_vm10, %v4554_v26, -inf }
 0x858   : > { %4740 = vrot.lane.b32.xlu1 %v10401_v28, %s9546_s12  ;;  %v11308_v28 = vsel %vm10494_vm5, %v4535_v48, -inf  ;;  %v11328_v48 = vsel %vm13377_vm15, %v7938_v31, -inf  ;;  %v11344_v31 = vsel %vm13380_vm6, %v7941_v47, -inf  ;;  %v13384_v47 = vld [vmem:[#allocation33_spill] sm:$0xff] }
 0x85a   : > { %v7945_v2 = vpop.f32.mrb[172].mxu1 }
 0x85b   : > { %v4567_v13 = vpop.f32.mrb[173].mxu1 }
 0x85c   : > { %v7946_v5 = vpop.f32.mrb[174].mxu1 }
 0x85d   : > { %v4570_v19 = vpop.f32.mrb[175].mxu1 }
 0x85e   : > { %v11324_v26 = vsel %vm13376_vm14, %v4570_v19, -inf  ;;  %v11349_v19 = vsel %vm13381_vm12, %v4567_v13, -inf  ;;  %v13386_v13 = vld [vmem:[#allocation19_spill] sm:$0xff] }
 0x862   : > { %4738 = vrot.lane.b32.xlu0 %v10387_v0, %s9546_s12  ;;  %v11314_v0 = vsel %vm13310_vm11, %v7942_v49, -inf  ;;  %v11334_v49 = vsel %vm13378_vm0, %v7946_v5, -inf  ;;  %v11354_v5 = vsel %vm13382_vm13, %v7945_v2, -inf  ;;  %v13388_v2 = vld [vmem:[#allocation24_spill] sm:$0xff]  ;;  %vm13399_vm13 = vcmask 523264  }
 0x863   : > { %vm13400_vm10 = vmmov %vm13399_vm13 }
 0x864   : > { %vm13401_vm7 = vmmov %vm13400_vm10 }
 0x865   : > { %vm13403_vm8 = vmmov %vm13401_vm7 }
 0x866   : > { %vm13404_vm14 = vmmov %vm13401_vm7 }
 0x867   : > { %vm13406_vm0 = vmmov %vm13401_vm7 }
 0x87c   : > { %4608 = vmax.xlane.f32.xlu1 %v11299_v24 }
 0x880   : > { %4616 = vmax.xlane.f32.xlu1 %v11304_v29 }
 0x881   : > { %4606 = vmax.xlane.f32.xlu0 %v11308_v28 }
 0x884   : > { %4620 = vmax.xlane.f32.xlu1 %v11314_v0 }
 0x885   : > { %4610 = vmax.xlane.f32.xlu0 %v11318_v38 }
 0x888   : > { %4624 = vmax.xlane.f32.xlu1 %v11324_v26 }
 0x889   : > { %4612 = vmax.xlane.f32.xlu0 %v11328_v48 }
 0x88c   : > { %4628 = vmax.xlane.f32.xlu1 %v11334_v49 }
 0x88d   : > { %4614 = vmax.xlane.f32.xlu0 %v11338_v1 }
 0x891   : > { %4618 = vmax.xlane.f32.xlu0 %v11344_v31 }
 0x895   : > { %4622 = vmax.xlane.f32.xlu0 %v11349_v19 }
 0x899   : > { %4626 = vmax.xlane.f32.xlu0 %v11354_v5 }
 0x89d   : > { %5387 = vrot.lane.b32.xlu1 %v13383_v9, %s9546_s12 }
 0x8a1   : > { %5391 = vrot.lane.b32.xlu1 %v13384_v47, %s9546_s12 }
 0x8a5   : > { %5395 = vrot.lane.b32.xlu1 %v13385_v60, %s9546_s12 }
 0x8a9   : > { %5363 = vrot.lane.b32.xlu1 %v13386_v13, %s9546_s12 }
 0x8ad   : > { %5367 = vrot.lane.b32.xlu1 %v13387_v36, %s9546_s12 }
 0x8af   : > { %5385 = vrot.lane.b32.xlu0 %v13388_v2, %s9546_s12 }
 0x8b1   : > { %5371 = vrot.lane.b32.xlu1 %v13389_v34, %s9546_s12 }
 0x8b3   : > { %5389 = vrot.lane.b32.xlu0 %v13390_v8, %s9546_s12 }
 0x8b5   : > { %5375 = vrot.lane.b32.xlu1 %v13391_v55, %s9546_s12 }
 0x8b7   : > { %5393 = vrot.lane.b32.xlu0 %v13392_v61, %s9546_s12 }
 0x8b9   : > { %5692 = vrot.lane.b32.xlu1 %v13348_v16, %s9546_s12  ;;  %v13398_v16 = vld [vmem:[#allocation28_spill] sm:$0xff] }
 0x8bb   : > { %5397 = vrot.lane.b32.xlu0 %v13393_v21, %s9546_s12 }
 0x8bd   : > { %5700 = vrot.lane.b32.xlu1 %v13355_v15, %s9546_s12 }
 0x8bf   : > { %5399 = vrot.lane.b32.xlu0 %v13394_v40, %s9546_s12 }
 0x8c3   : > { %5361 = vrot.lane.b32.xlu0 %v13395_v57, %s9546_s12 }
 0x8c7   : > { %5365 = vrot.lane.b32.xlu0 %v13396_v39, %s9546_s12 }
 0x8cb   : > { %5369 = vrot.lane.b32.xlu0 %v13397_v22, %s9546_s12 }
 0x8cf   : > { %5373 = vrot.lane.b32.xlu0 %v13398_v16, %s9546_s12 }
 0x8d1   : > { %v4603_v62 = vpop.xlane.xlu0 %4602 }
 0x8d2   : > { %v4632_v11 = vsub.f32 %v11275_v46, %v4603_v62 }
 0x8d3   : > { %5690 = vrot.lane.b32.xlu0 %v13345_v18, %s9546_s12 }
 0x8d4   : > { %v4601_v15 = vpop.xlane.xlu1 %4600  ;;  %v4650_v33 = vmul.f32 1.442695, %v4632_v11 }
 0x8d5   : > { %v4631_v37 = vsub.f32 %v11280_v25, %v4601_v15  ;;  %v4599_v20 = vpop.xlane.xlu0 %4598 }
 0x8d6   : > { %v4630_v14 = vsub.f32 %v11285_v27, %v4599_v20 }
 0x8d7   : > { %v4648_v17 = vmul.f32 1.442695, %v4631_v37  ;;  %5694 = vrot.lane.b32.xlu0 %v13349_v53, %s9546_s12  ;;  %v4952_v37 = vsel %vm13400_vm10, %v13388_v2, 0  ;;  %vm13405_vm10 = vmmov %vm13401_vm7  ;;  %v4961_v53 = vsel %vm13406_vm0, %v13384_v47, 0 }
 0x8d8   : > { %v4646_v10 = vmul.f32 1.442695, %v4630_v14  ;;  %v4741_v20 = vpop.permute.xlu1 %4740 }
 0x8d9   : > { %9118 = vpow2.f32 %v4648_v17  ;;  %v4605_v12 = vpop.xlane.xlu0 %4604 }
 0x8da   : > { %9120 = vpow2.f32 %v4646_v10  ;;  %v4633_v56 = vsub.f32 %v11290_v63, %v4605_v12 }
 0x8db   : > { %5696 = vrot.lane.b32.xlu0 %v13351_v23, %s9546_s12  ;;  %9122 = vpow2.f32 %v4650_v33 }
 0x8dc   : > { %v4652_v62 = vmul.f32 1.442695, %v4633_v56 }
 0x8dd   : > { %v4739_v18 = vpop.permute.xlu0 %4738 }
 0x8de   : > { %9124 = vpow2.f32 %v4652_v62  ;;  %7959 = vmatprep.subr.bf16.mxu0 %v4739_v18 }
 0x8df   : > { %5698 = vrot.lane.b32.xlu0 %v13352_v3, %s9546_s12  ;;  %7960 = vmatpush3.bf16.msra.mxu0 %v4739_v18 }
 0x8e0   : > { %7961 = vmatprep.subr.bf16.mxu0 %v4741_v20 }
 0x8e3   : > { %v9119_v11 = vpop.eup %9118  ;;  %5702 = vrot.lane.b32.xlu0 %v13356_v32, %s9546_s12  ;;  %7962 = vmatpush3.bf16.msra.mxu0 %v4741_v20 }
 0x8e4   : > { %v11407_v12 = vpop.eup %9120  ;;  %4680 = vadd.xlane.f32.xlu1 %v9119_v11  ;;  %8507 = vmatprep.subr.msk.bf16.mxu0 %vm13399_vm13, %v13388_v2  ;;  %vm13402_vm13 = vmmov %vm13401_vm7 }
 0x8e5   : > { %v4710_v33 = vpack.c.bf16 %v9119_v11, %v11407_v12  ;;  %v11412_v56 = vpop.eup %9122  ;;  %v4955_v14 = vsel %vm13402_vm13, %v13383_v9, 0  ;;  %vm13408_vm13 = vmmov %vm13406_vm0 }
 0x8e6   : > { %v4964_v3 = vsel %vm13408_vm13, %v13392_v61, 0  ;;  %vm13413_vm13 = vmmov %vm13406_vm0 }
 0x8e7   : > { %7963 = vmatprep.mubr.bf16.mxu0 %v4710_v33 }
 0x8e8   : > { %v9125_v10 = vpop.eup %9124  ;;  %3715 = vadd.xlane.f32.xlu1 %v10871_v54  ;;  %v4958_v54 = vsel %vm13404_vm14, %v13390_v8, 0  ;;  %vm13410_vm14 = vmmov %vm13406_vm0 }
 0x8e9   : > { %v4711_v17 = vpack.c.bf16 %v9125_v10, %v11412_v56 }
 0x8eb   : > { %7964 = vmatmul.mubr.bf16.vlgmr.msra.gmra.mrb[144].mxu0 %v4711_v17 }
 0x8ec   : > { %4684 = vadd.xlane.f32.xlu1 %v9125_v10  ;;  %7980 = vmatpush3.bf16.xpose.msra.mxu0 %v4952_v37 }
 0x8ed   : > { %8508 = vmatprep.subr.msk.bf16.mxu0 %vm13401_vm7, %v13383_v9  ;;  %vm13407_vm7 = vmmov %vm13406_vm0 }
 0x8f0   : > { %3719 = vadd.xlane.f32.xlu1 %v10881_v7 }
 0x8f4   : > { %7982 = vmatpush3.bf16.xpose.msra.mxu0 %v4955_v14 }
 0x8f5   : > { %8509 = vmatprep.subr.msk.bf16.mxu0 %vm13403_vm8, %v13390_v8  ;;  %vm13409_vm8 = vmmov %vm13406_vm0 }
 0x8fc   : > { %7984 = vmatpush3.bf16.xpose.msra.mxu0 %v4958_v54 }
 0x8fd   : > { %8510 = vmatprep.subr.msk.bf16.mxu0 %vm13405_vm10, %v13384_v47  ;;  %vm13411_vm10 = vmmov %vm13406_vm0 }
 0x8fe   : > { %v4970_v10 = vsel %vm13411_vm10, %v13393_v21, 0  ;;  %vm13416_vm10 = vmmov %vm13406_vm0 }
 0x904   : > { %7986 = vmatpush3.bf16.xpose.msra.mxu0 %v4961_v53 }
 0x905   : > { %8511 = vmatprep.subr.msk.bf16.mxu0 %vm13407_vm7, %v13392_v61  ;;  %vm13412_vm7 = vmmov %vm13406_vm0 }
 0x909   : > { %v4609_v7 = vpop.xlane.xlu1 %4608 }
 0x90a   : > { %v4635_v23 = vsub.f32 %v11299_v24, %v4609_v7  ;;  %v4967_v24 = vsel %vm13410_vm14, %v13385_v60, 0  ;;  %vm13415_vm14 = vmmov %vm13406_vm0 }
 0x90c   : > { %v4656_v32 = vmul.f32 1.442695, %v4635_v23  ;;  %7988 = vmatpush3.bf16.xpose.msra.mxu0 %v4964_v3 }
 0x90d   : > { %8512 = vmatprep.subr.msk.bf16.mxu0 %vm13409_vm8, %v13385_v60  ;;  %v4617_v8 = vpop.xlane.xlu1 %4616  ;;  %vm13414_vm8 = vmmov %vm13406_vm0 }
 0x90e   : > { %9126 = vpow2.f32 %v4656_v32  ;;  %v4607_v46 = vpop.xlane.xlu0 %4606  ;;  %v4639_v61 = vsub.f32 %v11304_v29, %v4617_v8 }
 0x90f   : > { %v4634_v25 = vsub.f32 %v11308_v28, %v4607_v46 }
 0x910   : > { %v4664_v11 = vmul.f32 1.442695, %v4639_v61 }
 0x911   : > { %v4654_v27 = vmul.f32 1.442695, %v4634_v25  ;;  %v4621_v9 = vpop.xlane.xlu1 %4620 }
 0x912   : > { %v4611_v63 = vpop.xlane.xlu0 %4610 }
 0x913   : > { %9128 = vpow2.f32 %v4654_v27  ;;  %v4636_v47 = vsub.f32 %v11318_v38, %v4611_v63  ;;  %v4641_v38 = vsub.f32 %v11314_v0, %v4621_v9 }
 0x914   : > { %7990 = vmatpush3.bf16.xpose.msra.mxu0 %v4967_v24 }
 0x915   : > { %8513 = vmatprep.subr.msk.bf16.mxu0 %vm13406_vm0, %v13393_v21  ;;  %v4658_v2 = vmul.f32 1.442695, %v4636_v47  ;;  %v4625_v18 = vpop.xlane.xlu1 %4624 }
 0x916   : > { %v4613_v15 = vpop.xlane.xlu0 %4612  ;;  %v4643_v0 = vsub.f32 %v11324_v26, %v4625_v18  ;;  %v4973_v26 = vsel %vm13413_vm13, %v13394_v40, 0  ;;  %vm13420_vm13 = vmmov %vm13406_vm0 }
 0x917   : > { %v4637_v62 = vsub.f32 %v11328_v48, %v4613_v15  ;;  %9130 = vpow2.f32 %v4658_v2  ;;  %v4668_v48 = vmul.f32 1.442695, %v4641_v38 }
 0x918   : > { %v9127_v28 = vpop.eup %9126  ;;  %v4672_v53 = vmul.f32 1.442695, %v4643_v0 }
 0x919   : > { %v4660_v20 = vmul.f32 1.442695, %v4637_v62  ;;  %4688 = vadd.xlane.f32.xlu1 %v9127_v28 }
 0x91a   : > { %v4615_v33 = vpop.xlane.xlu0 %4614 }
 0x91b   : > { %9132 = vpow2.f32 %v4660_v20  ;;  %v4638_v60 = vsub.f32 %v11338_v1, %v4615_v33  ;;  %v4629_v1 = vpop.xlane.xlu1 %4628 }
 0x91c   : > { %7992 = vmatpush3.bf16.xpose.msra.mxu0 %v4970_v10  ;;  %9134 = vpow2.f32 %v4664_v11  ;;  %v4645_v7 = vsub.f32 %v11334_v49, %v4629_v1 }
 0x91d   : > { %v11450_v29 = vpop.eup %9128  ;;  %v4662_v17 = vmul.f32 1.442695, %v4638_v60  ;;  %8514 = vmatprep.subr.msk.bf16.mxu0 %vm13412_vm7, %v13394_v40  ;;  %3723 = vadd.xlane.f32.xlu1 %v10918_v59  ;;  %vm13419_vm7 = vmmov %vm13406_vm0 }
 0x91e   : > { %v4619_v37 = vpop.xlane.xlu0 %4618  ;;  %v4712_v14 = vpack.c.bf16 %v9127_v28, %v11450_v29 }
 0x91f   : > { %9136 = vpow2.f32 %v4662_v17  ;;  %v4640_v21 = vsub.f32 %v11344_v31, %v4619_v37  ;;  %v4676_v31 = vmul.f32 1.442695, %v4645_v7  ;;  %v11465_v27 = vpop.permute.xlu1 %5387 }
 0x920   : > { %7967 = vmatprep.mubr.bf16.mxu0 %v4712_v14  ;;  %9138 = vpow2.f32 %v4668_v48 }
 0x921   : > { %v4666_v54 = vmul.f32 1.442695, %v4640_v21  ;;  %v11462_v3 = vpop.eup %9130 }
 0x922   : > { %v4623_v23 = vpop.xlane.xlu0 %4622 }
 0x923   : > { %9140 = vpow2.f32 %v4666_v54  ;;  %v4642_v59 = vsub.f32 %v11349_v19, %v4623_v23  ;;  %v11482_v61 = vpop.permute.xlu1 %5391 }
 0x924   : > { %7994 = vmatpush3.bf16.xpose.msra.mxu0 %v4973_v26  ;;  %9142 = vpow2.f32 %v4672_v53 }
 0x925   : > { %v9133_v32 = vpop.eup %9132  ;;  %v4670_v8 = vmul.f32 1.442695, %v4642_v59 }
 0x926   : > { %v4627_v46 = vpop.xlane.xlu0 %4626  ;;  %4692 = vadd.xlane.f32.xlu1 %v9133_v32  ;;  %v4713_v25 = vpack.c.bf16 %v9133_v32, %v11462_v3  ;;  %v11468_v19 = vpop.eup %9134 }
 0x927   : > { %9144 = vpow2.f32 %v4670_v8  ;;  %v4644_v49 = vsub.f32 %v11354_v5, %v4627_v46  ;;  %v11496_v11 = vpop.permute.xlu1 %5395 }
 0x928   : > { %7968 = vmatmul.mubr.bf16.gmra.mrb[148].mxu0 %v4713_v25  ;;  %9146 = vpow2.f32 %v4676_v31 }
 0x929   : > { %v11470_v40 = vpop.eup %9136  ;;  %v4674_v63 = vmul.f32 1.442695, %v4644_v49 }
 0x92a   : > { %v11472_v9 = vpop.permute.xlu0 %5385  ;;  %v4714_v47 = vpack.c.bf16 %v11468_v19, %v11470_v40  ;;  %v11478_v24 = vpop.eup %9138 }
 0x92b   : > { %9148 = vpow2.f32 %v4674_v63  ;;  %8515 = vmatprep.subr.msk.bf16.mxu1 %vm13414_vm8, %v11472_v9  ;;  %v11506_v17 = vpop.permute.xlu1 %5363  ;;  %vm13423_vm8 = vmmov %vm13406_vm0 }
 0x92c   : > { %7971 = vmatprep.mubr.bf16.mxu0 %v4714_v47 }
 0x92d   : > { %v11480_v5 = vpop.eup %9140 }
 0x92e   : > { %v11484_v2 = vpop.permute.xlu0 %5389  ;;  %v4715_v15 = vpack.c.bf16 %v11478_v24, %v11480_v5  ;;  %v11488_v62 = vpop.eup %9142 }
 0x92f   : > { %v11514_v37 = vpop.permute.xlu1 %5367 }
 0x930   : > { %7972 = vmatmul.mubr.bf16.gmra.mrb[152].mxu0 %v4715_v15 }
 0x931   : > { %v11490_v28 = vpop.eup %9144 }
 0x932   : > { %v11492_v18 = vpop.permute.xlu0 %5393  ;;  %v4716_v20 = vpack.c.bf16 %v11488_v62, %v11490_v28  ;;  %v11498_v38 = vpop.eup %9146 }
 0x933   : > { %v11522_v1 = vpop.permute.xlu1 %5371 }
 0x934   : > { %7975 = vmatprep.mubr.bf16.mxu0 %v4716_v20  ;;  %13417 = vst [vmem:[#allocation27_spill] sm:$0xff] %v11522_v1 }
 0x935   : > { %v11500_v33 = vpop.eup %9148 }
 0x936   : > { %v11502_v60 = vpop.permute.xlu0 %5397  ;;  %v4717_v10 = vpack.c.bf16 %v11498_v38, %v11500_v33 }
 0x937   : > { %v11532_v54 = vpop.permute.xlu1 %5375 }
 0x938   : > { %7976 = vmatmul.mubr.bf16.gmra.mrb[156].mxu0 %v4717_v10  ;;  %13422 = vst [vmem:[#allocation19_spill] sm:$0xff] %v11532_v54 }
 0x939   : > { %7995 = vmatprep.mubr.msk.bf16.mxu0 %vm13415_vm14, %v13395_v57  ;;  %vm13424_vm14 = vmmov %vm13406_vm0 }
 0x93a   : > { %v11510_v48 = vpop.permute.xlu0 %5399 }
 0x93e   : > { %v11512_v0 = vpop.permute.xlu0 %5361 }
 0x940   : > { %7996 = vmatmul.mubr.msk.bf16.vlgmr.msra.gmra.mrb[160].mxu0 %vm13406_vm0, %v13386_v13 }
 0x941   : > { %7999 = vmatprep.mubr.msk.bf16.mxu0 %vm13416_vm10, %v13396_v39  ;;  %v5693_v39 = vpop.permute.xlu1 %5692 }
 0x942   : > { %v11520_v14 = vpop.permute.xlu0 %5365 }
 0x945   : > { %v5701_v7 = vpop.permute.xlu1 %5700 }
 0x946   : > { %v11524_v21 = vpop.permute.xlu0 %5369 }
 0x947   : > { %13418 = vst [vmem:[#allocation33_spill] sm:$0xff] %v11524_v21 }
 0x948   : > { %8000 = vmatmul.mubr.msk.bf16.gmra.mrb[164].mxu0 %vm13419_vm7, %v13387_v36 }
 0x949   : > { %8003 = vmatprep.mubr.msk.bf16.mxu0 %vm13420_vm13, %v13397_v22 }
 0x94a   : > { %v11530_v57 = vpop.permute.xlu0 %5373 }
 0x94b   : > { %13421 = vst [vmem:[#allocation37_spill] sm:$0xff] %v11530_v57 }
 0x94e   : > { %v5691_v13 = vpop.permute.xlu0 %5690 }
 0x94f   : > { %8075 = vmatprep.subr.bf16.mxu0 %v5691_v13 }
 0x950   : > { %8004 = vmatmul.mubr.msk.bf16.gmra.mrb[168].mxu0 %vm13423_vm8, %v13389_v34 }
 0x951   : > { %8076 = vmatpush3.bf16.msra.mxu0 %v5691_v13  ;;  %8007 = vmatprep.mubr.msk.bf16.mxu0 %vm13424_vm14, %v13398_v16 }
 0x952   : > { %8077 = vmatprep.subr.bf16.mxu0 %v5693_v39  ;;  %v5695_v53 = vpop.permute.xlu0 %5694 }
 0x955   : > { %8078 = vmatpush3.bf16.msra.mxu0 %v5693_v39 }
 0x956   : > { %8079 = vmatprep.subr.bf16.mxu0 %v5695_v53  ;;  %v5697_v36 = vpop.permute.xlu0 %5696 }
 0x958   : > { %8008 = vmatmul.mubr.msk.bf16.gmra.mrb[172].mxu0 %vm13406_vm0, %v13391_v55 }
 0x959   : > { %8080 = vmatpush3.bf16.msra.mxu0 %v5695_v53 }
 0x95a   : > { %8081 = vmatprep.subr.bf16.mxu0 %v5697_v36  ;;  %v5699_v22 = vpop.permute.xlu0 %5698 }
 0x95d   : > { %8082 = vmatpush3.bf16.msra.mxu0 %v5697_v36 }
 0x95e   : > { %8083 = vmatprep.subr.bf16.mxu0 %v5699_v22  ;;  %v5703_v34 = vpop.permute.xlu0 %5702 }
 0x961   : > { %8084 = vmatpush3.bf16.msra.mxu0 %v5699_v22 }
 0x962   : > { %8085 = vmatprep.subr.bf16.mxu0 %v5701_v7 }
 0x965   : > { %8086 = vmatpush3.bf16.msra.mxu0 %v5701_v7 }
 0x966   : > { %8087 = vmatprep.subr.bf16.mxu0 %v5703_v34 }
 0x969   : > { %8088 = vmatpush3.bf16.msra.mxu0 %v5703_v34 }
 0x9be   : > { %v11540_v16 = vpop.f32.mrb[144].mxu0 }
 0x9bf   : > { %v11542_v23 = vpop.f32.mrb[145].mxu0 }
 0x9c0   : > { %v11544_v59 = vpop.f32.mrb[146].mxu0 }
 0x9c1   : > { %v11546_v26 = vpop.f32.mrb[147].mxu0 }
 0x9fb   : > { %v11548_v55 = vpop.f32.mrb[148].mxu0 }
 0x9fc   : > { %v11550_v32 = vpop.f32.mrb[149].mxu0 }
 0x9fd   : > { %v11552_v8 = vpop.f32.mrb[150].mxu0 }
 0x9fe   : > { %v11554_v31 = vpop.f32.mrb[151].mxu0 }
 0xa03   : > { %v11556_v46 = vpop.f32.mrb[152].mxu0 }
 0xa04   : > { %v11558_v25 = vpop.f32.mrb[153].mxu0 }
 0xa05   : > { %v11560_v49 = vpop.f32.mrb[154].mxu0 }
 0xa06   : > { %v11562_v63 = vpop.f32.mrb[155].mxu0 }
 0xa0b   : > { %v11564_v47 = vpop.f32.mrb[156].mxu0 }
 0xa0c   : > { %13425 = vst [vmem:[#allocation21_spill] sm:$0xff] %v11564_v47  ;;  %v11566_v15 = vpop.f32.mrb[157].mxu0 }
 0xa0d   : > { %v11568_v20 = vpop.f32.mrb[158].mxu0 }
 0xa0e   : > { %13426 = vst [vmem:[#allocation24_spill] sm:$0xff] %v11568_v20  ;;  %v11570_v10 = vpop.f32.mrb[159].mxu0 }
 0xa13   : > { %v7997_v13 = vpop.f32.mrb[160].mxu0 }
 0xa14   : > { %v11574_v39 = vsel %vm10445_vm1, %v7997_v13, -inf  ;;  %v5009_v53 = vpop.f32.mrb[161].mxu0 }
 0xa15   : > { %5092 = vmax.xlane.f32.xlu0 %v11574_v39  ;;  %v7998_v36 = vpop.f32.mrb[162].mxu0  ;;  %v11584_v34 = vsel %vm10452_vm2, %v5009_v53, -inf }
 0xa16   : > { %v11579_v22 = vsel %vm10467_vm3, %v7998_v36, -inf  ;;  %v5012_v7 = vpop.f32.mrb[163].mxu0 }
 0xa17   : > { %5094 = vmax.xlane.f32.xlu1 %v11579_v22  ;;  %v11589_v13 = vsel %vm10473_vm4, %v5012_v7, -inf }
 0xa19   : > { %5088 = vmax.xlane.f32.xlu0 %v11584_v34 }
 0xa1b   : > { %5090 = vmax.xlane.f32.xlu1 %v11589_v13  ;;  %v8001_v4 = vpop.f32.mrb[164].mxu0 }
 0xa1c   : > { %v5025_v54 = vpop.f32.mrb[165].mxu0 }
 0xa1d   : > { %v11594_v36 = vsel %vm10494_vm5, %v5025_v54, -inf  ;;  %v8002_v45 = vpop.f32.mrb[166].mxu0 }
 0xa1e   : > { %v5028_v57 = vpop.f32.mrb[167].mxu0  ;;  %v11599_v53 = vsel %vm13377_vm15, %v8002_v45, -inf }
 0xa1f   : > { %5096 = vmax.xlane.f32.xlu1 %v11594_v36  ;;  %v11604_v1 = vsel %vm13307_vm9, %v5028_v57, -inf }
 0xa23   : > { %5102 = vmax.xlane.f32.xlu1 %v11599_v53  ;;  %v8005_v7 = vpop.f32.mrb[168].mxu0 }
 0xa24   : > { %v5041_v50 = vpop.f32.mrb[169].mxu0  ;;  %v11609_v54 = vsel %vm13380_vm6, %v8005_v7, -inf }
 0xa25   : > { %v8006_v58 = vpop.f32.mrb[170].mxu0 }
 0xa26   : > { %v5044_v43 = vpop.f32.mrb[171].mxu0  ;;  %v11614_v47 = vsel %vm13310_vm11, %v8006_v58, -inf }
 0xa27   : > { %5098 = vmax.xlane.f32.xlu1 %v11604_v1 }
 0xa2b   : > { %5108 = vmax.xlane.f32.xlu1 %v11609_v54  ;;  %v8009_v45 = vpop.f32.mrb[172].mxu0 }
 0xa2c   : > { %v5057_v52 = vpop.f32.mrb[173].mxu0 }
 0xa2d   : > { %v8010_v20 = vpop.f32.mrb[174].mxu0  ;;  %v11627_v57 = vsel %vm13381_vm12, %v5057_v52, -inf  ;;  %v13433_v52 = vld [vmem:[#allocation38_spill] sm:$0xff] }
 0xa2e   : > { %v5060_v21 = vpop.f32.mrb[175].mxu0 }
 0xa2f   : > { %5704 = vrot.lane.b32.xlu0 %v13358_v35, %s9546_s12  ;;  %5110 = vmax.xlane.f32.xlu1 %v11614_v47  ;;  %v13428_v35 = vld [vmem:[#allocation64_spill] sm:$0xff] }
 0xa30   : > { %vm13429_vm10 = vnez %v13428_v35  ;;  %v13459_v35 = vld [vmem:[#allocation66_spill] sm:$0xff] }
 0xa31   : > { %v11632_v7 = vsel %vm13429_vm10, %v8010_v20, -inf  ;;  %v13439_v20 = vld [vmem:[#allocation55_spill] sm:$0xff] }
 0xa32   : > { %vm13440_vm13 = vnez %v13439_v20  ;;  %v13461_v20 = vld [vmem:[#allocation69_spill] sm:$0xff] }
 0xa33   : > { %3727 = vadd.xlane.f32.xlu1 %v10934_v6  ;;  %v13430_v6 = vld [vmem:[#allocation65_spill] sm:$0xff] }
 0xa34   : > { %vm13431_vm7 = vnez %v13430_v6  ;;  %v13458_v6 = vld [vmem:[#allocation109_spill] sm:$0xff] }
 0xa37   : > { %4696 = vadd.xlane.f32.xlu1 %v11468_v19  ;;  %v13434_v19 = vld [vmem:[#allocation23_spill] sm:$0xff] }
 0xa3b   : > { %3731 = vadd.xlane.f32.xlu1 %v10939_v41  ;;  %v11638_v41 = vsel %vm13431_vm7, %v5060_v21, -inf  ;;  %v13438_v21 = vld [vmem:[#allocation68_spill] sm:$0xff]  ;;  %vm13466_vm7 = vcmask 523264  }
 0xa3c   : > { %vm13467_vm10 = vmmov %vm13466_vm7 }
 0xa3d   : > { %vm13468_vm12 = vmmov %vm13466_vm7 }
 0xa3f   : > { %4700 = vadd.xlane.f32.xlu1 %v11478_v24  ;;  %v13436_v24 = vld [vmem:[#allocation29_spill] sm:$0xff] }
 0xa43   : > { %3735 = vadd.xlane.f32.xlu1 %v10949_v42  ;;  %v13432_v42 = vld [vmem:[#allocation26_spill] sm:$0xff] }
 0xa47   : > { %4704 = vadd.xlane.f32.xlu1 %v11488_v62  ;;  %v13437_v62 = vld [vmem:[#allocation110_spill] sm:$0xff] }
 0xa4b   : > { %5112 = vmax.xlane.f32.xlu1 %v11627_v57 }
 0xa4e   : > { %4678 = vadd.xlane.f32.xlu0 %v11407_v12  ;;  %v13435_v12 = vld [vmem:[#allocation98_spill] sm:$0xff] }
 0xa4f   : > { %5118 = vmax.xlane.f32.xlu1 %v11632_v7 }
 0xa52   : > { %3713 = vadd.xlane.f32.xlu0 %v13432_v42  ;;  %v13441_v42 = vld [vmem:[#allocation108_spill] sm:$0xff] }
 0xa53   : > { %5114 = vmax.xlane.f32.xlu1 %v11638_v41 }
 0xa56   : > { %4682 = vadd.xlane.f32.xlu0 %v11412_v56  ;;  %v11654_v56 = vsel %vm13440_vm13, %v8001_v4, -inf  ;;  %v13447_v4 = vld [vmem:[#allocation115_spill] sm:$0xff] }
 0xa57   : > { %3739 = vadd.xlane.f32.xlu1 %v13433_v52  ;;  %v13444_v52 = vld [vmem:[#allocation67_spill] sm:$0xff] }
 0xa5a   : > { %3717 = vadd.xlane.f32.xlu0 %v13434_v19  ;;  %v13445_v19 = vld [vmem:[#allocation59_spill] sm:$0xff] }
 0xa5b   : > { %4708 = vadd.xlane.f32.xlu1 %v11498_v38  ;;  %v13442_v38 = vld [vmem:[#allocation57_spill] sm:$0xff]  ;;  %vm13446_vm14 = vnez %v13445_v19  ;;  %v13460_v19 = vld [vmem:[#allocation111_spill] sm:$0xff] }
 0xa5c   : > { %vm13443_vm8 = vnez %v13442_v38 }
 0xa5e   : > { %4686 = vadd.xlane.f32.xlu0 %v11450_v29  ;;  %v11660_v29 = vsel %vm13443_vm8, %v5041_v50, -inf }
 0xa5f   : > { %3743 = vadd.xlane.f32.xlu1 %v13435_v12  ;;  %v13448_v12 = vld [vmem:[#allocation32_spill] sm:$0xff] }
 0xa62   : > { %3721 = vadd.xlane.f32.xlu0 %v13436_v24  ;;  %v13449_v24 = vld [vmem:[#allocation74_spill] sm:$0xff] }
 0xa63   : > { %4206 = vadd.xlane.f32.xlu1 %v13437_v62  ;;  %v13450_v62 = vld [vmem:[#allocation61_spill] sm:$0xff] }
 0xa64   : > { %vm13451_vm0 = vnez %v13450_v62 }
 0xa65   : > { %v11674_v50 = vsel %vm13451_vm0, %v8009_v45, -inf  ;;  %vm13469_vm0 = vmmov %vm13466_vm7 }
 0xa66   : > { %4690 = vadd.xlane.f32.xlu0 %v11462_v3  ;;  %v11666_v3 = vsel %vm13446_vm14, %v5044_v43, -inf  ;;  %v13453_v43 = vld [vmem:[#allocation72_spill] sm:$0xff] }
 0xa67   : > { %3241 = vadd.xlane.f32.xlu1 %v13438_v21  ;;  %v13452_v21 = vld [vmem:[#allocation113_spill] sm:$0xff] }
 0xa6a   : > { %5100 = vmax.xlane.f32.xlu0 %v11654_v56 }
 0xa6b   : > { %4210 = vadd.xlane.f32.xlu1 %v13441_v42  ;;  %v11680_v42 = vpop.xlane.xlu1 %4680 }
 0xa6e   : > { %5104 = vmax.xlane.f32.xlu0 %v11660_v29 }
 0xa6f   : > { %3245 = vadd.xlane.f32.xlu1 %v13444_v52  ;;  %v13454_v52 = vld [vmem:[#allocation34_spill] sm:$0xff] }
 0xa72   : > { %5106 = vmax.xlane.f32.xlu0 %v11666_v3 }
 0xa73   : > { %4214 = vadd.xlane.f32.xlu1 %v13447_v4  ;;  %v11683_v4 = vpop.xlane.xlu1 %3715 }
 0xa76   : > { %3725 = vadd.xlane.f32.xlu0 %v13448_v12  ;;  %v13455_v12 = vld [vmem:[#allocation36_spill] sm:$0xff] }
 0xa77   : > { %3249 = vadd.xlane.f32.xlu1 %v13449_v24  ;;  %v11687_v45 = vpop.xlane.xlu1 %4684 }
 0xa7a   : > { %5116 = vmax.xlane.f32.xlu0 %v11674_v50 }
 0xa7b   : > { %4218 = vadd.xlane.f32.xlu1 %v13452_v21  ;;  %v11690_v24 = vpop.xlane.xlu1 %3719  ;;  %v13456_v21 = vld [vmem:[#allocation40_spill] sm:$0xff] }
 0xa7e   : > { %4694 = vadd.xlane.f32.xlu0 %v11470_v40 }
 0xa7f   : > { %3253 = vadd.xlane.f32.xlu1 %v13453_v43  ;;  %v11693_v40 = vpop.xlane.xlu1 %4688  ;;  %v13457_v43 = vld [vmem:[#allocation99_spill] sm:$0xff] }
 0xa82   : > { %3729 = vadd.xlane.f32.xlu0 %v13454_v52 }
 0xa83   : > { %v11697_v52 = vpop.xlane.xlu1 %3723 }
 0xa86   : > { %4698 = vadd.xlane.f32.xlu0 %v11480_v5 }
 0xa87   : > { %v11700_v5 = vpop.xlane.xlu1 %4692 }
 0xa8a   : > { %3733 = vadd.xlane.f32.xlu0 %v13455_v12 }
 0xa8e   : > { %4702 = vadd.xlane.f32.xlu0 %v11490_v28 }
 0xa92   : > { %3737 = vadd.xlane.f32.xlu0 %v13456_v21 }
 0xa96   : > { %4706 = vadd.xlane.f32.xlu0 %v11500_v33 }
 0xa9a   : > { %3741 = vadd.xlane.f32.xlu0 %v13457_v43 }
 0xa9e   : > { %4204 = vadd.xlane.f32.xlu0 %v13458_v6 }
 0xaa2   : > { %v5093_v12 = vpop.xlane.xlu0 %5092  ;;  %3239 = vadd.xlane.f32.xlu0 %v13459_v35 }
 0xaa3   : > { %v5122_v21 = vsub.f32 %v11574_v39, %v5093_v12 }
 0xaa4   : > { %v5095_v28 = vpop.xlane.xlu1 %5094 }
 0xaa5   : > { %v5123_v58 = vsub.f32 %v11579_v22, %v5095_v28  ;;  %v5140_v44 = vmul.f32 1.442695, %v5122_v21  ;;  %v13462_v22 = vld [vmem:[#allocation112_spill] sm:$0xff] }
 0xaa6   : > { %v5089_v62 = vpop.xlane.xlu0 %5088  ;;  %4208 = vadd.xlane.f32.xlu0 %v13460_v19  ;;  %v13463_v19 = vld [vmem:[#allocation70_spill] sm:$0xff] }
 0xaa7   : > { %v5142_v33 = vmul.f32 1.442695, %v5123_v58  ;;  %v5120_v43 = vsub.f32 %v11584_v34, %v5089_v62 }
 0xaa8   : > { %v5091_v30 = vpop.xlane.xlu1 %5090 }
 0xaa9   : > { %v5136_v38 = vmul.f32 1.442695, %v5120_v43  ;;  %v5121_v6 = vsub.f32 %v11589_v13, %v5091_v30  ;;  %9150 = vpow2.f32 %v5142_v33  ;;  %v13465_v33 = vld [vmem:[#allocation71_spill] sm:$0xff]  ;;  %v5426_v43 = vsel %vm13466_vm7, %v11472_v9, 0  ;;  %vm13471_vm7 = vmmov %vm13469_vm0 }
 0xaaa   : > { %v5705_v51 = vpop.permute.xlu0 %5704  ;;  %3243 = vadd.xlane.f32.xlu0 %v13461_v20 }
 0xaab   : > { %v5138_v35 = vmul.f32 1.442695, %v5121_v6  ;;  %8089 = vmatprep.subr.bf16.mxu0 %v5705_v51  ;;  %9152 = vpow2.f32 %v5136_v38 }
 0xaac   : > { %8090 = vmatpush3.bf16.msra.mxu0 %v5705_v51  ;;  %v5097_v39 = vpop.xlane.xlu1 %5096  ;;  %v13464_v51 = vld [vmem:[#allocation116_spill] sm:$0xff] }
 0xaad   : > { %9154 = vpow2.f32 %v5138_v35  ;;  %v5124_v34 = vsub.f32 %v11594_v36, %v5097_v39 }
 0xaae   : > { %9156 = vpow2.f32 %v5140_v44  ;;  %4212 = vadd.xlane.f32.xlu0 %v13462_v22  ;;  %v5429_v22 = vsel %vm13468_vm12, %v11465_v27, 0  ;;  %vm13472_vm12 = vmmov %vm13469_vm0 }
 0xaaf   : > { %v5144_v30 = vmul.f32 1.442695, %v5124_v34 }
 0xab0   : > { %v11711_v58 = vpop.xlane.xlu1 %5102 }
 0xab1   : > { %9158 = vpow2.f32 %v5144_v30 }
 0xab2   : > { %3247 = vadd.xlane.f32.xlu0 %v13463_v19 }
 0xab3   : > { %v11714_v62 = vpop.eup %9150 }
 0xab4   : > { %v5099_v13 = vpop.xlane.xlu1 %5098 }
 0xab5   : > { %v5125_v20 = vsub.f32 %v11604_v1, %v5099_v13  ;;  %v11717_v12 = vpop.eup %9152  ;;  %v5435_v13 = vsel %vm13472_vm12, %v11482_v61, 0  ;;  %vm13475_vm12 = vmmov %vm13469_vm0 }
 0xab6   : > { %4216 = vadd.xlane.f32.xlu0 %v13464_v51 }
 0xab7   : > { %v11720_v38 = vpop.eup %9154  ;;  %v5146_v44 = vmul.f32 1.442695, %v5125_v20 }
 0xab8   : > { %v11722_v28 = vpop.eup %9156  ;;  %v5200_v36 = vpack.c.bf16 %v11720_v38, %v11717_v12  ;;  %v11729_v1 = vpop.xlane.xlu1 %5108 }
 0xab9   : > { %9160 = vpow2.f32 %v5146_v44  ;;  %v5201_v21 = vpack.c.bf16 %v11714_v62, %v11722_v28 }
 0xaba   : > { %3251 = vadd.xlane.f32.xlu0 %v13465_v33  ;;  %8027 = vmatprep.mubr.bf16.mxu1 %v5200_v36  ;;  %9162 = vrcp.f32 %v11680_v42  ;;  %v5441_v42 = vsel %vm13475_vm12, %v11496_v11, 0  ;;  %vm13480_vm12 = vmmov %vm13469_vm0 }
 0xabb   : > { %8028 = vmatmul.mubr.bf16.vlgmr.msra.gmra.mrb[176].mxu1 %v5201_v21  ;;  %v11737_v35 = vpop.eup %9158 }
 0xabc   : > { %8044 = vmatpush3.bf16.xpose.msra.mxu1 %v5426_v43  ;;  %v11735_v6 = vpop.xlane.xlu1 %5110 }
 0xabd   : > { %8516 = vmatprep.subr.msk.bf16.mxu1 %vm13467_vm10, %v11465_v27  ;;  %vm13470_vm10 = vmmov %vm13469_vm0 }
 0xabe   : > { %v5432_v19 = vsel %vm13470_vm10, %v11484_v2, 0  ;;  %vm13473_vm10 = vmmov %vm13469_vm0 }
 0xabf   : > { %v5438_v51 = vsel %vm13473_vm10, %v11492_v18, 0  ;;  %vm13476_vm10 = vmmov %vm13469_vm0 }
 0xac0   : > { %v11747_v9 = vpop.xlane.xlu1 %3727 }
 0xac3   : > { %v11739_v39 = vpop.eup %9160 }
 0xac4   : > { %8046 = vmatpush3.bf16.xpose.msra.mxu1 %v5429_v22  ;;  %v5202_v34 = vpack.c.bf16 %v11739_v39, %v11737_v35  ;;  %v11751_v30 = vpop.xlane.xlu1 %4696 }
 0xac5   : > { %8517 = vmatprep.subr.msk.bf16.mxu1 %vm13469_vm0, %v11484_v2 }
 0xac6   : > { %8031 = vmatprep.mubr.bf16.mxu1 %v5202_v34 }
 0xac8   : > { %v11755_v27 = vpop.xlane.xlu1 %3731 }
 0xacc   : > { %8048 = vmatpush3.bf16.xpose.msra.mxu1 %v5432_v19  ;;  %v11761_v20 = vpop.xlane.xlu1 %4700 }
 0xacd   : > { %8518 = vmatprep.subr.msk.bf16.mxu1 %vm13471_vm7, %v11482_v61  ;;  %vm13474_vm7 = vmmov %vm13469_vm0 }
 0xad0   : > { %v11769_v61 = vpop.xlane.xlu1 %3735 }
 0xad4   : > { %8050 = vmatpush3.bf16.xpose.msra.mxu1 %v5435_v13  ;;  %v11774_v21 = vpop.xlane.xlu1 %4704 }
 0xad5   : > { %8519 = vmatprep.subr.msk.bf16.mxu1 %vm13469_vm0, %v11492_v18  ;;  %v9163_v18 = vpop.eup %9162 }
 0xad8   : > { %v11782_v19 = vpop.xlane.xlu1 %5112 }
 0xadb   : > { %v4679_v2 = vpop.xlane.xlu0 %4678 }
 0xadc   : > { %9164 = vrcp.f32 %v4679_v2  ;;  %8052 = vmatpush3.bf16.xpose.msra.mxu1 %v5438_v51  ;;  %v5444_v2 = vsel %vm13476_vm10, %v11502_v60, 0  ;;  %vm13496_vm10 = vmmov %vm13469_vm0 }
 0xadd   : > { %8520 = vmatprep.subr.msk.bf16.mxu1 %vm13474_vm7, %v11496_v11  ;;  %9166 = vrcp.f32 %v11683_v4  ;;  %v4864_v4 = vmul.f32 %v9163_v18, %v11546_v26  ;;  %v13478_v26 = vld [vmem:[#allocation13_spill] sm:$0xff]  ;;  %vm13479_vm7 = vmmov %vm13469_vm0 }
 0xadf   : > { %v3714_v44 = vpop.xlane.xlu0 %3713 }
 0xae0   : > { %9168 = vrcp.f32 %v3714_v44 }
 0xae1   : > { %9170 = vrcp.f32 %v11687_v45 }
 0xae3   : > { %v4683_v36 = vpop.xlane.xlu0 %4682 }
 0xae4   : > { %9172 = vrcp.f32 %v4683_v36  ;;  %8054 = vmatpush3.bf16.xpose.msra.mxu1 %v5441_v42 }
 0xae5   : > { %8521 = vmatprep.subr.msk.bf16.mxu1 %vm13469_vm0, %v11502_v60  ;;  %9174 = vrcp.f32 %v11690_v24  ;;  %v13477_v24 = vld [vmem:[#allocation11_spill] sm:$0xff] }
 0xae6   : > { %v9165_v33 = vpop.eup %9164 }
 0xae7   : > { %v3718_v43 = vpop.xlane.xlu0 %3717  ;;  %v4863_v45 = vmul.f32 %v9165_v33, %v11542_v23  ;;  %v9167_v22 = vpop.eup %9166 }
 0xae8   : > { %9176 = vrcp.f32 %v3718_v43  ;;  %v3899_v44 = vmul.f32 %v9167_v22, %v13478_v26  ;;  %v5447_v22 = vsel %vm13480_vm12, %v11510_v48, 0  ;;  %vm13500_vm12 = vmmov %vm13469_vm0 }
 0xae9   : > { %v4879_v34 = vpack.c.bf16 %v4864_v4, %v4863_v45  ;;  %9178 = vrcp.f32 %v11693_v40  ;;  %v5119_v4 = vpop.xlane.xlu1 %5118 }
 0xaea   : > { %v9169_v11 = vpop.eup %9168 }
 0xaeb   : > { %v4687_v13 = vpop.xlane.xlu0 %4686  ;;  %4895 = vrot.lane.b32.xlu0 %v4879_v34, %s9546_s12  ;;  %v3898_v51 = vmul.f32 %v9169_v11, %v13477_v24  ;;  %v9171_v23 = vpop.eup %9170  ;;  %v13481_v34 = vld [vmem:[#allocation10_spill] sm:$0xff] }
 0xaec   : > { %9180 = vrcp.f32 %v4687_v13  ;;  %8056 = vmatpush3.bf16.xpose.msra.mxu1 %v5444_v2  ;;  %v11793_v42 = vmul.f32 %v9171_v23, %v11544_v59  ;;  %v5127_v59 = vsub.f32 %v11599_v53, %v11711_v58  ;;  %v5130_v53 = vsub.f32 %v11609_v54, %v11729_v1 }
 0xaed   : > { %8522 = vmatprep.subr.msk.bf16.mxu1 %vm13479_vm7, %v11510_v48  ;;  %v3914_v36 = vpack.c.bf16 %v3899_v44, %v3898_v51  ;;  %9182 = vrcp.f32 %v11697_v52  ;;  %v5115_v58 = vpop.xlane.xlu1 %5114  ;;  %vm13497_vm7 = vmmov %vm13469_vm0 }
 0xaee   : > { %v9173_v40 = vpop.eup %9172  ;;  %v5156_v54 = vmul.f32 1.442695, %v5130_v53 }
 0xaef   : > { %v3722_v18 = vpop.xlane.xlu0 %3721  ;;  %3930 = vrot.lane.b32.xlu1 %v3914_v36, %s9546_s12  ;;  %v11797_v60 = vmul.f32 %v9173_v40, %v11540_v16  ;;  %v9175_v33 = vpop.eup %9174  ;;  %v13482_v16 = vld [vmem:[#allocation12_spill] sm:$0xff]  ;;  %v5131_v36 = vsub.f32 %v11614_v47, %v11735_v6 }
 0xaf0   : > { %9184 = vrcp.f32 %v3722_v18  ;;  %v11810_v13 = vmul.f32 %v9175_v33, %v13482_v16  ;;  %v5133_v33 = vsub.f32 %v11638_v41, %v5115_v58  ;;  %v5132_v41 = vsub.f32 %v11627_v57, %v11782_v19 }
 0xaf1   : > { %v4880_v43 = vpack.c.bf16 %v11793_v42, %v11797_v60  ;;  %9186 = vrcp.f32 %v11700_v5  ;;  %v5150_v5 = vmul.f32 1.442695, %v5127_v59  ;;  %v13513_v42 = vld [vmem:[#allocation42_spill] sm:$0xff] }
 0xaf2   : > { %v9177_v45 = vpop.eup %9176 }
 0xaf3   : > { %v4691_v52 = vpop.xlane.xlu0 %4690  ;;  %v11807_v11 = vmul.f32 %v9177_v45, %v13481_v34  ;;  %v9179_v2 = vpop.eup %9178  ;;  %v5158_v34 = vmul.f32 1.442695, %v5131_v36 }
 0xaf4   : > { %9188 = vrcp.f32 %v4691_v52  ;;  %8058 = vmatpush3.bf16.xpose.msra.mxu1 %v5447_v22  ;;  %v11815_v48 = vmul.f32 %v9179_v2, %v11554_v31  ;;  %v13483_v22 = vld [vmem:[#allocation15_spill] sm:$0xff]  ;;  %v5162_v2 = vmul.f32 1.442695, %v5133_v33 }
 0xaf5   : > { %v3915_v24 = vpack.c.bf16 %v11810_v13, %v11807_v11  ;;  %9190 = vpow2.f32 %v5150_v5 }
 0xaf6   : > { %v9181_v51 = vpop.eup %9180 }
 0xaf7   : > { %v5101_v26 = vpop.xlane.xlu0 %5100  ;;  %v11820_v44 = vmul.f32 %v9181_v51, %v11550_v32  ;;  %v9183_v23 = vpop.eup %9182  ;;  %v13484_v32 = vld [vmem:[#allocation17_spill] sm:$0xff] }
 0xaf8   : > { %v5126_v40 = vsub.f32 %v11654_v56, %v5101_v26  ;;  %v11832_v52 = vmul.f32 %v9183_v23, %v13484_v32  ;;  %v5160_v23 = vmul.f32 1.442695, %v5132_v41 }
 0xaf9   : > { %v4881_v18 = vpack.c.bf16 %v11815_v48, %v11820_v44  ;;  %v8938_v48 = vld [vmem:[%s12930_s3 + $0x158] ss:$12 sps:$4 sm:$0xff]  }
 0xafa   : > { %v9185_v31 = vpop.eup %9184  ;;  %v5148_v45 = vmul.f32 1.442695, %v5126_v40  ;;  %v11854_v40 = vpop.xlane.xlu1 %3739  ;;  %v8939_v44 = vld [vmem:[%s12930_s3 + $0x98] ss:$12 sps:$4 sm:$0xff]  }
 0xafb   : > { %v5105_v1 = vpop.xlane.xlu0 %5104  ;;  %v11829_v59 = vmul.f32 %v9185_v31, %v13483_v22  ;;  %v9187_v56 = vpop.eup %9186 }
 0xafc   : > { %9192 = vpow2.f32 %v5148_v45  ;;  %v5128_v47 = vsub.f32 %v11660_v29, %v5105_v1  ;;  %v11840_v51 = vmul.f32 %v9187_v56, %v11552_v8  ;;  %v5135_v8 = vsub.f32 %v11632_v7, %v5119_v4  ;;  %v13487_v56 = vld [vmem:[#allocation73_spill] sm:$0xff] }
 0xafd   : > { %v3916_v6 = vpack.c.bf16 %v11832_v52, %v11829_v59  ;;  %9194 = vpow2.f32 %v5156_v54  ;;  %v13485_v54 = vld [vmem:[#allocation114_spill] sm:$0xff]  ;;  %v8941_v59 = vld [vmem:[%s12930_s3 + $0xb0] ss:$12 sps:$4 sm:$0xff]  }
 0xafe   : > { %v9189_v16 = vpop.eup %9188  ;;  %v5152_v5 = vmul.f32 1.442695, %v5128_v47  ;;  %9196 = vpow2.f32 %v5158_v34  ;;  %v4709_v47 = vpop.xlane.xlu1 %4708  ;;  %v13540_v52 = vld [vmem:[#allocation122_spill] sm:$0xff] }
 0xaff   : > { %v5107_v53 = vpop.xlane.xlu0 %5106  ;;  %v11843_v58 = vmul.f32 %v9189_v16, %v11548_v55  ;;  %9198 = vrcp.f32 %v11747_v9  ;;  %v11850_v36 = vpop.eup %9190 }
 0xb00   : > { %v5129_v29 = vsub.f32 %v11666_v3, %v5107_v53  ;;  %9200 = vpow2.f32 %v5162_v2  ;;  %v5166_v3 = vmul.f32 1.442695, %v5135_v8  ;;  %v13488_v53 = vld [vmem:[#allocation14_spill] sm:$0xff] }
 0xb01   : > { %v4882_v26 = vpack.c.bf16 %v11840_v51, %v11843_v58  ;;  %9202 = vpow2.f32 %v5152_v5  ;;  %v13546_v58 = vld [vmem:[#allocation127_spill] sm:$0xff] }
 0xb02   : > { %v5154_v57 = vmul.f32 1.442695, %v5129_v29 }
 0xb03   : > { %v3726_v19 = vpop.xlane.xlu0 %3725 }
 0xb04   : > { %9204 = vpow2.f32 %v5154_v57 }
 0xb05   : > { %9206 = vrcp.f32 %v3726_v19  ;;  %v3744_v19 = vpop.xlane.xlu1 %3743 }
 0xb06   : > { %v11852_v55 = vpop.eup %9192  ;;  %9208 = vpow2.f32 %v5160_v23  ;;  %v13489_v23 = vld [vmem:[#allocation16_spill] sm:$0xff] }
 0xb07   : > { %v5117_v9 = vpop.xlane.xlu0 %5116  ;;  %v5203_v31 = vpack.c.bf16 %v11850_v36, %v11852_v55  ;;  %v11859_v45 = vpop.eup %9194  ;;  %9210 = vrcp.f32 %v11751_v30 }
 0xb08   : > { %v5134_v33 = vsub.f32 %v11674_v50, %v5117_v9  ;;  %v11861_v7 = vpop.eup %9196  ;;  %9212 = vpow2.f32 %v5166_v3  ;;  %v13490_v9 = vld [vmem:[#allocation117_spill] sm:$0xff] }
 0xb09   : > { %8032 = vmatmul.mubr.bf16.gmra.mrb[180].mxu1 %v5203_v31  ;;  %v9199_v1 = vpop.eup %9198  ;;  %v5205_v5 = vpack.c.bf16 %v11861_v7, %v11859_v45 }
 0xb0a   : > { %v5164_v4 = vmul.f32 1.442695, %v5134_v33  ;;  %4222 = vadd.xlane.f32.xlu0 %v13485_v54  ;;  %v11865_v32 = vpop.eup %9200  ;;  %v11883_v57 = vmul.f32 %v9199_v1, %v13489_v23  ;;  %v13494_v23 = vld [vmem:[#allocation101_spill] sm:$0xff] }
 0xb0b   : > { %v4695_v22 = vpop.xlane.xlu0 %4694  ;;  %13486 = vst [vmem:[#allocation25_spill] sm:$0xff] %v11865_v32  ;;  %v11867_v34 = vpop.eup %9202 }
 0xb0c   : > { %9214 = vpow2.f32 %v5164_v4 }
 0xb0d   : > { %9216 = vrcp.f32 %v4695_v22 }
 0xb0e   : > { %v11869_v50 = vpop.eup %9204  ;;  %9218 = vrcp.f32 %v11755_v27  ;;  %3255 = vadd.xlane.f32.xlu0 %v13487_v56 }
 0xb0f   : > { %v9207_v30 = vpop.eup %9206  ;;  %v3730_v16 = vpop.xlane.xlu0 %3729  ;;  %v5204_v41 = vpack.c.bf16 %v11869_v50, %v11867_v34 }
 0xb10   : > { %v11875_v2 = vpop.eup %9208  ;;  %9220 = vrcp.f32 %v3730_v16  ;;  %v11880_v29 = vmul.f32 %v9207_v30, %v13488_v53 }
 0xb11   : > { %8035 = vmatprep.mubr.bf16.mxu1 %v5204_v41  ;;  %v5206_v27 = vpack.c.bf16 %v11865_v32, %v11875_v2  ;;  %9222 = vrcp.f32 %v11761_v20  ;;  %v9211_v31 = vpop.eup %9210  ;;  %v13493_v20 = vld [vmem:[#allocation75_spill] sm:$0xff]  ;;  %v4207_v41 = vpop.xlane.xlu1 %4206  ;;  %v13595_v32 = vld [vmem:[#allocation97_spill] sm:$0xff] }
 0xb12   : > { %8036 = vmatmul.mubr.bf16.gmra.mrb[184].mxu1 %v5205_v5  ;;  %v3917_v8 = vpack.c.bf16 %v11883_v57, %v11880_v29  ;;  %v11891_v33 = vpop.eup %9212  ;;  %v11903_v16 = vmul.f32 %v9211_v31, %v11562_v63 }
 0xb13   : > { %v4699_v3 = vpop.xlane.xlu0 %4698  ;;  %4220 = vadd.xlane.f32.xlu1 %v13490_v9  ;;  %8039 = vmatprep.mubr.bf16.mxu1 %v5206_v27  ;;  %13491 = vst [vmem:[#allocation30_spill] sm:$0xff] %v11891_v33 }
 0xb14   : > { %9224 = vrcp.f32 %v4699_v3 }
 0xb15   : > { %9226 = vrcp.f32 %v11769_v61  ;;  %v3242_v31 = vpop.xlane.xlu1 %3241 }
 0xb16   : > { %v11893_v4 = vpop.eup %9214 }
 0xb17   : > { %13492 = vst [vmem:[#allocation31_spill] sm:$0xff] %v11893_v4  ;;  %v9217_v54 = vpop.eup %9216  ;;  %v3734_v1 = vpop.xlane.xlu0 %3733  ;;  %3257 = vadd.xlane.f32.xlu1 %v13493_v20  ;;  %v5207_v22 = vpack.c.bf16 %v11891_v33, %v11893_v4 }
 0xb18   : > { %v9219_v56 = vpop.eup %9218  ;;  %9228 = vrcp.f32 %v3734_v1  ;;  %v11900_v30 = vmul.f32 %v9217_v54, %v11558_v25  ;;  %v13495_v25 = vld [vmem:[#allocation103_spill] sm:$0xff] }
 0xb19   : > { %9230 = vrcp.f32 %v11774_v21  ;;  %v11914_v3 = vmul.f32 %v9219_v56, %v13495_v25 }
 0xb1a   : > { %v9221_v5 = vpop.eup %9220  ;;  %8040 = vmatmul.mubr.bf16.gmra.mrb[188].mxu1 %v5207_v22 }
 0xb1b   : > { %v4703_v53 = vpop.xlane.xlu0 %4702  ;;  %8059 = vmatprep.mubr.msk.bf16.mxu1 %vm13469_vm0, %v11512_v0  ;;  %v11911_v27 = vmul.f32 %v9221_v5, %v13494_v23  ;;  %v9223_v63 = vpop.eup %9222 }
 0xb1c   : > { %9232 = vrcp.f32 %v4703_v53  ;;  %v11923_v0 = vmul.f32 %v9223_v63, %v11560_v49  ;;  %v13499_v53 = vld [vmem:[#allocation102_spill] sm:$0xff] }
 0xb1d   : > { %9234 = vrcp.f32 %v11854_v40  ;;  %v13498_v40 = vld [vmem:[#allocation100_spill] sm:$0xff] }
 0xb1e   : > { %v9225_v21 = vpop.eup %9224 }
 0xb1f   : > { %v3738_v54 = vpop.xlane.xlu0 %3737  ;;  %v11920_v1 = vmul.f32 %v9225_v21, %v11556_v46  ;;  %v9227_v20 = vpop.eup %9226 }
 0xb20   : > { %9236 = vrcp.f32 %v3738_v54  ;;  %v11935_v49 = vmul.f32 %v9227_v20, %v13499_v53  ;;  %v13505_v53 = vld [vmem:[#allocation24_spill] sm:$0xff] }
 0xb21   : > { %9238 = vrcp.f32 %v4709_v47  ;;  %v4211_v47 = vpop.xlane.xlu1 %4210 }
 0xb22   : > { %v9229_v56 = vpop.eup %9228  ;;  %8060 = vmatmul.mubr.msk.bf16.vlgmr.msra.gmra.mrb[192].mxu1 %vm13496_vm10, %v11506_v17  ;;  %vm13507_vm10 = vmmov %vm13469_vm0  ;;  %v13517_v17 = vld [vmem:[#allocation83_spill] sm:$0xff] }
 0xb23   : > { %v4707_v5 = vpop.xlane.xlu0 %4706  ;;  %8063 = vmatprep.mubr.msk.bf16.mxu1 %vm13497_vm7, %v11520_v14  ;;  %v11932_v46 = vmul.f32 %v9229_v56, %v13498_v40  ;;  %v9231_v23 = vpop.eup %9230  ;;  %v13503_v56 = vld [vmem:[#allocation107_spill] sm:$0xff]  ;;  %vm13509_vm7 = vmmov %vm13469_vm0 }
 0xb24   : > { %9240 = vrcp.f32 %v4707_v5  ;;  %4897 = vrot.lane.b32.xlu0 %v4880_v43, %s9546_s12  ;;  %v11947_v21 = vmul.f32 %v9231_v23, %v11570_v10  ;;  %v13502_v10 = vld [vmem:[#allocation105_spill] sm:$0xff] }
 0xb25   : > { %9242 = vrcp.f32 %v3744_v19  ;;  %v13501_v19 = vld [vmem:[#allocation33_spill] sm:$0xff] }
 0xb26   : > { %v9233_v25 = vpop.eup %9232 }
 0xb27   : > { %v3742_v14 = vpop.xlane.xlu0 %3741  ;;  %v11944_v63 = vmul.f32 %v9233_v25, %v11566_v15  ;;  %v9235_v54 = vpop.eup %9234 }
 0xb28   : > { %9244 = vrcp.f32 %v3742_v14  ;;  %3932 = vrot.lane.b32.xlu1 %v3915_v24, %s9546_s12  ;;  %v3246_v15 = vpop.xlane.xlu1 %3245  ;;  %v11963_v5 = vmul.f32 %v9235_v54, %v13503_v56 }
 0xb29   : > { %9246 = vrcp.f32 %v4207_v41 }
 0xb2a   : > { %v9237_v60 = vpop.eup %9236  ;;  %8064 = vmatmul.mubr.msk.bf16.gmra.mrb[196].mxu1 %vm13500_vm12, %v11514_v37  ;;  %v13504_v37 = vld [vmem:[#allocation21_spill] sm:$0xff]  ;;  %vm13515_vm12 = vmmov %vm13469_vm0 }
 0xb2b   : > { %v4205_v43 = vpop.xlane.xlu0 %4204  ;;  %8067 = vmatprep.mubr.msk.bf16.mxu1 %vm13469_vm0, %v13501_v19  ;;  %v11960_v20 = vmul.f32 %v9237_v60, %v13502_v10  ;;  %v9239_v11 = vpop.eup %9238  ;;  %v13510_v10 = vld [vmem:[#allocation104_spill] sm:$0xff] }
 0xb2c   : > { %9248 = vrcp.f32 %v4205_v43  ;;  %v11971_v23 = vmul.f32 %v9239_v11, %v13505_v53  ;;  %v4215_v14 = vpop.xlane.xlu1 %4214  ;;  %v13506_v43 = vld [vmem:[#allocation27_spill] sm:$0xff]  ;;  %v13511_v11 = vld [vmem:[#allocation106_spill] sm:$0xff] }
 0xb2d   : > { %9250 = vrcp.f32 %v3242_v31  ;;  %v13508_v31 = vld [vmem:[#allocation37_spill] sm:$0xff] }
 0xb2e   : > { %v9241_v24 = vpop.eup %9240 }
 0xb2f   : > { %v3240_v41 = vpop.xlane.xlu0 %3239  ;;  %v11968_v40 = vmul.f32 %v9241_v24, %v13504_v37  ;;  %v9243_v25 = vpop.eup %9242 }
 0xb30   : > { %9252 = vrcp.f32 %v3240_v41  ;;  %v11983_v24 = vmul.f32 %v9243_v25, %v13511_v11  ;;  %v13514_v25 = vld [vmem:[#allocation19_spill] sm:$0xff] }
 0xb31   : > { %9254 = vrcp.f32 %v4211_v47  ;;  %v13512_v47 = vld [vmem:[#allocation44_spill] sm:$0xff] }
 0xb32   : > { %v9245_v60 = vpop.eup %9244  ;;  %8068 = vmatmul.mubr.msk.bf16.gmra.mrb[200].mxu1 %vm13507_vm10, %v13506_v43  ;;  %v3250_v43 = vpop.xlane.xlu1 %3249  ;;  %vm13520_vm10 = vmmov %vm13469_vm0 }
 0xb33   : > { %v4209_v19 = vpop.xlane.xlu0 %4208  ;;  %8071 = vmatprep.mubr.msk.bf16.mxu1 %vm13509_vm7, %v13508_v31  ;;  %v11980_v56 = vmul.f32 %v9245_v60, %v13510_v10  ;;  %v9247_v41 = vpop.eup %9246  ;;  %vm13524_vm7 = vmmov %vm13469_vm0 }
 0xb34   : > { %9256 = vrcp.f32 %v4209_v19  ;;  %v4358_v54 = vmul.f32 %v9247_v41, %v13512_v47  ;;  %v13516_v19 = vld [vmem:[#allocation85_spill] sm:$0xff] }
 0xb35   : > { %9258 = vrcp.f32 %v3246_v15 }
 0xb36   : > { %v9249_v53 = vpop.eup %9248  ;;  %v4219_v41 = vpop.xlane.xlu1 %4218 }
 0xb37   : > { %v4357_v13 = vmul.f32 %v9249_v53, %v13513_v42  ;;  %v3244_v22 = vpop.xlane.xlu0 %3243  ;;  %v9251_v31 = vpop.eup %9250 }
 0xb38   : > { %9260 = vrcp.f32 %v3244_v22  ;;  %v3393_v11 = vmul.f32 %v9251_v31, %v13516_v19  ;;  %v13518_v22 = vld [vmem:[#allocation45_spill] sm:$0xff] }
 0xb39   : > { %v4373_v60 = vpack.c.bf16 %v4358_v54, %v4357_v13  ;;  %9262 = vrcp.f32 %v4215_v14  ;;  %v13519_v54 = vld [vmem:[#allocation43_spill] sm:$0xff] }
 0xb3a   : > { %v9253_v10 = vpop.eup %9252  ;;  %8072 = vmatmul.mubr.msk.bf16.gmra.mrb[204].mxu1 %vm13515_vm12, %v13514_v25  ;;  %v3254_v19 = vpop.xlane.xlu1 %3253  ;;  %vm13528_vm12 = vmmov %vm13469_vm0 }
 0xb3b   : > { %v3392_v37 = vmul.f32 %v9253_v10, %v13517_v17  ;;  %v4213_v61 = vpop.xlane.xlu0 %4212  ;;  %4381 = vst.msk [vmem:[#allocation2 + $0x8] sm:$0xff] %vm13469_vm0, %v4373_v60  ;;  %v9255_v15 = vpop.eup %9254  ;;  %v13521_v60 = vld [vmem:[#allocation84_spill] sm:$0xff] }
 0xb3c   : > { %9264 = vrcp.f32 %v4213_v61  ;;  %v4360_v13 = vmul.f32 %v9255_v15, %v13518_v22  ;;  %v8926_v61 = vld [vmem:[%s12930_s3 + $0xc8] ss:$12 sps:$4 sm:$0xff]  }
 0xb3d   : > { %v3408_v42 = vpack.c.bf16 %v3393_v11, %v3392_v37  ;;  %9266 = vrcp.f32 %v3250_v43  ;;  %v8927_v37 = vld [vmem:[%s12930_s3 + $0x8] ss:$12 sps:$4 sm:$0xff]   ;;  %v8928_v43 = vld [vmem:[%s12930_s3 + $0xe0] ss:$12 sps:$4 sm:$0xff]   ;;  %8139 = vmatprep.subr.bf16.mxu1 %v8926_v61 }
 0xb3e   : > { %v9257_v53 = vpop.eup %9256  ;;  %v13522_v11 = vld [vmem:[#allocation82_spill] sm:$0xff]  ;;  %8147 = vmatpush3.bf16.msra.mxu1 %v8927_v37 }
 0xb3f   : > { %v4359_v14 = vmul.f32 %v9257_v53, %v13519_v54  ;;  %v3248_v47 = vpop.xlane.xlu0 %3247  ;;  %3416 = vst.msk [vmem:[#allocation2] sm:$0xff] %vm13520_vm10, %v3408_v42  ;;  %v9259_v25 = vpop.eup %9258  ;;  %v13523_v53 = vld [vmem:[#allocation119_spill] sm:$0xff]  ;;  %8140 = vmatprep.subr.bf16.mxu1 %v8928_v43  ;;  %vm13534_vm10 = vmmov %vm13469_vm0 }
 0xb40   : > { %9268 = vrcp.f32 %v3248_v47  ;;  %v3395_v10 = vmul.f32 %v9259_v25, %v13521_v60  ;;  %v13526_v25 = vld [vmem:[#allocation46_spill] sm:$0xff] }
 0xb41   : > { %v4374_v31 = vpack.c.bf16 %v4360_v13, %v4359_v14  ;;  %9270 = vrcp.f32 %v4219_v41  ;;  %v8929_v13 = vld [vmem:[%s12930_s3 + $0x20] ss:$12 sps:$4 sm:$0xff]   ;;  %v13525_v14 = vld [vmem:[#allocation48_spill] sm:$0xff] }
 0xb42   : > { %v9261_v17 = vpop.eup %9260  ;;  %8148 = vmatpush3.bf16.msra.mxu1 %v8929_v13 }
 0xb43   : > { %v3394_v15 = vmul.f32 %v9261_v17, %v13522_v11  ;;  %v4217_v42 = vpop.xlane.xlu0 %4216  ;;  %4226 = vadd.xlane.f32.xlu0 %v13523_v53  ;;  %4382 = vst.msk [vmem:[#allocation2 + $0x20] sm:$0xff] %vm13524_vm7, %v4374_v31  ;;  %v9263_v41 = vpop.eup %9262  ;;  %v13527_v11 = vld [vmem:[#allocation76_spill] sm:$0xff]  ;;  %vm13538_vm7 = vmmov %vm13469_vm0 }
 0xb44   : > { %9272 = vrcp.f32 %v4217_v42  ;;  %v4362_v47 = vmul.f32 %v9263_v41, %v13525_v14  ;;  %v13530_v42 = vld [vmem:[#allocation87_spill] sm:$0xff]  ;;  %v13532_v14 = vld [vmem:[#allocation49_spill] sm:$0xff] }
 0xb45   : > { %v3409_v22 = vpack.c.bf16 %v3395_v10, %v3394_v15  ;;  %9274 = vrcp.f32 %v3254_v19  ;;  %v13529_v10 = vld [vmem:[#allocation89_spill] sm:$0xff]  ;;  %v13531_v19 = vld [vmem:[#allocation118_spill] sm:$0xff] }
 0xb46   : > { %v9265_v54 = vpop.eup %9264 }
 0xb47   : > { %v4361_v17 = vmul.f32 %v9265_v54, %v13526_v25  ;;  %v3252_v60 = vpop.xlane.xlu0 %3251  ;;  %3259 = vadd.xlane.f32.xlu0 %v13527_v11  ;;  %3417 = vst.msk [vmem:[#allocation2 + $0x18] sm:$0xff] %vm13528_vm12, %v3409_v22  ;;  %v9267_v31 = vpop.eup %9266  ;;  %v13533_v11 = vld [vmem:[#allocation47_spill] sm:$0xff]  ;;  %vm13539_vm12 = vmmov %vm13469_vm0 }
 0xb48   : > { %9276 = vrcp.f32 %v3252_v60  ;;  %v3397_v15 = vmul.f32 %v9267_v31, %v13529_v10 }
 0xb49   : > { %v4375_v61 = vpack.c.bf16 %v4362_v47, %v4361_v17  ;;  %v13535_v47 = vld [vmem:[#allocation77_spill] sm:$0xff] }
 0xb4a   : > { %v9269_v37 = vpop.eup %9268  ;;  %v8930_v17 = vld [vmem:[%s12930_s3 + $0xf8] ss:$12 sps:$4 sm:$0xff]  }
 0xb4b   : > { %v3396_v53 = vmul.f32 %v9269_v37, %v13530_v42  ;;  %4383 = vst.msk [vmem:[#allocation2 + $0x38] sm:$0xff] %vm13469_vm0, %v4375_v61  ;;  %v9271_v43 = vpop.eup %9270  ;;  %v8931_v61 = vld [vmem:[%s12930_s3 + $0x38] ss:$12 sps:$4 sm:$0xff]   ;;  %8141 = vmatprep.subr.bf16.mxu1 %v8930_v17  ;;  %vm3954_vm0 = vcmask 1048064  }
 0xb4c   : > { %4224 = vadd.xlane.f32.xlu1 %v13531_v19  ;;  %v4364_v25 = vmul.f32 %v9271_v43, %v13532_v14  ;;  %v13536_v37 = vld [vmem:[#allocation88_spill] sm:$0xff]  ;;  %8149 = vmatpush3.bf16.msra.mxu1 %v8931_v61 }
 0xb4d   : > { %v3410_v41 = vpack.c.bf16 %v3397_v15, %v3396_v53  ;;  %v13537_v15 = vld [vmem:[#allocation86_spill] sm:$0xff]  ;;  %v8932_v53 = vld [vmem:[%s12930_s3 + $0x110] ss:$12 sps:$4 sm:$0xff]  }
 0xb4e   : > { %v9273_v54 = vpop.eup %9272  ;;  %v8933_v19 = vld [vmem:[%s12930_s3 + $0x50] ss:$12 sps:$4 sm:$0xff]   ;;  %8142 = vmatprep.subr.bf16.mxu1 %v8932_v53 }
 0xb4f   : > { %v4363_v22 = vmul.f32 %v9273_v54, %v13533_v11  ;;  %3418 = vst.msk [vmem:[#allocation2 + $0x30] sm:$0xff] %vm13534_vm10, %v3410_v41  ;;  %v9275_v13 = vpop.eup %9274  ;;  %v8934_v41 = vld [vmem:[%s12930_s3 + $0x128] ss:$12 sps:$4 sm:$0xff]   ;;  %v8937_v11 = vld [vmem:[%s12930_s3 + $0x80] ss:$12 sps:$4 sm:$0xff]   ;;  %vm13550_vm10 = vmmov %vm13538_vm7 }
 0xb50   : > { %3261 = vadd.xlane.f32.xlu1 %v13535_v47  ;;  %v3399_v10 = vmul.f32 %v9275_v13, %v13536_v37  ;;  %8150 = vmatpush3.bf16.msra.mxu1 %v8933_v19  ;;  %v8935_v54 = vld [vmem:[%s12930_s3 + $0x68] ss:$12 sps:$4 sm:$0xff]   ;;  %v13542_v13 = vld [vmem:[#allocation120_spill] sm:$0xff] }
 0xb51   : > { %v4376_v60 = vpack.c.bf16 %v4364_v25, %v4363_v22  ;;  %8143 = vmatprep.subr.bf16.mxu1 %v8934_v41  ;;  %v8936_v25 = vld [vmem:[%s12930_s3 + $0x140] ss:$12 sps:$4 sm:$0xff]   ;;  %v13543_v47 = vld [vmem:[#allocation80_spill] sm:$0xff] }
 0xb52   : > { %v9277_v31 = vpop.eup %9276  ;;  %v13547_v41 = vld [vmem:[#allocation125_spill] sm:$0xff] }
 0xb53   : > { %v3398_v42 = vmul.f32 %v9277_v31, %v13537_v15  ;;  %4384 = vst.msk [vmem:[#allocation2 + $0x50] sm:$0xff] %vm13538_vm7, %v4376_v60 }
 0xb54   : > { %8151 = vmatpush3.bf16.msra.mxu1 %v8935_v54 }
 0xb55   : > { %v3411_v43 = vpack.c.bf16 %v3399_v10, %v3398_v42  ;;  %8144 = vmatprep.subr.bf16.mxu1 %v8936_v25 }
 0xb57   : > { %3419 = vst.msk [vmem:[#allocation2 + $0x48] sm:$0xff] %vm13539_vm12, %v3411_v43  ;;  %vm13568_vm12 = vmmov %vm13538_vm7 }
 0xb58   : > { %8152 = vmatpush3.bf16.msra.mxu1 %v8937_v11  ;;  %v13549_v11 = vld [vmem:[#allocation93_spill] sm:$0xff] }
 0xb59   : > { %8145 = vmatprep.subr.bf16.mxu1 %v8938_v48 }
 0xb5c   : > { %8153 = vmatpush3.bf16.msra.mxu1 %v8939_v44  ;;  %v13551_v44 = vld [vmem:[#allocation121_spill] sm:$0xff] }
 0xb5d   : > { %v4896_v14 = vpop.permute.xlu0 %4895  ;;  %4899 = vrot.lane.b32.xlu0 %v4881_v18, %s9546_s12  ;;  %v8940_v18 = vld [vmem:[%s12930_s3 + $0x170] ss:$12 sps:$4 sm:$0xff]  }
 0xb5e   : > { %4919 = vst.msk [vmem:[#allocation2 + $0x8] sm:$0xff] %vm3954_vm0, %v4896_v14  ;;  %8146 = vmatprep.subr.bf16.mxu1 %v8940_v18  ;;  %v13548_v14 = vld [vmem:[#allocation91_spill] sm:$0xff]  ;;  %v13552_v18 = vld [vmem:[#allocation81_spill] sm:$0xff] }
 0xb60   : > { %8154 = vmatpush3.bf16.msra.mxu1 %v8941_v59  ;;  %v13553_v59 = vld [vmem:[#allocation123_spill] sm:$0xff] }
 0xb61   : > { %3934 = vrot.lane.b32.xlu1 %v3916_v6, %s9546_s12  ;;  %v3931_v22 = vpop.permute.xlu1 %3930  ;;  %v13541_v6 = vld [vmem:[#allocation78_spill] sm:$0xff] }
 0xb62   : > { %3955 = vst.msk [vmem:[#allocation2] sm:$0xff] %vm3954_vm0, %v3931_v22 }
 0xb7c   : > { %4230 = vadd.xlane.f32.xlu0 %v13540_v52  ;;  %v13554_v52 = vld [vmem:[#allocation79_spill] sm:$0xff] }
 0xb80   : > { %3263 = vadd.xlane.f32.xlu0 %v13541_v6 }
 0xb85   : > { %4228 = vadd.xlane.f32.xlu1 %v13542_v13 }
 0xb89   : > { %3265 = vadd.xlane.f32.xlu1 %v13543_v47 }
 0xb8e   : > { %v12079_v17 = vpop.f32.mrb[176].mxu1 }
 0xb8f   : > { %13544 = vst [vmem:[#allocation35_spill] sm:$0xff] %v12079_v17  ;;  %v12081_v60 = vpop.f32.mrb[177].mxu1  ;;  %v13594_v17 = vld [vmem:[#allocation95_spill] sm:$0xff] }
 0xb90   : > { %v12083_v31 = vpop.f32.mrb[178].mxu1 }
 0xb91   : > { %13545 = vst [vmem:[#allocation39_spill] sm:$0xff] %v12083_v31  ;;  %v12085_v61 = vpop.f32.mrb[179].mxu1 }
 0xb96   : > { %4901 = vrot.lane.b32.xlu0 %v4882_v26, %s9546_s12 }
 0xb97   : > { %v4223_v37 = vpop.xlane.xlu0 %4222 }
 0xb98   : > { %9278 = vrcp.f32 %v4223_v37 }
 0xb9a   : > { %3936 = vrot.lane.b32.xlu1 %v3917_v8, %s9546_s12 }
 0xb9b   : > { %v3256_v10 = vpop.xlane.xlu0 %3255 }
 0xb9f   : > { %v4898_v15 = vpop.permute.xlu0 %4897 }
 0xba0   : > { %4920 = vst.msk [vmem:[#allocation2 + $0x20] sm:$0xff] %vm3954_vm0, %v4898_v15  ;;  %v4221_v42 = vpop.xlane.xlu1 %4220 }
 0xba1   : > { %9280 = vrcp.f32 %v4221_v42 }
 0xba2   : > { %9282 = vrcp.f32 %v3256_v10  ;;  %v9279_v19 = vpop.eup %9278 }
 0xba3   : > { %v4366_v26 = vmul.f32 %v9279_v19, %v13546_v58 }
 0xba4   : > { %v3258_v53 = vpop.xlane.xlu1 %3257 }
 0xba5   : > { %9284 = vrcp.f32 %v3258_v53 }
 0xba8   : > { %v3933_v43 = vpop.permute.xlu1 %3932 }
 0xba9   : > { %3956 = vst.msk [vmem:[#allocation2 + $0x18] sm:$0xff] %vm3954_vm0, %v3933_v43 }
 0xbab   : > { %v9281_v51 = vpop.eup %9280 }
 0xbac   : > { %v4365_v29 = vmul.f32 %v9281_v51, %v13547_v41  ;;  %v9283_v57 = vpop.eup %9282  ;;  %v13559_v41 = vld [vmem:[#allocation126_spill] sm:$0xff] }
 0xbad   : > { %v3400_v25 = vmul.f32 %v9283_v57, %v13548_v14  ;;  %v13560_v57 = vld [vmem:[#allocation124_spill] sm:$0xff] }
 0xbae   : > { %v4377_v8 = vpack.c.bf16 %v4366_v26, %v4365_v29 }
 0xbaf   : > { %v9285_v54 = vpop.eup %9284 }
 0xbb0   : > { %v3401_v22 = vmul.f32 %v9285_v54, %v13549_v11  ;;  %4385 = vst.msk [vmem:[#allocation2 + $0x68] sm:$0xff] %vm13550_vm10, %v4377_v8  ;;  %vm13570_vm10 = vmmov %vm13538_vm7 }
 0xbb2   : > { %v3412_v48 = vpack.c.bf16 %v3401_v22, %v3400_v25 }
 0xbb4   : > { %3420 = vst.msk [vmem:[#allocation2 + $0x60] sm:$0xff] %vm13538_vm7, %v3412_v48 }
 0xbb5   : > { %4234 = vadd.xlane.f32.xlu0 %v13551_v44 }
 0xbb9   : > { %3267 = vadd.xlane.f32.xlu0 %v13552_v18  ;;  %v13565_v18 = vld [vmem:[#allocation90_spill] sm:$0xff] }
 0xbbe   : > { %4232 = vadd.xlane.f32.xlu1 %v13553_v59 }
 0xbc2   : > { %3269 = vadd.xlane.f32.xlu1 %v13554_v52  ;;  %v13566_v52 = vld [vmem:[#allocation92_spill] sm:$0xff] }
 0xbd0   : > { %v4227_v6 = vpop.xlane.xlu0 %4226 }
 0xbd1   : > { %9286 = vrcp.f32 %v4227_v6 }
 0xbd4   : > { %v3260_v13 = vpop.xlane.xlu0 %3259 }
 0xbd8   : > { %v4900_v47 = vpop.permute.xlu0 %4899 }
 0xbd9   : > { %4921 = vst.msk [vmem:[#allocation2 + $0x38] sm:$0xff] %vm3954_vm0, %v4900_v47  ;;  %v4225_v37 = vpop.xlane.xlu1 %4224 }
 0xbda   : > { %9288 = vrcp.f32 %v4225_v37 }
 0xbdb   : > { %9290 = vrcp.f32 %v3260_v13  ;;  %v9287_v58 = vpop.eup %9286 }
 0xbdc   : > { %v12108_v10 = vpop.f32.mrb[180].mxu1  ;;  %v4368_v29 = vmul.f32 %v9287_v58, %v13559_v41 }
 0xbdd   : > { %13555 = vst [vmem:[#allocation41_spill] sm:$0xff] %v12108_v10  ;;  %v12110_v15 = vpop.f32.mrb[181].mxu1  ;;  %v3262_v42 = vpop.xlane.xlu1 %3261 }
 0xbde   : > { %13556 = vst [vmem:[#allocation18_spill] sm:$0xff] %v12110_v15  ;;  %9292 = vrcp.f32 %v3262_v42  ;;  %v12112_v53 = vpop.f32.mrb[182].mxu1 }
 0xbdf   : > { %13557 = vst [vmem:[#allocation20_spill] sm:$0xff] %v12112_v53  ;;  %v12114_v43 = vpop.f32.mrb[183].mxu1 }
 0xbe0   : > { %13558 = vst [vmem:[#allocation22_spill] sm:$0xff] %v12114_v43  ;;  %v12116_v19 = vld [vmem:[#allocation2 + $0x38] sm:$0xff] }
 0xbe1   : > { %6686 = vmatprep.mubr.bf16.mxu1 %v12116_v19  ;;  %v3935_v51 = vpop.permute.xlu1 %3934 }
 0xbe2   : > { %3957 = vst.msk [vmem:[#allocation2 + $0x30] sm:$0xff] %vm3954_vm0, %v3935_v51 }
 0xbe4   : > { %v9289_v26 = vpop.eup %9288 }
 0xbe5   : > { %v4367_v8 = vmul.f32 %v9289_v26, %v13560_v57  ;;  %v12122_v54 = vpop.f32.mrb[184].mxu1  ;;  %v9291_v14 = vpop.eup %9290 }
 0xbe6   : > { %13561 = vst [vmem:[#allocation28_spill] sm:$0xff] %v12122_v54  ;;  %v12124_v25 = vpop.f32.mrb[185].mxu1  ;;  %v3402_v59 = vmul.f32 %v9291_v14, %v13565_v18  ;;  %v13588_v54 = vld [vmem:[#allocation63_spill] sm:$0xff] }
 0xbe7   : > { %13562 = vst [vmem:[#allocation26_spill] sm:$0xff] %v12124_v25  ;;  %v12126_v11 = vpop.f32.mrb[186].mxu1  ;;  %v4378_v22 = vpack.c.bf16 %v4368_v29, %v4367_v8  ;;  %v13586_v25 = vld [vmem:[#allocation61_spill] sm:$0xff] }
 0xbe8   : > { %13563 = vst [vmem:[#allocation38_spill] sm:$0xff] %v12126_v11  ;;  %v9293_v48 = vpop.eup %9292  ;;  %v12128_v44 = vpop.f32.mrb[187].mxu1 }
 0xbe9   : > { %13564 = vst [vmem:[#allocation23_spill] sm:$0xff] %v12128_v44  ;;  %v3403_v6 = vmul.f32 %v9293_v48, %v13566_v52  ;;  %v12132_v13 = vld [vmem:[#allocation2 + $0x30] sm:$0xff]  ;;  %4386 = vst.msk [vmem:[#allocation2 + $0x80] sm:$0xff] %vm13568_vm12, %v4378_v22 }
 0xbea   : > { %13567 = vst [vmem:[#allocation98_spill] sm:$0xff] %v12132_v13  ;;  %6687 = vmatmul.mubr.bf16.vlgmr.msra.gmra.mrb[208].mxu1 %v12132_v13 }
 0xbeb   : > { %v3413_v47 = vpack.c.bf16 %v3403_v6, %v3402_v59 }
 0xbed   : > { %v12136_v37 = vpop.f32.mrb[188].mxu1  ;;  %3421 = vst.msk [vmem:[#allocation2 + $0x78] sm:$0xff] %vm13570_vm10, %v3413_v47 }
 0xbee   : > { %13569 = vst [vmem:[#allocation29_spill] sm:$0xff] %v12136_v37  ;;  %v12139_v42 = vpop.f32.mrb[189].mxu1 }
 0xbef   : > { %13571 = vst [vmem:[#allocation110_spill] sm:$0xff] %v12139_v42  ;;  %v12141_v51 = vpop.f32.mrb[190].mxu1 }
 0xbf0   : > { %13572 = vst [vmem:[#allocation68_spill] sm:$0xff] %v12141_v51  ;;  %v12143_v58 = vpop.f32.mrb[191].mxu1 }
 0xbf1   : > { %13573 = vst [vmem:[#allocation108_spill] sm:$0xff] %v12143_v58 }
 0xbf5   : > { %v8061_v26 = vpop.f32.mrb[192].mxu1 }
 0xbf6   : > { %v12147_v29 = vsel %vm10445_vm1, %v8061_v26, -inf  ;;  %v5483_v57 = vpop.f32.mrb[193].mxu1  ;;  %vm13587_vm1 = vnez %v13586_v25 }
 0xbf7   : > { %v12151_v14 = vsel %vm10452_vm2, %v5483_v57, -inf  ;;  %5566 = vmax.xlane.f32.xlu1 %v12147_v29  ;;  %v8062_v22 = vpop.f32.mrb[194].mxu1  ;;  %vm13589_vm2 = vnez %v13588_v54 }
 0xbf8   : > { %5562 = vmax.xlane.f32.xlu0 %v12151_v14  ;;  %v5486_v48 = vpop.f32.mrb[195].mxu1  ;;  %v12157_v59 = vsel %vm10467_vm3, %v8062_v22, -inf  ;;  %vm13596_vm3 = vmmov %vm13538_vm7 }
 0xbf9   : > { %v12162_v47 = vsel %vm10473_vm4, %v5486_v48, -inf  ;;  %vm13597_vm4 = vmmov %vm13596_vm3 }
 0xbfa   : > { %vm13631_vm7 = vmmov %vm13596_vm3 }
 0xbfb   : > { %5568 = vmax.xlane.f32.xlu1 %v12157_v59  ;;  %vm13634_vm12 = vmmov %vm13596_vm3 }
 0xbfc   : > { %vm13637_vm10 = vmmov %vm13596_vm3 }
 0xbfd   : > { %v8065_v52 = vpop.f32.mrb[196].mxu1 }
 0xbfe   : > { %v5499_v26 = vpop.f32.mrb[197].mxu1  ;;  %v12172_v9 = vsel %vm13440_vm13, %v8065_v52, -inf  ;;  %vm13621_vm13 = vmmov %vm13596_vm3 }
 0xbff   : > { %v12166_v57 = vsel %vm10494_vm5, %v5499_v26, -inf  ;;  %5564 = vmax.xlane.f32.xlu1 %v12162_v47  ;;  %v8066_v8 = vpop.f32.mrb[198].mxu1 }
 0xc00   : > { %5570 = vmax.xlane.f32.xlu0 %v12166_v57  ;;  %v5502_v18 = vpop.f32.mrb[199].mxu1  ;;  %v12177_v51 = vsel %vm13377_vm15, %v8066_v8, -inf  ;;  %vm13609_vm15 = vmmov %vm13596_vm3 }
 0xc01   : > { %v12187_v58 = vsel %vm13307_vm9, %v5502_v18, -inf }
 0xc03   : > { %5574 = vmax.xlane.f32.xlu1 %v12172_v9 }
 0xc05   : > { %v8069_v6 = vpop.f32.mrb[200].mxu1 }
 0xc06   : > { %v12181_v26 = vsel %vm13380_vm6, %v8069_v6, -inf  ;;  %v5515_v37 = vpop.f32.mrb[201].mxu1  ;;  %vm13615_vm6 = vmmov %vm13596_vm3 }
 0xc07   : > { %5576 = vmax.xlane.f32.xlu1 %v12177_v51  ;;  %5582 = vmax.xlane.f32.xlu0 %v12181_v26  ;;  %v8070_v33 = vpop.f32.mrb[202].mxu1  ;;  %v12191_v8 = vsel %vm13443_vm8, %v5515_v37, -inf  ;;  %vm13625_vm8 = vmmov %vm13596_vm3 }
 0xc08   : > { %v5518_v22 = vpop.f32.mrb[203].mxu1  ;;  %v12197_v11 = vsel %vm13310_vm11, %v8070_v33, -inf  ;;  %vm13607_vm11 = vmmov %vm13596_vm3 }
 0xc09   : > { %v4231_v52 = vpop.xlane.xlu0 %4230  ;;  %v12201_v44 = vsel %vm13446_vm14, %v5518_v22, -inf  ;;  %vm13630_vm14 = vmmov %vm13596_vm3 }
 0xc0a   : > { %9294 = vrcp.f32 %v4231_v52 }
 0xc0b   : > { %5572 = vmax.xlane.f32.xlu1 %v12187_v58  ;;  %5578 = vmax.xlane.f32.xlu0 %v12191_v8 }
 0xc0d   : > { %v3264_v6 = vpop.xlane.xlu0 %3263  ;;  %v8073_v48 = vpop.f32.mrb[204].mxu1 }
 0xc0e   : > { %v5531_v4 = vpop.f32.mrb[205].mxu1  ;;  %v12207_v53 = vsel %vm13587_vm1, %v8073_v48, -inf  ;;  %vm13642_vm1 = vmmov %vm13596_vm3 }
 0xc0f   : > { %5584 = vmax.xlane.f32.xlu0 %v12197_v11  ;;  %5580 = vmax.xlane.f32.xlu1 %v12201_v44  ;;  %v8074_v37 = vpop.f32.mrb[206].mxu1  ;;  %v12213_v22 = vsel %vm13589_vm2, %v5531_v4, -inf  ;;  %v13593_v4 = vpack.c.bf16 %v11914_v3, %v11911_v27  ;;  %v13598_v27 = vpack.c.bf16 %v11903_v16, %v11900_v30  ;;  %v8944_v3 = vld [vmem:[%s12930_s3 + $0x4] ss:$12 sps:$4 sm:$0xff]  }
 0xc10   : > { %v5534_v42 = vpop.f32.mrb[207].mxu1  ;;  %6412 = vmatprep.subr.bf16.mxu0 %v8944_v3 }
 0xc11   : > { %v4902_v18 = vpop.permute.xlu0 %4901 }
 0xc12   : > { %4922 = vst.msk [vmem:[#allocation2 + $0x50] sm:$0xff] %vm3954_vm0, %v4902_v18  ;;  %v4229_v33 = vpop.xlane.xlu1 %4228 }
 0xc13   : > { %9296 = vrcp.f32 %v4229_v33  ;;  %5590 = vmax.xlane.f32.xlu0 %v12207_v53  ;;  %v13591_v33 = vld [vmem:[#allocation131_spill] sm:$0xff] }
 0xc14   : > { %9298 = vrcp.f32 %v3264_v6  ;;  %v9295_v48 = vpop.eup %9294  ;;  %v13592_v6 = vld [vmem:[#allocation129_spill] sm:$0xff] }
 0xc15   : > { %v4370_v10 = vmul.f32 %v9295_v48, %v13591_v33 }
 0xc16   : > { %v3266_v41 = vpop.xlane.xlu1 %3265 }
 0xc17   : > { %9300 = vrcp.f32 %v3266_v41  ;;  %5586 = vmax.xlane.f32.xlu0 %v12213_v22 }
 0xc19   : > { %v12216_v52 = vld [vmem:[#allocation2 + $0x50] sm:$0xff] }
 0xc1a   : > { %13590 = vst [vmem:[#allocation67_spill] sm:$0xff] %v12216_v52  ;;  %6694 = vmatprep.mubr.bf16.mxu1 %v12216_v52  ;;  %v3937_v25 = vpop.permute.xlu1 %3936 }
 0xc1b   : > { %3958 = vst.msk [vmem:[#allocation2 + $0x48] sm:$0xff] %vm3954_vm0, %v3937_v25 }
 0xc1d   : > { %v9297_v18 = vpop.eup %9296 }
 0xc1e   : > { %v4369_v15 = vmul.f32 %v9297_v18, %v13592_v6  ;;  %v9299_v54 = vpop.eup %9298  ;;  %v13604_v18 = vld [vmem:[#allocation128_spill] sm:$0xff] }
 0xc1f   : > { %v3404_v31 = vmul.f32 %v9299_v54, %v13594_v17  ;;  %v13599_v17 = vld [vmem:[#allocation64_spill] sm:$0xff] }
 0xc20   : > { %3938 = vrot.lane.b32.xlu1 %v13593_v4, %s9546_s12  ;;  %v4379_v41 = vpack.c.bf16 %v4370_v10, %v4369_v15  ;;  %vm13600_vm5 = vnez %v13599_v17  ;;  %v13605_v4 = vld [vmem:[#allocation94_spill] sm:$0xff] }
 0xc21   : > { %v9301_v43 = vpop.eup %9300  ;;  %v12243_v10 = vsel %vm13600_vm5, %v8074_v37, -inf }
 0xc22   : > { %v3405_v52 = vmul.f32 %v9301_v43, %v13595_v32  ;;  %v12228_v13 = vld [vmem:[#allocation2 + $0x48] sm:$0xff]  ;;  %4387 = vst.msk [vmem:[#allocation2 + $0x98] sm:$0xff] %vm13596_vm3, %v4379_v41 }
 0xc23   : > { %6695 = vmatmul.mubr.bf16.gmra.mrb[212].mxu1 %v12228_v13 }
 0xc24   : > { %v3414_v25 = vpack.c.bf16 %v3405_v52, %v3404_v31  ;;  %v13601_v31 = vld [vmem:[#allocation65_spill] sm:$0xff]  ;;  %v13603_v52 = vld [vmem:[#allocation130_spill] sm:$0xff] }
 0xc25   : > { %vm13602_vm9 = vnez %v13601_v31 }
 0xc26   : > { %3422 = vst.msk [vmem:[#allocation2 + $0x90] sm:$0xff] %vm13597_vm4, %v3414_v25  ;;  %v12248_v15 = vsel %vm13602_vm9, %v5534_v42, -inf  ;;  %v13606_v25 = vld [vmem:[#allocation96_spill] sm:$0xff] }
 0xc2d   : > { %4903 = vrot.lane.b32.xlu0 %v13598_v27, %s9546_s12 }
 0xc42   : > { %v4235_v32 = vpop.xlane.xlu0 %4234 }
 0xc43   : > { %9302 = vrcp.f32 %v4235_v32  ;;  %v13610_v32 = vpack.c.bf16 %v11923_v0, %v11920_v1 }
 0xc44   : > { %5170 = vadd.xlane.f32.xlu1 %v11720_v38 }
 0xc46   : > { %v3268_v30 = vpop.xlane.xlu0 %3267 }
 0xc48   : > { %5592 = vmax.xlane.f32.xlu1 %v12243_v10 }
 0xc4b   : > { %v4233_v16 = vpop.xlane.xlu1 %4232 }
 0xc4c   : > { %9304 = vrcp.f32 %v4233_v16  ;;  %5168 = vadd.xlane.f32.xlu0 %v11717_v12  ;;  %5588 = vmax.xlane.f32.xlu1 %v12248_v15  ;;  %v13608_v12 = vpack.c.bf16 %v11935_v49, %v11932_v46 }
 0xc4d   : > { %9306 = vrcp.f32 %v3268_v30  ;;  %v9303_v43 = vpop.eup %9302 }
 0xc4e   : > { %v4372_v48 = vmul.f32 %v9303_v43, %v13603_v52 }
 0xc4f   : > { %v3270_v38 = vpop.xlane.xlu1 %3269 }
 0xc50   : > { %9308 = vrcp.f32 %v3270_v38 }
 0xc56   : > { %v9305_v37 = vpop.eup %9304 }
 0xc57   : > { %v4371_v33 = vmul.f32 %v9305_v37, %v13604_v18  ;;  %v9307_v6 = vpop.eup %9306 }
 0xc58   : > { %v3406_v41 = vmul.f32 %v9307_v6, %v13605_v4 }
 0xc59   : > { %v4380_v54 = vpack.c.bf16 %v4372_v48, %v4371_v33  ;;  %v13612_v33 = vpack.c.bf16 %v11947_v21, %v11944_v63 }
 0xc5a   : > { %v9309_v42 = vpop.eup %9308 }
 0xc5b   : > { %v3407_v27 = vmul.f32 %v9309_v42, %v13606_v25  ;;  %4388 = vst.msk [vmem:[#allocation2 + $0xb0] sm:$0xff] %vm13607_vm11, %v4380_v54 }
 0xc5d   : > { %3940 = vrot.lane.b32.xlu1 %v13608_v12, %s9546_s12  ;;  %v3415_v3 = vpack.c.bf16 %v3407_v27, %v3406_v41 }
 0xc5f   : > { %3423 = vst.msk [vmem:[#allocation2 + $0xa8] sm:$0xff] %vm13609_vm15, %v3415_v3 }
 0xc62   : > { %4905 = vrot.lane.b32.xlu0 %v13610_v32, %s9546_s12 }
 0xc81   : > { %5174 = vadd.xlane.f32.xlu0 %v11714_v62  ;;  %5172 = vadd.xlane.f32.xlu1 %v11722_v28 }
 0xc84   : > { %v5567_v17 = vpop.xlane.xlu1 %5566 }
 0xc85   : > { %v5563_v31 = vpop.xlane.xlu0 %5562  ;;  %v5596_v30 = vsub.f32 %v12147_v29, %v5567_v17  ;;  %v13611_v29 = vpack.c.bf16 %v11963_v5, %v11960_v20 }
 0xc86   : > { %v5594_v16 = vsub.f32 %v12151_v14, %v5563_v31  ;;  %v8947_v31 = vld [vmem:[%s12930_s3 + $0x1c] ss:$12 sps:$4 sm:$0xff]  }
 0xc87   : > { %v5614_v38 = vmul.f32 1.442695, %v5596_v30 }
 0xc88   : > { %v5569_v46 = vpop.xlane.xlu1 %5568  ;;  %v5610_v37 = vmul.f32 1.442695, %v5594_v16 }
 0xc89   : > { %v5597_v49 = vsub.f32 %v12157_v59, %v5569_v46  ;;  %9310 = vpow2.f32 %v5614_v38  ;;  %v8950_v38 = vld [vmem:[%s12930_s3 + $0x34] ss:$12 sps:$4 sm:$0xff]  }
 0xc8b   : > { %v5616_v43 = vmul.f32 1.442695, %v5597_v49 }
 0xc8c   : > { %v5565_v52 = vpop.xlane.xlu1 %5564 }
 0xc8d   : > { %v5595_v1 = vsub.f32 %v12162_v47, %v5565_v52  ;;  %9312 = vpow2.f32 %v5616_v43  ;;  %v5571_v28 = vpop.xlane.xlu0 %5570  ;;  %v8953_v52 = vld [vmem:[%s12930_s3 + $0x4c] ss:$12 sps:$4 sm:$0xff]  }
 0xc8e   : > { %9314 = vpow2.f32 %v5610_v37  ;;  %v5598_v14 = vsub.f32 %v12166_v57, %v5571_v28  ;;  %v8948_v37 = vld [vmem:[%s12930_s3 + $0x30] ss:$12 sps:$4 sm:$0xff]  }
 0xc8f   : > { %v5612_v62 = vmul.f32 1.442695, %v5595_v1 }
 0xc90   : > { %v5575_v0 = vpop.xlane.xlu1 %5574  ;;  %v5618_v54 = vmul.f32 1.442695, %v5598_v14 }
 0xc91   : > { %9316 = vpow2.f32 %v5612_v62  ;;  %v5600_v47 = vsub.f32 %v12172_v9, %v5575_v0 }
 0xc92   : > { %3942 = vrot.lane.b32.xlu1 %v13611_v29, %s9546_s12  ;;  %9318 = vpow2.f32 %v5618_v54 }
 0xc93   : > { %v12283_v6 = vpop.eup %9310  ;;  %v5622_v25 = vmul.f32 1.442695, %v5600_v47 }
 0xc94   : > { %v5583_v59 = vpop.xlane.xlu0 %5582  ;;  %v5577_v48 = vpop.xlane.xlu1 %5576 }
 0xc95   : > { %v5601_v18 = vsub.f32 %v12177_v51, %v5577_v48  ;;  %v5604_v30 = vsub.f32 %v12181_v26, %v5583_v59  ;;  %v8951_v59 = vld [vmem:[%s12930_s3 + $0x48] ss:$12 sps:$4 sm:$0xff]  }
 0xc97   : > { %4907 = vrot.lane.b32.xlu0 %v13612_v33, %s9546_s12  ;;  %v12285_v20 = vpop.eup %9312  ;;  %v5624_v5 = vmul.f32 1.442695, %v5601_v18  ;;  %v5630_v26 = vmul.f32 1.442695, %v5604_v30  ;;  %v8956_v18 = vld [vmem:[%s12930_s3 + $0x64] ss:$12 sps:$4 sm:$0xff]  }
 0xc98   : > { %v5579_v42 = vpop.xlane.xlu0 %5578  ;;  %v5573_v4 = vpop.xlane.xlu1 %5572  ;;  %v5675_v3 = vpack.c.bf16 %v12285_v20, %v12283_v6 }
 0xc99   : > { %v5602_v57 = vsub.f32 %v12191_v8, %v5579_v42  ;;  %v5599_v41 = vsub.f32 %v12187_v58, %v5573_v4  ;;  %v12289_v51 = vpop.eup %9314  ;;  %v8942_v8 = vld [vmem:[%s12930_s3] ss:$12 sps:$4 sm:$0xff]   ;;  %9320 = vpow2.f32 %v5624_v5  ;;  %v8959_v4 = vld [vmem:[%s12930_s3 + $0x7c] ss:$12 sps:$4 sm:$0xff]  }
 0xc9a   : > { %v8954_v42 = vld [vmem:[%s12930_s3 + $0x60] ss:$12 sps:$4 sm:$0xff]  }
 0xc9b   : > { %v12291_v9 = vpop.eup %9316  ;;  %v5620_v27 = vmul.f32 1.442695, %v5599_v41  ;;  %v5626_v58 = vmul.f32 1.442695, %v5602_v57 }
 0xc9c   : > { %v5585_v63 = vpop.xlane.xlu0 %5584  ;;  %v5581_v21 = vpop.xlane.xlu1 %5580  ;;  %v5674_v12 = vpack.c.bf16 %v12291_v9, %v12289_v51 }
 0xc9d   : > { %v5605_v32 = vsub.f32 %v12197_v11, %v5585_v63  ;;  %v5603_v17 = vsub.f32 %v12201_v44, %v5581_v21  ;;  %9322 = vpow2.f32 %v5620_v27  ;;  %v8945_v11 = vld [vmem:[%s12930_s3 + $0x18] ss:$12 sps:$4 sm:$0xff]   ;;  %v12323_v1 = vpop.eup %9318  ;;  %v8962_v21 = vld [vmem:[%s12930_s3 + $0x94] ss:$12 sps:$4 sm:$0xff]  }
 0xc9e   : > { %8091 = vmatprep.mubr.bf16.mxu0 %v5674_v12  ;;  %9324 = vpow2.f32 %v5622_v25  ;;  %v8957_v27 = vld [vmem:[%s12930_s3 + $0x78] ss:$12 sps:$4 sm:$0xff]   ;;  %v8960_v12 = vld [vmem:[%s12930_s3 + $0x90] ss:$12 sps:$4 sm:$0xff]  }
 0xc9f   : > { %v5628_v16 = vmul.f32 1.442695, %v5603_v17  ;;  %8092 = vmatmul.mubr.bf16.vlgmr.msra.gmra.mrb[176].mxu0 %v5675_v3  ;;  %9326 = vpow2.f32 %v5626_v58  ;;  %v5632_v44 = vmul.f32 1.442695, %v5605_v32  ;;  %v8965_v3 = vld [vmem:[%s12930_s3 + $0xac] ss:$12 sps:$4 sm:$0xff]  }
 0xca0   : > { %v12306_v46 = vpop.xlane.xlu0 %5590  ;;  %v3939_v49 = vpop.permute.xlu1 %3938  ;;  %6413 = vmatpush1.bf16.msra.mxu0 %v8942_v8  ;;  %v8963_v8 = vld [vmem:[%s12930_s3 + $0xa8] ss:$12 sps:$4 sm:$0xff]   ;;  %v8968_v58 = vld [vmem:[%s12930_s3 + $0xc4] ss:$12 sps:$4 sm:$0xff]  }
 0xca1   : > { %3959 = vst.msk [vmem:[#allocation2 + $0x60] sm:$0xff] %vm3954_vm0, %v3939_v49  ;;  %6414 = vmatprep.subr.bf16.mxu0 %v8947_v31  ;;  %9328 = vpow2.f32 %v5628_v16  ;;  %v8971_v17 = vld [vmem:[%s12930_s3 + $0xdc] ss:$12 sps:$4 sm:$0xff]  }
 0xca2   : > { %9330 = vpow2.f32 %v5632_v44  ;;  %v8974_v44 = vld [vmem:[%s12930_s3 + $0xf4] ss:$12 sps:$4 sm:$0xff]  }
 0xca3   : > { %v12325_v62 = vpop.eup %9320  ;;  %9332 = vpow2.f32 %v5630_v26  ;;  %v8977_v26 = vld [vmem:[%s12930_s3 + $0x10c] ss:$12 sps:$4 sm:$0xff]  }
 0xca4   : > { %v12315_v43 = vpop.xlane.xlu0 %5586  ;;  %6415 = vmatpush1.bf16.msra.mxu0 %v8945_v11  ;;  %v8969_v11 = vld [vmem:[%s12930_s3 + $0xd8] ss:$12 sps:$4 sm:$0xff]  }
 0xca5   : > { %6416 = vmatprep.subr.bf16.mxu0 %v8950_v38  ;;  %v8972_v38 = vld [vmem:[%s12930_s3 + $0xf0] ss:$12 sps:$4 sm:$0xff]  }
 0xca7   : > { %v12327_v28 = vpop.eup %9322 }
 0xca8   : > { %v4904_v0 = vpop.permute.xlu0 %4903  ;;  %6417 = vmatpush1.bf16.msra.mxu0 %v8948_v37  ;;  %v12329_v29 = vpop.eup %9324  ;;  %v5676_v14 = vpack.c.bf16 %v12327_v28, %v12323_v1  ;;  %v12361_v25 = vld [vmem:[#allocation2 + $0x60] sm:$0xff]  ;;  %v13613_v37 = vpack.c.bf16 %v11983_v24, %v11980_v56  ;;  %v8983_v24 = vld [vmem:[%s12930_s3 + $0x13c] ss:$12 sps:$4 sm:$0xff]  }
 0xca9   : > { %4923 = vst.msk [vmem:[#allocation2 + $0x68] sm:$0xff] %vm3954_vm0, %v4904_v0  ;;  %6418 = vmatprep.subr.bf16.mxu0 %v8953_v52  ;;  %v5677_v48 = vpack.c.bf16 %v12325_v62, %v12329_v29  ;;  %v12342_v47 = vpop.eup %9326  ;;  %v8975_v52 = vld [vmem:[%s12930_s3 + $0x108] ss:$12 sps:$4 sm:$0xff]   ;;  %v8980_v0 = vld [vmem:[%s12930_s3 + $0x124] ss:$12 sps:$4 sm:$0xff]  }
 0xcaa   : > { %8095 = vmatprep.mubr.bf16.mxu0 %v5676_v14  ;;  %v13614_v14 = vpack.c.bf16 %v11971_v23, %v11968_v40  ;;  %v8978_v56 = vld [vmem:[%s12930_s3 + $0x120] ss:$12 sps:$4 sm:$0xff]   ;;  %v5606_v23 = vsub.f32 %v12213_v22, %v12315_v43 }
 0xcab   : > { %v12344_v33 = vpop.eup %9328  ;;  %8096 = vmatmul.mubr.bf16.gmra.mrb[180].mxu0 %v5677_v48  ;;  %v8981_v48 = vld [vmem:[%s12930_s3 + $0x138] ss:$12 sps:$4 sm:$0xff]   ;;  %v8986_v40 = vld [vmem:[%s12930_s3 + $0x154] ss:$12 sps:$4 sm:$0xff]  }
 0xcac   : > { %v5678_v54 = vpack.c.bf16 %v12344_v33, %v12342_v47  ;;  %6419 = vmatpush1.bf16.msra.mxu0 %v8951_v59  ;;  %v12354_v5 = vpop.eup %9330 }
 0xcad   : > { %6420 = vmatprep.subr.bf16.mxu0 %v8956_v18  ;;  %v12358_v41 = vpop.eup %9332 }
 0xcae   : > { %8099 = vmatprep.mubr.bf16.mxu0 %v5678_v54  ;;  %v5679_v63 = vpack.c.bf16 %v12354_v5, %v12358_v41  ;;  %v8984_v54 = vld [vmem:[%s12930_s3 + $0x150] ss:$12 sps:$4 sm:$0xff]  }
 0xcb0   : > { %v12356_v57 = vld [vmem:[#allocation2 + $0x68] sm:$0xff]  ;;  %6421 = vmatpush1.bf16.msra.mxu0 %v8954_v42 }
 0xcb1   : > { %6702 = vmatprep.mubr.bf16.mxu1 %v12356_v57  ;;  %6422 = vmatprep.subr.bf16.mxu0 %v8959_v4  ;;  %v8989_v4 = vld [vmem:[%s12930_s3 + $0x16c] ss:$12 sps:$4 sm:$0xff]  }
 0xcb2   : > { %6703 = vmatmul.mubr.bf16.gmra.mrb[216].mxu1 %v12361_v25 }
 0xcb3   : > { %8100 = vmatmul.mubr.bf16.gmra.mrb[184].mxu0 %v5679_v63  ;;  %v5634_v63 = vmul.f32 1.442695, %v5606_v23 }
 0xcb4   : > { %6423 = vmatpush1.bf16.msra.mxu0 %v8957_v27  ;;  %v5608_v27 = vsub.f32 %v12207_v53, %v12306_v46 }
 0xcb5   : > { %6424 = vmatprep.subr.bf16.mxu0 %v8962_v21 }
 0xcb6   : > { %5178 = vadd.xlane.f32.xlu0 %v11739_v39  ;;  %5176 = vadd.xlane.f32.xlu1 %v11737_v35  ;;  %v8966_v35 = vld [vmem:[%s12930_s3 + $0xc0] ss:$12 sps:$4 sm:$0xff]  }
 0xcb8   : > { %6425 = vmatpush1.bf16.msra.mxu0 %v8960_v12  ;;  %v8987_v12 = vld [vmem:[%s12930_s3 + $0x168] ss:$12 sps:$4 sm:$0xff]  }
 0xcb9   : > { %6426 = vmatprep.subr.bf16.mxu0 %v8965_v3  ;;  %v5638_v3 = vmul.f32 1.442695, %v5608_v27  ;;  %v13624_v27 = vmov 0  }
 0xcbc   : > { %6427 = vmatpush1.bf16.msra.mxu0 %v8963_v8 }
 0xcbd   : > { %v7639_v32 = vpop.f32.mrb[208].mxu1  ;;  %6428 = vmatprep.subr.bf16.mxu0 %v8968_v58 }
 0xcbe   : > { %v7640_v39 = vpop.f32.mrb[209].mxu1 }
 0xcbf   : > { %v12392_v31 = vadd.f32 %v7640_v39, %v7639_v32  ;;  %v7642_v30 = vpop.f32.mrb[210].mxu1 }
 0xcc0   : > { %v7643_v16 = vpop.f32.mrb[211].mxu1  ;;  %6429 = vmatpush1.bf16.msra.mxu0 %v8966_v35 }
 0xcc1   : > { %v12394_v49 = vadd.f32 %v7643_v16, %v7642_v30  ;;  %6430 = vmatprep.subr.bf16.mxu0 %v8971_v17 }
 0xcc4   : > { %6431 = vmatpush1.bf16.msra.mxu0 %v8969_v11 }
 0xcc5   : > { %6432 = vmatprep.subr.bf16.mxu0 %v8974_v44 }
 0xcc7   : > { %3944 = vrot.lane.b32.xlu1 %v13613_v37, %s9546_s12  ;;  %v12472_v37 = vld [vmem:[#allocation2] sm:$0xff] }
 0xcc8   : > { %6433 = vmatpush1.bf16.msra.mxu0 %v8972_v38 }
 0xcc9   : > { %6434 = vmatprep.subr.bf16.mxu0 %v8977_v26 }
 0xccc   : > { %4909 = vrot.lane.b32.xlu0 %v13614_v14, %s9546_s12  ;;  %6435 = vmatpush1.bf16.msra.mxu0 %v8975_v52 }
 0xccd   : > { %6436 = vmatprep.subr.bf16.mxu0 %v8980_v0 }
 0xcd0   : > { %6437 = vmatpush1.bf16.msra.mxu0 %v8978_v56 }
 0xcd1   : > { %v5171_v59 = vpop.xlane.xlu1 %5170  ;;  %6438 = vmatprep.subr.bf16.mxu0 %v8983_v24 }
 0xcd2   : > { %9334 = vrcp.f32 %v5171_v59 }
 0xcd4   : > { %6439 = vmatpush1.bf16.msra.mxu0 %v8981_v48 }
 0xcd5   : > { %v5593_v18 = vpop.xlane.xlu1 %5592  ;;  %6440 = vmatprep.subr.bf16.mxu0 %v8986_v40  ;;  %v13622_v40 = vld [vmem:[#allocation22_spill] sm:$0xff] }
 0xcd6   : > { %v5609_v42 = vsub.f32 %v12243_v10, %v5593_v18 }
 0xcd8   : > { %v5640_v21 = vmul.f32 1.442695, %v5609_v42  ;;  %6441 = vmatpush1.bf16.msra.mxu0 %v8984_v54  ;;  %v13623_v42 = vld [vmem:[#allocation18_spill] sm:$0xff] }
 0xcd9   : > { %v5169_v22 = vpop.xlane.xlu0 %5168  ;;  %v5589_v43 = vpop.xlane.xlu1 %5588  ;;  %6442 = vmatprep.subr.bf16.mxu0 %v8989_v4 }
 0xcda   : > { %v5607_v10 = vsub.f32 %v12248_v15, %v5589_v43  ;;  %9336 = vrcp.f32 %v5169_v22  ;;  %v8990_v43 = vld [vmem:[%s12930_s3 + $0x180] ss:$12 sps:$4 sm:$0xff]  }
 0xcdb   : > { %9338 = vpow2.f32 %v5634_v63 }
 0xcdc   : > { %v5636_v8 = vmul.f32 1.442695, %v5607_v10  ;;  %9340 = vpow2.f32 %v5640_v21  ;;  %6443 = vmatpush1.bf16.msra.mxu0 %v8987_v12  ;;  %v9335_v46 = vpop.eup %9334  ;;  %v8992_v12 = vld [vmem:[%s12930_s3 + $0x184] ss:$12 sps:$4 sm:$0xff]  }
 0xcdd   : > { %v4906_v58 = vpop.permute.xlu0 %4905  ;;  %v3941_v53 = vpop.permute.xlu1 %3940  ;;  %v5322_v17 = vmul.f32 %v9335_v46, %v12085_v61  ;;  %6525 = vmatprep.subr.bf16.mxu0 %v8992_v12  ;;  %v8994_v46 = vld [vmem:[%s12930_s3 + $0x198] ss:$12 sps:$4 sm:$0xff]   ;;  %v13628_v12 = vld [vmem:[#allocation26_spill] sm:$0xff] }
 0xcde   : > { %9342 = vpow2.f32 %v5636_v8  ;;  %4924 = vst.msk [vmem:[#allocation2 + $0x80] sm:$0xff] %vm3954_vm0, %v4906_v58  ;;  %3960 = vst.msk [vmem:[#allocation2 + $0x78] sm:$0xff] %vm3954_vm0, %v3941_v53  ;;  %v8996_v58 = vld [vmem:[%s12930_s3 + $0x19c] ss:$12 sps:$4 sm:$0xff]   ;;  %v8997_v53 = vld [vmem:[%s12930_s3 + $0x1a0] ss:$12 sps:$4 sm:$0xff]  }
 0xcdf   : > { %9344 = vpow2.f32 %v5638_v3  ;;  %v8993_v3 = vld [vmem:[%s12930_s3 + $0x188] ss:$12 sps:$4 sm:$0xff]  }
 0xce0   : > { %8107 = vmatprep.subr.bf16.mxu1 %v8993_v3 }
 0xce1   : > { %8108 = vmatpush3.bf16.msra.mxu1 %v8993_v3 }
 0xce2   : > { %8109 = vmatprep.subr.bf16.mxu1 %v8997_v53 }
 0xce4   : > { %v9337_v32 = vpop.eup %9336 }
 0xce5   : > { %v12451_v35 = vld [vmem:[#allocation2 + $0x80] sm:$0xff]  ;;  %v12453_v15 = vld [vmem:[#allocation2 + $0x78] sm:$0xff]  ;;  %v9339_v39 = vpop.eup %9338  ;;  %v5321_v30 = vmul.f32 %v9337_v32, %v12081_v60  ;;  %v12465_v60 = vld [vmem:[#allocation2 + $0x8] sm:$0xff]  ;;  %8110 = vmatpush3.bf16.msra.mxu1 %v8997_v53 }
 0xce6   : > { %6710 = vmatprep.mubr.bf16.mxu1 %v12451_v35  ;;  %v9341_v16 = vpop.eup %9340  ;;  %v9000_v32 = vld [vmem:[%s12930_s3 + $0x1b4] ss:$12 sps:$4 sm:$0xff]  }
 0xce7   : > { %6711 = vmatmul.mubr.bf16.gmra.mrb[220].mxu1 %v12453_v15  ;;  %v5337_v44 = vpack.c.bf16 %v5322_v17, %v5321_v30  ;;  %v8998_v17 = vld [vmem:[%s12930_s3 + $0x1b0] ss:$12 sps:$4 sm:$0xff]   ;;  %v9004_v30 = vld [vmem:[%s12930_s3 + $0x1cc] ss:$12 sps:$4 sm:$0xff]  }
 0xce8   : > { %v12459_v11 = vpop.eup %9342 }
 0xce9   : > { %v5680_v38 = vpack.c.bf16 %v12459_v11, %v9339_v39  ;;  %v9345_v26 = vpop.eup %9344  ;;  %5345 = vst.msk [vmem:[#allocation2 + $0x10] sm:$0xff] %vm13615_vm6, %v5337_v44  ;;  %v9005_v44 = vld [vmem:[%s12930_s3 + $0x1d0] ss:$12 sps:$4 sm:$0xff]  }
 0xcea   : > { %v5681_v61 = vpack.c.bf16 %v9341_v16, %v9345_v26 }
 0xceb   : > { %5180 = vadd.xlane.f32.xlu1 %v11852_v55  ;;  %5646 = vadd.xlane.f32.xlu0 %v12283_v6  ;;  %v12475_v55 = vld [vmem:[#allocation2 + $0x20] sm:$0xff] }
 0xcec   : > { %8103 = vmatprep.mubr.bf16.mxu0 %v5680_v38  ;;  %v9002_v38 = vld [vmem:[%s12930_s3 + $0x1c8] ss:$12 sps:$4 sm:$0xff]  }
 0xced   : > { %8104 = vmatmul.mubr.bf16.gmra.mrb[188].mxu0 %v5681_v61  ;;  %v9008_v61 = vld [vmem:[%s12930_s3 + $0x1e4] ss:$12 sps:$4 sm:$0xff]  }
 0xcee   : > { %6444 = vmatprep.mubr.bf16.mxu0 %v12465_v60 }
 0xcef   : > { %5184 = vadd.xlane.f32.xlu1 %v11867_v34  ;;  %5642 = vadd.xlane.f32.xlu0 %v12289_v51 }
 0xcf3   : > { %5186 = vadd.xlane.f32.xlu1 %v11869_v50  ;;  %5182 = vadd.xlane.f32.xlu0 %v11850_v36  ;;  %v12486_v36 = vld [vmem:[#allocation2 + $0x18] sm:$0xff] }
 0xcf5   : > { %6445 = vmatmul.mubr.bf16.vlgmr.msra.gmra.mrb[192].mxu0 %v12472_v37 }
 0xcf6   : > { %6454 = vmatprep.mubr.bf16.mxu0 %v12475_v55  ;;  %v7645_v6 = vpop.f32.mrb[212].mxu1  ;;  %6526 = vmatpush1.bf16.msra.mxu0 %v8990_v43  ;;  %v9017_v43 = vld [vmem:[%s12930_s3 + $0x218] ss:$12 sps:$4 sm:$0xff]  }
 0xcf7   : > { %v7646_v52 = vpop.f32.mrb[213].mxu1  ;;  %5188 = vadd.xlane.f32.xlu0 %v11859_v45  ;;  %5648 = vadd.xlane.f32.xlu1 %v12285_v20  ;;  %v13616_v45 = vld [vmem:[#allocation98_spill] sm:$0xff]  ;;  %v13617_v20 = vld [vmem:[#allocation67_spill] sm:$0xff] }
 0xcf8   : > { %v12480_v34 = vadd.f32 %v7646_v52, %v7645_v6  ;;  %v7648_v51 = vpop.f32.mrb[214].mxu1  ;;  %6527 = vmatprep.subr.bf16.mxu0 %v8996_v58  ;;  %v13629_v58 = vld [vmem:[#allocation23_spill] sm:$0xff] }
 0xcf9   : > { %v7649_v50 = vpop.f32.mrb[215].mxu1 }
 0xcfa   : > { %v12482_v0 = vadd.f32 %v7649_v50, %v7648_v51  ;;  %6528 = vmatpush1.bf16.msra.mxu0 %v8994_v46  ;;  %v9009_v51 = vld [vmem:[%s12930_s3 + $0x1e8] ss:$12 sps:$4 sm:$0xff]   ;;  %v9020_v46 = vld [vmem:[%s12930_s3 + $0x22c] ss:$12 sps:$4 sm:$0xff]  }
 0xcfb   : > { %5644 = vadd.xlane.f32.xlu1 %v12291_v9  ;;  %5654 = vadd.xlane.f32.xlu0 %v12329_v29 }
 0xcfc   : > { %6529 = vmatprep.subr.bf16.mxu0 %v9000_v32  ;;  %v9021_v32 = vld [vmem:[%s12930_s3 + $0x230] ss:$12 sps:$4 sm:$0xff]  }
 0xcfd   : > { %6455 = vmatmul.mubr.bf16.gmra.mrb[196].mxu0 %v12486_v36 }
 0xcfe   : > { %6464 = vmatprep.mubr.bf16.mxu0 %v12116_v19  ;;  %6530 = vmatpush1.bf16.msra.mxu0 %v8998_v17 }
 0xcff   : > { %5190 = vadd.xlane.f32.xlu1 %v11861_v7  ;;  %5650 = vadd.xlane.f32.xlu0 %v12323_v1 }
 0xd00   : > { %6531 = vmatprep.subr.bf16.mxu0 %v9004_v30 }
 0xd02   : > { %6532 = vmatpush1.bf16.msra.mxu0 %v9002_v38 }
 0xd03   : > { %5192 = vadd.xlane.f32.xlu1 %v11875_v2  ;;  %5662 = vadd.xlane.f32.xlu0 %v12358_v41  ;;  %v13618_v2 = vld [vmem:[#allocation25_spill] sm:$0xff]  ;;  %v13620_v41 = vld [vmem:[#allocation35_spill] sm:$0xff] }
 0xd04   : > { %6533 = vmatprep.subr.bf16.mxu0 %v9008_v61 }
 0xd05   : > { %6465 = vmatmul.mubr.bf16.gmra.mrb[200].mxu0 %v13616_v45 }
 0xd06   : > { %6474 = vmatprep.mubr.bf16.mxu0 %v13617_v20 }
 0xd07   : > { %5658 = vadd.xlane.f32.xlu0 %v12342_v47  ;;  %5656 = vadd.xlane.f32.xlu1 %v12325_v62 }
 0xd0b   : > { %5666 = vadd.xlane.f32.xlu0 %v9339_v39  ;;  %5652 = vadd.xlane.f32.xlu1 %v12327_v28  ;;  %v13619_v28 = vld [vmem:[#allocation39_spill] sm:$0xff]  ;;  %v9001_v39 = vld [vmem:[%s12930_s3 + $0x1b8] ss:$12 sps:$4 sm:$0xff]  }
 0xd0c   : > { %8111 = vmatprep.subr.bf16.mxu1 %v9001_v39 }
 0xd0d   : > { %6475 = vmatmul.mubr.bf16.gmra.mrb[204].mxu0 %v12228_v13  ;;  %8112 = vmatpush3.bf16.msra.mxu1 %v9001_v39  ;;  %v9018_v39 = vld [vmem:[%s12930_s3 + $0x228] ss:$12 sps:$4 sm:$0xff]  }
 0xd0e   : > { %6484 = vmatprep.mubr.bf16.mxu0 %v12356_v57  ;;  %v5175_v7 = vpop.xlane.xlu0 %5174  ;;  %v5173_v19 = vpop.xlane.xlu1 %5172  ;;  %8113 = vmatprep.subr.bf16.mxu1 %v9005_v44 }
 0xd0f   : > { %9346 = vrcp.f32 %v5175_v7  ;;  %5194 = vadd.xlane.f32.xlu1 %v13618_v2  ;;  %5672 = vadd.xlane.f32.xlu0 %v9341_v16  ;;  %v9006_v7 = vld [vmem:[%s12930_s3 + $0x1e0] ss:$12 sps:$4 sm:$0xff]  }
 0xd10   : > { %9348 = vrcp.f32 %v5173_v19  ;;  %6534 = vmatpush1.bf16.msra.mxu0 %v9006_v7 }
 0xd11   : > { %8114 = vmatpush3.bf16.msra.mxu1 %v9005_v44 }
 0xd12   : > { %v4908_v9 = vpop.permute.xlu0 %4907  ;;  %v3943_v1 = vpop.permute.xlu1 %3942  ;;  %8115 = vmatprep.subr.bf16.mxu1 %v9009_v51 }
 0xd13   : > { %4925 = vst.msk [vmem:[#allocation2 + $0x98] sm:$0xff] %vm3954_vm0, %v4908_v9  ;;  %3961 = vst.msk [vmem:[#allocation2 + $0x90] sm:$0xff] %vm3954_vm0, %v3943_v1  ;;  %5664 = vadd.xlane.f32.xlu1 %v12354_v5 }
 0xd15   : > { %6485 = vmatmul.mubr.bf16.gmra.mrb[208].mxu0 %v12361_v25  ;;  %8116 = vmatpush3.bf16.msra.mxu1 %v9009_v51 }
 0xd16   : > { %6494 = vmatprep.mubr.bf16.mxu0 %v12451_v35 }
 0xd17   : > { %5660 = vadd.xlane.f32.xlu1 %v12344_v33 }
 0xd19   : > { %v9347_v13 = vpop.eup %9346 }
 0xd1a   : > { %v9349_v62 = vpop.eup %9348  ;;  %v5324_v29 = vmul.f32 %v9347_v13, %v13619_v28  ;;  %v5910_v47 = vld [vmem:[#allocation2 + $0x98] sm:$0xff]  ;;  %v5909_v57 = vld [vmem:[#allocation2 + $0x90] sm:$0xff] }
 0xd1b   : > { %v5323_v14 = vmul.f32 %v9349_v62, %v13620_v41  ;;  %5670 = vadd.xlane.f32.xlu1 %v9345_v26  ;;  %6718 = vmatprep.mubr.bf16.mxu1 %v5910_v47  ;;  %v9012_v28 = vld [vmem:[%s12930_s3 + $0x1fc] ss:$12 sps:$4 sm:$0xff]   ;;  %v9013_v41 = vld [vmem:[%s12930_s3 + $0x200] ss:$12 sps:$4 sm:$0xff]  }
 0xd1c   : > { %6719 = vmatmul.mubr.bf16.gmra.mrb[224].mxu1 %v5909_v57  ;;  %6535 = vmatprep.subr.bf16.mxu0 %v9012_v28 }
 0xd1d   : > { %6495 = vmatmul.mubr.bf16.gmra.mrb[212].mxu0 %v12453_v15  ;;  %v5338_v5 = vpack.c.bf16 %v5324_v29, %v5323_v14  ;;  %8117 = vmatprep.subr.bf16.mxu1 %v9013_v41 }
 0xd1e   : > { %6504 = vmatprep.mubr.bf16.mxu0 %v5910_v47  ;;  %8118 = vmatpush3.bf16.msra.mxu1 %v9013_v41  ;;  %v13633_v41 = vld [vmem:[#allocation38_spill] sm:$0xff] }
 0xd1f   : > { %5668 = vadd.xlane.f32.xlu1 %v12459_v11  ;;  %5346 = vst.msk [vmem:[#allocation2 + $0x28] sm:$0xff] %vm13621_vm13, %v5338_v5  ;;  %8119 = vmatprep.subr.bf16.mxu1 %v9017_v43 }
 0xd22   : > { %8120 = vmatpush3.bf16.msra.mxu1 %v9017_v43 }
 0xd23   : > { %8121 = vmatprep.subr.bf16.mxu1 %v9021_v32 }
 0xd25   : > { %6505 = vmatmul.mubr.bf16.gmra.mrb[216].mxu0 %v5909_v57  ;;  %v9010_v57 = vld [vmem:[%s12930_s3 + $0x1f8] ss:$12 sps:$4 sm:$0xff]  }
 0xd26   : > { %6536 = vmatpush1.bf16.msra.mxu0 %v9010_v57  ;;  %8122 = vmatpush3.bf16.msra.mxu1 %v9021_v32  ;;  %v13635_v32 = vld [vmem:[#allocation110_spill] sm:$0xff] }
 0xd43   : > { %v5179_v33 = vpop.xlane.xlu0 %5178  ;;  %v5177_v25 = vpop.xlane.xlu1 %5176 }
 0xd44   : > { %9350 = vrcp.f32 %v5179_v33 }
 0xd45   : > { %9352 = vrcp.f32 %v5177_v25 }
 0xd47   : > { %v4910_v56 = vpop.permute.xlu0 %4909  ;;  %v3945_v24 = vpop.permute.xlu1 %3944 }
 0xd48   : > { %4926 = vst.msk [vmem:[#allocation2 + $0xb0] sm:$0xff] %vm3954_vm0, %v4910_v56  ;;  %3962 = vst.msk [vmem:[#allocation2 + $0xa8] sm:$0xff] %vm3954_vm0, %v3945_v24 }
 0xd4e   : > { %v9351_v59 = vpop.eup %9350 }
 0xd4f   : > { %v9353_v48 = vpop.eup %9352  ;;  %v5326_v23 = vmul.f32 %v9351_v59, %v13622_v40  ;;  %v5913_v18 = vld [vmem:[#allocation2 + $0xb0] sm:$0xff]  ;;  %v5912_v54 = vld [vmem:[#allocation2 + $0xa8] sm:$0xff] }
 0xd50   : > { %v5325_v4 = vmul.f32 %v9353_v48, %v13623_v42  ;;  %6514 = vmatprep.mubr.bf16.mxu0 %v5913_v18  ;;  %6726 = vmatprep.mubr.bf16.mxu1 %v5913_v18  ;;  %v9016_v40 = vld [vmem:[%s12930_s3 + $0x214] ss:$12 sps:$4 sm:$0xff]   ;;  %v13627_v42 = vld [vmem:[#allocation20_spill] sm:$0xff] }
 0xd51   : > { %6515 = vmatmul.mubr.bf16.gmra.mrb[220].mxu0 %v5912_v54  ;;  %6727 = vmatmul.mubr.bf16.gmra.mrb[228].mxu1 %v5912_v54  ;;  %v13626_v18 = vld [vmem:[#allocation41_spill] sm:$0xff] }
 0xd52   : > { %6557 = vmatprep.mubr.bf16.mxu0 %v13624_v27  ;;  %v5339_v63 = vpack.c.bf16 %v5326_v23, %v5325_v4  ;;  %6537 = vmatprep.subr.bf16.mxu0 %v9016_v40 }
 0xd54   : > { %5347 = vst.msk [vmem:[#allocation2 + $0x40] sm:$0xff] %vm13625_vm8, %v5339_v63  ;;  %v9014_v63 = vld [vmem:[%s12930_s3 + $0x210] ss:$12 sps:$4 sm:$0xff]  }
 0xd55   : > { %6538 = vmatpush1.bf16.msra.mxu0 %v9014_v63 }
 0xd56   : > { %6539 = vmatprep.subr.bf16.mxu0 %v9020_v46 }
 0xd59   : > { %6540 = vmatpush1.bf16.msra.mxu0 %v9018_v39 }
 0xd72   : > { %v12519_v21 = vpop.f32.mrb[176].mxu0 }
 0xd73   : > { %v12521_v22 = vpop.f32.mrb[177].mxu0 }
 0xd74   : > { %v12529_v10 = vpop.f32.mrb[178].mxu0 }
 0xd75   : > { %v12534_v8 = vpop.f32.mrb[179].mxu0 }
 0xd78   : > { %v5647_v35 = vpop.xlane.xlu0 %5646  ;;  %v5181_v15 = vpop.xlane.xlu1 %5180 }
 0xd79   : > { %9354 = vrcp.f32 %v5181_v15 }
 0xd7c   : > { %v5643_v16 = vpop.xlane.xlu0 %5642  ;;  %v5185_v11 = vpop.xlane.xlu1 %5184 }
 0xd7d   : > { %9356 = vrcp.f32 %v5185_v11 }
 0xd7e   : > { %v12563_v26 = vpop.f32.mrb[180].mxu0 }
 0xd7f   : > { %v12568_v6 = vpop.f32.mrb[181].mxu0 }
 0xd80   : > { %v5183_v52 = vpop.xlane.xlu0 %5182  ;;  %v12573_v50 = vpop.f32.mrb[182].mxu0 }
 0xd81   : > { %9358 = vrcp.f32 %v5183_v52  ;;  %v5187_v45 = vpop.xlane.xlu1 %5186  ;;  %v12575_v20 = vpop.f32.mrb[183].mxu0 }
 0xd82   : > { %9360 = vrcp.f32 %v5187_v45  ;;  %v9430_v45 = vld [vmem:[%s12930_s3 + $0xc8] ss:$12 sps:$4 sm:$0xff]  }
 0xd83   : > { %9362 = vrcp.f32 %v5647_v35  ;;  %v9355_v14 = vpop.eup %9354  ;;  %7611 = vmatprep.subr.bf16.mxu0 %v9430_v45 }
 0xd84   : > { %v5189_v29 = vpop.xlane.xlu0 %5188  ;;  %v5327_v54 = vmul.f32 %v9355_v14, %v13626_v18 }
 0xd85   : > { %v5649_v19 = vpop.xlane.xlu1 %5648  ;;  %v7651_v2 = vpop.f32.mrb[216].mxu1 }
 0xd86   : > { %9364 = vrcp.f32 %v5649_v19  ;;  %v7652_v9 = vpop.f32.mrb[217].mxu1  ;;  %v12580_v1 = vpop.f32.mrb[184].mxu0 }
 0xd87   : > { %v12582_v13 = vadd.f32 %v7652_v9, %v7651_v2  ;;  %v7654_v62 = vpop.f32.mrb[218].mxu1  ;;  %v12587_v47 = vpop.f32.mrb[185].mxu0  ;;  %9366 = vrcp.f32 %v5643_v16 }
 0xd88   : > { %v12595_v5 = vpop.f32.mrb[186].mxu0  ;;  %v7655_v33 = vpop.f32.mrb[219].mxu1 }
 0xd89   : > { %v9357_v25 = vpop.eup %9356  ;;  %v12597_v56 = vadd.f32 %v7655_v33, %v7654_v62  ;;  %v5645_v24 = vpop.xlane.xlu1 %5644 }
 0xd8a   : > { %v12599_v59 = vpop.f32.mrb[187].mxu0  ;;  %9368 = vrcp.f32 %v5645_v24  ;;  %v5329_v3 = vmul.f32 %v9357_v25, %v13628_v12  ;;  %v5655_v11 = vpop.xlane.xlu0 %5654 }
 0xd8b   : > { %v9359_v48 = vpop.eup %9358  ;;  %9370 = vrcp.f32 %v5189_v29  ;;  %v13632_v29 = vld [vmem:[#allocation28_spill] sm:$0xff] }
 0xd8c   : > { %v9361_v23 = vpop.eup %9360  ;;  %v5328_v4 = vmul.f32 %v9359_v48, %v13627_v42 }
 0xd8d   : > { %v5330_v53 = vmul.f32 %v9361_v23, %v13629_v58  ;;  %v9363_v35 = vpop.eup %9362  ;;  %v5191_v15 = vpop.xlane.xlu1 %5190 }
 0xd8e   : > { %v5340_v17 = vpack.c.bf16 %v5328_v4, %v5327_v54  ;;  %9372 = vrcp.f32 %v5191_v15  ;;  %v5829_v44 = vmul.f32 %v9363_v35, %v12519_v21  ;;  %v5651_v19 = vpop.xlane.xlu0 %5650  ;;  %v13636_v35 = vld [vmem:[#allocation108_spill] sm:$0xff] }
 0xd8f   : > { %v5341_v30 = vpack.c.bf16 %v5330_v53, %v5329_v3  ;;  %9374 = vrcp.f32 %v5655_v11 }
 0xd90   : > { %v9365_v16 = vpop.eup %9364  ;;  %5348 = vst.msk [vmem:[#allocation2 + $0x58] sm:$0xff] %vm13630_vm14, %v5340_v17 }
 0xd91   : > { %v5830_v38 = vmul.f32 %v9365_v16, %v12529_v10  ;;  %5349 = vst.msk [vmem:[#allocation2 + $0x70] sm:$0xff] %vm13631_vm7, %v5341_v30  ;;  %v5193_v61 = vpop.xlane.xlu1 %5192  ;;  %v9367_v52 = vpop.eup %9366 }
 0xd92   : > { %v5827_v10 = vmul.f32 %v9367_v52, %v12521_v22  ;;  %v5663_v25 = vpop.xlane.xlu0 %5662 }
 0xd93   : > { %v5844_v51 = vpack.c.bf16 %v5830_v38, %v5829_v44 }
 0xd94   : > { %v9369_v7 = vpop.eup %9368 }
 0xd95   : > { %5861 = vrot.lane.b32.xlu1 %v5844_v51, %s9546_s12  ;;  %v5657_v21 = vpop.xlane.xlu1 %5656  ;;  %v5828_v2 = vmul.f32 %v9369_v7, %v12534_v8  ;;  %v9371_v9 = vpop.eup %9370 }
 0xd96   : > { %9376 = vrcp.f32 %v5657_v21  ;;  %v5331_v57 = vmul.f32 %v9371_v9, %v13632_v29  ;;  %v5659_v40 = vpop.xlane.xlu0 %5658 }
 0xd97   : > { %v5843_v62 = vpack.c.bf16 %v5828_v2, %v5827_v10  ;;  %9378 = vrcp.f32 %v5651_v19 }
 0xd98   : > { %v9373_v28 = vpop.eup %9372 }
 0xd99   : > { %v5332_v14 = vmul.f32 %v9373_v28, %v13633_v41  ;;  %5859 = vrot.lane.b32.xlu0 %v5843_v62, %s9546_s12  ;;  %v5653_v33 = vpop.xlane.xlu1 %5652  ;;  %v9375_v22 = vpop.eup %9374 }
 0xd9a   : > { %9380 = vrcp.f32 %v5653_v33  ;;  %v5833_v18 = vmul.f32 %v9375_v22, %v12563_v26  ;;  %v5667_v30 = vpop.xlane.xlu0 %5666 }
 0xd9b   : > { %v5342_v24 = vpack.c.bf16 %v5332_v14, %v5331_v57  ;;  %9382 = vrcp.f32 %v5193_v61 }
 0xd9d   : > { %v5195_v48 = vpop.xlane.xlu1 %5194  ;;  %5350 = vst.msk [vmem:[#allocation2 + $0x88] sm:$0xff] %vm13634_vm12, %v5342_v24 }
 0xd9e   : > { %9384 = vrcp.f32 %v5195_v48  ;;  %v5673_v51 = vpop.xlane.xlu0 %5672 }
 0xd9f   : > { %9386 = vrcp.f32 %v5663_v25 }
 0xda0   : > { %v9377_v8 = vpop.eup %9376 }
 0xda1   : > { %v5665_v23 = vpop.xlane.xlu1 %5664  ;;  %v5834_v54 = vmul.f32 %v9377_v8, %v12573_v50  ;;  %v9379_v42 = vpop.eup %9378  ;;  %v13638_v8 = vld [vmem:[#allocation31_spill] sm:$0xff] }
 0xda2   : > { %9388 = vrcp.f32 %v5665_v23  ;;  %v5831_v12 = vmul.f32 %v9379_v42, %v12568_v6 }
 0xda3   : > { %v5846_v4 = vpack.c.bf16 %v5834_v54, %v5833_v18  ;;  %9390 = vrcp.f32 %v5659_v40  ;;  %v13639_v40 = vld [vmem:[#allocation30_spill] sm:$0xff] }
 0xda4   : > { %v9381_v63 = vpop.eup %9380 }
 0xda5   : > { %5865 = vrot.lane.b32.xlu1 %v5846_v4, %s9546_s12  ;;  %v5661_v43 = vpop.xlane.xlu1 %5660  ;;  %v5832_v3 = vmul.f32 %v9381_v63, %v12575_v20  ;;  %v9383_v58 = vpop.eup %9382 }
 0xda6   : > { %9392 = vrcp.f32 %v5661_v43  ;;  %v5333_v26 = vmul.f32 %v9383_v58, %v13635_v32  ;;  %v9432_v32 = vld [vmem:[%s12930_s3 + $0xe0] ss:$12 sps:$4 sm:$0xff]  }
 0xda7   : > { %v5845_v53 = vpack.c.bf16 %v5832_v3, %v5831_v12  ;;  %9394 = vrcp.f32 %v5667_v30 }
 0xda8   : > { %v9385_v46 = vpop.eup %9384  ;;  %9396 = vrcp.f32 %v5673_v51 }
 0xda9   : > { %v5334_v50 = vmul.f32 %v9385_v46, %v13636_v35  ;;  %5863 = vrot.lane.b32.xlu0 %v5845_v53, %s9546_s12  ;;  %v9387_v15 = vpop.eup %9386  ;;  %v5671_v11 = vpop.xlane.xlu1 %5670  ;;  %v9431_v53 = vld [vmem:[%s12930_s3 + $0x8] ss:$12 sps:$4 sm:$0xff]  }
 0xdaa   : > { %v5837_v16 = vmul.f32 %v9387_v15, %v12580_v1  ;;  %9398 = vrcp.f32 %v5671_v11  ;;  %v9435_v15 = vld [vmem:[%s12930_s3 + $0x38] ss:$12 sps:$4 sm:$0xff]  }
 0xdab   : > { %v5343_v39 = vpack.c.bf16 %v5334_v50, %v5333_v26  ;;  %v9433_v26 = vld [vmem:[%s12930_s3 + $0x20] ss:$12 sps:$4 sm:$0xff]   ;;  %v9434_v50 = vld [vmem:[%s12930_s3 + $0xf8] ss:$12 sps:$4 sm:$0xff]  }
 0xdac   : > { %v9389_v17 = vpop.eup %9388 }
 0xdad   : > { %v5838_v6 = vmul.f32 %v9389_v17, %v12595_v5  ;;  %5351 = vst.msk [vmem:[#allocation2 + $0xa0] sm:$0xff] %vm13637_vm10, %v5343_v39  ;;  %v9391_v20 = vpop.eup %9390  ;;  %v5669_v7 = vpop.xlane.xlu1 %5668  ;;  %v9436_v39 = vld [vmem:[%s12930_s3 + $0x110] ss:$12 sps:$4 sm:$0xff]  }
 0xdae   : > { %v5835_v61 = vmul.f32 %v9391_v20, %v12587_v47  ;;  %9400 = vrcp.f32 %v5669_v7  ;;  %v9437_v17 = vld [vmem:[%s12930_s3 + $0x50] ss:$12 sps:$4 sm:$0xff]   ;;  %v9441_v7 = vld [vmem:[%s12930_s3 + $0x80] ss:$12 sps:$4 sm:$0xff]  }
 0xdaf   : > { %v5848_v44 = vpack.c.bf16 %v5838_v6, %v5837_v16  ;;  %v9438_v6 = vld [vmem:[%s12930_s3 + $0x128] ss:$12 sps:$4 sm:$0xff]  }
 0xdb0   : > { %v9393_v38 = vpop.eup %9392 }
 0xdb1   : > { %v5836_v52 = vmul.f32 %v9393_v38, %v12599_v59  ;;  %v9395_v9 = vpop.eup %9394 }
 0xdb2   : > { %v9397_v47 = vpop.eup %9396 }
 0xdb3   : > { %v5847_v45 = vpack.c.bf16 %v5836_v52, %v5835_v61  ;;  %v9439_v52 = vld [vmem:[%s12930_s3 + $0x68] ss:$12 sps:$4 sm:$0xff]  }
 0xdb4   : > { %v9399_v59 = vpop.eup %9398 }
 0xdb8   : > { %v9401_v57 = vpop.eup %9400 }
 0xdba   : > { %v7657_v1 = vpop.f32.mrb[220].mxu1 }
 0xdbb   : > { %v7658_v19 = vpop.f32.mrb[221].mxu1 }
 0xdbc   : > { %v12650_v5 = vadd.f32 %v7658_v19, %v7657_v1  ;;  %v7660_v21 = vpop.f32.mrb[222].mxu1  ;;  %v9442_v1 = vld [vmem:[%s12930_s3 + $0x158] ss:$12 sps:$4 sm:$0xff]  }
 0xdbd   : > { %v7661_v10 = vpop.f32.mrb[223].mxu1  ;;  %v9443_v19 = vld [vmem:[%s12930_s3 + $0x98] ss:$12 sps:$4 sm:$0xff]  }
 0xdbe   : > { %v12652_v2 = vadd.f32 %v7661_v10, %v7660_v21  ;;  %v9444_v21 = vld [vmem:[%s12930_s3 + $0x170] ss:$12 sps:$4 sm:$0xff]  }
 0xdbf   : > { %v9445_v10 = vld [vmem:[%s12930_s3 + $0xb0] ss:$12 sps:$4 sm:$0xff]  }
 0xdc0   : > { %v8105_v62 = vpop.f32.mrb[188].mxu0 }
 0xdc1   : > { %v5796_v28 = vpop.f32.mrb[189].mxu0  ;;  %v5841_v41 = vmul.f32 %v9399_v59, %v8105_v62 }
 0xdc2   : > { %v8106_v29 = vpop.f32.mrb[190].mxu0  ;;  %v5839_v25 = vmul.f32 %v9395_v9, %v5796_v28 }
 0xdc3   : > { %v5842_v14 = vmul.f32 %v9397_v47, %v8106_v29  ;;  %v5799_v33 = vpop.f32.mrb[191].mxu0 }
 0xdc4   : > { %v5840_v24 = vmul.f32 %v9401_v57, %v5799_v33 }
 0xdc5   : > { %v5850_v48 = vpack.c.bf16 %v5842_v14, %v5841_v41  ;;  %v13640_v41 = vld [vmem:[#allocation29_spill] sm:$0xff] }
 0xdc6   : > { %v5849_v22 = vpack.c.bf16 %v5840_v24, %v5839_v25  ;;  %v13641_v25 = vld [vmem:[#allocation68_spill] sm:$0xff] }
 0xdc8   : > { %5196 = vadd.xlane.f32.xlu0 %v13638_v8 }
 0xdc9   : > { %5198 = vadd.xlane.f32.xlu1 %v13639_v40 }
 0xdda   : > { %5869 = vrot.lane.b32.xlu1 %v5848_v44, %s9546_s12 }
 0xdde   : > { %5867 = vrot.lane.b32.xlu0 %v5847_v45, %s9546_s12  ;;  %v9440_v45 = vld [vmem:[%s12930_s3 + $0x140] ss:$12 sps:$4 sm:$0xff]  }
 0xde2   : > { %5871 = vrot.lane.b32.xlu0 %v5849_v22, %s9546_s12 }
 0xde6   : > { %5873 = vrot.lane.b32.xlu0 %v5850_v48, %s9546_s12 }
 0xdef   : > { %v7663_v23 = vpop.f32.mrb[224].mxu1 }
 0xdf0   : > { %v7664_v18 = vpop.f32.mrb[225].mxu1 }
 0xdf1   : > { %v12660_v54 = vadd.f32 %v7664_v18, %v7663_v23  ;;  %v7666_v42 = vpop.f32.mrb[226].mxu1  ;;  %v6011_v18 = vld [vmem:[%s12931_s4] sm:$0x7] }
 0xdf2   : > { %v7667_v4 = vpop.f32.mrb[227].mxu1 }
 0xdf3   : > { %v12662_v63 = vadd.f32 %v7667_v4, %v7666_v42  ;;  %v13643_v42 = vld [vmem:[#allocation9_spill] sm:$0xff] }
 0xdf4   : > { %v13644_v4 = vsub.s32 0, %v13643_v42 }
 0xe07   : > { %v5862_v43 = vpop.permute.xlu1 %5861 }
 0xe08   : > { %5884 = vst.msk [vmem:[#allocation2 + $0x28] sm:$0xff] %vm3954_vm0, %v5862_v43  ;;  %v12743_v43 = vrot.slane %v6011_v18, %v13644_v4 }
 0xe0b   : > { %v5860_v12 = vpop.permute.xlu0 %5859 }
 0xe0c   : > { %5883 = vst.msk [vmem:[#allocation2 + $0x10] sm:$0xff] %vm3954_vm0, %v5860_v12 }
 0xe0f   : > { %v5896_v58 = vld [vmem:[#allocation2 + $0x28] sm:$0xff] }
 0xe13   : > { %v5893_v3 = vld [vmem:[#allocation2 + $0x10] sm:$0xff] }
 0xe14   : > { %6558 = vmatmul.mubr.bf16.vlgmr.msra.gmra.mrb[192].mxu0 %v5893_v3  ;;  %8123 = vmatprep.mubr.bf16.mxu1 %v5893_v3 }
 0xe15   : > { %8124 = vmatmul.mubr.bf16.vlgmr.msra.gmra.mrb[232].mxu1 %v5896_v58  ;;  %6567 = vmatprep.mubr.bf16.mxu0 %v13624_v27 }
 0xe16   : > { %7612 = vmatpush3.bf16.msra.mxu0 %v9431_v53 }
 0xe17   : > { %v5866_v46 = vpop.permute.xlu1 %5865  ;;  %7613 = vmatprep.subr.bf16.mxu0 %v9432_v32 }
 0xe18   : > { %5886 = vst.msk [vmem:[#allocation2 + $0x58] sm:$0xff] %vm3954_vm0, %v5866_v46 }
 0xe1a   : > { %7614 = vmatpush3.bf16.msra.mxu0 %v9433_v26 }
 0xe1b   : > { %v5864_v35 = vpop.permute.xlu0 %5863  ;;  %7615 = vmatprep.subr.bf16.mxu0 %v9434_v50 }
 0xe1c   : > { %5885 = vst.msk [vmem:[#allocation2 + $0x40] sm:$0xff] %vm3954_vm0, %v5864_v35  ;;  %6568 = vmatmul.mubr.bf16.gmra.mrb[196].mxu0 %v5896_v58 }
 0xe1d   : > { %6577 = vmatprep.mubr.bf16.mxu0 %v13624_v27 }
 0xe1e   : > { %7616 = vmatpush3.bf16.msra.mxu0 %v9435_v15 }
 0xe1f   : > { %7617 = vmatprep.subr.bf16.mxu0 %v9436_v39  ;;  %v5902_v20 = vld [vmem:[#allocation2 + $0x58] sm:$0xff] }
 0xe22   : > { %7618 = vmatpush3.bf16.msra.mxu0 %v9437_v17 }
 0xe23   : > { %v5899_v30 = vld [vmem:[#allocation2 + $0x40] sm:$0xff]  ;;  %7619 = vmatprep.subr.bf16.mxu0 %v9438_v6 }
 0xe24   : > { %v7669_v16 = vpop.f32.mrb[228].mxu1  ;;  %6578 = vmatmul.mubr.bf16.gmra.mrb[200].mxu0 %v5899_v30  ;;  %8127 = vmatprep.mubr.bf16.mxu1 %v5899_v30 }
 0xe25   : > { %v7670_v11 = vpop.f32.mrb[229].mxu1  ;;  %8128 = vmatmul.mubr.bf16.gmra.mrb[236].mxu1 %v5902_v20  ;;  %6587 = vmatprep.mubr.bf16.mxu0 %v13624_v27 }
 0xe26   : > { %v12694_v44 = vadd.f32 %v7670_v11, %v7669_v16  ;;  %v7672_v38 = vpop.f32.mrb[230].mxu1  ;;  %7620 = vmatpush3.bf16.msra.mxu0 %v9439_v52 }
 0xe27   : > { %v7673_v61 = vpop.f32.mrb[231].mxu1  ;;  %7621 = vmatprep.subr.bf16.mxu0 %v9440_v45 }
 0xe28   : > { %v12700_v51 = vadd.f32 %v7673_v61, %v7672_v38  ;;  %v13646_v38 = vsub.s32 2, %v13643_v42 }
 0xe2a   : > { %7622 = vmatpush3.bf16.msra.mxu0 %v9441_v7  ;;  %v12776_v61 = vrot.slane %v6011_v18, %v13646_v38 }
 0xe2b   : > { %7623 = vmatprep.subr.bf16.mxu0 %v9442_v1 }
 0xe2c   : > { %6588 = vmatmul.mubr.bf16.gmra.mrb[204].mxu0 %v5902_v20  ;;  %v6697_v45 = vadd.f32 %v12480_v34, %v12776_v61  ;;  %v6700_v34 = vadd.f32 %v12482_v0, %v12776_v61 }
 0xe2d   : > { %6597 = vmatprep.mubr.bf16.mxu0 %v13624_v27 }
 0xe2e   : > { %7624 = vmatpush3.bf16.msra.mxu0 %v9443_v19 }
 0xe2f   : > { %7625 = vmatprep.subr.bf16.mxu0 %v9444_v21  ;;  %v6689_v21 = vadd.f32 %v12392_v31, %v12776_v61  ;;  %v6692_v31 = vadd.f32 %v12394_v49, %v12776_v61 }
 0xe32   : > { %7626 = vmatpush3.bf16.msra.mxu0 %v9445_v10 }
 0xe55   : > { %v5197_v9 = vpop.xlane.xlu0 %5196 }
 0xe56   : > { %9402 = vrcp.f32 %v5197_v9  ;;  %v5199_v62 = vpop.xlane.xlu1 %5198 }
 0xe57   : > { %9404 = vrcp.f32 %v5199_v62 }
 0xe59   : > { %v5868_v47 = vpop.permute.xlu0 %5867 }
 0xe5a   : > { %5887 = vst.msk [vmem:[#allocation2 + $0x70] sm:$0xff] %vm3954_vm0, %v5868_v47  ;;  %v5870_v28 = vpop.permute.xlu1 %5869 }
 0xe5b   : > { %5888 = vst.msk [vmem:[#allocation2 + $0x88] sm:$0xff] %vm3954_vm0, %v5870_v28 }
 0xe5d   : > { %v5872_v59 = vpop.permute.xlu0 %5871 }
 0xe5e   : > { %5889 = vst.msk [vmem:[#allocation2 + $0xa0] sm:$0xff] %vm3954_vm0, %v5872_v59 }
 0xe60   : > { %v9403_v29 = vpop.eup %9402 }
 0xe61   : > { %v9405_v57 = vpop.eup %9404  ;;  %v5335_v14 = vmul.f32 %v9403_v29, %v13640_v41  ;;  %v5905_v33 = vld [vmem:[#allocation2 + $0x70] sm:$0xff]  ;;  %v5874_v40 = vpop.permute.xlu0 %5873 }
 0xe62   : > { %v5336_v24 = vmul.f32 %v9405_v57, %v13641_v25  ;;  %6598 = vmatmul.mubr.bf16.gmra.mrb[208].mxu0 %v5905_v33  ;;  %8131 = vmatprep.mubr.bf16.mxu1 %v5905_v33  ;;  %v5908_v48 = vld [vmem:[#allocation2 + $0x88] sm:$0xff] }
 0xe63   : > { %8132 = vmatmul.mubr.bf16.gmra.mrb[240].mxu1 %v5908_v48  ;;  %6607 = vmatprep.mubr.bf16.mxu0 %v13624_v27 }
 0xe64   : > { %v5344_v22 = vpack.c.bf16 %v5336_v24, %v5335_v14 }
 0xe65   : > { %v5911_v8 = vld [vmem:[#allocation2 + $0xa0] sm:$0xff] }
 0xe66   : > { %5352 = vst.msk [vmem:[#allocation2 + $0xb8] sm:$0xff] %vm13642_vm1, %v5344_v22  ;;  %8135 = vmatprep.mubr.bf16.mxu1 %v5911_v8 }
 0xe67   : > { %5890 = vst.msk [vmem:[#allocation2 + $0xb8] sm:$0xff] %vm3954_vm0, %v5874_v40 }
 0xe6a   : > { %6608 = vmatmul.mubr.bf16.gmra.mrb[212].mxu0 %v5908_v48 }
 0xe6b   : > { %6617 = vmatprep.mubr.bf16.mxu0 %v13624_v27 }
 0xe6e   : > { %v5914_v23 = vld [vmem:[#allocation2 + $0xb8] sm:$0xff] }
 0xe6f   : > { %8136 = vmatmul.mubr.bf16.gmra.mrb[244].mxu1 %v5914_v23 }
 0xe72   : > { %6618 = vmatmul.mubr.bf16.gmra.mrb[216].mxu0 %v5911_v8 }
 0xe73   : > { %6627 = vmatprep.mubr.bf16.mxu0 %v13624_v27  ;;  %v13645_v27 = vsub.s32 1, %v13643_v42  ;;  %v6713_v42 = vadd.f32 %v12650_v5, %v12776_v61  ;;  %v6716_v5 = vadd.f32 %v12652_v2, %v12776_v61 }
 0xe7a   : > { %6628 = vmatmul.mubr.bf16.gmra.mrb[220].mxu0 %v5914_v23 }
 0xe7b   : > { %6670 = vmatprep.mubr.bf16.mxu0 %v12465_v60  ;;  %v12747_v60 = vrot.slane %v6011_v18, %v13645_v27 }
 0xe82   : > { %6671 = vmatmul.mubr.bf16.vlgmr.msra.gmra.mrb[224].mxu0 %v12472_v37 }
 0xe83   : > { %6678 = vmatprep.mubr.bf16.mxu0 %v12475_v55 }
 0xe8a   : > { %6679 = vmatmul.mubr.bf16.gmra.mrb[228].mxu0 %v12486_v36 }
 0xee7   : > { %v6559_v37 = vpop.f32.mrb[192].mxu0 }
 0xee8   : > { %v8315_v55 = vadd.f32 %v6559_v37, %v12743_v43  ;;  %v6561_v12 = vpop.f32.mrb[193].mxu0  ;;  %v12750_v36 = vpop.f32.mrb[232].mxu1 }
 0xee9   : > { %v8316_v3 = vadd.f32 %v6561_v12, %v12747_v60  ;;  %v6563_v58 = vpop.f32.mrb[194].mxu0  ;;  %v12753_v53 = vpop.f32.mrb[233].mxu1 }
 0xeea   : > { %6832 = vst [vmem:[%s12755_s11] sm:$0xff] %v8315_v55  ;;  %v8317_v46 = vadd.f32 %v6563_v58, %v12743_v43  ;;  %v6565_v32 = vpop.f32.mrb[195].mxu0  ;;  %v12759_v26 = vpop.f32.mrb[234].mxu1  ;;  %v6705_v55 = vadd.f32 %v12582_v13, %v12776_v61  ;;  %v6708_v13 = vadd.f32 %v12597_v56, %v12776_v61 }
 0xeeb   : > { %6833 = vst [vmem:[%s12755_s11 + $0x8] sm:$0xff] %v8316_v3  ;;  %v8318_v35 = vadd.f32 %v6565_v32, %v12747_v60  ;;  %v12763_v50 = vpop.f32.mrb[235].mxu1 }
 0xeec   : > { %6835 = vst [vmem:[%s12755_s11 + $0x18] sm:$0xff] %v8317_v46 }
 0xeed   : > { %6836 = vst [vmem:[%s12755_s11 + $0x20] sm:$0xff] %v8318_v35 }
 0xeef   : > { %v6569_v15 = vpop.f32.mrb[196].mxu0 }
 0xef0   : > { %v8319_v39 = vadd.f32 %v6569_v15, %v12743_v43  ;;  %v6571_v17 = vpop.f32.mrb[197].mxu0 }
 0xef1   : > { %v8320_v30 = vadd.f32 %v6571_v17, %v12747_v60  ;;  %v6573_v16 = vpop.f32.mrb[198].mxu0 }
 0xef2   : > { %6838 = vst [vmem:[%s12755_s11 + $0x30] sm:$0xff] %v8319_v39  ;;  %v8321_v6 = vadd.f32 %v6573_v16, %v12743_v43  ;;  %v6575_v20 = vpop.f32.mrb[199].mxu0 }
 0xef3   : > { %6839 = vst [vmem:[%s12755_s11 + $0x38] sm:$0xff] %v8320_v30  ;;  %v8322_v11 = vadd.f32 %v6575_v20, %v12747_v60 }
 0xef4   : > { %6841 = vst [vmem:[%s12755_s11 + $0x48] sm:$0xff] %v8321_v6 }
 0xef5   : > { %6842 = vst [vmem:[%s12755_s11 + $0x50] sm:$0xff] %v8322_v11 }
 0xef7   : > { %v6579_v52 = vpop.f32.mrb[200].mxu0 }
 0xef8   : > { %v8323_v7 = vadd.f32 %v6579_v52, %v12743_v43  ;;  %v6581_v1 = vpop.f32.mrb[201].mxu0  ;;  %v8129_v19 = vpop.f32.mrb[236].mxu1 }
 0xef9   : > { %v8324_v10 = vadd.f32 %v6581_v1, %v12747_v60  ;;  %v6794_v9 = vadd.f32 %v8129_v19, %v6697_v45  ;;  %v6583_v62 = vpop.f32.mrb[202].mxu0  ;;  %v6785_v47 = vpop.f32.mrb[237].mxu1  ;;  %v6729_v1 = vadd.f32 %v12694_v44, %v12776_v61 }
 0xefa   : > { %6844 = vst [vmem:[%s12755_s11 + $0x60] sm:$0xff] %v8323_v7  ;;  %v8325_v28 = vadd.f32 %v6583_v62, %v12743_v43  ;;  %v6786_v59 = vadd.f32 %v6785_v47, %v6689_v21  ;;  %v6585_v29 = vpop.f32.mrb[203].mxu0  ;;  %v8130_v57 = vpop.f32.mrb[238].mxu1  ;;  %v6721_v21 = vadd.f32 %v12660_v54, %v12776_v61  ;;  %v6732_v62 = vadd.f32 %v12700_v51, %v12776_v61 }
 0xefb   : > { %6845 = vst [vmem:[%s12755_s11 + $0x68] sm:$0xff] %v8324_v10  ;;  %6852 = vst [vmem:[%s12755_s11 + $0xa0] sm:$0xff] %v6794_v9  ;;  %v8326_v41 = vadd.f32 %v6585_v29, %v12747_v60  ;;  %v6797_v14 = vadd.f32 %v8130_v57, %v6700_v34  ;;  %v6788_v33 = vpop.f32.mrb[239].mxu1 }
 0xefc   : > { %6847 = vst [vmem:[%s12755_s11 + $0x78] sm:$0xff] %v8325_v28  ;;  %6846 = vst [vmem:[%s12755_s11 + $0x70] sm:$0xff] %v6786_v59  ;;  %v6789_v0 = vadd.f32 %v6788_v33, %v6692_v31  ;;  %v6724_v28 = vadd.f32 %v12662_v63, %v12776_v61 }
 0xefd   : > { %6848 = vst [vmem:[%s12755_s11 + $0x80] sm:$0xff] %v8326_v41  ;;  %6855 = vst [vmem:[%s12755_s11 + $0xb8] sm:$0xff] %v6797_v14 }
 0xefe   : > { %6849 = vst [vmem:[%s12755_s11 + $0x88] sm:$0xff] %v6789_v0 }
 0xeff   : > { %v6589_v25 = vpop.f32.mrb[204].mxu0 }
 0xf00   : > { %v8327_v24 = vadd.f32 %v6589_v25, %v12743_v43  ;;  %v6591_v49 = vpop.f32.mrb[205].mxu0 }
 0xf01   : > { %v8328_v48 = vadd.f32 %v6591_v49, %v12747_v60  ;;  %v6593_v22 = vpop.f32.mrb[206].mxu0 }
 0xf02   : > { %6850 = vst [vmem:[%s12755_s11 + $0x90] sm:$0xff] %v8327_v24  ;;  %v8329_v8 = vadd.f32 %v6593_v22, %v12743_v43  ;;  %v6595_v40 = vpop.f32.mrb[207].mxu0 }
 0xf03   : > { %6851 = vst [vmem:[%s12755_s11 + $0x98] sm:$0xff] %v8328_v48  ;;  %v8330_v23 = vadd.f32 %v6595_v40, %v12747_v60 }
 0xf04   : > { %6853 = vst [vmem:[%s12755_s11 + $0xa8] sm:$0xff] %v8329_v8 }
 0xf05   : > { %6854 = vst [vmem:[%s12755_s11 + $0xb0] sm:$0xff] %v8330_v23 }
 0xf35   : > { %v6599_v18 = vpop.f32.mrb[208].mxu0 }
 0xf36   : > { %v8331_v4 = vadd.f32 %v6599_v18, %v12743_v43  ;;  %v6601_v27 = vpop.f32.mrb[209].mxu0  ;;  %v8133_v37 = vpop.f32.mrb[240].mxu1 }
 0xf37   : > { %v8332_v12 = vadd.f32 %v6601_v27, %v12747_v60  ;;  %v6810_v3 = vadd.f32 %v8133_v37, %v6713_v42  ;;  %v6603_v58 = vpop.f32.mrb[210].mxu0  ;;  %v6801_v46 = vpop.f32.mrb[241].mxu1 }
 0xf38   : > { %6856 = vst [vmem:[%s12755_s11 + $0xc0] sm:$0xff] %v8331_v4  ;;  %v8333_v32 = vadd.f32 %v6603_v58, %v12743_v43  ;;  %v6802_v35 = vadd.f32 %v6801_v46, %v6705_v55  ;;  %v6605_v15 = vpop.f32.mrb[211].mxu0  ;;  %v8134_v39 = vpop.f32.mrb[242].mxu1 }
 0xf39   : > { %6857 = vst [vmem:[%s12755_s11 + $0xc8] sm:$0xff] %v8332_v12  ;;  %6864 = vst [vmem:[%s12755_s11 + $0x100] sm:$0xff] %v6810_v3  ;;  %v8334_v17 = vadd.f32 %v6605_v15, %v12747_v60  ;;  %v6813_v30 = vadd.f32 %v8134_v39, %v6716_v5  ;;  %v6804_v16 = vpop.f32.mrb[243].mxu1 }
 0xf3a   : > { %6859 = vst [vmem:[%s12755_s11 + $0xd8] sm:$0xff] %v8333_v32  ;;  %6858 = vst [vmem:[%s12755_s11 + $0xd0] sm:$0xff] %v6802_v35  ;;  %v6805_v2 = vadd.f32 %v6804_v16, %v6708_v13 }
 0xf3b   : > { %6860 = vst [vmem:[%s12755_s11 + $0xe0] sm:$0xff] %v8334_v17  ;;  %6867 = vst [vmem:[%s12755_s11 + $0x118] sm:$0xff] %v6813_v30 }
 0xf3c   : > { %6861 = vst [vmem:[%s12755_s11 + $0xe8] sm:$0xff] %v6805_v2 }
 0xf3d   : > { %v6609_v6 = vpop.f32.mrb[212].mxu0 }
 0xf3e   : > { %v8335_v20 = vadd.f32 %v6609_v6, %v12743_v43  ;;  %v6611_v56 = vpop.f32.mrb[213].mxu0 }
 0xf3f   : > { %v8336_v11 = vadd.f32 %v6611_v56, %v12747_v60  ;;  %v6613_v38 = vpop.f32.mrb[214].mxu0 }
 0xf40   : > { %6862 = vst [vmem:[%s12755_s11 + $0xf0] sm:$0xff] %v8335_v20  ;;  %v8337_v52 = vadd.f32 %v6613_v38, %v12743_v43  ;;  %v6615_v45 = vpop.f32.mrb[215].mxu0 }
 0xf41   : > { %6863 = vst [vmem:[%s12755_s11 + $0xf8] sm:$0xff] %v8336_v11  ;;  %v8338_v7 = vadd.f32 %v6615_v45, %v12747_v60 }
 0xf42   : > { %6865 = vst [vmem:[%s12755_s11 + $0x108] sm:$0xff] %v8337_v52  ;;  %v8137_v19 = vpop.f32.mrb[244].mxu1 }
 0xf43   : > { %6866 = vst [vmem:[%s12755_s11 + $0x110] sm:$0xff] %v8338_v7  ;;  %v6826_v10 = vadd.f32 %v8137_v19, %v6729_v1  ;;  %v6817_v9 = vpop.f32.mrb[245].mxu1 }
 0xf44   : > { %v6818_v47 = vadd.f32 %v6817_v9, %v6721_v21  ;;  %v8138_v34 = vpop.f32.mrb[246].mxu1 }
 0xf45   : > { %6876 = vst [vmem:[%s12755_s11 + $0x160] sm:$0xff] %v6826_v10  ;;  %v6829_v44 = vadd.f32 %v8138_v34, %v6732_v62  ;;  %v6619_v59 = vpop.f32.mrb[216].mxu0  ;;  %v6820_v54 = vpop.f32.mrb[247].mxu1 }
 0xf46   : > { %6870 = vst [vmem:[%s12755_s11 + $0x130] sm:$0xff] %v6818_v47  ;;  %v8339_v29 = vadd.f32 %v6619_v59, %v12743_v43  ;;  %v6821_v57 = vadd.f32 %v6820_v54, %v6724_v28  ;;  %v6621_v31 = vpop.f32.mrb[217].mxu0 }
 0xf47   : > { %6879 = vst [vmem:[%s12755_s11 + $0x178] sm:$0xff] %v6829_v44  ;;  %v8340_v51 = vadd.f32 %v6621_v31, %v12747_v60  ;;  %v6623_v41 = vpop.f32.mrb[218].mxu0 }
 0xf48   : > { %6868 = vst [vmem:[%s12755_s11 + $0x120] sm:$0xff] %v8339_v29  ;;  %6873 = vst [vmem:[%s12755_s11 + $0x148] sm:$0xff] %v6821_v57  ;;  %v8341_v63 = vadd.f32 %v6623_v41, %v12743_v43  ;;  %v6625_v14 = vpop.f32.mrb[219].mxu0 }
 0xf49   : > { %6869 = vst [vmem:[%s12755_s11 + $0x128] sm:$0xff] %v8340_v51  ;;  %v8342_v33 = vadd.f32 %v6625_v14, %v12747_v60 }
 0xf4a   : > { %6871 = vst [vmem:[%s12755_s11 + $0x138] sm:$0xff] %v8341_v63 }
 0xf4b   : > { %6872 = vst [vmem:[%s12755_s11 + $0x140] sm:$0xff] %v8342_v33 }
 0xf4d   : > { %v6629_v0 = vpop.f32.mrb[220].mxu0 }
 0xf4e   : > { %v8343_v25 = vadd.f32 %v6629_v0, %v12743_v43  ;;  %v6631_v24 = vpop.f32.mrb[221].mxu0 }
 0xf4f   : > { %v8344_v49 = vadd.f32 %v6631_v24, %v12747_v60  ;;  %v6633_v48 = vpop.f32.mrb[222].mxu0 }
 0xf50   : > { %6874 = vst [vmem:[%s12755_s11 + $0x150] sm:$0xff] %v8343_v25  ;;  %v8345_v22 = vadd.f32 %v6633_v48, %v12743_v43  ;;  %v6635_v8 = vpop.f32.mrb[223].mxu0 }
 0xf51   : > { %6875 = vst [vmem:[%s12755_s11 + $0x158] sm:$0xff] %v8344_v49  ;;  %v8346_v40 = vadd.f32 %v6635_v8, %v12747_v60 }
 0xf52   : > { %6877 = vst [vmem:[%s12755_s11 + $0x168] sm:$0xff] %v8345_v22 }
 0xf53   : > { %6878 = vst [vmem:[%s12755_s11 + $0x170] sm:$0xff] %v8346_v40 }
 0xf55   : > { %v7627_v23 = vpop.f32.mrb[224].mxu0 }
 0xf56   : > { %v7628_v18 = vpop.f32.mrb[225].mxu0 }
 0xf57   : > { %v7629_v42 = vadd.f32 %v7628_v18, %v7627_v23  ;;  %v7630_v4 = vpop.f32.mrb[226].mxu0 }
 0xf58   : > { %v7631_v27 = vpop.f32.mrb[227].mxu0 }
 0xf59   : > { %v6673_v37 = vadd.f32 %v7629_v42, %v12776_v61  ;;  %v7632_v55 = vadd.f32 %v7631_v27, %v7630_v4 }
 0xf5b   : > { %v6770_v12 = vadd.f32 %v12753_v53, %v6673_v37  ;;  %v6676_v43 = vadd.f32 %v7632_v55, %v12776_v61 }
 0xf5d   : > { %6834 = vst [vmem:[%s12755_s11 + $0x10] sm:$0xff] %v6770_v12  ;;  %v6773_v60 = vadd.f32 %v12763_v50, %v6676_v43  ;;  %v7633_v3 = vpop.f32.mrb[228].mxu0 }
 0xf5e   : > { %v7634_v58 = vpop.f32.mrb[229].mxu0 }
 0xf5f   : > { %6837 = vst [vmem:[%s12755_s11 + $0x28] sm:$0xff] %v6773_v60  ;;  %v7635_v46 = vadd.f32 %v7634_v58, %v7633_v3  ;;  %v7636_v5 = vpop.f32.mrb[230].mxu0 }
 0xf60   : > { %v7637_v32 = vpop.f32.mrb[231].mxu0 }
 0xf61   : > { %v6681_v35 = vadd.f32 %v7635_v46, %v12776_v61  ;;  %v7638_v15 = vadd.f32 %v7637_v32, %v7636_v5 }
 0xf63   : > { %v6778_v53 = vadd.f32 %v12750_v36, %v6681_v35  ;;  %v6684_v39 = vadd.f32 %v7638_v15, %v12776_v61 }
 0xf65   : > { %6840 = vst [vmem:[%s12755_s11 + $0x40] sm:$0xff] %v6778_v53  ;;  %v6781_v50 = vadd.f32 %v12759_v26, %v6684_v39 }
 0xf67   : > { %6843 = vst [vmem:[%s12755_s11 + $0x58] sm:$0xff] %v6781_v50 }
 0xf68   : > { %9487 = shalt.err (!%p9484_p7)
}
 0xf69   : > { %s9488_s6 = scalar_lea.hbm %s12877_s17, 6144  ;;  %s9492_s9 = scalar_lea.hbm %s12932_s5, 12288 }
 0xf6a   : > { %p9489_p8 = scmp.ne.s32.totalorder %s12877_s17, %s9488_s6  ;;  %p9493_p1 = scmp.lt.u32.totalorder %s12877_s17, %s12932_s5 }
 0xf6b   : > { %p9494_p0 = scmp.lt.u32.totalorder %s9492_s9, %s9488_s6  ;;  %p9496_p6 = scmp.lt.u32.totalorder %s9488_s6, %s12877_s17 }
 0xf6c   : > { %p9490_p11 = pnand %p9489_p8, %p13647_p9 }
 0xf6d   : > { %p9495_p5 = por %p9494_p0, %p9493_p1 }
 0xf6e   : > { %p9491_p13 = pneg %p9490_p11 }
 0xf6f   : > { %p9497_p10 = por %p9496_p6, %p9495_p5 }
 0xf71   : > { %p9498_p12 = pnand %p9497_p10, %p9491_p13 }
 0xf73   : > { %9501 = shalt.err (!%p9498_p12)
}
 0xf74   : > { %s9548_s11 = smov 384   ;;  %s9549_s13 = smov 24  }
 0xf75   : > { %8530 = dma.vmem_to_hbm [thread:$0]  (%p13647_p9), %s12879_s14, 6144, %s12877_s17, %s12886_s22, %s9548_s11, %s9548_s11, %s9549_s13  }
 0xf76 PF: > { %p8542_p2 = scmp.ge.s32.totalorder %s9540_s21, 2  ;;  %s6909_s15 = sand.u32 1, %s9528_s18  }
 0xf77   : > { %p13648_p3 = scmp.ne.s32.totalorder %s13084_s29, 0  ;;  %s6910_s16 = scalar_lea.sflag [#allocation5], %s6909_s15 }
 0xf79   : > { %p8537_p4 = pnand %p8542_p2, %p13648_p3 }
 0xf7b   : > { %9523 = dma.done.wait (!%p8537_p4), %s6910_s16, 6144  }
 0xf7c   : > { %9525 = vsyncadd (!%p8537_p4), %s6910_s16, 4294961152  ;;  %p16_p7 = scmp.ge.s32.totalorder %s9605_s24, 4   ;;  %s13649_s18 = smov %s9532_s19 }
 0xf7d   : > { %s13650_s19 = smov %s9536_s20  ;;  %s13651_s20 = smov %s9616_s27 }
 0xf7e   : > { %s13652_s21 = smov %s9605_s24  ;;  %18 = sbr.rel (!%p16_p7) target bundleno = 4 (0x4), region = 80 }
 0xf85   :  { %6915 = vsyncpa [#allocation4], 1 }
 0xf86   :  { %6917 = vsyncpa [#allocation4 + $0x1], 1 }
 0xf87   :  { %6918 = vsyncpa [#allocation5], 1 }
 0xf88   :  { %6920 = vsyncpa [#allocation5 + $0x1], 1 }

</bundles_post_ra>
